<compile_context>
chip_gen: v7x
topology: tpu7x:2x2x1
jax: 0.10.0
libtpu: 0.0.40
codegen_flags: <defaults>
</compile_context>

<pallas_src>
import jax
import jax.numpy as jnp
import numpy as np
from jax.experimental import pallas as pl
from jax.experimental.pallas import tpu as pltpu

# Exact-f32 matmuls/convs on both the kernel path and the XLA reference so the
# end-to-end check can keep the tight 1e-3 tolerance.  (Per-dot HIGH precision
# would shave MXU passes on v5e but needs the tolerance re-validated against a
# float64 reference; the MXU is nowhere near the binding unit at this size.)
jax.config.update("jax_default_matmul_precision", "highest")

EPS = 1e-5
K = 5              # conv kernel size (both convs)
C = 10             # channels: conv1 out, conv2 in/out, fc out
LANE = 128         # lane-padding target for the narrow (80-/10-wide) outputs
MAX_BATCH_TILE = 128   # per-grid-step batch tile cap (sized for v7x 64 MiB VMEM)


# ---------------------------------------------------------------------------
# Fused kernel: conv1+relu+pool -> conv2+relu+pool -> flatten+fc1 (pre-BN z)
# for one batch tile.  Activation layout: feature map h[n, y, x, c] lives as a
# matrix with rows (n, y) and lanes (x*C + c), so both convolutions are
# accumulated per-kh MXU dots against precomputed band matrices and the 2x2
# max-pools are an in-register lane max (W) plus a row-pair max (H).  Pool
# "garbage" lanes (odd columns, tail pad) are killed by zero rows in the next
# layer's band matrix, so nothing is ever compacted or truncated on lanes.
# ---------------------------------------------------------------------------
def _fused_cnn_kernel(x_ref, w1b_ref, b1_ref, w2b_ref, b2_ref, wf_ref, bf_ref,
                      z_ref):
    B, Hin, Win = x_ref.shape            # (B, 28, 28)
    Ho1 = Hin - K + 1                    # 24
    Hp1 = Ho1 // 2                       # 12
    Ho2 = Hp1 - K + 1                    # 8
    Hp2 = Ho2 // 2                       # 4
    W1 = w1b_ref.shape[2]                # 240 = 24*C   conv1 lane width
    L1 = w2b_ref.shape[1]                # 230 = W1 - C pooled conv1 lane width
    W2 = w2b_ref.shape[2]                # 128          conv2 lane width (padded from 80)

    x = x_ref[...]                                                   # (B, 28, 28)

    # ---- conv1 + bias + ReLU: 5 accumulated per-kh MXU dots (no im2col concat)
    y1 = jnp.dot(x[:, 0:Ho1, :].reshape(B * Ho1, Win), w1b_ref[0],
                 preferred_element_type=jnp.float32)
    for kh in range(1, K):
        y1 = y1 + jnp.dot(x[:, kh:kh + Ho1, :].reshape(B * Ho1, Win),
                          w1b_ref[kh], preferred_element_type=jnp.float32)
    y1 = jnp.maximum(y1 + b1_ref[...], 0.0)                          # (B*24, 240)

    # ---- 2x2 max-pool: W via lane-shifted max, H via row-pair max ----------
    y1 = jnp.maximum(y1[:, :L1], y1[:, C:])                          # (B*24, 230)
    p1 = jnp.max(y1.reshape(B, Hp1, 2, L1), axis=2)                  # (B, 12, 230)
    # pooled conv1 value (hp, wp, ci) sits at p1[n, hp, 2*wp*C + ci]

    # ---- conv2 + bias + ReLU: 5 accumulated per-kh MXU dots -----------------
    y2 = jnp.dot(p1[:, 0:Ho2, :].reshape(B * Ho2, L1), w2b_ref[0],
                 preferred_element_type=jnp.float32)
    for kh in range(1, K):
        y2 = y2 + jnp.dot(p1[:, kh:kh + Ho2, :].reshape(B * Ho2, L1),
                          w2b_ref[kh], preferred_element_type=jnp.float32)
    y2 = jnp.maximum(y2 + b2_ref[...], 0.0)                          # (B*8, 128)

    # ---- 2x2 max-pool: W shift via one XLU roll (lanes stay 128-dense) ------
    y2 = jnp.maximum(y2, pltpu.roll(y2, shift=W2 - C, axis=1))       # (B*8, 128)
    p2 = jnp.max(y2.reshape(B, Hp2, 2, W2), axis=2)                  # (B, 4, 128)
    # pooled conv2 value (hp, wp, c) sits at p2[n, hp, 2*wp*C + c]

    # ---- flatten + fc1: 4 per-row dots (flatten order + transpose folded) ---
    z = jnp.dot(p2[:, 0, :], wf_ref[0], preferred_element_type=jnp.float32)
    for hp in range(1, Hp2):
        z = z + jnp.dot(p2[:, hp, :], wf_ref[hp],
                        preferred_element_type=jnp.float32)
    z_ref[...] = z + bf_ref[...]                                     # (B, 128)


def _const_spec(a):
    """Full-array block with a constant index map (stays VMEM-resident)."""
    nd = a.ndim
    return pl.BlockSpec(a.shape, lambda i: (0,) * nd)


def torch_cnn_forward(x_nchw, kp):
    """Full forward pass: torch-facing NCHW input -> (N, 10) output."""
    if x_nchw.ndim != 4 or x_nchw.shape[1:] != (1, 28, 28):
        raise ValueError(
            f"band matrices are built for 1x28x28 / k=5 inputs, got {x_nchw.shape}")
    n = x_nchw.shape[0]
    x = jnp.squeeze(x_nchw, axis=1)                     # (N, 28, 28), lane-dense

    # Batch is a parallel grid axis.  Tile cap 128 keeps per-step activations
    # well under v7x's 64 MiB VMEM (and fills the MXU rows); v5e/v6e's 128 MiB
    # would allow larger tiles, but the weights stay resident either way.
    b = n if n <= MAX_BATCH_TILE else MAX_BATCH_TILE
    weights = (kp["w1b"], kp["b1t"], kp["w2b"], kp["b2t"], kp["wf"], kp["bf"])

    z = pl.pallas_call(
        _fused_cnn_kernel,
        out_shape=jax.ShapeDtypeStruct((n, LANE), jnp.float32),
        grid=(pl.cdiv(n, b),),
        in_specs=[pl.BlockSpec((b, 28, 28), lambda i: (i, 0, 0))]
                 + [_const_spec(w) for w in weights],
        out_specs=pl.BlockSpec((b, LANE), lambda i: (i, 0)),
        compiler_params=pltpu.CompilerParams(dimension_semantics=("parallel",)),
    )(x, *weights)

    # BatchNorm1d (training-mode batch statistics), hoisted out of the kernel
    # (per review) because the stats couple all batch tiles; it is a trivial
    # (N, 10) op.  The lane-padded kernel output is sliced back to 10 here.
    # TODO(synk): running_mean/running_var buffer updates (training-mode
    # bookkeeping) are not emitted; only the normalized forward output is.
    zc = z[:, :C]
    mean = jnp.mean(zc, axis=0, keepdims=True)
    var = jnp.mean((zc - mean) ** 2, axis=0, keepdims=True)   # biased (torch train)
    return kp["gamma"] * (zc - mean) * jax.lax.rsqrt(var + EPS) + kp["beta"]


# ---------------------------------------------------------------------------
# One-time host-side repack of PyTorch-layout weights into the band /
# flatten-folded, lane-padded tensors the fused kernel consumes.
# ---------------------------------------------------------------------------
def prepare_params(p):
    w1 = np.asarray(p["w1"], np.float32)      # (10, 1, 5, 5)   OIHW
    b1 = np.asarray(p["b1"], np.float32)      # (10,)
    w2 = np.asarray(p["w2"], np.float32)      # (10, 10, 5, 5)  OIHW
    b2 = np.asarray(p["b2"], np.float32)      # (10,)
    wfc = np.asarray(p["wfc"], np.float32)    # (10, 160) = (o, c*16 + h*4 + w)
    bfc = np.asarray(p["bfc"], np.float32)

    Hin = Win = 28
    Ho1 = Wo1 = Hin - K + 1          # 24
    Hp1 = Ho1 // 2                   # 12
    Ho2 = Wo2 = Hp1 - K + 1          # 8
    Hp2 = Wp2 = Ho2 // 2             # 4
    W1 = Wo1 * C                     # 240  conv1 lane width
    L1 = W1 - C                      # 230  pooled conv1 lane width

    # conv1 band tensor: one (Win, W1) slab per kh;
    # w1b[kh, wo + kw, wo*C + co] = w1[co, 0, kh, kw]
    w1b = np.zeros((K, Win, W1), np.float32)
    for kh in range(K):
        for kw in range(K):
            for wo in range(Wo1):
                w1b[kh, wo + kw, wo * C:(wo + 1) * C] = w1[:, 0, kh, kw]

    # conv2 band tensor, consuming the W-pooled (not lane-compacted) conv1
    # activations: pooled (wp, ci) lives at lane 2*wp*C + ci; all other rows
    # stay zero so the pool "garbage" lanes contribute nothing.  Output lanes
    # zero-padded 80 -> 128 for dense MXU result tiles / stores.
    w2b = np.zeros((K, L1, LANE), np.float32)
    for kh in range(K):
        for kw in range(K):
            for ci in range(C):
                for wo in range(Wo2):
                    w2b[kh, 2 * (wo + kw) * C + ci,
                        wo * C:(wo + 1) * C] = w2[:, ci, kh, kw]

    # fc1 weight with torch Flatten (c, h, w) ordering and the transpose
    # folded in: one (128, 128) slab per pooled row hp; rows for garbage lanes
    # stay zero, output lanes padded 10 -> 128.
    wf = np.zeros((Hp2, LANE, LANE), np.float32)
    for hp in range(Hp2):
        for wp in range(Wp2):
            for c in range(C):
                wf[hp, 2 * wp * C + c, :C] = wfc[:, c * (Hp2 * Wp2) + hp * Wp2 + wp]

    b1t = np.tile(b1, Wo1)[None, :]                       # (1, 240)
    b2t = np.zeros((1, LANE), np.float32)
    b2t[0, :Wo2 * C] = np.tile(b2, Wo2)                   # (1, 128), zero-padded
    bft = np.zeros((1, LANE), np.float32)
    bft[0, :C] = bfc                                      # (1, 128), zero-padded

    return {
        "w1b": jnp.asarray(w1b),                              # (5, 28, 240)
        "b1t": jnp.asarray(b1t),                              # (1, 240)
        "w2b": jnp.asarray(w2b),                              # (5, 230, 128)
        "b2t": jnp.asarray(b2t),                              # (1, 128)
        "wf": jnp.asarray(wf),                                # (4, 128, 128)
        "bf": jnp.asarray(bft),                               # (1, 128)
        "gamma": jnp.asarray(np.asarray(p["gamma"], np.float32)),   # (10,)
        "beta": jnp.asarray(np.asarray(p["beta"], np.float32)),     # (10,)
    }


# ---------------------------------------------------------------------------
# Deterministic synthetic parameters (PyTorch layouts / shapes)
# ---------------------------------------------------------------------------
def init_params(key):
    k1, k2, k3, k4, k5, k6 = jax.random.split(key, 6)
    return {
        "w1": 0.1 * jax.random.normal(k1, (10, 1, 5, 5), jnp.float32),    # conv1 OIHW
        "b1": 0.1 * jax.random.normal(k2, (10,), jnp.float32),
        "w2": 0.1 * jax.random.normal(k3, (10, 10, 5, 5), jnp.float32),   # conv2 OIHW
        "b2": 0.1 * jax.random.normal(k4, (10,), jnp.float32),
        "wfc": 0.1 * jax.random.normal(k5, (10, 160), jnp.float32),       # fc1 (out, in)
        "bfc": 0.1 * jax.random.normal(k6, (10,), jnp.float32),
        "gamma": jnp.ones((10,), jnp.float32),                            # BatchNorm1d init
        "beta": jnp.zeros((10,), jnp.float32),
    }


# Pure-JAX reference (same math, XLA ops) to check the fused kernel.
def reference_forward(x_nchw, p):
    def conv(x, w, b):
        y = jax.lax.conv_general_dilated(
            x, w, (1, 1), "VALID", dimension_numbers=("NCHW", "OIHW", "NCHW"))
        return jax.nn.relu(y + b[None, :, None, None])

    def pool(x):
        return jax.lax.reduce_window(x, -jnp.inf, jax.lax.max,
                                     (1, 1, 2, 2), (1, 1, 2, 2), "VALID")

    h = pool(conv(x_nchw, p["w1"], p["b1"]))
    h = pool(conv(h, p["w2"], p["b2"]))
    f = h.reshape(h.shape[0], -1)
    z = f @ p["wfc"].T + p["bfc"]
    mean = z.mean(axis=0, keepdims=True)
    var = jnp.mean((z - mean) ** 2, axis=0, keepdims=True)
    return p["gamma"] * (z - mean) * jax.lax.rsqrt(var + EPS) + p["beta"]


if __name__ == "__main__":
    key = jax.random.PRNGKey(0)
    kx, kp_key = jax.random.split(key)
    # 28x28 single-channel input is implied by fc1 = Linear(10*4*4, 10).
    x = jax.random.normal(kx, (2, 1, 28, 28), jnp.float32)
    params = init_params(kp_key)
    kernel_params = prepare_params(params)       # one-time weight repack (host side)

    out = jax.jit(torch_cnn_forward)(x, kernel_params)
    out = jax.block_until_ready(out)

    ref = reference_forward(x, params)
    assert out.shape == (2, 10)
    # Both paths run exact-f32 matmuls (global "highest"); residual headroom
    # covers BatchNorm's rsqrt amplification when a batch variance is tiny.
    err = float(jnp.max(jnp.abs(out - ref)))
    assert err < 1e-3, f"mismatch vs JAX reference (max abs err {err})"
    print("KERNEL_OK")
</pallas_src>

<mosaic_0001>
module attributes {stable_mosaic.version = 11 : i64} {
  func.func @_fused_cnn_kernel(%arg0: i32, %arg1: memref<2x28x28xf32, #tpu.memory_space<vmem>>, %arg2: memref<5x28x240xf32, #tpu.memory_space<vmem>>, %arg3: memref<1x240xf32, #tpu.memory_space<vmem>>, %arg4: memref<5x230x128xf32, #tpu.memory_space<vmem>>, %arg5: memref<1x128xf32, #tpu.memory_space<vmem>>, %arg6: memref<4x128x128xf32, #tpu.memory_space<vmem>>, %arg7: memref<1x128xf32, #tpu.memory_space<vmem>>, %arg8: memref<2x128xf32, #tpu.memory_space<vmem>>) attributes {dimension_semantics = [#tpu.dimension_semantics<parallel>], iteration_bounds = array<i64: 1>, scalar_prefetch = 0 : i64, scratch_operands = 0 : i64, tpu.core_type = #tpu.core_type<tc>, window_params = [{transform_indices = @transform_0, window_bounds = array<i64: 2, 28, 28>}, {pipeline_mode = #tpu.pipeline_mode<synchronous>, transform_indices = @transform_1, window_bounds = array<i64: 5, 28, 240>}, {pipeline_mode = #tpu.pipeline_mode<synchronous>, transform_indices = @transform_2, window_bounds = array<i64: 1, 240>}, {pipeline_mode = #tpu.pipeline_mode<synchronous>, transform_indices = @transform_3, window_bounds = array<i64: 5, 230, 128>}, {pipeline_mode = #tpu.pipeline_mode<synchronous>, transform_indices = @transform_4, window_bounds = array<i64: 1, 128>}, {pipeline_mode = #tpu.pipeline_mode<synchronous>, transform_indices = @transform_5, window_bounds = array<i64: 4, 128, 128>}, {pipeline_mode = #tpu.pipeline_mode<synchronous>, transform_indices = @transform_6, window_bounds = array<i64: 1, 128>}, {transform_indices = @transform_7, window_bounds = array<i64: 2, 128>}]} {
    %c0 = arith.constant 0 : index
    %c0_0 = arith.constant 0 : index
    %c0_1 = arith.constant 0 : index
    %0 = vector.load %arg1[%c0, %c0_0, %c0_1] : memref<2x28x28xf32, #tpu.memory_space<vmem>>, vector<2x28x28xf32>
    %1 = vector.extract_strided_slice %0 {offsets = [0, 0, 0], sizes = [2, 24, 28], strides = [1, 1, 1]} : vector<2x28x28xf32> to vector<2x24x28xf32>
    %2 = vector.shape_cast %1 : vector<2x24x28xf32> to vector<48x28xf32>
    %c0_2 = arith.constant 0 : index
    %c0_3 = arith.constant 0 : index
    %c0_4 = arith.constant 0 : index
    %3 = vector.load %arg2[%c0_2, %c0_3, %c0_4] : memref<5x28x240xf32, #tpu.memory_space<vmem>>, vector<1x28x240xf32>
    %4 = vector.shape_cast %3 : vector<1x28x240xf32> to vector<28x240xf32>
    %cst = arith.constant dense<0.000000e+00> : vector<48x240xf32>
    %5 = tpu.matmul %2, %4, %cst {dimension_numbers = #tpu.dot_dimension_numbers<[1], [0], [0], [1], [0, 0, 1, 1], [], []>, precision = #tpu.contract_precision<fp32>} : vector<48x28xf32>, vector<28x240xf32>, vector<48x240xf32> -> vector<48x240xf32>
    %6 = vector.extract_strided_slice %0 {offsets = [0, 1, 0], sizes = [2, 24, 28], strides = [1, 1, 1]} : vector<2x28x28xf32> to vector<2x24x28xf32>
    %7 = vector.shape_cast %6 : vector<2x24x28xf32> to vector<48x28xf32>
    %c1 = arith.constant 1 : index
    %c0_5 = arith.constant 0 : index
    %c0_6 = arith.constant 0 : index
    %8 = vector.load %arg2[%c1, %c0_5, %c0_6] : memref<5x28x240xf32, #tpu.memory_space<vmem>>, vector<1x28x240xf32>
    %9 = vector.shape_cast %8 : vector<1x28x240xf32> to vector<28x240xf32>
    %cst_7 = arith.constant dense<0.000000e+00> : vector<48x240xf32>
    %10 = tpu.matmul %7, %9, %cst_7 {dimension_numbers = #tpu.dot_dimension_numbers<[1], [0], [0], [1], [0, 0, 1, 1], [], []>, precision = #tpu.contract_precision<fp32>} : vector<48x28xf32>, vector<28x240xf32>, vector<48x240xf32> -> vector<48x240xf32>
    %11 = arith.addf %5, %10 : vector<48x240xf32>
    %12 = vector.extract_strided_slice %0 {offsets = [0, 2, 0], sizes = [2, 24, 28], strides = [1, 1, 1]} : vector<2x28x28xf32> to vector<2x24x28xf32>
    %13 = vector.shape_cast %12 : vector<2x24x28xf32> to vector<48x28xf32>
    %c2 = arith.constant 2 : index
    %c0_8 = arith.constant 0 : index
    %c0_9 = arith.constant 0 : index
    %14 = vector.load %arg2[%c2, %c0_8, %c0_9] : memref<5x28x240xf32, #tpu.memory_space<vmem>>, vector<1x28x240xf32>
    %15 = vector.shape_cast %14 : vector<1x28x240xf32> to vector<28x240xf32>
    %cst_10 = arith.constant dense<0.000000e+00> : vector<48x240xf32>
    %16 = tpu.matmul %13, %15, %cst_10 {dimension_numbers = #tpu.dot_dimension_numbers<[1], [0], [0], [1], [0, 0, 1, 1], [], []>, precision = #tpu.contract_precision<fp32>} : vector<48x28xf32>, vector<28x240xf32>, vector<48x240xf32> -> vector<48x240xf32>
    %17 = arith.addf %11, %16 : vector<48x240xf32>
    %18 = vector.extract_strided_slice %0 {offsets = [0, 3, 0], sizes = [2, 24, 28], strides = [1, 1, 1]} : vector<2x28x28xf32> to vector<2x24x28xf32>
    %19 = vector.shape_cast %18 : vector<2x24x28xf32> to vector<48x28xf32>
    %c3 = arith.constant 3 : index
    %c0_11 = arith.constant 0 : index
    %c0_12 = arith.constant 0 : index
    %20 = vector.load %arg2[%c3, %c0_11, %c0_12] : memref<5x28x240xf32, #tpu.memory_space<vmem>>, vector<1x28x240xf32>
    %21 = vector.shape_cast %20 : vector<1x28x240xf32> to vector<28x240xf32>
    %cst_13 = arith.constant dense<0.000000e+00> : vector<48x240xf32>
    %22 = tpu.matmul %19, %21, %cst_13 {dimension_numbers = #tpu.dot_dimension_numbers<[1], [0], [0], [1], [0, 0, 1, 1], [], []>, precision = #tpu.contract_precision<fp32>} : vector<48x28xf32>, vector<28x240xf32>, vector<48x240xf32> -> vector<48x240xf32>
    %23 = arith.addf %17, %22 : vector<48x240xf32>
    %24 = vector.extract_strided_slice %0 {offsets = [0, 4, 0], sizes = [2, 24, 28], strides = [1, 1, 1]} : vector<2x28x28xf32> to vector<2x24x28xf32>
    %25 = vector.shape_cast %24 : vector<2x24x28xf32> to vector<48x28xf32>
    %c4 = arith.constant 4 : index
    %c0_14 = arith.constant 0 : index
    %c0_15 = arith.constant 0 : index
    %26 = vector.load %arg2[%c4, %c0_14, %c0_15] : memref<5x28x240xf32, #tpu.memory_space<vmem>>, vector<1x28x240xf32>
    %27 = vector.shape_cast %26 : vector<1x28x240xf32> to vector<28x240xf32>
    %cst_16 = arith.constant dense<0.000000e+00> : vector<48x240xf32>
    %28 = tpu.matmul %25, %27, %cst_16 {dimension_numbers = #tpu.dot_dimension_numbers<[1], [0], [0], [1], [0, 0, 1, 1], [], []>, precision = #tpu.contract_precision<fp32>} : vector<48x28xf32>, vector<28x240xf32>, vector<48x240xf32> -> vector<48x240xf32>
    %29 = arith.addf %23, %28 : vector<48x240xf32>
    %c0_17 = arith.constant 0 : index
    %c0_18 = arith.constant 0 : index
    %30 = vector.load %arg3[%c0_17, %c0_18] : memref<1x240xf32, #tpu.memory_space<vmem>>, vector<1x240xf32>
    %31 = vector.broadcast %30 : vector<1x240xf32> to vector<48x240xf32>
    %32 = arith.addf %29, %31 : vector<48x240xf32>
    %cst_19 = arith.constant 0.000000e+00 : f32
    %33 = vector.broadcast %cst_19 : f32 to vector<48x240xf32>
    %34 = arith.maximumf %32, %33 : vector<48x240xf32>
    %35 = vector.extract_strided_slice %34 {offsets = [0, 0], sizes = [48, 230], strides = [1, 1]} : vector<48x240xf32> to vector<48x230xf32>
    %36 = vector.extract_strided_slice %34 {offsets = [0, 10], sizes = [48, 230], strides = [1, 1]} : vector<48x240xf32> to vector<48x230xf32>
    %37 = arith.maximumf %35, %36 : vector<48x230xf32>
    %38 = vector.shape_cast %37 : vector<48x230xf32> to vector<2x12x2x230xf32>
    %cst_20 = arith.constant dense<0xFF800000> : vector<2x12x230xf32>
    %39 = vector.multi_reduction <maximumf>, %38, %cst_20 [2] : vector<2x12x2x230xf32> to vector<2x12x230xf32>
    %40 = vector.extract_strided_slice %39 {offsets = [0, 0, 0], sizes = [2, 8, 230], strides = [1, 1, 1]} : vector<2x12x230xf32> to vector<2x8x230xf32>
    %41 = vector.shape_cast %40 : vector<2x8x230xf32> to vector<16x230xf32>
    %c0_21 = arith.constant 0 : index
    %c0_22 = arith.constant 0 : index
    %c0_23 = arith.constant 0 : index
    %42 = vector.load %arg4[%c0_21, %c0_22, %c0_23] : memref<5x230x128xf32, #tpu.memory_space<vmem>>, vector<1x230x128xf32>
    %43 = vector.shape_cast %42 : vector<1x230x128xf32> to vector<230x128xf32>
    %cst_24 = arith.constant dense<0.000000e+00> : vector<16x128xf32>
    %44 = tpu.matmul %41, %43, %cst_24 {dimension_numbers = #tpu.dot_dimension_numbers<[1], [0], [0], [1], [0, 0, 1, 1], [], []>, precision = #tpu.contract_precision<fp32>} : vector<16x230xf32>, vector<230x128xf32>, vector<16x128xf32> -> vector<16x128xf32>
    %45 = vector.extract_strided_slice %39 {offsets = [0, 1, 0], sizes = [2, 8, 230], strides = [1, 1, 1]} : vector<2x12x230xf32> to vector<2x8x230xf32>
    %46 = vector.shape_cast %45 : vector<2x8x230xf32> to vector<16x230xf32>
    %c1_25 = arith.constant 1 : index
    %c0_26 = arith.constant 0 : index
    %c0_27 = arith.constant 0 : index
    %47 = vector.load %arg4[%c1_25, %c0_26, %c0_27] : memref<5x230x128xf32, #tpu.memory_space<vmem>>, vector<1x230x128xf32>
    %48 = vector.shape_cast %47 : vector<1x230x128xf32> to vector<230x128xf32>
    %cst_28 = arith.constant dense<0.000000e+00> : vector<16x128xf32>
    %49 = tpu.matmul %46, %48, %cst_28 {dimension_numbers = #tpu.dot_dimension_numbers<[1], [0], [0], [1], [0, 0, 1, 1], [], []>, precision = #tpu.contract_precision<fp32>} : vector<16x230xf32>, vector<230x128xf32>, vector<16x128xf32> -> vector<16x128xf32>
    %50 = arith.addf %44, %49 : vector<16x128xf32>
    %51 = vector.extract_strided_slice %39 {offsets = [0, 2, 0], sizes = [2, 8, 230], strides = [1, 1, 1]} : vector<2x12x230xf32> to vector<2x8x230xf32>
    %52 = vector.shape_cast %51 : vector<2x8x230xf32> to vector<16x230xf32>
    %c2_29 = arith.constant 2 : index
    %c0_30 = arith.constant 0 : index
    %c0_31 = arith.constant 0 : index
    %53 = vector.load %arg4[%c2_29, %c0_30, %c0_31] : memref<5x230x128xf32, #tpu.memory_space<vmem>>, vector<1x230x128xf32>
    %54 = vector.shape_cast %53 : vector<1x230x128xf32> to vector<230x128xf32>
    %cst_32 = arith.constant dense<0.000000e+00> : vector<16x128xf32>
    %55 = tpu.matmul %52, %54, %cst_32 {dimension_numbers = #tpu.dot_dimension_numbers<[1], [0], [0], [1], [0, 0, 1, 1], [], []>, precision = #tpu.contract_precision<fp32>} : vector<16x230xf32>, vector<230x128xf32>, vector<16x128xf32> -> vector<16x128xf32>
    %56 = arith.addf %50, %55 : vector<16x128xf32>
    %57 = vector.extract_strided_slice %39 {offsets = [0, 3, 0], sizes = [2, 8, 230], strides = [1, 1, 1]} : vector<2x12x230xf32> to vector<2x8x230xf32>
    %58 = vector.shape_cast %57 : vector<2x8x230xf32> to vector<16x230xf32>
    %c3_33 = arith.constant 3 : index
    %c0_34 = arith.constant 0 : index
    %c0_35 = arith.constant 0 : index
    %59 = vector.load %arg4[%c3_33, %c0_34, %c0_35] : memref<5x230x128xf32, #tpu.memory_space<vmem>>, vector<1x230x128xf32>
    %60 = vector.shape_cast %59 : vector<1x230x128xf32> to vector<230x128xf32>
    %cst_36 = arith.constant dense<0.000000e+00> : vector<16x128xf32>
    %61 = tpu.matmul %58, %60, %cst_36 {dimension_numbers = #tpu.dot_dimension_numbers<[1], [0], [0], [1], [0, 0, 1, 1], [], []>, precision = #tpu.contract_precision<fp32>} : vector<16x230xf32>, vector<230x128xf32>, vector<16x128xf32> -> vector<16x128xf32>
    %62 = arith.addf %56, %61 : vector<16x128xf32>
    %63 = vector.extract_strided_slice %39 {offsets = [0, 4, 0], sizes = [2, 8, 230], strides = [1, 1, 1]} : vector<2x12x230xf32> to vector<2x8x230xf32>
    %64 = vector.shape_cast %63 : vector<2x8x230xf32> to vector<16x230xf32>
    %c4_37 = arith.constant 4 : index
    %c0_38 = arith.constant 0 : index
    %c0_39 = arith.constant 0 : index
    %65 = vector.load %arg4[%c4_37, %c0_38, %c0_39] : memref<5x230x128xf32, #tpu.memory_space<vmem>>, vector<1x230x128xf32>
    %66 = vector.shape_cast %65 : vector<1x230x128xf32> to vector<230x128xf32>
    %cst_40 = arith.constant dense<0.000000e+00> : vector<16x128xf32>
    %67 = tpu.matmul %64, %66, %cst_40 {dimension_numbers = #tpu.dot_dimension_numbers<[1], [0], [0], [1], [0, 0, 1, 1], [], []>, precision = #tpu.contract_precision<fp32>} : vector<16x230xf32>, vector<230x128xf32>, vector<16x128xf32> -> vector<16x128xf32>
    %68 = arith.addf %62, %67 : vector<16x128xf32>
    %c0_41 = arith.constant 0 : index
    %c0_42 = arith.constant 0 : index
    %69 = vector.load %arg5[%c0_41, %c0_42] : memref<1x128xf32, #tpu.memory_space<vmem>>, vector<1x128xf32>
    %70 = vector.broadcast %69 : vector<1x128xf32> to vector<16x128xf32>
    %71 = arith.addf %68, %70 : vector<16x128xf32>
    %cst_43 = arith.constant 0.000000e+00 : f32
    %72 = vector.broadcast %cst_43 : f32 to vector<16x128xf32>
    %73 = arith.maximumf %71, %72 : vector<16x128xf32>
    %c118_i32 = arith.constant 118 : i32
    %74 = tpu.dynamic_rotate %73 by %c118_i32 dim 1 : vector<16x128xf32>, i32 -> vector<16x128xf32>
    %75 = arith.maximumf %73, %74 : vector<16x128xf32>
    %76 = vector.shape_cast %75 : vector<16x128xf32> to vector<2x4x2x128xf32>
    %cst_44 = arith.constant dense<0xFF800000> : vector<2x4x128xf32>
    %77 = vector.multi_reduction <maximumf>, %76, %cst_44 [2] : vector<2x4x2x128xf32> to vector<2x4x128xf32>
    %78 = vector.extract_strided_slice %77 {offsets = [0, 0, 0], sizes = [2, 1, 128], strides = [1, 1, 1]} : vector<2x4x128xf32> to vector<2x1x128xf32>
    %79 = vector.shape_cast %78 : vector<2x1x128xf32> to vector<2x128xf32>
    %c0_45 = arith.constant 0 : index
    %c0_46 = arith.constant 0 : index
    %c0_47 = arith.constant 0 : index
    %80 = vector.load %arg6[%c0_45, %c0_46, %c0_47] : memref<4x128x128xf32, #tpu.memory_space<vmem>>, vector<1x128x128xf32>
    %81 = vector.shape_cast %80 : vector<1x128x128xf32> to vector<128x128xf32>
    %cst_48 = arith.constant dense<0.000000e+00> : vector<2x128xf32>
    %82 = tpu.matmul %79, %81, %cst_48 {dimension_numbers = #tpu.dot_dimension_numbers<[1], [0], [0], [1], [0, 0, 1, 1], [], []>, precision = #tpu.contract_precision<fp32>} : vector<2x128xf32>, vector<128x128xf32>, vector<2x128xf32> -> vector<2x128xf32>
    %83 = vector.extract_strided_slice %77 {offsets = [0, 1, 0], sizes = [2, 1, 128], strides = [1, 1, 1]} : vector<2x4x128xf32> to vector<2x1x128xf32>
    %84 = vector.shape_cast %83 : vector<2x1x128xf32> to vector<2x128xf32>
    %c1_49 = arith.constant 1 : index
    %c0_50 = arith.constant 0 : index
    %c0_51 = arith.constant 0 : index
    %85 = vector.load %arg6[%c1_49, %c0_50, %c0_51] : memref<4x128x128xf32, #tpu.memory_space<vmem>>, vector<1x128x128xf32>
    %86 = vector.shape_cast %85 : vector<1x128x128xf32> to vector<128x128xf32>
    %cst_52 = arith.constant dense<0.000000e+00> : vector<2x128xf32>
    %87 = tpu.matmul %84, %86, %cst_52 {dimension_numbers = #tpu.dot_dimension_numbers<[1], [0], [0], [1], [0, 0, 1, 1], [], []>, precision = #tpu.contract_precision<fp32>} : vector<2x128xf32>, vector<128x128xf32>, vector<2x128xf32> -> vector<2x128xf32>
    %88 = arith.addf %82, %87 : vector<2x128xf32>
    %89 = vector.extract_strided_slice %77 {offsets = [0, 2, 0], sizes = [2, 1, 128], strides = [1, 1, 1]} : vector<2x4x128xf32> to vector<2x1x128xf32>
    %90 = vector.shape_cast %89 : vector<2x1x128xf32> to vector<2x128xf32>
    %c2_53 = arith.constant 2 : index
    %c0_54 = arith.constant 0 : index
    %c0_55 = arith.constant 0 : index
    %91 = vector.load %arg6[%c2_53, %c0_54, %c0_55] : memref<4x128x128xf32, #tpu.memory_space<vmem>>, vector<1x128x128xf32>
    %92 = vector.shape_cast %91 : vector<1x128x128xf32> to vector<128x128xf32>
    %cst_56 = arith.constant dense<0.000000e+00> : vector<2x128xf32>
    %93 = tpu.matmul %90, %92, %cst_56 {dimension_numbers = #tpu.dot_dimension_numbers<[1], [0], [0], [1], [0, 0, 1, 1], [], []>, precision = #tpu.contract_precision<fp32>} : vector<2x128xf32>, vector<128x128xf32>, vector<2x128xf32> -> vector<2x128xf32>
    %94 = arith.addf %88, %93 : vector<2x128xf32>
    %95 = vector.extract_strided_slice %77 {offsets = [0, 3, 0], sizes = [2, 1, 128], strides = [1, 1, 1]} : vector<2x4x128xf32> to vector<2x1x128xf32>
    %96 = vector.shape_cast %95 : vector<2x1x128xf32> to vector<2x128xf32>
    %c3_57 = arith.constant 3 : index
    %c0_58 = arith.constant 0 : index
    %c0_59 = arith.constant 0 : index
    %97 = vector.load %arg6[%c3_57, %c0_58, %c0_59] : memref<4x128x128xf32, #tpu.memory_space<vmem>>, vector<1x128x128xf32>
    %98 = vector.shape_cast %97 : vector<1x128x128xf32> to vector<128x128xf32>
    %cst_60 = arith.constant dense<0.000000e+00> : vector<2x128xf32>
    %99 = tpu.matmul %96, %98, %cst_60 {dimension_numbers = #tpu.dot_dimension_numbers<[1], [0], [0], [1], [0, 0, 1, 1], [], []>, precision = #tpu.contract_precision<fp32>} : vector<2x128xf32>, vector<128x128xf32>, vector<2x128xf32> -> vector<2x128xf32>
    %100 = arith.addf %94, %99 : vector<2x128xf32>
    %c0_61 = arith.constant 0 : index
    %c0_62 = arith.constant 0 : index
    %101 = vector.load %arg7[%c0_61, %c0_62] : memref<1x128xf32, #tpu.memory_space<vmem>>, vector<1x128xf32>
    %102 = vector.broadcast %101 : vector<1x128xf32> to vector<2x128xf32>
    %103 = arith.addf %100, %102 : vector<2x128xf32>
    %c0_63 = arith.constant 0 : index
    %c0_64 = arith.constant 0 : index
    %104 = vector.load %arg8[%c0_63, %c0_64] : memref<2x128xf32, #tpu.memory_space<vmem>>, vector<2x128xf32>
    tpu.vector_store %arg8[%c0_63, %c0_64], %103 {strides = array<i32>} : memref<2x128xf32, #tpu.memory_space<vmem>>, vector<2x128xf32>,
    return
  }
  func.func @transform_0(%arg0: i32) -> (i32, i32, i32) {
    %c0_i32 = arith.constant 0 : i32
    %c0_i32_0 = arith.constant 0 : i32
    %c0_i32_1 = arith.constant 0 : i32
    return %arg0, %c0_i32, %c0_i32_0 : i32, i32, i32
  }
  func.func @transform_1(%arg0: i32) -> (i32, i32, i32) {
    %c0_i32 = arith.constant 0 : i32
    %c0_i32_0 = arith.constant 0 : i32
    %c0_i32_1 = arith.constant 0 : i32
    %c0_i32_2 = arith.constant 0 : i32
    return %c0_i32, %c0_i32_0, %c0_i32_1 : i32, i32, i32
  }
  func.func @transform_2(%arg0: i32) -> (i32, i32) {
    %c0_i32 = arith.constant 0 : i32
    %c0_i32_0 = arith.constant 0 : i32
    %c0_i32_1 = arith.constant 0 : i32
    return %c0_i32, %c0_i32_0 : i32, i32
  }
  func.func @transform_3(%arg0: i32) -> (i32, i32, i32) {
    %c0_i32 = arith.constant 0 : i32
    %c0_i32_0 = arith.constant 0 : i32
    %c0_i32_1 = arith.constant 0 : i32
    %c0_i32_2 = arith.constant 0 : i32
    return %c0_i32, %c0_i32_0, %c0_i32_1 : i32, i32, i32
  }
  func.func @transform_4(%arg0: i32) -> (i32, i32) {
    %c0_i32 = arith.constant 0 : i32
    %c0_i32_0 = arith.constant 0 : i32
    %c0_i32_1 = arith.constant 0 : i32
    return %c0_i32, %c0_i32_0 : i32, i32
  }
  func.func @transform_5(%arg0: i32) -> (i32, i32, i32) {
    %c0_i32 = arith.constant 0 : i32
    %c0_i32_0 = arith.constant 0 : i32
    %c0_i32_1 = arith.constant 0 : i32
    %c0_i32_2 = arith.constant 0 : i32
    return %c0_i32, %c0_i32_0, %c0_i32_1 : i32, i32, i32
  }
  func.func @transform_6(%arg0: i32) -> (i32, i32) {
    %c0_i32 = arith.constant 0 : i32
    %c0_i32_0 = arith.constant 0 : i32
    %c0_i32_1 = arith.constant 0 : i32
    return %c0_i32, %c0_i32_0 : i32, i32
  }
  func.func @transform_7(%arg0: i32) -> (i32, i32) {
    %c0_i32 = arith.constant 0 : i32
    %c0_i32_0 = arith.constant 0 : i32
    return %arg0, %c0_i32 : i32, i32
  }
}

</mosaic_0001>

<bundles_post_ra>
// kernel: torch_cnn_forward.1
= control target key start
LH: loop header
LB: loop body
LE: loop exit
PB: predicated region body
PF: predicated region fallthrough
CT: control target
= control target key end

     0   :  { %12 = vsyncpa [#allocation3], 0  ;;  %s23649_s0 = inlined_call_operand.vmem [shape: f32[2,28,28], index: 0, kind: input, shape index: {}]   ;;  %s23650_s1 = inlined_call_operand.hbm [shape: f32[5,28,240], index: 1, kind: input, shape index: {}]   ;;  %s23651_s2 = inlined_call_operand.vmem [shape: f32[1,240], index: 2, kind: input, shape index: {}]   ;;  %s23652_s3 = inlined_call_operand.hbm [shape: f32[5,230,128], index: 3, kind: input, shape index: {}]   ;;  %s23653_s4 = inlined_call_operand.vmem [shape: f32[1,128], index: 4, kind: input, shape index: {}]   ;;  %s23654_s5 = inlined_call_operand.hbm [shape: f32[4,128,128], index: 5, kind: input, shape index: {}]   ;;  %s23655_s6 = inlined_call_operand.vmem [shape: f32[1,128], index: 6, kind: input, shape index: {}]   ;;  %s23656_s7 = inlined_call_operand.vmem [shape: f32[2,128], index: 7, kind: output, shape index: {}]  }
   0x1   :  { %13 = vsyncpa [#allocation5], 0  ;;  %s16391_s24 = smov [#allocation4]   ;;  %s16321_s28 = scalar_lea.hbm %s23652_s3, 18560 }
   0x2   :  { %s35_s25 = sshll.u32 %s16391_s24, 4  ;;  %p16322_p0 = scmp.ne.s32.totalorder %s23652_s3, %s16321_s28  ;;  %s36_s25 = int_to_ptr.vmem [resolvable:$true] %s35_s25 }
   0x3   :  { %p16325_p1 = scmp.lt.u32.totalorder %s16321_s28, %s23652_s3 }
   0x5   :  { %p16327_p2 = pnand %p16325_p1, %p16322_p0 }
   0x7   :  { %16330 = shalt.err (!%p16327_p2)
}
   0x8   :  { %s16331_s10 = scalar_lea.vmem %s36_s25, 18560  ;;  %p16336_p4 = scmp.lt.s32.totalorder %s36_s25, %s36_s25 }
   0x9   :  { %p16332_p3 = scmp.ne.s32.totalorder %s36_s25, %s16331_s10  ;;  %p16337_p5 = scmp.lt.s32.totalorder %s16331_s10, %s16331_s10 }
   0xb   :  { %p16338_p6 = por %p16337_p5, %p16336_p4 }
   0xd   :  { %p16339_p7 = pnand %p16338_p6, %p16332_p3 }
   0xf   :  { %16342 = shalt.err (!%p16339_p7)
}
  0x10   :  { %s16392_s11 = smov 128   ;;  %s16393_s12 = smov 8  }
  0x11   :  { %41 = dma.hbm_to_vmem [thread:$0]  %s23652_s3, 18560, %s36_s25, [#allocation5], %s16392_s11, %s16392_s11, %s16393_s12  }
  0x12   :  { %s16394_s15 = smov [#allocation2]   ;;  %s16343_s19 = scalar_lea.hbm %s23650_s1, 5120 }
  0x13   :  { %s21_s16 = sshll.u32 %s16394_s15, 4  ;;  %p16344_p8 = scmp.ne.s32.totalorder %s23650_s1, %s16343_s19  ;;  %s22_s16 = int_to_ptr.vmem [resolvable:$true] %s21_s16 }
  0x14   :  { %p16347_p9 = scmp.lt.u32.totalorder %s16343_s19, %s23650_s1 }
  0x16   :  { %p16349_p10 = pnand %p16347_p9, %p16344_p8 }
  0x18   :  { %16352 = shalt.err (!%p16349_p10)
}
  0x19   :  { %s16353_s24 = scalar_lea.vmem %s22_s16, 5120  ;;  %p16358_p12 = scmp.lt.s32.totalorder %s22_s16, %s22_s16 }
  0x1a   :  { %p16354_p11 = scmp.ne.s32.totalorder %s22_s16, %s16353_s24  ;;  %p16359_p13 = scmp.lt.s32.totalorder %s16353_s24, %s16353_s24 }
  0x1c   :  { %p16360_p0 = por %p16359_p13, %p16358_p12 }
  0x1e   :  { %p16361_p1 = pnand %p16360_p0, %p16354_p11 }
  0x20   :  { %16364 = shalt.err (!%p16361_p1)
}
  0x21   :  { %s16395_s3 = smov 256   ;;  %s16396_s25 = smov 16  }
  0x22   :  { %27 = dma.hbm_to_vmem [thread:$0]  %s23650_s1, 5120, %s22_s16, [#allocation3], %s16395_s3, %s16395_s3, %s16396_s25  }
  0x23   :  { %s16397_s28 = smov [#allocation6]   ;;  %s16365_s9 = scalar_lea.hbm %s23654_s5, 8192 }
  0x24   :  { %s49_s29 = sshll.u32 %s16397_s28, 4  ;;  %p16366_p2 = scmp.ne.s32.totalorder %s23654_s5, %s16365_s9  ;;  %s50_s29 = int_to_ptr.vmem [resolvable:$true] %s49_s29 }
  0x25   :  { %p16369_p3 = scmp.lt.u32.totalorder %s16365_s9, %s23654_s5 }
  0x27   :  { %p16371_p4 = pnand %p16369_p3, %p16366_p2 }
  0x29   :  { %16374 = shalt.err (!%p16371_p4)
}
  0x2a   :  { %s16375_s17 = scalar_lea.vmem %s50_s29, 8192  ;;  %p16380_p6 = scmp.lt.s32.totalorder %s50_s29, %s50_s29 }
  0x2b   :  { %p16376_p5 = scmp.ne.s32.totalorder %s50_s29, %s16375_s17  ;;  %p16381_p7 = scmp.lt.s32.totalorder %s16375_s17, %s16375_s17 }
  0x2d   :  { %p16382_p8 = por %p16381_p7, %p16380_p6 }
  0x2f   :  { %p16383_p9 = pnand %p16382_p8, %p16376_p5 }
  0x31   :  { %16386 = shalt.err (!%p16383_p9)
}
  0x32   :  { %55 = dma.hbm_to_vmem [thread:$0]  %s23654_s5, 8192, %s50_s29, [#allocation5], %s16392_s11, %s16392_s11, %s16393_s12  }
  0x33   :  { %16387 = dma.done.wait [#allocation3], 5120  }
  0x34   :  { %16388 = vsyncadd [#allocation3], 4294962176 }
  0x35   :  { %16389 = dma.done.wait [#allocation5], 26752  }
  0x36   :  { %16390 = vsyncadd [#allocation5], 4294940544  ;;  %v23686_v0 = vmov 0.0   ;;  %v108_v1 = vld [vmem:[#allocation2 + $0x48] sm:$0xff]  ;;  %v110_v2 = vld [vmem:[#allocation2 + $0x58] sm:$0xff]  ;;  %vm128_vm0 = vcmask 1043456  }
  0x37   :  { %207 = vmatprep.mubr.f32.mxu0 %v23686_v0  ;;  %v107_v3 = vld [vmem:[#allocation2 + $0x40] sm:$0xff]  ;;  %vm91_vm1 = vcmask 1046528   ;;  %vm115_vm2 = vcmask 228352   ;;  %v135_v4 = vand.u32 4294901760, %v108_v1  ;;  %v139_v5 = vand.u32 4294901760, %v110_v2  ;;  %v109_v6 = vld [vmem:[#allocation2 + $0x50] sm:$0xff] }
  0x38   :  { %v137_v7 = vand.u32 4294901760, %v107_v3  ;;  %v112_v8 = vld [vmem:[#allocation2 + $0x68] sm:$0xff]  ;;  %v111_v9 = vld [vmem:[#allocation2 + $0x60] sm:$0xff]  ;;  %v141_v10 = vand.u32 4294901760, %v109_v6  ;;  %v114_v11 = vld [vmem:[#allocation2 + $0x78] sm:$0xf] }
  0x39   :  { %v143_v12 = vand.u32 4294901760, %v112_v8  ;;  %v113_v13 = vld [vmem:[#allocation2 + $0x70] sm:$0xf]  ;;  %v16486_v14 = vpack.c.bf16 %v139_v5, %v135_v4  ;;  %v16488_v15 = vsub.f32 %v108_v1, %v135_v4  ;;  %v16490_v16 = vsub.f32 %v110_v2, %v139_v5  ;;  %v16497_v18 = vld [vmem:[%s23649_s0] sm:$0xff]  ;;  %v16502_v19 = vld [vmem:[%s23649_s0 + $0x8] sm:$0xff] }
  0x3a   :  { %v16492_v17 = vsub.f32 %v107_v3, %v137_v7  ;;  %v16504_v20 = vpack.c.bf16 %v141_v10, %v137_v7  ;;  %v16506_v21 = vsub.f32 %v109_v6, %v141_v10  ;;  %v133_v22 = vsel %vm128_vm0, %v114_v11, 0  ;;  %v16530_v36 = vld [vmem:[%s23649_s0 + $0x10] sm:$0xff]  ;;  %v16535_v37 = vld [vmem:[%s23649_s0 + $0x18] sm:$0xf]  ;;  %v16570_v58 = vld [vmem:[%s23649_s0 + $0x20] sm:$0xff] }
  0x3b   :  { %v16509_v23 = vsub.f32 %v112_v8, %v143_v12  ;;  %13878 = vmatprep.subr.bf16.mxu0 %v16486_v14  ;;  %v147_v24 = vand.u32 4294901760, %v133_v22  ;;  %v130_v25 = vsel %vm128_vm0, %v113_v13, 0  ;;  %v145_v26 = vand.u32 4294901760, %v111_v9  ;;  %v16575_v59 = vld [vmem:[%s23649_s0 + $0x28] sm:$0xff] }
  0x3c   :  { %v276_v27 = vand.u32 4294901760, %v16488_v15  ;;  %13880 = vmatpush1.bf16.msra.mxu0 %v16504_v20  ;;  %v149_v28 = vand.u32 4294901760, %v130_v25  ;;  %v288_v29 = vand.u32 4294901760, %v16490_v16  ;;  %v92_v30 = vrot.slane %v16497_v18, 1 }
  0x3d   :  { %v93_v31 = vrot.slane %v16502_v19, 1  ;;  %v16518_v32 = vpack.c.bf16 %v147_v24, %v143_v12  ;;  %v16520_v33 = vsub.f32 %v133_v22, %v147_v24  ;;  %v16522_v34 = vsub.f32 %v111_v9, %v145_v26 }
  0x3e   :  { %v277_v35 = vsub.f32 %v16488_v15, %v276_v27  ;;  %v16537_v38 = vpack.c.bf16 %v149_v28, %v145_v26  ;;  %v16539_v39 = vsub.f32 %v130_v25, %v149_v28  ;;  %v289_v40 = vsub.f32 %v16490_v16, %v288_v29  ;;  %v16607_v26 = vld [vmem:[%s23649_s0 + $0x30] sm:$0xff]  ;;  %v16612_v28 = vld [vmem:[%s23649_s0 + $0x38] sm:$0xf] }
  0x3f   :  { %v94_v41 = vsel %vm91_vm1, %v92_v30, %v93_v31  ;;  %13882 = vmatprep.subr.bf16.mxu0 %v16518_v32  ;;  %v282_v44 = vand.u32 4294901760, %v16492_v17  ;;  %v294_v45 = vand.u32 4294901760, %v16506_v21  ;;  %v95_v48 = vrot.slane %v16530_v36, 1 }
  0x40   :  { %v278_v42 = vand.u32 4294901760, %v277_v35  ;;  %v116_v43 = vsel %vm115_vm2, %v94_v41, 0  ;;  %13884 = vmatpush1.bf16.msra.mxu0 %v16537_v38  ;;  %v290_v46 = vand.u32 4294901760, %v289_v40  ;;  %v97_v49 = vrot.slane %v16535_v37, 1 }
  0x41   :  { %v16550_v47 = vand.u32 4294901760, %v116_v43  ;;  %v283_v50 = vsub.f32 %v16492_v17, %v282_v44  ;;  %v295_v51 = vsub.f32 %v16506_v21, %v294_v45  ;;  %v300_v52 = vand.u32 4294901760, %v16509_v23 }
  0x42   :  { %v312_v53 = vand.u32 4294901760, %v16520_v33  ;;  %v13885_v54 = vpack.c.bf16 %v290_v46, %v278_v42  ;;  %v96_v56 = vsel %vm91_vm1, %v93_v31, %v95_v48  ;;  %v98_v57 = vsel %vm91_vm1, %v95_v48, %v97_v49 }
  0x43   :  { %v16563_v55 = vsub.f32 %v116_v43, %v16550_v47  ;;  %v284_v60 = vand.u32 4294901760, %v283_v50  ;;  %v296_v61 = vand.u32 4294901760, %v295_v51  ;;  %v118_v62 = vsel %vm115_vm2, %v96_v56, 0 }
  0x44   :  { %v120_v63 = vsel %vm115_vm2, %v98_v57, 0  ;;  %13886 = vmatprep.subr.bf16.mxu0 %v13885_v54  ;;  %v16580_v2 = vand.u32 4294901760, %v118_v62  ;;  %v301_v4 = vsub.f32 %v16509_v23, %v300_v52  ;;  %v313_v6 = vsub.f32 %v16520_v33, %v312_v53 }
  0x45   :  { %v210_v1 = vand.u32 4294901760, %v16563_v55  ;;  %v16582_v3 = vand.u32 4294901760, %v120_v63  ;;  %v13887_v5 = vpack.c.bf16 %v296_v61, %v284_v60  ;;  %v99_v7 = vrot.slane %v16570_v58, 1 }
  0x46   :  { %v100_v8 = vrot.slane %v16575_v59, 1  ;;  %v16596_v10 = vsub.f32 %v118_v62, %v16580_v2  ;;  %v302_v12 = vand.u32 4294901760, %v301_v4  ;;  %v314_v13 = vand.u32 4294901760, %v313_v6 }
  0x47   :  { %v211_v9 = vsub.f32 %v16563_v55, %v210_v1  ;;  %v16599_v11 = vsub.f32 %v120_v63, %v16582_v3  ;;  %v306_v24 = vand.u32 4294901760, %v16522_v34  ;;  %v318_v25 = vand.u32 4294901760, %v16539_v39 }
  0x48   :  { %v101_v22 = vsel %vm91_vm1, %v99_v7, %v100_v8  ;;  %v221_v31 = vand.u32 4294901760, %v16596_v10  ;;  %v13889_v41 = vpack.c.bf16 %v314_v13, %v302_v12  ;;  %v102_v50 = vrot.slane %v16607_v26, 1 }
  0x49   :  { %v212_v30 = vand.u32 4294901760, %v211_v9  ;;  %v232_v35 = vand.u32 4294901760, %v16599_v11  ;;  %v122_v40 = vsel %vm115_vm2, %v101_v22, 0  ;;  %v307_v43 = vsub.f32 %v16522_v34, %v306_v24 }
  0x4a   :  { %v16617_v42 = vand.u32 4294901760, %v122_v40  ;;  %v319_v46 = vsub.f32 %v16539_v39, %v318_v25  ;;  %v222_v48 = vsub.f32 %v16596_v10, %v221_v31  ;;  %v104_v51 = vrot.slane %v16612_v28, 1 }
  0x4b   :  { %213 = vmatmul.mubr.f32.vlgmr.msra.gmra.mrb[0].mxu0 %v212_v30  ;;  %v233_v49 = vsub.f32 %v16599_v11, %v232_v35  ;;  %v308_v56 = vand.u32 4294901760, %v307_v43  ;;  %v103_v61 = vsel %vm91_vm1, %v100_v8, %v102_v50  ;;  %v13893_v63 = vpack.c.bf16 %v16490_v16, %v16488_v15 }
  0x4c   :  { %13888 = vmatpush1.bf16.msra.mxu0 %v13887_v5  ;;  %218 = vmatprep.mubr.f32.mxu0 %v23686_v0  ;;  %v16631_v54 = vsub.f32 %v122_v40, %v16617_v42  ;;  %v320_v57 = vand.u32 4294901760, %v319_v46  ;;  %v223_v60 = vand.u32 4294901760, %v222_v48  ;;  %v105_v62 = vsel %vm91_vm1, %v102_v50, %v104_v51  ;;  %v79_v51 = vld [vmem:[#allocation2 + $0x20] sm:$0xff] }
  0x4d   :  { %13890 = vmatprep.subr.bf16.mxu0 %v13889_v41  ;;  %v124_v5 = vsel %vm115_vm2, %v103_v61, 0  ;;  %v126_v7 = vsel %vm115_vm2, %v105_v62, 0  ;;  %v234_v9 = vand.u32 4294901760, %v233_v49  ;;  %v13909_v22 = vpack.c.bf16 %v288_v29, %v276_v27 }
  0x4e   :  { %v243_v4 = vand.u32 4294901760, %v16631_v54  ;;  %v13891_v6 = vpack.c.bf16 %v320_v57, %v308_v56  ;;  %v16640_v12 = vand.u32 4294901760, %v124_v5  ;;  %v16642_v13 = vand.u32 4294901760, %v126_v7 }
  0x4f   :  { %224 = vmatmul.mubr.f32.gmra.mrb[2].mxu0 %v223_v60  ;;  %v13911_v41 = vpack.c.bf16 %v294_v45, %v282_v44  ;;  %v13913_v15 = vpack.c.bf16 %v312_v53, %v300_v52  ;;  %v13915_v43 = vpack.c.bf16 %v318_v25, %v306_v24  ;;  %v13895_v52 = vpack.c.bf16 %v16506_v21, %v16492_v17  ;;  %v76_v17 = vld [vmem:[#allocation2 + $0x8] sm:$0xff]  ;;  %v78_v21 = vld [vmem:[#allocation2 + $0x18] sm:$0xff]  ;;  %v81_v25 = vld [vmem:[#allocation2 + $0x30] sm:$0xf] }
  0x50   :  { %229 = vmatprep.mubr.f32.mxu0 %v23686_v0  ;;  %v244_v8 = vsub.f32 %v16631_v54, %v243_v4  ;;  %13892 = vmatpush1.bf16.msra.mxu0 %v13891_v6  ;;  %v16653_v30 = vsub.f32 %v124_v5, %v16640_v12  ;;  %v16656_v40 = vsub.f32 %v126_v7, %v16642_v13  ;;  %v951_v61 = vand.u32 4294901760, %v79_v51 }
  0x51   :  { %13894 = vmatprep.subr.bf16.mxu0 %v13893_v63  ;;  %v13897_v53 = vpack.c.bf16 %v16520_v33, %v16509_v23  ;;  %v13899_v24 = vpack.c.bf16 %v16539_v39, %v16522_v34  ;;  %v941_v23 = vand.u32 4294901760, %v76_v17  ;;  %v75_v39 = vld [vmem:[#allocation2] sm:$0xff]  ;;  %v923_v7 = vsel %vm115_vm2, %v16497_v18, 0 }
  0x52   :  { %v245_v16 = vand.u32 4294901760, %v244_v8  ;;  %v254_v27 = vand.u32 4294901760, %v16653_v30  ;;  %v265_v29 = vand.u32 4294901760, %v16656_v40  ;;  %vm1729_vm3 = vcmask 1045504  }
  0x53   :  { %235 = vmatmul.mubr.f32.gmra.mrb[4].mxu0 %v234_v9  ;;  %v16735_v34 = vsub.f32 %v76_v17, %v941_v23  ;;  %v929_v17 = vsel %vm115_vm2, %v16570_v58, 0  ;;  %vm2571_vm4 = vcmask 1044480   ;;  %vm4326_vm5 = vcmask 965632  }
  0x54   :  { %240 = vmatprep.mubr.f32.mxu0 %v23686_v0  ;;  %v255_v46 = vsub.f32 %v16653_v30, %v254_v27  ;;  %v266_v44 = vsub.f32 %v16656_v40, %v265_v29  ;;  %vm4717_vm6 = vcmask 1041408   ;;  %vm4725_vm7 = vcmask 828416  }
  0x55   :  { %vm5146_vm8 = vcmask 1041409   ;;  %vm5148_vm9 = vcmask 1042434   ;;  %vm5150_vm10 = vcmask 1043459   ;;  %vm5152_vm11 = vcmask 1044484  }
  0x56   :  { %v256_v48 = vand.u32 4294901760, %v255_v46  ;;  %v267_v45 = vand.u32 4294901760, %v266_v44  ;;  %vm5154_vm12 = vcmask 1045509   ;;  %vm5156_vm13 = vcmask 1046534  }
  0x57   :  { %246 = vmatmul.mubr.f32.gmra.mrb[6].mxu0 %v245_v16  ;;  %v927_v16 = vsel %vm115_vm2, %v16530_v36, 0  ;;  %vm5158_vm14 = vcmask 1047559   ;;  %vm5183_vm15 = vcmask 834560  }
  0x58   :  { %251 = vmatprep.mubr.f32.mxu0 %v23686_v0  ;;  %v16799_v44 = vand.u32 4294901760, %v927_v16 }
  0x5b   :  { %257 = vmatmul.mubr.f32.gmra.mrb[8].mxu0 %v256_v48 }
  0x5c   :  { %262 = vmatprep.mubr.f32.mxu0 %v23686_v0 }
  0x5f   :  { %268 = vmatmul.mubr.f32.gmra.mrb[10].mxu0 %v267_v45 }
  0x60   :  { %378 = vmatprep.mubr.f32.mxu0 %v23686_v0 }
  0x63   :  { %380 = vmatmul.mubr.f32.vlgmr.msra.gmra.mrb[0].mxu0 %v16550_v47 }
  0x64   :  { %13896 = vmatpush1.bf16.msra.mxu0 %v13895_v52  ;;  %385 = vmatprep.mubr.f32.mxu0 %v23686_v0 }
  0x65   :  { %13898 = vmatprep.subr.bf16.mxu0 %v13897_v53 }
  0x67   :  { %387 = vmatmul.mubr.f32.gmra.mrb[2].mxu0 %v16580_v2 }
  0x68   :  { %392 = vmatprep.mubr.f32.mxu0 %v23686_v0  ;;  %13900 = vmatpush1.bf16.msra.mxu0 %v13899_v24 }
  0x69   :  { %13902 = vmatprep.subr.bf16.mxu0 %v16486_v14 }
  0x6b   :  { %394 = vmatmul.mubr.f32.gmra.mrb[4].mxu0 %v16582_v3 }
  0x6c   :  { %399 = vmatprep.mubr.f32.mxu0 %v23686_v0 }
  0x6f   :  { %401 = vmatmul.mubr.f32.gmra.mrb[6].mxu0 %v16617_v42 }
  0x70   :  { %406 = vmatprep.mubr.f32.mxu0 %v23686_v0 }
  0x73   :  { %408 = vmatmul.mubr.f32.gmra.mrb[8].mxu0 %v16640_v12 }
  0x74   :  { %413 = vmatprep.mubr.f32.mxu0 %v23686_v0 }
  0x77   :  { %415 = vmatmul.mubr.f32.gmra.mrb[10].mxu0 %v16642_v13 }
  0x78   :  { %501 = vmatprep.mubr.f32.mxu0 %v23686_v0 }
  0x7b   :  { %504 = vmatmul.mubr.f32.vlgmr.msra.gmra.mrb[0].mxu0 %v16563_v55  ;;  %v77_v55 = vld [vmem:[#allocation2 + $0x10] sm:$0xff] }
  0x7c   :  { %13904 = vmatpush1.bf16.msra.mxu0 %v16504_v20  ;;  %509 = vmatprep.mubr.f32.mxu0 %v23686_v0 }
  0x7d   :  { %13906 = vmatprep.subr.bf16.mxu0 %v16518_v32 }
  0x7f   :  { %512 = vmatmul.mubr.f32.gmra.mrb[2].mxu0 %v16596_v10 }
  0x80   :  { %517 = vmatprep.mubr.f32.mxu0 %v23686_v0  ;;  %13908 = vmatpush1.bf16.msra.mxu0 %v16537_v38 }
  0x81   :  { %13910 = vmatprep.subr.bf16.mxu0 %v13909_v22  ;;  %v16770_v22 = vand.u32 4294901760, %v923_v7 }
  0x83   :  { %520 = vmatmul.mubr.f32.gmra.mrb[4].mxu0 %v16599_v11 }
  0x84   :  { %525 = vmatprep.mubr.f32.mxu0 %v23686_v0 }
  0x87   :  { %528 = vmatmul.mubr.f32.gmra.mrb[6].mxu0 %v16631_v54  ;;  %v936_v54 = vsel %vm128_vm0, %v81_v25, 0 }
  0x88   :  { %533 = vmatprep.mubr.f32.mxu0 %v23686_v0  ;;  %v955_v62 = vand.u32 4294901760, %v936_v54 }
  0x8a   :  { %v16762_v5 = vpack.c.bf16 %v955_v62, %v951_v61 }
  0x8b   :  { %536 = vmatmul.mubr.f32.gmra.mrb[8].mxu0 %v16653_v30 }
  0x8c   :  { %541 = vmatprep.mubr.f32.mxu0 %v23686_v0 }
  0x8f   :  { %544 = vmatmul.mubr.f32.gmra.mrb[10].mxu0 %v16656_v40 }
  0x90   :  { %622 = vmatprep.mubr.f32.mxu0 %v23686_v0 }
  0x93   :  { %626 = vmatmul.mubr.f32.vlgmr.msra.gmra.mrb[0].mxu0 %v210_v1  ;;  %v80_v1 = vld [vmem:[#allocation2 + $0x28] sm:$0xff] }
  0x94   :  { %13912 = vmatpush1.bf16.msra.mxu0 %v13911_v41  ;;  %631 = vmatprep.mubr.f32.mxu0 %v23686_v0  ;;  %v949_v49 = vand.u32 4294901760, %v80_v1 }
  0x95   :  { %13914 = vmatprep.subr.bf16.mxu0 %v13913_v15 }
  0x96   :  { %v16778_v40 = vsub.f32 %v80_v1, %v949_v49 }
  0x97   :  { %635 = vmatmul.mubr.f32.gmra.mrb[2].mxu0 %v221_v31  ;;  %v943_v31 = vand.u32 4294901760, %v75_v39 }
  0x98   :  { %640 = vmatprep.mubr.f32.mxu0 %v23686_v0  ;;  %13916 = vmatpush1.bf16.msra.mxu0 %v13915_v43 }
  0x99   :  { %13918 = vmatprep.subr.bf16.mxu0 %v16486_v14  ;;  %v945_v14 = vand.u32 4294901760, %v78_v21  ;;  %v16767_v8 = vsub.f32 %v75_v39, %v943_v31 }
  0x9b   :  { %644 = vmatmul.mubr.f32.gmra.mrb[4].mxu0 %v232_v35  ;;  %v16727_v33 = vpack.c.bf16 %v945_v14, %v941_v23  ;;  %v947_v35 = vand.u32 4294901760, %v77_v55  ;;  %v1088_v15 = vand.u32 4294901760, %v16767_v8 }
  0x9c   :  { %649 = vmatprep.mubr.f32.mxu0 %v23686_v0 }
  0x9d   :  { %v16755_v60 = vpack.c.bf16 %v947_v35, %v943_v31  ;;  %v16772_v30 = vsub.f32 %v77_v55, %v947_v35  ;;  %v1089_v52 = vsub.f32 %v16767_v8, %v1088_v15  ;;  %v931_v35 = vsel %vm115_vm2, %v16575_v59, 0 }
  0x9f   :  { %653 = vmatmul.mubr.f32.gmra.mrb[6].mxu0 %v243_v4  ;;  %v1100_v46 = vand.u32 4294901760, %v16772_v30  ;;  %v1090_v55 = vand.u32 4294901760, %v1089_v52 }
  0xa0   :  { %658 = vmatprep.mubr.f32.mxu0 %v23686_v0 }
  0xa1   :  { %v1101_v24 = vsub.f32 %v16772_v30, %v1100_v46 }
  0xa3   :  { %662 = vmatmul.mubr.f32.gmra.mrb[8].mxu0 %v254_v27  ;;  %v16792_v27 = vsub.f32 %v79_v51, %v951_v61  ;;  %v1102_v25 = vand.u32 4294901760, %v1101_v24  ;;  %v16850_v61 = vand.u32 4294901760, %v931_v35 }
  0xa4   :  { %667 = vmatprep.mubr.f32.mxu0 %v23686_v0 }
  0xa5   :  { %v16860_v52 = vsub.f32 %v931_v35, %v16850_v61 }
  0xa7   :  { %671 = vmatmul.mubr.f32.gmra.mrb[10].mxu0 %v265_v29  ;;  %v16794_v29 = vsub.f32 %v936_v54, %v955_v62  ;;  %v13935_v62 = vpack.c.bf16 %v1102_v25, %v1090_v55  ;;  %v1060_v55 = vand.u32 4294901760, %v16860_v52 }
  0xa8   :  { %765 = vmatprep.mubr.f32.mxu0 %v23686_v0 }
  0xab   :  { %767 = vmatmul.mubr.f32.vlgmr.msra.gmra.mrb[0].mxu0 %v16550_v47 }
  0xac   :  { %13920 = vmatpush1.bf16.msra.mxu0 %v16504_v20  ;;  %772 = vmatprep.mubr.f32.mxu0 %v23686_v0  ;;  %v16737_v20 = vsub.f32 %v78_v21, %v945_v14  ;;  %v1124_v21 = vand.u32 4294901760, %v16794_v29 }
  0xad   :  { %13922 = vmatprep.subr.bf16.mxu0 %v16518_v32  ;;  %v82_v32 = vld [vmem:[#allocation2 + $0x38] sm:$0xf] }
  0xae   :  { %v1094_v10 = vand.u32 4294901760, %v16737_v20  ;;  %v939_v11 = vsel %vm128_vm0, %v82_v32, 0  ;;  %v16824_v32 = vsub.f32 %v927_v16, %v16799_v44 }
  0xaf   :  { %774 = vmatmul.mubr.f32.gmra.mrb[2].mxu0 %v16580_v2  ;;  %v953_v50 = vand.u32 4294901760, %v939_v11 }
  0xb0   :  { %779 = vmatprep.mubr.f32.mxu0 %v23686_v0  ;;  %13924 = vmatpush1.bf16.msra.mxu0 %v16537_v38  ;;  %v1082_v38 = vand.u32 4294901760, %v16735_v34  ;;  %v1095_v57 = vsub.f32 %v16737_v20, %v1094_v10  ;;  %v1038_v51 = vand.u32 4294901760, %v16824_v32 }
  0xb1   :  { %13926 = vmatprep.subr.bf16.mxu0 %v16727_v33  ;;  %v16757_v63 = vpack.c.bf16 %v953_v50, %v949_v49  ;;  %v16780_v41 = vsub.f32 %v939_v11, %v953_v50  ;;  %v16831_v11 = vand.u32 4294901760, %v929_v17 }
  0xb2   :  { %v1083_v56 = vsub.f32 %v16735_v34, %v1082_v38  ;;  %v1096_v6 = vand.u32 4294901760, %v1095_v57 }
  0xb3   :  { %781 = vmatmul.mubr.f32.gmra.mrb[4].mxu0 %v16582_v3  ;;  %v1118_v48 = vand.u32 4294901760, %v16780_v41  ;;  %v16848_v57 = vsub.f32 %v929_v17, %v16831_v11 }
  0xb4   :  { %786 = vmatprep.mubr.f32.mxu0 %v23686_v0  ;;  %v1084_v4 = vand.u32 4294901760, %v1083_v56 }
  0xb5   :  { %v1119_v14 = vsub.f32 %v16780_v41, %v1118_v48  ;;  %v1049_v16 = vand.u32 4294901760, %v16848_v57 }
  0xb6   :  { %v13933_v9 = vpack.c.bf16 %v1096_v6, %v1084_v4 }
  0xb7   :  { %788 = vmatmul.mubr.f32.gmra.mrb[6].mxu0 %v16617_v42  ;;  %v1120_v50 = vand.u32 4294901760, %v1119_v14 }
  0xb8   :  { %793 = vmatprep.mubr.f32.mxu0 %v23686_v0 }
  0xbb   :  { %795 = vmatmul.mubr.f32.gmra.mrb[8].mxu0 %v16640_v12 }
  0xbc   :  { %800 = vmatprep.mubr.f32.mxu0 %v23686_v0 }
  0xbf   :  { %802 = vmatmul.mubr.f32.gmra.mrb[10].mxu0 %v16642_v13 }
  0xc0   :  { %880 = vmatprep.mubr.f32.mxu0 %v23686_v0 }
  0xc3   :  { %882 = vmatmul.mubr.f32.vlgmr.msra.gmra.mrb[0].mxu0 %v16550_v47  ;;  %v925_v47 = vsel %vm115_vm2, %v16502_v19, 0 }
  0xc4   :  { %13928 = vmatpush1.bf16.msra.mxu0 %v16755_v60  ;;  %887 = vmatprep.mubr.f32.mxu0 %v23686_v0  ;;  %v16787_v43 = vand.u32 4294901760, %v925_v47 }
  0xc5   :  { %13930 = vmatprep.subr.bf16.mxu0 %v16757_v63 }
  0xc6   :  { %v16807_v53 = vsub.f32 %v925_v47, %v16787_v43 }
  0xc7   :  { %889 = vmatmul.mubr.f32.gmra.mrb[2].mxu0 %v16580_v2  ;;  %v16784_v2 = vsub.f32 %v923_v7, %v16770_v22  ;;  %v933_v7 = vsel %vm115_vm2, %v16607_v26, 0 }
  0xc8   :  { %894 = vmatprep.mubr.f32.mxu0 %v23686_v0  ;;  %13932 = vmatpush1.bf16.msra.mxu0 %v16762_v5  ;;  %v1027_v1 = vand.u32 4294901760, %v16807_v53  ;;  %v16862_v24 = vand.u32 4294901760, %v933_v7 }
  0xc9   :  { %13934 = vmatprep.subr.bf16.mxu0 %v13933_v9  ;;  %v1016_v45 = vand.u32 4294901760, %v16784_v2 }
  0xca   :  { %v1028_v56 = vsub.f32 %v16807_v53, %v1027_v1  ;;  %v16872_v25 = vsub.f32 %v933_v7, %v16862_v24 }
  0xcb   :  { %896 = vmatmul.mubr.f32.gmra.mrb[4].mxu0 %v16582_v3  ;;  %v1106_v3 = vand.u32 4294901760, %v16778_v40  ;;  %v1017_v39 = vsub.f32 %v16784_v2, %v1016_v45 }
  0xcc   :  { %901 = vmatprep.mubr.f32.mxu0 %v23686_v0  ;;  %v1029_v47 = vand.u32 4294901760, %v1028_v56  ;;  %v1071_v35 = vand.u32 4294901760, %v16872_v25  ;;  %v13943_v56 = vpack.c.bf16 %v16772_v30, %v16767_v8  ;;  %v1748_v8 = vld [vmem:[#allocation2 + $0x98] sm:$0xff] }
  0xcd   :  { %v1107_v23 = vsub.f32 %v16778_v40, %v1106_v3  ;;  %v1018_v54 = vand.u32 4294901760, %v1017_v39  ;;  %v1050_v39 = vsub.f32 %v16848_v57, %v1049_v16  ;;  %v1775_v30 = vand.u32 4294901760, %v1748_v8 }
  0xcf   :  { %903 = vmatmul.mubr.f32.gmra.mrb[6].mxu0 %v16617_v42  ;;  %v1112_v42 = vand.u32 4294901760, %v16792_v27  ;;  %v1108_v49 = vand.u32 4294901760, %v1107_v23  ;;  %v13941_v23 = vpack.c.bf16 %v16737_v20, %v16735_v34  ;;  %v13959_v34 = vpack.c.bf16 %v1100_v46, %v1088_v15  ;;  %v1747_v15 = vld [vmem:[#allocation2 + $0x90] sm:$0xff] }
  0xd0   :  { %908 = vmatprep.mubr.f32.mxu0 %v23686_v0  ;;  %v13961_v20 = vpack.c.bf16 %v1118_v48, %v1106_v3  ;;  %v1751_v3 = vld [vmem:[#allocation2 + $0xb0] sm:$0xf] }
  0xd1   :  { %v1113_v31 = vsub.f32 %v16792_v27, %v1112_v42  ;;  %v13937_v9 = vpack.c.bf16 %v1120_v50, %v1108_v49  ;;  %v1072_v50 = vsub.f32 %v16872_v25, %v1071_v35 }
  0xd3   :  { %910 = vmatmul.mubr.f32.gmra.mrb[8].mxu0 %v16640_v12  ;;  %v1125_v12 = vsub.f32 %v16794_v29, %v1124_v21  ;;  %v1114_v4 = vand.u32 4294901760, %v1113_v31  ;;  %v1051_v31 = vand.u32 4294901760, %v1050_v39 }
  0xd4   :  { %915 = vmatprep.mubr.f32.mxu0 %v23686_v0 }
  0xd5   :  { %v1126_v6 = vand.u32 4294901760, %v1125_v12  ;;  %v1061_v12 = vsub.f32 %v16860_v52, %v1060_v55 }
  0xd7   :  { %917 = vmatmul.mubr.f32.gmra.mrb[10].mxu0 %v16642_v13  ;;  %v1039_v13 = vsub.f32 %v16824_v32, %v1038_v51  ;;  %v13939_v17 = vpack.c.bf16 %v1126_v6, %v1114_v4  ;;  %v1062_v49 = vand.u32 4294901760, %v1061_v12  ;;  %v13947_v4 = vpack.c.bf16 %v16794_v29, %v16792_v27  ;;  %v1750_v27 = vld [vmem:[#allocation2 + $0xa8] sm:$0xff] }
  0xd8   :  { %1013 = vmatprep.mubr.f32.mxu0 %v23686_v0  ;;  %v13957_v6 = vpack.c.bf16 %v1094_v10, %v1082_v38  ;;  %v13963_v38 = vpack.c.bf16 %v1124_v21, %v1112_v42  ;;  %v1746_v10 = vld [vmem:[#allocation2 + $0x88] sm:$0xff]  ;;  %v1730_v42 = vrot.slane %v16497_v18, 2  ;;  %v1731_v21 = vrot.slane %v16502_v19, 2 }
  0xd9   :  { %v1040_v14 = vand.u32 4294901760, %v1039_v13  ;;  %v1733_v13 = vrot.slane %v16530_v36, 2 }
  0xdb   :  { %1019 = vmatmul.mubr.f32.vlgmr.msra.gmra.mrb[0].mxu0 %v1018_v54  ;;  %v1073_v54 = vand.u32 4294901760, %v1072_v50  ;;  %v1734_v39 = vsel %vm1729_vm3, %v1731_v21, %v1733_v13  ;;  %v1737_v50 = vrot.slane %v16570_v58, 2 }
  0xdc   :  { %13936 = vmatpush1.bf16.msra.mxu0 %v13935_v62  ;;  %1024 = vmatprep.mubr.f32.mxu0 %v23686_v0  ;;  %v13945_v62 = vpack.c.bf16 %v16780_v41, %v16778_v40 }
  0xdd   :  { %13938 = vmatprep.subr.bf16.mxu0 %v13937_v9 }
  0xdf   :  { %1030 = vmatmul.mubr.f32.gmra.mrb[2].mxu0 %v1029_v47 }
  0xe0   :  { %1035 = vmatprep.mubr.f32.mxu0 %v23686_v0  ;;  %13940 = vmatpush1.bf16.msra.mxu0 %v13939_v17  ;;  %v1732_v17 = vsel %vm1729_vm3, %v1730_v42, %v1731_v21 }
  0xe1   :  { %13942 = vmatprep.subr.bf16.mxu0 %v13941_v23 }
  0xe3   :  { %1041 = vmatmul.mubr.f32.gmra.mrb[4].mxu0 %v1040_v14  ;;  %v1753_v14 = vsel %vm115_vm2, %v1732_v17, 0 }
  0xe4   :  { %1046 = vmatprep.mubr.f32.mxu0 %v23686_v0 }
  0xe7   :  { %1052 = vmatmul.mubr.f32.gmra.mrb[6].mxu0 %v1051_v31  ;;  %v1755_v31 = vsel %vm115_vm2, %v1734_v39, 0 }
  0xe8   :  { %1057 = vmatprep.mubr.f32.mxu0 %v23686_v0 }
  0xeb   :  { %1063 = vmatmul.mubr.f32.gmra.mrb[8].mxu0 %v1062_v49 }
  0xec   :  { %1068 = vmatprep.mubr.f32.mxu0 %v23686_v0 }
  0xef   :  { %1074 = vmatmul.mubr.f32.gmra.mrb[10].mxu0 %v1073_v54  ;;  %v17021_v54 = vand.u32 4294901760, %v1755_v31 }
  0xf0   :  { %1184 = vmatprep.mubr.f32.mxu0 %v23686_v0 }
  0xf3   :  { %1186 = vmatmul.mubr.f32.vlgmr.msra.gmra.mrb[0].mxu0 %v16770_v22 }
  0xf4   :  { %13944 = vmatpush1.bf16.msra.mxu0 %v13943_v56  ;;  %1191 = vmatprep.mubr.f32.mxu0 %v23686_v0 }
  0xf5   :  { %13946 = vmatprep.subr.bf16.mxu0 %v13945_v62 }
  0xf7   :  { %1193 = vmatmul.mubr.f32.gmra.mrb[2].mxu0 %v16787_v43 }
  0xf8   :  { %1198 = vmatprep.mubr.f32.mxu0 %v23686_v0  ;;  %13948 = vmatpush1.bf16.msra.mxu0 %v13947_v4 }
  0xf9   :  { %13950 = vmatprep.subr.bf16.mxu0 %v16727_v33 }
  0xfb   :  { %1200 = vmatmul.mubr.f32.gmra.mrb[4].mxu0 %v16799_v44 }
  0xfc   :  { %1205 = vmatprep.mubr.f32.mxu0 %v23686_v0 }
  0xff   :  { %1207 = vmatmul.mubr.f32.gmra.mrb[6].mxu0 %v16831_v11 }
 0x100   :  { %1212 = vmatprep.mubr.f32.mxu0 %v23686_v0 }
 0x103   :  { %1214 = vmatmul.mubr.f32.gmra.mrb[8].mxu0 %v16850_v61 }
 0x104   :  { %1219 = vmatprep.mubr.f32.mxu0 %v23686_v0 }
 0x107   :  { %1221 = vmatmul.mubr.f32.gmra.mrb[10].mxu0 %v16862_v24 }
 0x108   :  { %1307 = vmatprep.mubr.f32.mxu0 %v23686_v0 }
 0x10b   :  { %1310 = vmatmul.mubr.f32.vlgmr.msra.gmra.mrb[0].mxu0 %v16784_v2  ;;  %v1745_v2 = vld [vmem:[#allocation2 + $0x80] sm:$0xff] }
 0x10c   :  { %13952 = vmatpush1.bf16.msra.mxu0 %v16755_v60  ;;  %1315 = vmatprep.mubr.f32.mxu0 %v23686_v0  ;;  %v1773_v48 = vand.u32 4294901760, %v1745_v2 }
 0x10d   :  { %13954 = vmatprep.subr.bf16.mxu0 %v16757_v63 }
 0x10f   :  { %1318 = vmatmul.mubr.f32.gmra.mrb[2].mxu0 %v16807_v53  ;;  %v1779_v53 = vand.u32 4294901760, %v1750_v27 }
 0x110   :  { %1323 = vmatprep.mubr.f32.mxu0 %v23686_v0  ;;  %13956 = vmatpush1.bf16.msra.mxu0 %v16762_v5 }
 0x111   :  { %13958 = vmatprep.subr.bf16.mxu0 %v13957_v6 }
 0x113   :  { %1326 = vmatmul.mubr.f32.gmra.mrb[4].mxu0 %v16824_v32 }
 0x114   :  { %1331 = vmatprep.mubr.f32.mxu0 %v23686_v0 }
 0x117   :  { %1334 = vmatmul.mubr.f32.gmra.mrb[6].mxu0 %v16848_v57 }
 0x118   :  { %1339 = vmatprep.mubr.f32.mxu0 %v23686_v0 }
 0x11b   :  { %1342 = vmatmul.mubr.f32.gmra.mrb[8].mxu0 %v16860_v52 }
 0x11c   :  { %1347 = vmatprep.mubr.f32.mxu0 %v23686_v0 }
 0x11f   :  { %1350 = vmatmul.mubr.f32.gmra.mrb[10].mxu0 %v16872_v25  ;;  %v17004_v25 = vsub.f32 %v1745_v2, %v1773_v48 }
 0x120   :  { %1428 = vmatprep.mubr.f32.mxu0 %v23686_v0 }
 0x121   :  { %v1918_v62 = vand.u32 4294901760, %v17004_v25 }
 0x123   :  { %1432 = vmatmul.mubr.f32.vlgmr.msra.gmra.mrb[0].mxu0 %v1016_v45  ;;  %v1777_v45 = vand.u32 4294901760, %v1747_v15 }
 0x124   :  { %13960 = vmatpush1.bf16.msra.mxu0 %v13959_v34  ;;  %1437 = vmatprep.mubr.f32.mxu0 %v23686_v0 }
 0x125   :  { %13962 = vmatprep.subr.bf16.mxu0 %v13961_v20  ;;  %v16989_v18 = vpack.c.bf16 %v1777_v45, %v1773_v48  ;;  %v17010_v12 = vsub.f32 %v1747_v15, %v1777_v45 }
 0x127   :  { %1441 = vmatmul.mubr.f32.gmra.mrb[2].mxu0 %v1027_v1  ;;  %v1749_v1 = vld [vmem:[#allocation2 + $0xa0] sm:$0xff]  ;;  %v1930_v34 = vand.u32 4294901760, %v17010_v12 }
 0x128   :  { %1446 = vmatprep.mubr.f32.mxu0 %v23686_v0  ;;  %13964 = vmatpush1.bf16.msra.mxu0 %v13963_v38  ;;  %v1781_v19 = vand.u32 4294901760, %v1749_v1  ;;  %v1740_v38 = vrot.slane %v16607_v26, 2 }
 0x129   :  { %13966 = vmatprep.subr.bf16.mxu0 %v16727_v33  ;;  %v1771_v33 = vand.u32 4294901760, %v1746_v10 }
 0x12a   :  { %v17029_v4 = vsub.f32 %v1749_v1, %v1781_v19 }
 0x12b   :  { %1450 = vmatmul.mubr.f32.gmra.mrb[4].mxu0 %v1038_v51  ;;  %v16959_v40 = vpack.c.bf16 %v1775_v30, %v1771_v33  ;;  %v16967_v41 = vsub.f32 %v1746_v10, %v1771_v33  ;;  %v1766_v51 = vsel %vm128_vm0, %v1751_v3, 0  ;;  %v17040_v10 = vsub.f32 %v1755_v31, %v17021_v54 }
 0x12c   :  { %1455 = vmatprep.mubr.f32.mxu0 %v23686_v0  ;;  %v1785_v9 = vand.u32 4294901760, %v1766_v51  ;;  %v1919_v33 = vsub.f32 %v17004_v25, %v1918_v62  ;;  %v1942_v2 = vand.u32 4294901760, %v17029_v4  ;;  %v1742_v3 = vrot.slane %v16612_v28, 2 }
 0x12d   :  { %v1857_v48 = vand.u32 4294901760, %v17040_v10 }
 0x12e   :  { %v16998_v23 = vpack.c.bf16 %v1785_v9, %v1781_v19  ;;  %v17031_v6 = vsub.f32 %v1766_v51, %v1785_v9  ;;  %v1943_v28 = vsub.f32 %v17029_v4, %v1942_v2 }
 0x12f   :  { %1459 = vmatmul.mubr.f32.gmra.mrb[6].mxu0 %v1049_v16  ;;  %v1858_v19 = vsub.f32 %v17040_v10, %v1857_v48 }
 0x130   :  { %1464 = vmatprep.mubr.f32.mxu0 %v23686_v0 }
 0x131   :  { %v1859_v31 = vand.u32 4294901760, %v1858_v19 }
 0x133   :  { %1468 = vmatmul.mubr.f32.gmra.mrb[8].mxu0 %v1060_v55  ;;  %v1735_v55 = vrot.slane %v16535_v37, 2 }
 0x134   :  { %1473 = vmatprep.mubr.f32.mxu0 %v23686_v0 }
 0x135   :  { %v1736_v37 = vsel %vm1729_vm3, %v1733_v13, %v1735_v55 }
 0x136   :  { %v1757_v58 = vsel %vm115_vm2, %v1736_v37, 0 }
 0x137   :  { %1477 = vmatmul.mubr.f32.gmra.mrb[10].mxu0 %v1071_v35  ;;  %v17013_v35 = vsub.f32 %v1750_v27, %v1779_v53 }
 0x138   :  { %1571 = vmatprep.mubr.f32.mxu0 %v23686_v0 }
 0x13b   :  { %1573 = vmatmul.mubr.f32.vlgmr.msra.gmra.mrb[0].mxu0 %v16770_v22 }
 0x13c   :  { %13968 = vmatpush1.bf16.msra.mxu0 %v16755_v60  ;;  %1578 = vmatprep.mubr.f32.mxu0 %v23686_v0  ;;  %v16969_v60 = vsub.f32 %v1748_v8, %v1775_v30  ;;  %v17047_v30 = vand.u32 4294901760, %v1757_v58 }
 0x13d   :  { %13970 = vmatprep.subr.bf16.mxu0 %v16757_v63  ;;  %v1752_v63 = vld [vmem:[#allocation2 + $0xb8] sm:$0xf] }
 0x13e   :  { %v1924_v29 = vand.u32 4294901760, %v16969_v60  ;;  %v1769_v46 = vsel %vm128_vm0, %v1752_v63, 0  ;;  %v1931_v63 = vsub.f32 %v17010_v12, %v1930_v34  ;;  %v17070_v42 = vsub.f32 %v1757_v58, %v17047_v30 }
 0x13f   :  { %1580 = vmatmul.mubr.f32.gmra.mrb[2].mxu0 %v16787_v43  ;;  %v1783_v32 = vand.u32 4294901760, %v1769_v46 }
 0x140   :  { %1585 = vmatprep.mubr.f32.mxu0 %v23686_v0  ;;  %13972 = vmatpush1.bf16.msra.mxu0 %v16762_v5  ;;  %v1912_v5 = vand.u32 4294901760, %v16967_v41  ;;  %v1925_v7 = vsub.f32 %v16969_v60, %v1924_v29  ;;  %v1868_v13 = vand.u32 4294901760, %v17070_v42 }
 0x141   :  { %13974 = vmatprep.subr.bf16.mxu0 %v16959_v40  ;;  %v16992_v47 = vpack.c.bf16 %v1783_v32, %v1779_v53  ;;  %v17016_v49 = vsub.f32 %v1769_v46, %v1783_v32  ;;  %v1920_v53 = vand.u32 4294901760, %v1919_v33  ;;  %v1932_v32 = vand.u32 4294901760, %v1931_v63 }
 0x142   :  { %v1913_v57 = vsub.f32 %v16967_v41, %v1912_v5  ;;  %v1926_v52 = vand.u32 4294901760, %v1925_v7  ;;  %v1743_v7 = vsel %vm1729_vm3, %v1740_v38, %v1742_v3 }
 0x143   :  { %1587 = vmatmul.mubr.f32.gmra.mrb[4].mxu0 %v16799_v44  ;;  %v1948_v20 = vand.u32 4294901760, %v17016_v49  ;;  %v13983_v17 = vpack.c.bf16 %v1932_v32, %v1920_v53  ;;  %v13991_v32 = vpack.c.bf16 %v17010_v12, %v17004_v25  ;;  %v2590_v25 = vld [vmem:[#allocation2 + $0xd8] sm:$0xff] }
 0x144   :  { %1592 = vmatprep.mubr.f32.mxu0 %v23686_v0  ;;  %v1914_v16 = vand.u32 4294901760, %v1913_v57  ;;  %v2617_v12 = vand.u32 4294901760, %v2590_v25 }
 0x145   :  { %v1949_v27 = vsub.f32 %v17016_v49, %v1948_v20 }
 0x146   :  { %v13981_v36 = vpack.c.bf16 %v1926_v52, %v1914_v16 }
 0x147   :  { %1594 = vmatmul.mubr.f32.gmra.mrb[6].mxu0 %v16831_v11  ;;  %v1950_v57 = vand.u32 4294901760, %v1949_v27 }
 0x148   :  { %1599 = vmatprep.mubr.f32.mxu0 %v23686_v0 }
 0x14b   :  { %1601 = vmatmul.mubr.f32.gmra.mrb[8].mxu0 %v16850_v61 }
 0x14c   :  { %1606 = vmatprep.mubr.f32.mxu0 %v23686_v0 }
 0x14f   :  { %1608 = vmatmul.mubr.f32.gmra.mrb[10].mxu0 %v16862_v24 }
 0x150   :  { %1686 = vmatprep.mubr.f32.mxu0 %v23686_v0 }
 0x153   :  { %1688 = vmatmul.mubr.f32.vlgmr.msra.gmra.mrb[0].mxu0 %v16770_v22  ;;  %v17007_v22 = vand.u32 4294901760, %v1753_v14 }
 0x154   :  { %13976 = vmatpush1.bf16.msra.mxu0 %v16989_v18  ;;  %1693 = vmatprep.mubr.f32.mxu0 %v23686_v0 }
 0x155   :  { %13978 = vmatprep.subr.bf16.mxu0 %v16992_v47  ;;  %v17025_v56 = vsub.f32 %v1753_v14, %v17007_v22  ;;  %v1944_v14 = vand.u32 4294901760, %v1943_v28  ;;  %v13993_v28 = vpack.c.bf16 %v17016_v49, %v17013_v35 }
 0x157   :  { %1695 = vmatmul.mubr.f32.gmra.mrb[2].mxu0 %v16787_v43  ;;  %v1738_v43 = vrot.slane %v16575_v59, 2  ;;  %v1936_v59 = vand.u32 4294901760, %v17013_v35  ;;  %v1846_v8 = vand.u32 4294901760, %v17025_v56 }
 0x158   :  { %1700 = vmatprep.mubr.f32.mxu0 %v23686_v0  ;;  %13980 = vmatpush1.bf16.msra.mxu0 %v16998_v23 }
 0x159   :  { %13982 = vmatprep.subr.bf16.mxu0 %v13981_v36  ;;  %v1937_v15 = vsub.f32 %v17013_v35, %v1936_v59  ;;  %v1741_v46 = vsel %vm1729_vm3, %v1738_v43, %v1740_v38  ;;  %v1847_v45 = vsub.f32 %v17025_v56, %v1846_v8  ;;  %v1763_v36 = vsel %vm115_vm2, %v1743_v7, 0 }
 0x15a   :  { %v1761_v1 = vsel %vm115_vm2, %v1741_v46, 0 }
 0x15b   :  { %1702 = vmatmul.mubr.f32.gmra.mrb[4].mxu0 %v16799_v44  ;;  %v1739_v44 = vsel %vm1729_vm3, %v1737_v50, %v1738_v43  ;;  %v1938_v51 = vand.u32 4294901760, %v1937_v15  ;;  %v1848_v9 = vand.u32 4294901760, %v1847_v45  ;;  %v17091_v52 = vand.u32 4294901760, %v1761_v1 }
 0x15c   :  { %1707 = vmatprep.mubr.f32.mxu0 %v23686_v0  ;;  %v1759_v26 = vsel %vm115_vm2, %v1739_v44, 0  ;;  %v17102_v43 = vand.u32 4294901760, %v1763_v36  ;;  %v13989_v44 = vpack.c.bf16 %v16969_v60, %v16967_v41  ;;  %v14007_v41 = vpack.c.bf16 %v1930_v34, %v1918_v62  ;;  %v2589_v62 = vld [vmem:[#allocation2 + $0xd0] sm:$0xff] }
 0x15d   :  { %v17072_v21 = vand.u32 4294901760, %v1759_v26  ;;  %v13985_v55 = vpack.c.bf16 %v1950_v57, %v1938_v51  ;;  %v17100_v50 = vsub.f32 %v1761_v1, %v17091_v52  ;;  %v14005_v1 = vpack.c.bf16 %v1924_v29, %v1912_v5  ;;  %v2588_v29 = vld [vmem:[#allocation2 + $0xc8] sm:$0xff]  ;;  %v2591_v57 = vld [vmem:[#allocation2 + $0xe0] sm:$0xff] }
 0x15e   :  { %v14009_v60 = vpack.c.bf16 %v1948_v20, %v1936_v59  ;;  %v2593_v59 = vld [vmem:[#allocation2 + $0xf0] sm:$0xf] }
 0x15f   :  { %1709 = vmatmul.mubr.f32.gmra.mrb[6].mxu0 %v16831_v11  ;;  %v1954_v11 = vand.u32 4294901760, %v17031_v6  ;;  %v17089_v16 = vsub.f32 %v1759_v26, %v17072_v21  ;;  %v1890_v63 = vand.u32 4294901760, %v17100_v50  ;;  %v17112_v26 = vsub.f32 %v1763_v36, %v17102_v43 }
 0x160   :  { %1714 = vmatprep.mubr.f32.mxu0 %v23686_v0  ;;  %v2608_v7 = vsel %vm128_vm0, %v2593_v59, 0 }
 0x161   :  { %v1879_v37 = vand.u32 4294901760, %v17089_v16  ;;  %v1891_v27 = vsub.f32 %v17100_v50, %v1890_v63  ;;  %v1901_v46 = vand.u32 4294901760, %v17112_v26  ;;  %v14011_v5 = vpack.c.bf16 %v1954_v11, %v1942_v2  ;;  %v17221_v2 = vld [vmem:[%s23649_s0] sm:$0xff] }
 0x163   :  { %1716 = vmatmul.mubr.f32.gmra.mrb[8].mxu0 %v16850_v61  ;;  %v1955_v61 = vsub.f32 %v17031_v6, %v1954_v11  ;;  %v1880_v33 = vsub.f32 %v17089_v16, %v1879_v37  ;;  %v1892_v3 = vand.u32 4294901760, %v1891_v27  ;;  %v1902_v45 = vsub.f32 %v17112_v26, %v1901_v46 }
 0x164   :  { %1721 = vmatprep.mubr.f32.mxu0 %v23686_v0  ;;  %v2572_v11 = vrot.slane %v17221_v2, 3 }
 0x165   :  { %v1956_v39 = vand.u32 4294901760, %v1955_v61  ;;  %v1881_v15 = vand.u32 4294901760, %v1880_v33  ;;  %v1903_v53 = vand.u32 4294901760, %v1902_v45  ;;  %v13995_v61 = vpack.c.bf16 %v17031_v6, %v17029_v4  ;;  %v2592_v4 = vld [vmem:[#allocation2 + $0xe8] sm:$0xff] }
 0x167   :  { %1723 = vmatmul.mubr.f32.gmra.mrb[10].mxu0 %v16862_v24  ;;  %v1869_v24 = vsub.f32 %v17070_v42, %v1868_v13  ;;  %v13987_v58 = vpack.c.bf16 %v1956_v39, %v1944_v14  ;;  %v17244_v14 = vld [vmem:[%s23649_s0 + $0x10] sm:$0xff] }
 0x168   :  { %1843 = vmatprep.mubr.f32.mxu0 %v23686_v0  ;;  %v2575_v39 = vrot.slane %v17244_v14, 3 }
 0x169   :  { %v1870_v38 = vand.u32 4294901760, %v1869_v24 }
 0x16b   :  { %1849 = vmatmul.mubr.f32.vlgmr.msra.gmra.mrb[0].mxu0 %v1848_v9 }
 0x16c   :  { %13984 = vmatpush1.bf16.msra.mxu0 %v13983_v17  ;;  %1854 = vmatprep.mubr.f32.mxu0 %v23686_v0  ;;  %v2627_v17 = vand.u32 4294901760, %v2608_v7 }
 0x16d   :  { %13986 = vmatprep.subr.bf16.mxu0 %v13985_v55 }
 0x16f   :  { %1860 = vmatmul.mubr.f32.gmra.mrb[2].mxu0 %v1859_v31 }
 0x170   :  { %1865 = vmatprep.mubr.f32.mxu0 %v23686_v0  ;;  %13988 = vmatpush1.bf16.msra.mxu0 %v13987_v58 }
 0x171   :  { %13990 = vmatprep.subr.bf16.mxu0 %v13989_v44 }
 0x173   :  { %1871 = vmatmul.mubr.f32.gmra.mrb[4].mxu0 %v1870_v38  ;;  %v17261_v38 = vld [vmem:[%s23649_s0 + $0x18] sm:$0xf] }
 0x174   :  { %1876 = vmatprep.mubr.f32.mxu0 %v23686_v0 }
 0x177   :  { %1882 = vmatmul.mubr.f32.gmra.mrb[6].mxu0 %v1881_v15 }
 0x178   :  { %1887 = vmatprep.mubr.f32.mxu0 %v23686_v0 }
 0x17b   :  { %1893 = vmatmul.mubr.f32.gmra.mrb[8].mxu0 %v1892_v3 }
 0x17c   :  { %1898 = vmatprep.mubr.f32.mxu0 %v23686_v0 }
 0x17f   :  { %1904 = vmatmul.mubr.f32.gmra.mrb[10].mxu0 %v1903_v53  ;;  %v17288_v53 = vld [vmem:[%s23649_s0 + $0x28] sm:$0xff] }
 0x180   :  { %2014 = vmatprep.mubr.f32.mxu0 %v23686_v0 }
 0x183   :  { %2016 = vmatmul.mubr.f32.vlgmr.msra.gmra.mrb[0].mxu0 %v17007_v22 }
 0x184   :  { %13992 = vmatpush1.bf16.msra.mxu0 %v13991_v32  ;;  %2021 = vmatprep.mubr.f32.mxu0 %v23686_v0  ;;  %v2580_v32 = vrot.slane %v17288_v53, 3 }
 0x185   :  { %13994 = vmatprep.subr.bf16.mxu0 %v13993_v28 }
 0x187   :  { %2023 = vmatmul.mubr.f32.gmra.mrb[2].mxu0 %v17021_v54 }
 0x188   :  { %2028 = vmatprep.mubr.f32.mxu0 %v23686_v0  ;;  %13996 = vmatpush1.bf16.msra.mxu0 %v13995_v61 }
 0x189   :  { %13998 = vmatprep.subr.bf16.mxu0 %v16959_v40 }
 0x18b   :  { %2030 = vmatmul.mubr.f32.gmra.mrb[4].mxu0 %v17047_v30 }
 0x18c   :  { %2035 = vmatprep.mubr.f32.mxu0 %v23686_v0 }
 0x18f   :  { %2037 = vmatmul.mubr.f32.gmra.mrb[6].mxu0 %v17072_v21 }
 0x190   :  { %2042 = vmatprep.mubr.f32.mxu0 %v23686_v0 }
 0x193   :  { %2044 = vmatmul.mubr.f32.gmra.mrb[8].mxu0 %v17091_v52 }
 0x194   :  { %2049 = vmatprep.mubr.f32.mxu0 %v23686_v0 }
 0x197   :  { %2051 = vmatmul.mubr.f32.gmra.mrb[10].mxu0 %v17102_v43 }
 0x198   :  { %2137 = vmatprep.mubr.f32.mxu0 %v23686_v0 }
 0x19b   :  { %2140 = vmatmul.mubr.f32.vlgmr.msra.gmra.mrb[0].mxu0 %v17025_v56  ;;  %v2587_v56 = vld [vmem:[#allocation2 + $0xc0] sm:$0xff] }
 0x19c   :  { %14000 = vmatpush1.bf16.msra.mxu0 %v16989_v18  ;;  %2145 = vmatprep.mubr.f32.mxu0 %v23686_v0  ;;  %v2615_v20 = vand.u32 4294901760, %v2587_v56 }
 0x19d   :  { %14002 = vmatprep.subr.bf16.mxu0 %v16992_v47 }
 0x19e   :  { %v17264_v33 = vsub.f32 %v2587_v56, %v2615_v20 }
 0x19f   :  { %2148 = vmatmul.mubr.f32.gmra.mrb[2].mxu0 %v17040_v10  ;;  %v2619_v10 = vand.u32 4294901760, %v2589_v62 }
 0x1a0   :  { %2153 = vmatprep.mubr.f32.mxu0 %v23686_v0  ;;  %14004 = vmatpush1.bf16.msra.mxu0 %v16998_v23 }
 0x1a1   :  { %14006 = vmatprep.subr.bf16.mxu0 %v14005_v1  ;;  %v17270_v15 = vsub.f32 %v2589_v62, %v2619_v10  ;;  %v2760_v1 = vand.u32 4294901760, %v17264_v33 }
 0x1a3   :  { %2156 = vmatmul.mubr.f32.gmra.mrb[4].mxu0 %v17070_v42 }
 0x1a4   :  { %2161 = vmatprep.mubr.f32.mxu0 %v23686_v0 }
 0x1a7   :  { %2164 = vmatmul.mubr.f32.gmra.mrb[6].mxu0 %v17089_v16  ;;  %v2623_v16 = vand.u32 4294901760, %v2591_v57 }
 0x1a8   :  { %2169 = vmatprep.mubr.f32.mxu0 %v23686_v0 }
 0x1ab   :  { %2172 = vmatmul.mubr.f32.gmra.mrb[8].mxu0 %v17100_v50 }
 0x1ac   :  { %2177 = vmatprep.mubr.f32.mxu0 %v23686_v0 }
 0x1af   :  { %2180 = vmatmul.mubr.f32.gmra.mrb[10].mxu0 %v17112_v26 }
 0x1b0   :  { %2258 = vmatprep.mubr.f32.mxu0 %v23686_v0 }
 0x1b3   :  { %2262 = vmatmul.mubr.f32.vlgmr.msra.gmra.mrb[0].mxu0 %v1846_v8  ;;  %v2621_v8 = vand.u32 4294901760, %v2592_v4 }
 0x1b4   :  { %14008 = vmatpush1.bf16.msra.mxu0 %v14007_v41  ;;  %2267 = vmatprep.mubr.f32.mxu0 %v23686_v0  ;;  %v17299_v41 = vsub.f32 %v2591_v57, %v2623_v16 }
 0x1b5   :  { %14010 = vmatprep.subr.bf16.mxu0 %v14009_v60  ;;  %v17273_v27 = vsub.f32 %v2592_v4, %v2621_v8  ;;  %v17301_v60 = vsub.f32 %v2608_v7, %v2627_v17  ;;  %v2761_v4 = vsub.f32 %v17264_v33, %v2760_v1 }
 0x1b7   :  { %2271 = vmatmul.mubr.f32.gmra.mrb[2].mxu0 %v1857_v48  ;;  %v17227_v48 = vld [vmem:[%s23649_s0 + $0x8] sm:$0xff] }
 0x1b8   :  { %2276 = vmatprep.mubr.f32.mxu0 %v23686_v0  ;;  %14012 = vmatpush1.bf16.msra.mxu0 %v14011_v5  ;;  %v2573_v42 = vrot.slane %v17227_v48, 3  ;;  %v2772_v5 = vand.u32 4294901760, %v17270_v15 }
 0x1b9   :  { %14014 = vmatprep.subr.bf16.mxu0 %v16959_v40  ;;  %v2613_v40 = vand.u32 4294901760, %v2588_v29 }
 0x1ba   :  { %v2574_v24 = vsel %vm2571_vm4, %v2572_v11, %v2573_v42  ;;  %v2576_v58 = vsel %vm2571_vm4, %v2573_v42, %v2575_v39  ;;  %v2773_v59 = vsub.f32 %v17270_v15, %v2772_v5 }
 0x1bb   :  { %2280 = vmatmul.mubr.f32.gmra.mrb[4].mxu0 %v1868_v13  ;;  %v17199_v35 = vpack.c.bf16 %v2617_v12, %v2613_v40  ;;  %v17207_v49 = vsub.f32 %v2588_v29, %v2613_v40  ;;  %v17239_v13 = vpack.c.bf16 %v2619_v10, %v2615_v20  ;;  %v2595_v50 = vsel %vm115_vm2, %v2574_v24, 0 }
 0x1bc   :  { %2285 = vmatprep.mubr.f32.mxu0 %v23686_v0  ;;  %v2597_v26 = vsel %vm115_vm2, %v2576_v58, 0  ;;  %v2784_v10 = vand.u32 4294901760, %v17299_v41 }
 0x1bd   :  { %v17291_v28 = vand.u32 4294901760, %v2597_v26 }
 0x1bf   :  { %2289 = vmatmul.mubr.f32.gmra.mrb[6].mxu0 %v1879_v37  ;;  %v17253_v37 = vpack.c.bf16 %v2627_v17, %v2623_v16  ;;  %v17315_v56 = vsub.f32 %v2597_v26, %v17291_v28 }
 0x1c0   :  { %2294 = vmatprep.mubr.f32.mxu0 %v23686_v0 }
 0x1c1   :  { %v2699_v7 = vand.u32 4294901760, %v17315_v56 }
 0x1c3   :  { %2298 = vmatmul.mubr.f32.gmra.mrb[8].mxu0 %v1890_v63  ;;  %v17267_v63 = vand.u32 4294901760, %v2595_v50 }
 0x1c4   :  { %2303 = vmatprep.mubr.f32.mxu0 %v23686_v0 }
 0x1c5   :  { %v17295_v61 = vsub.f32 %v2595_v50, %v17267_v63 }
 0x1c7   :  { %2307 = vmatmul.mubr.f32.gmra.mrb[10].mxu0 %v1901_v46  ;;  %v2688_v62 = vand.u32 4294901760, %v17295_v61 }
 0x1c8   :  { %2401 = vmatprep.mubr.f32.mxu0 %v23686_v0 }
 0x1cb   :  { %2403 = vmatmul.mubr.f32.vlgmr.msra.gmra.mrb[0].mxu0 %v17007_v22 }
 0x1cc   :  { %14016 = vmatpush1.bf16.msra.mxu0 %v16989_v18  ;;  %2408 = vmatprep.mubr.f32.mxu0 %v23686_v0  ;;  %v17209_v18 = vsub.f32 %v2590_v25, %v2617_v12  ;;  %v2778_v25 = vand.u32 4294901760, %v17273_v27  ;;  %v17311_v12 = vld [vmem:[%s23649_s0 + $0x30] sm:$0xff] }
 0x1cd   :  { %14018 = vmatprep.subr.bf16.mxu0 %v16992_v47  ;;  %v2594_v47 = vld [vmem:[#allocation2 + $0xf8] sm:$0xf] }
 0x1ce   :  { %v2766_v6 = vand.u32 4294901760, %v17209_v18  ;;  %v2611_v34 = vsel %vm128_vm0, %v2594_v47, 0  ;;  %v2582_v47 = vrot.slane %v17311_v12, 3 }
 0x1cf   :  { %2410 = vmatmul.mubr.f32.gmra.mrb[2].mxu0 %v17021_v54  ;;  %v2625_v51 = vand.u32 4294901760, %v2611_v34 }
 0x1d0   :  { %2415 = vmatprep.mubr.f32.mxu0 %v23686_v0  ;;  %14020 = vmatpush1.bf16.msra.mxu0 %v16998_v23  ;;  %v2754_v23 = vand.u32 4294901760, %v17207_v49  ;;  %v2767_v9 = vsub.f32 %v17209_v18, %v2766_v6  ;;  %v2583_v42 = vsel %vm2571_vm4, %v2580_v32, %v2582_v47 }
 0x1d1   :  { %14022 = vmatprep.subr.bf16.mxu0 %v17199_v35  ;;  %v17247_v36 = vpack.c.bf16 %v2625_v51, %v2621_v8  ;;  %v17276_v46 = vsub.f32 %v2611_v34, %v2625_v51  ;;  %v2779_v8 = vsub.f32 %v17273_v27, %v2778_v25  ;;  %v17341_v51 = vld [vmem:[%s23649_s0 + $0x38] sm:$0xf] }
 0x1d2   :  { %v2755_v19 = vsub.f32 %v17207_v49, %v2754_v23  ;;  %v2768_v31 = vand.u32 4294901760, %v2767_v9  ;;  %v2584_v57 = vrot.slane %v17341_v51, 3  ;;  %v2762_v9 = vand.u32 4294901760, %v2761_v4 }
 0x1d3   :  { %2417 = vmatmul.mubr.f32.gmra.mrb[4].mxu0 %v17047_v30  ;;  %v2790_v40 = vand.u32 4294901760, %v17276_v46  ;;  %v2780_v24 = vand.u32 4294901760, %v2779_v8 }
 0x1d4   :  { %2422 = vmatprep.mubr.f32.mxu0 %v23686_v0  ;;  %v2756_v55 = vand.u32 4294901760, %v2755_v19  ;;  %v2689_v19 = vsub.f32 %v17295_v61, %v2688_v62  ;;  %v2585_v58 = vsel %vm2571_vm4, %v2582_v47, %v2584_v57  ;;  %v14037_v57 = vpack.c.bf16 %v17209_v18, %v17207_v49 }
 0x1d5   :  { %v2791_v11 = vsub.f32 %v17276_v46, %v2790_v40  ;;  %v2605_v47 = vsel %vm115_vm2, %v2585_v58, 0  ;;  %v14055_v49 = vpack.c.bf16 %v2772_v5, %v2760_v1  ;;  %v14057_v18 = vpack.c.bf16 %v2790_v40, %v2778_v25  ;;  %v3430_v1 = vld [vmem:[#allocation2 + $0x110] sm:$0xff] }
 0x1d6   :  { %v14029_v44 = vpack.c.bf16 %v2768_v31, %v2756_v55  ;;  %v2785_v55 = vsub.f32 %v17299_v41, %v2784_v10  ;;  %v2603_v31 = vsel %vm115_vm2, %v2583_v42, 0  ;;  %v3434_v25 = vld [vmem:[#allocation2 + $0x130] sm:$0xf] }
 0x1d7   :  { %2424 = vmatmul.mubr.f32.gmra.mrb[6].mxu0 %v17072_v21  ;;  %v2792_v50 = vand.u32 4294901760, %v2791_v11  ;;  %v17382_v11 = vand.u32 4294901760, %v2605_v47 }
 0x1d8   :  { %2429 = vmatprep.mubr.f32.mxu0 %v23686_v0 }
 0x1d9   :  { %v14033_v4 = vpack.c.bf16 %v2792_v50, %v2780_v24 }
 0x1db   :  { %2431 = vmatmul.mubr.f32.gmra.mrb[8].mxu0 %v17091_v52 }
 0x1dc   :  { %2436 = vmatprep.mubr.f32.mxu0 %v23686_v0 }
 0x1df   :  { %2438 = vmatmul.mubr.f32.gmra.mrb[10].mxu0 %v17102_v43 }
 0x1e0   :  { %2516 = vmatprep.mubr.f32.mxu0 %v23686_v0 }
 0x1e3   :  { %2518 = vmatmul.mubr.f32.vlgmr.msra.gmra.mrb[0].mxu0 %v17007_v22  ;;  %v2577_v22 = vrot.slane %v17261_v38, 3 }
 0x1e4   :  { %14024 = vmatpush1.bf16.msra.mxu0 %v17239_v13  ;;  %2523 = vmatprep.mubr.f32.mxu0 %v23686_v0 }
 0x1e5   :  { %14026 = vmatprep.subr.bf16.mxu0 %v17247_v36  ;;  %v2578_v3 = vsel %vm2571_vm4, %v2575_v39, %v2577_v22  ;;  %v2774_v39 = vand.u32 4294901760, %v2773_v59  ;;  %v2690_v22 = vand.u32 4294901760, %v2689_v19 }
 0x1e6   :  { %v2599_v29 = vsel %vm115_vm2, %v2578_v3, 0 }
 0x1e7   :  { %2525 = vmatmul.mubr.f32.gmra.mrb[2].mxu0 %v17021_v54  ;;  %v17282_v54 = vld [vmem:[%s23649_s0 + $0x20] sm:$0xff]  ;;  %v17322_v34 = vand.u32 4294901760, %v2599_v29 }
 0x1e8   :  { %2530 = vmatprep.mubr.f32.mxu0 %v23686_v0  ;;  %14028 = vmatpush1.bf16.msra.mxu0 %v17253_v37  ;;  %v2579_v45 = vrot.slane %v17282_v54, 3 }
 0x1e9   :  { %14030 = vmatprep.subr.bf16.mxu0 %v14029_v44  ;;  %v17350_v16 = vsub.f32 %v2599_v29, %v17322_v34  ;;  %v2700_v44 = vsub.f32 %v17315_v56, %v2699_v7  ;;  %v2786_v29 = vand.u32 4294901760, %v2785_v55  ;;  %v17392_v55 = vsub.f32 %v2605_v47, %v17382_v11 }
 0x1eb   :  { %2532 = vmatmul.mubr.f32.gmra.mrb[4].mxu0 %v17047_v30  ;;  %v2581_v30 = vsel %vm2571_vm4, %v2579_v45, %v2580_v32  ;;  %v2710_v26 = vand.u32 4294901760, %v17350_v16  ;;  %v17371_v45 = vand.u32 4294901760, %v2603_v31  ;;  %v14031_v32 = vpack.c.bf16 %v2774_v39, %v2762_v9 }
 0x1ec   :  { %2537 = vmatprep.mubr.f32.mxu0 %v23686_v0  ;;  %v2601_v20 = vsel %vm115_vm2, %v2581_v30, 0  ;;  %v2701_v59 = vand.u32 4294901760, %v2700_v44  ;;  %v2743_v24 = vand.u32 4294901760, %v17392_v55 }
 0x1ed   :  { %v17352_v17 = vand.u32 4294901760, %v2601_v20 }
 0x1ee   :  { %v2744_v58 = vsub.f32 %v17392_v55, %v2743_v24 }
 0x1ef   :  { %2539 = vmatmul.mubr.f32.gmra.mrb[6].mxu0 %v17072_v21  ;;  %v2796_v21 = vand.u32 4294901760, %v17301_v60  ;;  %v17369_v3 = vsub.f32 %v2601_v20, %v17352_v17  ;;  %v17380_v20 = vsub.f32 %v2603_v31, %v17371_v45 }
 0x1f0   :  { %2544 = vmatprep.mubr.f32.mxu0 %v23686_v0  ;;  %v2745_v44 = vand.u32 4294901760, %v2744_v58  ;;  %v3420_v58 = vrot.slane %v17282_v54, 4 }
 0x1f1   :  { %v2721_v8 = vand.u32 4294901760, %v17369_v3  ;;  %v2732_v39 = vand.u32 4294901760, %v17380_v20 }
 0x1f3   :  { %2546 = vmatmul.mubr.f32.gmra.mrb[8].mxu0 %v17091_v52  ;;  %v2797_v52 = vsub.f32 %v17301_v60, %v2796_v21  ;;  %v2722_v9 = vsub.f32 %v17369_v3, %v2721_v8  ;;  %v2733_v31 = vsub.f32 %v17380_v20, %v2732_v39 }
 0x1f4   :  { %2551 = vmatprep.mubr.f32.mxu0 %v23686_v0 }
 0x1f5   :  { %v2798_v30 = vand.u32 4294901760, %v2797_v52  ;;  %v2723_v52 = vand.u32 4294901760, %v2722_v9  ;;  %v2734_v50 = vand.u32 4294901760, %v2733_v31 }
 0x1f7   :  { %2553 = vmatmul.mubr.f32.gmra.mrb[10].mxu0 %v17102_v43  ;;  %v2711_v43 = vsub.f32 %v17350_v16, %v2710_v26  ;;  %v14035_v42 = vpack.c.bf16 %v2798_v30, %v2786_v29  ;;  %v14043_v29 = vpack.c.bf16 %v17301_v60, %v17299_v41  ;;  %v14053_v30 = vpack.c.bf16 %v2766_v6, %v2754_v23  ;;  %v3429_v6 = vld [vmem:[#allocation2 + $0x108] sm:$0xff] }
 0x1f8   :  { %2685 = vmatprep.mubr.f32.mxu0 %v23686_v0  ;;  %v14059_v23 = vpack.c.bf16 %v2796_v21, %v2784_v10  ;;  %v3433_v41 = vld [vmem:[#allocation2 + $0x128] sm:$0xff]  ;;  %v3413_v10 = vrot.slane %v17221_v2, 4  ;;  %v3414_v21 = vrot.slane %v17227_v48, 4 }
 0x1f9   :  { %v2712_v19 = vand.u32 4294901760, %v2711_v43 }
 0x1fb   :  { %2691 = vmatmul.mubr.f32.vlgmr.msra.gmra.mrb[0].mxu0 %v2690_v22  ;;  %v14039_v22 = vpack.c.bf16 %v17270_v15, %v17264_v33  ;;  %v3431_v33 = vld [vmem:[#allocation2 + $0x118] sm:$0xff] }
 0x1fc   :  { %14032 = vmatpush1.bf16.msra.mxu0 %v14031_v32  ;;  %2696 = vmatprep.mubr.f32.mxu0 %v23686_v0  ;;  %v14041_v32 = vpack.c.bf16 %v17276_v46, %v17273_v27  ;;  %v3458_v15 = vand.u32 4294901760, %v3431_v33 }
 0x1fd   :  { %14034 = vmatprep.subr.bf16.mxu0 %v14033_v4 }
 0x1ff   :  { %2702 = vmatmul.mubr.f32.gmra.mrb[2].mxu0 %v2701_v59  ;;  %v3416_v59 = vrot.slane %v17244_v14, 4 }
 0x200   :  { %2707 = vmatprep.mubr.f32.mxu0 %v23686_v0  ;;  %14036 = vmatpush1.bf16.msra.mxu0 %v14035_v42  ;;  %v3415_v42 = vsel %vm128_vm0, %v3413_v10, %v3414_v21 }
 0x201   :  { %14038 = vmatprep.subr.bf16.mxu0 %v14037_v57  ;;  %v3417_v9 = vsel %vm128_vm0, %v3414_v21, %v3416_v59 }
 0x203   :  { %2713 = vmatmul.mubr.f32.gmra.mrb[4].mxu0 %v2712_v19  ;;  %v3436_v19 = vsel %vm115_vm2, %v3415_v42, 0 }
 0x204   :  { %2718 = vmatprep.mubr.f32.mxu0 %v23686_v0 }
 0x207   :  { %2724 = vmatmul.mubr.f32.gmra.mrb[6].mxu0 %v2723_v52  ;;  %v3438_v52 = vsel %vm115_vm2, %v3417_v9, 0 }
 0x208   :  { %2729 = vmatprep.mubr.f32.mxu0 %v23686_v0 }
 0x20b   :  { %2735 = vmatmul.mubr.f32.gmra.mrb[8].mxu0 %v2734_v50 }
 0x20c   :  { %2740 = vmatprep.mubr.f32.mxu0 %v23686_v0 }
 0x20f   :  { %2746 = vmatmul.mubr.f32.gmra.mrb[10].mxu0 %v2745_v44  ;;  %v17541_v44 = vand.u32 4294901760, %v3438_v52 }
 0x210   :  { %2856 = vmatprep.mubr.f32.mxu0 %v23686_v0 }
 0x213   :  { %2858 = vmatmul.mubr.f32.vlgmr.msra.gmra.mrb[0].mxu0 %v17267_v63 }
 0x214   :  { %14040 = vmatpush1.bf16.msra.mxu0 %v14039_v22  ;;  %2863 = vmatprep.mubr.f32.mxu0 %v23686_v0 }
 0x215   :  { %14042 = vmatprep.subr.bf16.mxu0 %v14041_v32 }
 0x217   :  { %2865 = vmatmul.mubr.f32.gmra.mrb[2].mxu0 %v17291_v28 }
 0x218   :  { %2870 = vmatprep.mubr.f32.mxu0 %v23686_v0  ;;  %14044 = vmatpush1.bf16.msra.mxu0 %v14043_v29 }
 0x219   :  { %14046 = vmatprep.subr.bf16.mxu0 %v17199_v35 }
 0x21b   :  { %2872 = vmatmul.mubr.f32.gmra.mrb[4].mxu0 %v17322_v34 }
 0x21c   :  { %2877 = vmatprep.mubr.f32.mxu0 %v23686_v0 }
 0x21f   :  { %2879 = vmatmul.mubr.f32.gmra.mrb[6].mxu0 %v17352_v17 }
 0x220   :  { %2884 = vmatprep.mubr.f32.mxu0 %v23686_v0 }
 0x223   :  { %2886 = vmatmul.mubr.f32.gmra.mrb[8].mxu0 %v17371_v45 }
 0x224   :  { %2891 = vmatprep.mubr.f32.mxu0 %v23686_v0 }
 0x227   :  { %2893 = vmatmul.mubr.f32.gmra.mrb[10].mxu0 %v17382_v11 }
 0x228   :  { %2979 = vmatprep.mubr.f32.mxu0 %v23686_v0 }
 0x22b   :  { %2982 = vmatmul.mubr.f32.vlgmr.msra.gmra.mrb[0].mxu0 %v17295_v61  ;;  %v3428_v61 = vld [vmem:[#allocation2 + $0x100] sm:$0xff] }
 0x22c   :  { %14048 = vmatpush1.bf16.msra.mxu0 %v17239_v13  ;;  %2987 = vmatprep.mubr.f32.mxu0 %v23686_v0  ;;  %v3456_v40 = vand.u32 4294901760, %v3428_v61 }
 0x22d   :  { %14050 = vmatprep.subr.bf16.mxu0 %v17247_v36 }
 0x22f   :  { %2990 = vmatmul.mubr.f32.gmra.mrb[2].mxu0 %v17315_v56  ;;  %v3460_v56 = vand.u32 4294901760, %v3430_v1 }
 0x230   :  { %2995 = vmatprep.mubr.f32.mxu0 %v23686_v0  ;;  %14052 = vmatpush1.bf16.msra.mxu0 %v17253_v37 }
 0x231   :  { %14054 = vmatprep.subr.bf16.mxu0 %v14053_v30  ;;  %v17509_v4 = vpack.c.bf16 %v3460_v56, %v3456_v40  ;;  %v17530_v31 = vsub.f32 %v3430_v1, %v3460_v56 }
 0x233   :  { %2998 = vmatmul.mubr.f32.gmra.mrb[4].mxu0 %v17350_v16  ;;  %v3432_v16 = vld [vmem:[#allocation2 + $0x120] sm:$0xff] }
 0x234   :  { %3003 = vmatprep.mubr.f32.mxu0 %v23686_v0  ;;  %v3464_v2 = vand.u32 4294901760, %v3432_v16 }
 0x236   :  { %v17549_v29 = vsub.f32 %v3432_v16, %v3464_v2 }
 0x237   :  { %3006 = vmatmul.mubr.f32.gmra.mrb[6].mxu0 %v17369_v3 }
 0x238   :  { %3011 = vmatprep.mubr.f32.mxu0 %v23686_v0 }
 0x23b   :  { %3014 = vmatmul.mubr.f32.gmra.mrb[8].mxu0 %v17380_v20 }
 0x23c   :  { %3019 = vmatprep.mubr.f32.mxu0 %v23686_v0 }
 0x23f   :  { %3022 = vmatmul.mubr.f32.gmra.mrb[10].mxu0 %v17392_v55  ;;  %v17524_v55 = vsub.f32 %v3428_v61, %v3456_v40  ;;  %v3625_v61 = vand.u32 4294901760, %v17549_v29 }
 0x240   :  { %3100 = vmatprep.mubr.f32.mxu0 %v23686_v0 }
 0x241   :  { %v3601_v32 = vand.u32 4294901760, %v17524_v55 }
 0x243   :  { %3104 = vmatmul.mubr.f32.vlgmr.msra.gmra.mrb[0].mxu0 %v2688_v62  ;;  %v3462_v62 = vand.u32 4294901760, %v3433_v41 }
 0x244   :  { %14056 = vmatpush1.bf16.msra.mxu0 %v14055_v49  ;;  %3109 = vmatprep.mubr.f32.mxu0 %v23686_v0  ;;  %v3613_v49 = vand.u32 4294901760, %v17530_v31 }
 0x245   :  { %14058 = vmatprep.subr.bf16.mxu0 %v14057_v18 }
 0x247   :  { %3113 = vmatmul.mubr.f32.gmra.mrb[2].mxu0 %v2699_v7 }
 0x248   :  { %3118 = vmatprep.mubr.f32.mxu0 %v23686_v0  ;;  %14060 = vmatpush1.bf16.msra.mxu0 %v14059_v23  ;;  %v3423_v23 = vrot.slane %v17311_v12, 4 }
 0x249   :  { %14062 = vmatprep.subr.bf16.mxu0 %v17199_v35  ;;  %v3454_v35 = vand.u32 4294901760, %v3429_v6 }
 0x24b   :  { %3122 = vmatmul.mubr.f32.gmra.mrb[4].mxu0 %v2710_v26  ;;  %v17479_v27 = vpack.c.bf16 %v3458_v15, %v3454_v35  ;;  %v17487_v46 = vsub.f32 %v3429_v6, %v3454_v35  ;;  %v3449_v26 = vsel %vm128_vm0, %v3434_v25, 0  ;;  %v17560_v6 = vsub.f32 %v3438_v52, %v17541_v44 }
 0x24c   :  { %3127 = vmatprep.mubr.f32.mxu0 %v23686_v0  ;;  %v3468_v48 = vand.u32 4294901760, %v3449_v26  ;;  %v3602_v35 = vsub.f32 %v17524_v55, %v3601_v32  ;;  %v3425_v25 = vrot.slane %v17341_v51, 4  ;;  %v3626_v51 = vsub.f32 %v17549_v29, %v3625_v61 }
 0x24d   :  { %v3540_v40 = vand.u32 4294901760, %v17560_v6 }
 0x24e   :  { %v17518_v57 = vpack.c.bf16 %v3468_v48, %v3464_v2  ;;  %v17551_v30 = vsub.f32 %v3449_v26, %v3468_v48 }
 0x24f   :  { %3131 = vmatmul.mubr.f32.gmra.mrb[6].mxu0 %v2721_v8  ;;  %v3541_v2 = vsub.f32 %v17560_v6, %v3540_v40 }
 0x250   :  { %3136 = vmatprep.mubr.f32.mxu0 %v23686_v0 }
 0x251   :  { %v3542_v52 = vand.u32 4294901760, %v3541_v2 }
 0x253   :  { %3140 = vmatmul.mubr.f32.gmra.mrb[8].mxu0 %v2732_v39  ;;  %v3418_v39 = vrot.slane %v17261_v38, 4 }
 0x254   :  { %3145 = vmatprep.mubr.f32.mxu0 %v23686_v0 }
 0x255   :  { %v3419_v38 = vsel %vm128_vm0, %v3416_v59, %v3418_v39 }
 0x256   :  { %v3440_v54 = vsel %vm115_vm2, %v3419_v38, 0 }
 0x257   :  { %3149 = vmatmul.mubr.f32.gmra.mrb[10].mxu0 %v2743_v24  ;;  %v17533_v24 = vsub.f32 %v3433_v41, %v3462_v62 }
 0x258   :  { %3243 = vmatprep.mubr.f32.mxu0 %v23686_v0 }
 0x25b   :  { %3245 = vmatmul.mubr.f32.vlgmr.msra.gmra.mrb[0].mxu0 %v17267_v63 }
 0x25c   :  { %14064 = vmatpush1.bf16.msra.mxu0 %v17239_v13  ;;  %3250 = vmatprep.mubr.f32.mxu0 %v23686_v0  ;;  %v17489_v13 = vsub.f32 %v3431_v33, %v3458_v15  ;;  %v17567_v15 = vand.u32 4294901760, %v3440_v54 }
 0x25d   :  { %14066 = vmatprep.subr.bf16.mxu0 %v17247_v36  ;;  %v3435_v36 = vld [vmem:[#allocation2 + $0x138] sm:$0xf] }
 0x25e   :  { %v3607_v60 = vand.u32 4294901760, %v17489_v13  ;;  %v3452_v5 = vsel %vm128_vm0, %v3435_v36, 0  ;;  %v3614_v36 = vsub.f32 %v17530_v31, %v3613_v49  ;;  %v17590_v10 = vsub.f32 %v3440_v54, %v17567_v15 }
 0x25f   :  { %3252 = vmatmul.mubr.f32.gmra.mrb[2].mxu0 %v17291_v28  ;;  %v3466_v7 = vand.u32 4294901760, %v3452_v5 }
 0x260   :  { %3257 = vmatprep.mubr.f32.mxu0 %v23686_v0  ;;  %14068 = vmatpush1.bf16.msra.mxu0 %v17253_v37  ;;  %v3595_v37 = vand.u32 4294901760, %v17487_v46  ;;  %v3608_v47 = vsub.f32 %v17489_v13, %v3607_v60  ;;  %v3551_v59 = vand.u32 4294901760, %v17590_v10 }
 0x261   :  { %14070 = vmatprep.subr.bf16.mxu0 %v17479_v27  ;;  %v17512_v43 = vpack.c.bf16 %v3466_v7, %v3462_v62  ;;  %v17536_v50 = vsub.f32 %v3452_v5, %v3466_v7  ;;  %v3603_v62 = vand.u32 4294901760, %v3602_v35  ;;  %v3615_v7 = vand.u32 4294901760, %v3614_v36 }
 0x262   :  { %v3596_v3 = vsub.f32 %v17487_v46, %v3595_v37  ;;  %v3609_v20 = vand.u32 4294901760, %v3608_v47  ;;  %v3426_v47 = vsel %vm128_vm0, %v3423_v23, %v3425_v25 }
 0x263   :  { %3259 = vmatmul.mubr.f32.gmra.mrb[4].mxu0 %v17322_v34  ;;  %v3631_v18 = vand.u32 4294901760, %v17536_v50  ;;  %v14079_v42 = vpack.c.bf16 %v3615_v7, %v3603_v62  ;;  %v14087_v7 = vpack.c.bf16 %v17530_v31, %v17524_v55 }
 0x264   :  { %3264 = vmatprep.mubr.f32.mxu0 %v23686_v0  ;;  %v3597_v8 = vand.u32 4294901760, %v3596_v3 }
 0x265   :  { %v3632_v41 = vsub.f32 %v17536_v50, %v3631_v18 }
 0x266   :  { %v14077_v14 = vpack.c.bf16 %v3609_v20, %v3597_v8 }
 0x267   :  { %3266 = vmatmul.mubr.f32.gmra.mrb[6].mxu0 %v17352_v17  ;;  %v3633_v3 = vand.u32 4294901760, %v3632_v41 }
 0x268   :  { %3271 = vmatprep.mubr.f32.mxu0 %v23686_v0 }
 0x26b   :  { %3273 = vmatmul.mubr.f32.gmra.mrb[8].mxu0 %v17371_v45 }
 0x26c   :  { %3278 = vmatprep.mubr.f32.mxu0 %v23686_v0 }
 0x26f   :  { %3280 = vmatmul.mubr.f32.gmra.mrb[10].mxu0 %v17382_v11 }
 0x270   :  { %3358 = vmatprep.mubr.f32.mxu0 %v23686_v0 }
 0x273   :  { %3360 = vmatmul.mubr.f32.vlgmr.msra.gmra.mrb[0].mxu0 %v17267_v63  ;;  %v17527_v63 = vand.u32 4294901760, %v3436_v19 }
 0x274   :  { %14072 = vmatpush1.bf16.msra.mxu0 %v17509_v4  ;;  %3365 = vmatprep.mubr.f32.mxu0 %v23686_v0 }
 0x275   :  { %14074 = vmatprep.subr.bf16.mxu0 %v17512_v43  ;;  %v17545_v22 = vsub.f32 %v3436_v19, %v17527_v63  ;;  %v3627_v19 = vand.u32 4294901760, %v3626_v51  ;;  %v14089_v51 = vpack.c.bf16 %v17536_v50, %v17533_v24  ;;  %v5086_v50 = vld [vmem:[#allocation4 + $0xf0] sm:$0xff] }
 0x277   :  { %3367 = vmatmul.mubr.f32.gmra.mrb[2].mxu0 %v17291_v28  ;;  %v3421_v28 = vrot.slane %v17288_v53, 4  ;;  %v3619_v53 = vand.u32 4294901760, %v17533_v24  ;;  %v3529_v33 = vand.u32 4294901760, %v17545_v22 }
 0x278   :  { %3372 = vmatprep.mubr.f32.mxu0 %v23686_v0  ;;  %14076 = vmatpush1.bf16.msra.mxu0 %v17518_v57 }
 0x279   :  { %14078 = vmatprep.subr.bf16.mxu0 %v14077_v14  ;;  %v3620_v1 = vsub.f32 %v17533_v24, %v3619_v53  ;;  %v3424_v5 = vsel %vm128_vm0, %v3421_v28, %v3423_v23  ;;  %v3530_v56 = vsub.f32 %v17545_v22, %v3529_v33  ;;  %v3446_v14 = vsel %vm115_vm2, %v3426_v47, 0  ;;  %v5085_v24 = vld [vmem:[#allocation4 + $0xe8] sm:$0xff] }
 0x27a   :  { %v3444_v16 = vsel %vm115_vm2, %v3424_v5, 0 }
 0x27b   :  { %3374 = vmatmul.mubr.f32.gmra.mrb[4].mxu0 %v17322_v34  ;;  %v3422_v34 = vsel %vm128_vm0, %v3420_v58, %v3421_v28  ;;  %v3621_v26 = vand.u32 4294901760, %v3620_v1  ;;  %v3531_v48 = vand.u32 4294901760, %v3530_v56  ;;  %v17611_v20 = vand.u32 4294901760, %v3444_v16 }
 0x27c   :  { %3379 = vmatprep.mubr.f32.mxu0 %v23686_v0  ;;  %v3442_v12 = vsel %vm115_vm2, %v3422_v34, 0  ;;  %v17622_v28 = vand.u32 4294901760, %v3446_v14  ;;  %v14085_v34 = vpack.c.bf16 %v17489_v13, %v17487_v46  ;;  %v14103_v46 = vpack.c.bf16 %v3613_v49, %v3601_v32 }
 0x27d   :  { %v17592_v21 = vand.u32 4294901760, %v3442_v12  ;;  %v14081_v39 = vpack.c.bf16 %v3633_v3, %v3621_v26  ;;  %v17620_v58 = vsub.f32 %v3444_v16, %v17611_v20  ;;  %v14101_v16 = vpack.c.bf16 %v3607_v60, %v3595_v37  ;;  %v17743_v60 = vld [vmem:[#allocation4 + $0x1d8] sm:$0xff] }
 0x27e   :  { %v14105_v13 = vpack.c.bf16 %v3631_v18, %v3619_v53  ;;  %v23679_v55 = vand.u32 4294901760, %v17743_v60  ;;  %v5195_v32 = vand.u32 4294901760, %v5086_v50  ;;  %vm16402_vm0 = vmmov 0  }
 0x27f   :  { %3381 = vmatmul.mubr.f32.gmra.mrb[6].mxu0 %v17352_v17  ;;  %v3637_v17 = vand.u32 4294901760, %v17551_v30  ;;  %v17609_v8 = vsub.f32 %v3442_v12, %v17592_v21  ;;  %v3573_v36 = vand.u32 4294901760, %v17620_v58  ;;  %v17632_v12 = vsub.f32 %v3446_v14, %v17622_v28  ;;  %v17812_v14 = vld [vmem:[#allocation4 + $0x200] sm:$0xff] }
 0x280   :  { %3386 = vmatprep.mubr.f32.mxu0 %v23686_v0  ;;  %v17767_v53 = vsub.f32 %v17743_v60, %v23679_v55  ;;  %24493 = vst [vmem:[#allocation20_spill] sm:$0xff] %v17812_v14 }
 0x281   :  { %v3562_v38 = vand.u32 4294901760, %v17609_v8  ;;  %v3574_v41 = vsub.f32 %v17620_v58, %v3573_v36  ;;  %v3584_v5 = vand.u32 4294901760, %v17632_v12  ;;  %v14107_v37 = vpack.c.bf16 %v3637_v17, %v3625_v61 }
 0x282   :  { %24485 = vst [vmem:[#allocation12_spill] sm:$0xff] %v17767_v53  ;;  %v23665_v26 = vand.u32 4294901760, %v17767_v53 }
 0x283   :  { %3388 = vmatmul.mubr.f32.gmra.mrb[8].mxu0 %v17371_v45  ;;  %v3638_v45 = vsub.f32 %v17551_v30, %v3637_v17  ;;  %v3563_v35 = vsub.f32 %v17609_v8, %v3562_v38  ;;  %v3575_v25 = vand.u32 4294901760, %v3574_v41  ;;  %v3585_v56 = vsub.f32 %v17632_v12, %v3584_v5 }
 0x284   :  { %3393 = vmatprep.mubr.f32.mxu0 %v23686_v0 }
 0x285   :  { %v3639_v9 = vand.u32 4294901760, %v3638_v45  ;;  %v3564_v1 = vand.u32 4294901760, %v3563_v35  ;;  %v3586_v62 = vand.u32 4294901760, %v3585_v56  ;;  %v14091_v45 = vpack.c.bf16 %v17551_v30, %v17549_v29  ;;  %v17755_v29 = vld [vmem:[#allocation4 + $0x1f0] sm:$0xff]  ;;  %v17757_v30 = vld [vmem:[#allocation4 + $0x1f8] sm:$0xff] }
 0x286   :  { %24482 = vst [vmem:[#allocation9_spill] sm:$0xff] %v17755_v29  ;;  %24483 = vst [vmem:[#allocation10_spill] sm:$0xff] %v17757_v30  ;;  %v23675_v47 = vand.u32 4294901760, %v17757_v30 }
 0x287   :  { %3395 = vmatmul.mubr.f32.gmra.mrb[10].mxu0 %v17382_v11  ;;  %v3552_v11 = vsub.f32 %v17590_v10, %v3551_v59  ;;  %v14083_v54 = vpack.c.bf16 %v3639_v9, %v3627_v19 }
 0x288   :  { %3526 = vmatprep.mubr.f32.mxu0 %v23686_v0  ;;  %v17809_v9 = vsub.f32 %v17757_v30, %v23675_v47 }
 0x289   :  { %v3553_v23 = vand.u32 4294901760, %v3552_v11 }
 0x28a   :  { %24492 = vst [vmem:[#allocation19_spill] sm:$0xff] %v17809_v9 }
 0x28b   :  { %3532 = vmatmul.mubr.f32.vlgmr.msra.gmra.mrb[0].mxu0 %v3531_v48 }
 0x28c   :  { %14080 = vmatpush1.bf16.msra.mxu0 %v14079_v42  ;;  %3537 = vmatprep.mubr.f32.mxu0 %v23686_v0  ;;  %v7196_v42 = vsub.f32 %v17767_v53, %v23665_v26 }
 0x28d   :  { %14082 = vmatprep.subr.bf16.mxu0 %v14081_v39 }
 0x28f   :  { %3543 = vmatmul.mubr.f32.gmra.mrb[2].mxu0 %v3542_v52 }
 0x290   :  { %3548 = vmatprep.mubr.f32.mxu0 %v23686_v0  ;;  %14084 = vmatpush1.bf16.msra.mxu0 %v14083_v54  ;;  %v7197_v54 = vand.u32 4294901760, %v7196_v42 }
 0x291   :  { %14086 = vmatprep.subr.bf16.mxu0 %v14085_v34 }
 0x293   :  { %3554 = vmatmul.mubr.f32.gmra.mrb[4].mxu0 %v3553_v23  ;;  %v23661_v23 = vand.u32 4294901760, %v17809_v9 }
 0x294   :  { %3559 = vmatprep.mubr.f32.mxu0 %v23686_v0 }
 0x297   :  { %3565 = vmatmul.mubr.f32.gmra.mrb[6].mxu0 %v3564_v1  ;;  %v23674_v1 = vand.u32 4294901760, %v17812_v14 }
 0x298   :  { %3570 = vmatprep.mubr.f32.mxu0 %v23686_v0 }
 0x299   :  { %v17840_v56 = vsub.f32 %v17812_v14, %v23674_v1 }
 0x29b   :  { %3576 = vmatmul.mubr.f32.gmra.mrb[8].mxu0 %v3575_v25  ;;  %24498 = vst [vmem:[#allocation25_spill] sm:$0xff] %v17840_v56 }
 0x29c   :  { %3581 = vmatprep.mubr.f32.mxu0 %v23686_v0 }
 0x29f   :  { %3587 = vmatmul.mubr.f32.gmra.mrb[10].mxu0 %v3586_v62 }
 0x2a0   :  { %3697 = vmatprep.mubr.f32.mxu0 %v23686_v0 }
 0x2a3   :  { %3699 = vmatmul.mubr.f32.vlgmr.msra.gmra.mrb[0].mxu0 %v17527_v63 }
 0x2a4   :  { %14088 = vmatpush1.bf16.msra.mxu0 %v14087_v7  ;;  %3704 = vmatprep.mubr.f32.mxu0 %v23686_v0 }
 0x2a5   :  { %14090 = vmatprep.subr.bf16.mxu0 %v14089_v51 }
 0x2a7   :  { %3706 = vmatmul.mubr.f32.gmra.mrb[2].mxu0 %v17541_v44 }
 0x2a8   :  { %3711 = vmatprep.mubr.f32.mxu0 %v23686_v0  ;;  %14092 = vmatpush1.bf16.msra.mxu0 %v14091_v45 }
 0x2a9   :  { %14094 = vmatprep.subr.bf16.mxu0 %v17479_v27 }
 0x2ab   :  { %3713 = vmatmul.mubr.f32.gmra.mrb[4].mxu0 %v17567_v15 }
 0x2ac   :  { %3718 = vmatprep.mubr.f32.mxu0 %v23686_v0 }
 0x2af   :  { %3720 = vmatmul.mubr.f32.gmra.mrb[6].mxu0 %v17592_v21 }
 0x2b0   :  { %3725 = vmatprep.mubr.f32.mxu0 %v23686_v0 }
 0x2b3   :  { %3727 = vmatmul.mubr.f32.gmra.mrb[8].mxu0 %v17611_v20 }
 0x2b4   :  { %3732 = vmatprep.mubr.f32.mxu0 %v23686_v0 }
 0x2b7   :  { %3734 = vmatmul.mubr.f32.gmra.mrb[10].mxu0 %v17622_v28 }
 0x2b8   :  { %3820 = vmatprep.mubr.f32.mxu0 %v23686_v0 }
 0x2bb   :  { %3823 = vmatmul.mubr.f32.vlgmr.msra.gmra.mrb[0].mxu0 %v17545_v22  ;;  %v5192_v22 = vand.u32 4294901760, %v5085_v24 }
 0x2bc   :  { %14096 = vmatpush1.bf16.msra.mxu0 %v17509_v4  ;;  %3828 = vmatprep.mubr.f32.mxu0 %v23686_v0 }
 0x2bd   :  { %14098 = vmatprep.subr.bf16.mxu0 %v17512_v43  ;;  %v17780_v17 = vpack.c.bf16 %v5195_v32, %v5192_v22 }
 0x2bf   :  { %3831 = vmatmul.mubr.f32.gmra.mrb[2].mxu0 %v17560_v6  ;;  %v23676_v6 = vand.u32 4294901760, %v17755_v29  ;;  %24488 = vst [vmem:[#allocation15_spill] sm:$0xff] %v17780_v17 }
 0x2c0   :  { %3836 = vmatprep.mubr.f32.mxu0 %v23686_v0  ;;  %14100 = vmatpush1.bf16.msra.mxu0 %v17518_v57 }
 0x2c1   :  { %14102 = vmatprep.subr.bf16.mxu0 %v14101_v16  ;;  %v17795_v48 = vsub.f32 %v17755_v29, %v23676_v6  ;;  %v23660_v16 = vand.u32 4294901760, %v17840_v56 }
 0x2c3   :  { %3839 = vmatmul.mubr.f32.gmra.mrb[4].mxu0 %v17590_v10  ;;  %v17784_v10 = vsub.f32 %v5086_v50, %v5195_v32  ;;  %24491 = vst [vmem:[#allocation18_spill] sm:$0xff] %v17795_v48  ;;  %v23662_v52 = vand.u32 4294901760, %v17795_v48 }
 0x2c4   :  { %3844 = vmatprep.mubr.f32.mxu0 %v23686_v0 }
 0x2c5   :  { %24490 = vst [vmem:[#allocation17_spill] sm:$0xff] %v17784_v10 }
 0x2c7   :  { %3847 = vmatmul.mubr.f32.gmra.mrb[6].mxu0 %v17609_v8 }
 0x2c8   :  { %3852 = vmatprep.mubr.f32.mxu0 %v23686_v0 }
 0x2cb   :  { %3855 = vmatmul.mubr.f32.gmra.mrb[8].mxu0 %v17620_v58  ;;  %v17822_v58 = vld [vmem:[#allocation4 + $0x208] sm:$0xff] }
 0x2cc   :  { %3860 = vmatprep.mubr.f32.mxu0 %v23686_v0  ;;  %24496 = vst [vmem:[#allocation23_spill] sm:$0xff] %v17822_v58  ;;  %v23673_v25 = vand.u32 4294901760, %v17822_v58 }
 0x2ce   :  { %v17845_v45 = vsub.f32 %v17822_v58, %v23673_v25 }
 0x2cf   :  { %3863 = vmatmul.mubr.f32.gmra.mrb[10].mxu0 %v17632_v12 }
 0x2d0   :  { %3941 = vmatprep.mubr.f32.mxu0 %v23686_v0  ;;  %24499 = vst [vmem:[#allocation26_spill] sm:$0xff] %v17845_v45 }
 0x2d3   :  { %3945 = vmatmul.mubr.f32.vlgmr.msra.gmra.mrb[0].mxu0 %v3529_v33  ;;  %v5087_v33 = vld [vmem:[#allocation4 + $0xf8] sm:$0xff] }
 0x2d4   :  { %14104 = vmatpush1.bf16.msra.mxu0 %v14103_v46  ;;  %3950 = vmatprep.mubr.f32.mxu0 %v23686_v0  ;;  %v23659_v46 = vand.u32 4294901760, %v17845_v45 }
 0x2d5   :  { %14106 = vmatprep.subr.bf16.mxu0 %v14105_v13  ;;  %v7231_v13 = vsub.f32 %v17840_v56, %v23660_v16 }
 0x2d7   :  { %3954 = vmatmul.mubr.f32.gmra.mrb[2].mxu0 %v3540_v40  ;;  %v17782_v40 = vsub.f32 %v5085_v24, %v5192_v22  ;;  %v7238_v24 = vsub.f32 %v17845_v45, %v23659_v46  ;;  %v7232_v50 = vand.u32 4294901760, %v7231_v13 }
 0x2d8   :  { %3959 = vmatprep.mubr.f32.mxu0 %v23686_v0  ;;  %14108 = vmatpush1.bf16.msra.mxu0 %v14107_v37 }
 0x2d9   :  { %14110 = vmatprep.subr.bf16.mxu0 %v17479_v27  ;;  %v17741_v27 = vld [vmem:[#allocation4 + $0x1d0] sm:$0xff]  ;;  %24489 = vst [vmem:[#allocation16_spill] sm:$0xff] %v17782_v40  ;;  %v7239_v22 = vand.u32 4294901760, %v7238_v24 }
 0x2db   :  { %3963 = vmatmul.mubr.f32.gmra.mrb[4].mxu0 %v3551_v59  ;;  %v5198_v59 = vand.u32 4294901760, %v5087_v33  ;;  %v14673_v32 = vpack.c.bf16 %v7239_v22, %v7232_v50 }
 0x2dc   :  { %3968 = vmatprep.mubr.f32.mxu0 %v23686_v0 }
 0x2df   :  { %3972 = vmatmul.mubr.f32.gmra.mrb[6].mxu0 %v3562_v38  ;;  %v17820_v38 = vsub.f32 %v5087_v33, %v5198_v59  ;;  %v17859_v33 = vld [vmem:[#allocation4 + $0x210] sm:$0xff] }
 0x2e0   :  { %3977 = vmatprep.mubr.f32.mxu0 %v23686_v0  ;;  %24500 = vst [vmem:[#allocation27_spill] sm:$0xff] %v17859_v33 }
 0x2e1   :  { %24495 = vst [vmem:[#allocation22_spill] sm:$0xff] %v17820_v38 }
 0x2e3   :  { %3981 = vmatmul.mubr.f32.gmra.mrb[8].mxu0 %v3573_v36  ;;  %v7217_v36 = vsub.f32 %v17795_v48, %v23662_v52 }
 0x2e4   :  { %3986 = vmatprep.mubr.f32.mxu0 %v23686_v0 }
 0x2e5   :  { %v7218_v7 = vand.u32 4294901760, %v7217_v36 }
 0x2e7   :  { %3990 = vmatmul.mubr.f32.gmra.mrb[10].mxu0 %v3584_v5  ;;  %v7224_v5 = vsub.f32 %v17809_v9, %v23661_v23 }
 0x2e8   :  { %4084 = vmatprep.mubr.f32.mxu0 %v23686_v0 }
 0x2e9   :  { %v7225_v51 = vand.u32 4294901760, %v7224_v5 }
 0x2eb   :  { %4086 = vmatmul.mubr.f32.vlgmr.msra.gmra.mrb[0].mxu0 %v17527_v63  ;;  %v14670_v37 = vpack.c.bf16 %v7225_v51, %v7218_v7  ;;  %v17885_v7 = vld [vmem:[#allocation4 + $0x220] sm:$0xff]  ;;  %v17887_v51 = vld [vmem:[#allocation4 + $0x228] sm:$0xff] }
 0x2ec   :  { %14112 = vmatpush1.bf16.msra.mxu0 %v17509_v4  ;;  %4091 = vmatprep.mubr.f32.mxu0 %v23686_v0  ;;  %v17745_v4 = vld [vmem:[#allocation4 + $0x1e0] sm:$0xff]  ;;  %24504 = vst [vmem:[#allocation31_spill] sm:$0xff] %v17885_v7  ;;  %24505 = vst [vmem:[#allocation32_spill] sm:$0xff] %v17887_v51  ;;  %v23669_v24 = vand.u32 4294901760, %v17885_v7  ;;  %v23667_v50 = vand.u32 4294901760, %v17887_v51 }
 0x2ed   :  { %14114 = vmatprep.subr.bf16.mxu0 %v17512_v43  ;;  %v23692_v43 = vmov 0.0|0.0   ;;  %v23678_v31 = vand.u32 4294901760, %v17745_v4 }
 0x2ee   :  { %14117 = vmatprep.subr.bf16.mxu1 %v23692_v43 }
 0x2ef   :  { %4093 = vmatmul.mubr.f32.gmra.mrb[2].mxu0 %v17541_v44  ;;  %v17772_v18 = vsub.f32 %v17745_v4, %v23678_v31  ;;  %14119 = vmatpush1.bf16.msra.mxu1 %v17780_v17 }
 0x2f0   :  { %4098 = vmatprep.mubr.f32.mxu0 %v23686_v0  ;;  %14116 = vmatpush1.bf16.msra.mxu0 %v17518_v57  ;;  %v23680_v57 = vand.u32 4294901760, %v17741_v27 }
 0x2f1   :  { %14663 = vmatprep.subr.bf16.mxu0 %v23692_v43  ;;  %24486 = vst [vmem:[#allocation13_spill] sm:$0xff] %v17772_v18  ;;  %v23664_v3 = vand.u32 4294901760, %v17772_v18  ;;  %14120 = vmatprep.subr.bf16.mxu1 %v23692_v43 }
 0x2f2   :  { %v17762_v49 = vsub.f32 %v17741_v27, %v23680_v57 }
 0x2f3   :  { %4100 = vmatmul.mubr.f32.gmra.mrb[4].mxu0 %v17567_v15  ;;  %v7203_v19 = vsub.f32 %v17772_v18, %v23664_v3 }
 0x2f4   :  { %4105 = vmatprep.mubr.f32.mxu0 %v23686_v0  ;;  %24484 = vst [vmem:[#allocation11_spill] sm:$0xff] %v17762_v49 }
 0x2f5   :  { %v7204_v34 = vand.u32 4294901760, %v7203_v19  ;;  %v4256_v19 = vlaneseq }
 0x2f7   :  { %4107 = vmatmul.mubr.f32.gmra.mrb[6].mxu0 %v17592_v21 }
 0x2f8   :  { %4112 = vmatprep.mubr.f32.mxu0 %v23686_v0 }
 0x2fb   :  { %4114 = vmatmul.mubr.f32.gmra.mrb[8].mxu0 %v17611_v20 }
 0x2fc   :  { %4119 = vmatprep.mubr.f32.mxu0 %v23686_v0 }
 0x2ff   :  { %4121 = vmatmul.mubr.f32.gmra.mrb[10].mxu0 %v17622_v28 }
 0x300   :  { %4199 = vmatprep.mubr.f32.mxu0 %v23686_v0 }
 0x303   :  { %4201 = vmatmul.mubr.f32.vlgmr.msra.gmra.mrb[0].mxu0 %v17527_v63  ;;  %v17750_v63 = vld [vmem:[#allocation4 + $0x1e8] sm:$0xff] }
 0x304   :  { %4206 = vmatprep.mubr.f32.mxu0 %v23686_v0 }
 0x307   :  { %4208 = vmatmul.mubr.f32.gmra.mrb[2].mxu0 %v17541_v44  ;;  %v23677_v44 = vand.u32 4294901760, %v17750_v63 }
 0x308   :  { %4213 = vmatprep.mubr.f32.mxu0 %v23686_v0 }
 0x309   :  { %v17778_v61 = vsub.f32 %v17750_v63, %v23677_v44 }
 0x30b   :  { %4215 = vmatmul.mubr.f32.gmra.mrb[4].mxu0 %v17567_v15  ;;  %v5088_v15 = vld [vmem:[#allocation4 + $0x100] sm:$0xff]  ;;  %24487 = vst [vmem:[#allocation14_spill] sm:$0xff] %v17778_v61  ;;  %v23663_v2 = vand.u32 4294901760, %v17778_v61 }
 0x30c   :  { %4220 = vmatprep.mubr.f32.mxu0 %v23686_v0  ;;  %v5201_v8 = vand.u32 4294901760, %v5088_v15 }
 0x30d   :  { %v7210_v39 = vsub.f32 %v17778_v61, %v23663_v2 }
 0x30e   :  { %v17818_v11 = vpack.c.bf16 %v5201_v8, %v5198_v59  ;;  %v17829_v12 = vsub.f32 %v5088_v15, %v5201_v8  ;;  %v17861_v15 = vld [vmem:[#allocation4 + $0x218] sm:$0xff]  ;;  %v23672_v59 = vand.u32 4294901760, %v17859_v33 }
 0x30f   :  { %4222 = vmatmul.mubr.f32.gmra.mrb[6].mxu0 %v17592_v21  ;;  %v23666_v21 = vand.u32 4294901760, %v17762_v49  ;;  %v7211_v35 = vand.u32 4294901760, %v7210_v39  ;;  %24501 = vst [vmem:[#allocation28_spill] sm:$0xff] %v17861_v15  ;;  %v23671_v8 = vand.u32 4294901760, %v17861_v15 }
 0x310   :  { %4227 = vmatprep.mubr.f32.mxu0 %v23686_v0  ;;  %24494 = vst [vmem:[#allocation21_spill] sm:$0xff] %v17818_v11  ;;  %14122 = vmatpush1.bf16.msra.mxu1 %v17818_v11  ;;  %24497 = vst [vmem:[#allocation24_spill] sm:$0xff] %v17829_v12 }
 0x311   :  { %14123 = vmatprep.subr.bf16.mxu1 %v23692_v43  ;;  %v14667_v62 = vpack.c.bf16 %v7211_v35, %v7204_v34  ;;  %v17873_v42 = vsub.f32 %v17861_v15, %v23671_v8  ;;  %v5090_v34 = vld [vmem:[#allocation4 + $0x110] sm:$0xff] }
 0x313   :  { %4229 = vmatmul.mubr.f32.gmra.mrb[8].mxu0 %v17611_v20  ;;  %v7189_v20 = vsub.f32 %v17762_v49, %v23666_v21  ;;  %24503 = vst [vmem:[#allocation30_spill] sm:$0xff] %v17873_v42 }
 0x314   :  { %4234 = vmatprep.mubr.f32.mxu0 %v23686_v0 }
 0x317   :  { %4236 = vmatmul.mubr.f32.gmra.mrb[10].mxu0 %v17622_v28  ;;  %v7190_v28 = vand.u32 4294901760, %v7189_v20  ;;  %v17868_v20 = vsub.f32 %v17859_v33, %v23672_v59 }
 0x319   :  { %v14664_v41 = vpack.c.bf16 %v7197_v54, %v7190_v28  ;;  %24502 = vst [vmem:[#allocation29_spill] sm:$0xff] %v17868_v20  ;;  %v23657_v39 = vand.u32 4294901760, %v17868_v20  ;;  %v23658_v28 = vand.u32 4294901760, %v17873_v42  ;;  %v5089_v54 = vld [vmem:[#allocation4 + $0x108] sm:$0xff] }
 0x31a   :  { %v5204_v5 = vand.u32 4294901760, %v5089_v54 }
 0x31b   :  { %14665 = vmatpush1.bf16.msra.mxu0 %v14664_v41  ;;  %v7245_v35 = vsub.f32 %v17868_v20, %v23657_v39  ;;  %v7252_v36 = vsub.f32 %v17873_v42, %v23658_v28  ;;  %v17883_v41 = vshrl.u32 %v4256_v19, 7  ;;  %v5095_v42 = vld [vmem:[#allocation4 + $0x138] sm:$0xff] }
 0x31c   :  { %14666 = vmatprep.subr.bf16.mxu0 %v23692_v43  ;;  %v5222_v45 = vand.u32 4294901760, %v5095_v42 }
 0x31d   :  { %v7246_v13 = vand.u32 4294901760, %v7245_v35  ;;  %v4258_v28 = vsub.s32 0, %v17883_v41  ;;  %v17903_v35 = vsub.f32 %v17885_v7, %v23669_v24 }
 0x31f   :  { %14668 = vmatpush1.bf16.msra.mxu0 %v14667_v62  ;;  %v5207_v62 = vand.u32 4294901760, %v5090_v34  ;;  %24509 = vst [vmem:[#allocation36_spill] sm:$0xff] %v17903_v35 }
 0x320   :  { %14669 = vmatprep.subr.bf16.mxu0 %v23692_v43 }
 0x321   :  { %v17891_v22 = vpack.c.bf16 %v5207_v62, %v5204_v5  ;;  %v17895_v39 = vsub.f32 %v5090_v34, %v5207_v62  ;;  %v4254_v34 = vld [vmem:[%s23651_s2] sm:$0x3]  ;;  %s16400_s2 = smov 118  }
 0x322   :  { %v17917_v62 = vld [vmem:[#allocation4 + $0x120] sm:$0xff]  ;;  %v17923_v16 = vrot.slane %v4254_v34, %v4258_v28 }
 0x323   :  { %14671 = vmatpush1.bf16.msra.mxu0 %v14670_v37  ;;  %v7253_v37 = vand.u32 4294901760, %v7252_v36  ;;  %24506 = vst [vmem:[#allocation33_spill] sm:$0xff] %v17891_v22  ;;  %24508 = vst [vmem:[#allocation35_spill] sm:$0xff] %v17895_v39  ;;  %14125 = vmatpush1.bf16.msra.mxu1 %v17891_v22  ;;  %v4262_v36 = vsub.s32 1, %v17883_v41  ;;  %v23688_v46 = vand.u32 4294901760, %v17917_v62 }
 0x324   :  { %14672 = vmatprep.subr.bf16.mxu0 %v23692_v43  ;;  %14126 = vmatprep.subr.bf16.mxu1 %v23692_v43 }
 0x325   :  { %v14676_v19 = vpack.c.bf16 %v7253_v37, %v7246_v13  ;;  %v23668_v13 = vand.u32 4294901760, %v17903_v35  ;;  %v17931_v2 = vrot.slane %v4254_v34, %v4262_v36 }
 0x327   :  { %14674 = vmatpush1.bf16.msra.mxu0 %v14673_v32  ;;  %v17893_v32 = vsub.f32 %v5089_v54, %v5204_v5  ;;  %v17908_v54 = vsub.f32 %v17887_v51, %v23667_v50  ;;  %v17915_v5 = vld [vmem:[#allocation4 + $0x118] sm:$0xff]  ;;  %v7259_v23 = vsub.f32 %v17903_v35, %v23668_v13 }
 0x328   :  { %14675 = vmatprep.subr.bf16.mxu0 %v23692_v43 }
 0x329   :  { %24507 = vst [vmem:[#allocation34_spill] sm:$0xff] %v17893_v32  ;;  %24510 = vst [vmem:[#allocation37_spill] sm:$0xff] %v17908_v54  ;;  %v23670_v37 = vand.u32 4294901760, %v17908_v54  ;;  %v7260_v26 = vand.u32 4294901760, %v7259_v23  ;;  %v17956_v23 = vld [vmem:[#allocation4 + $0x230] sm:$0xff] }
 0x32a   :  { %24512 = vst [vmem:[#allocation39_spill] sm:$0xff] %v17956_v23 }
 0x32b   :  { %14677 = vmatpush1.bf16.msra.mxu0 %v14676_v19  ;;  %v23690_v19 = vand.u32 4294901760, %v17915_v5  ;;  %v7266_v52 = vsub.f32 %v17908_v54, %v23670_v37 }
 0x32c   :  { %14678 = vmatprep.subr.bf16.mxu0 %v23692_v43 }
 0x32d   :  { %v17937_v3 = vpack.c.bf16 %v23688_v46, %v23690_v19  ;;  %v7267_v21 = vand.u32 4294901760, %v7266_v52 }
 0x32f   :  { %24511 = vst [vmem:[#allocation38_spill] sm:$0xff] %v17937_v3  ;;  %14128 = vmatpush1.bf16.msra.mxu1 %v17937_v3  ;;  %v14679_v24 = vpack.c.bf16 %v7267_v21, %v7260_v26  ;;  %v18127_v3 = vsub.f32 %v5095_v42, %v5222_v45 }
 0x330   :  { %14129 = vmatprep.subr.bf16.mxu1 %v23692_v43 }
 0x331   :  { %14680 = vmatpush1.bf16.msra.mxu0 %v14679_v24  ;;  %24534 = vst [vmem:[#allocation58_spill] sm:$0xff] %v18127_v3 }
 0x332   :  { %14681 = vmatprep.subr.bf16.mxu0 %v23692_v43 }
 0x3d6   :  { %v4202_v28 = vpop.f32.mrb[0].mxu0 }
 0x3d7   :  { %v17941_v50 = vadd.f32 %v17923_v16, %v4202_v28  ;;  %v4204_v13 = vpop.f32.mrb[1].mxu0 }
 0x3d8   :  { %v17945_v34 = vadd.f32 %v17931_v2, %v4204_v13  ;;  %v17958_v13 = vld [vmem:[#allocation4 + $0x238] sm:$0xff] }
 0x3d9   :  { %v23684_v36 = vmax.f32 %v17941_v50, 0.0  ;;  %24513 = vst [vmem:[#allocation40_spill] sm:$0xff] %v17958_v13  ;;  %v23682_v8 = vand.u32 4294901760, %v17958_v13 }
 0x3da   :  { %v4209_v37 = vpop.f32.mrb[2].mxu0  ;;  %v23685_v26 = vmax.f32 %v17945_v34, 0.0 }
 0x3db   :  { %v17950_v52 = vadd.f32 %v17923_v16, %v4209_v37  ;;  %4302 = vrot.lane.b32.xlu0 %v23684_v36, %s16400_s2  ;;  %v4211_v21 = vpop.f32.mrb[3].mxu0  ;;  %v23681_v37 = vand.u32 4294901760, %v17956_v23  ;;  %v17983_v47 = vsub.f32 %v17958_v13, %v23682_v8  ;;  %v5093_v8 = vld [vmem:[#allocation4 + $0x128] sm:$0xff] }
 0x3dc   :  { %v17962_v28 = vadd.f32 %v17931_v2, %v4211_v21  ;;  %v5216_v0 = vand.u32 4294901760, %v5093_v8 }
 0x3dd   :  { %v23683_v24 = vmax.f32 %v17950_v52, 0.0  ;;  %v17978_v21 = vsub.f32 %v17956_v23, %v23681_v37  ;;  %24515 = vst [vmem:[#allocation42_spill] sm:$0xff] %v17983_v47  ;;  %v23699_v55 = vand.u32 4294901760, %v17983_v47 }
 0x3de   :  { %v4216_v59 = vpop.f32.mrb[4].mxu0  ;;  %v23689_v6 = vmax.f32 %v17962_v28, 0.0  ;;  %v18093_v18 = vsub.f32 %v5093_v8, %v5216_v0  ;;  %v5098_v8 = vld [vmem:[#allocation4 + $0x150] sm:$0xff] }
 0x3df   :  { %v17967_v25 = vadd.f32 %v17923_v16, %v4216_v59  ;;  %4304 = vrot.lane.b32.xlu0 %v23685_v26, %s16400_s2  ;;  %4306 = vrot.lane.b32.xlu1 %v23683_v24, %s16400_s2  ;;  %v4218_v1 = vpop.f32.mrb[5].mxu0  ;;  %24514 = vst [vmem:[#allocation41_spill] sm:$0xff] %v17978_v21  ;;  %v23698_v31 = vand.u32 4294901760, %v17978_v21  ;;  %v5094_v24 = vld [vmem:[#allocation4 + $0x130] sm:$0xff] }
 0x3e0   :  { %v17986_v59 = vadd.f32 %v17931_v2, %v4218_v1  ;;  %v5219_v46 = vand.u32 4294901760, %v5094_v24  ;;  %24527 = vst [vmem:[#allocation51_spill] sm:$0xff] %v18093_v18 }
 0x3e1   :  { %v23691_v44 = vmax.f32 %v17967_v25, 0.0  ;;  %v7273_v36 = vsub.f32 %v17978_v21, %v23698_v31 }
 0x3e2   :  { %v4223_v57 = vpop.f32.mrb[6].mxu0  ;;  %v23704_v26 = vmax.f32 %v17986_v59, 0.0  ;;  %v18012_v35 = vpack.c.bf16 %v5219_v46, %v5216_v0  ;;  %v18095_v53 = vsub.f32 %v5094_v24, %v5219_v46  ;;  %v5097_v46 = vld [vmem:[#allocation4 + $0x148] sm:$0xff] }
 0x3e3   :  { %v17993_v37 = vadd.f32 %v17923_v16, %v4223_v57  ;;  %4308 = vrot.lane.b32.xlu1 %v23689_v6, %s16400_s2  ;;  %4310 = vrot.lane.b32.xlu0 %v23691_v44, %s16400_s2  ;;  %v4225_v1 = vpop.f32.mrb[7].mxu0  ;;  %v7280_v57 = vsub.f32 %v17983_v47, %v23699_v55  ;;  %v7274_v44 = vand.u32 4294901760, %v7273_v36 }
 0x3e4   :  { %v18010_v19 = vadd.f32 %v17931_v2, %v4225_v1  ;;  %24516 = vst [vmem:[#allocation43_spill] sm:$0xff] %v18012_v35  ;;  %14131 = vmatpush1.bf16.msra.mxu1 %v18012_v35  ;;  %24528 = vst [vmem:[#allocation52_spill] sm:$0xff] %v18095_v53 }
 0x3e5   :  { %v23707_v6 = vmax.f32 %v17993_v37, 0.0  ;;  %v7281_v43 = vand.u32 4294901760, %v7280_v57 }
 0x3e6   :  { %v4230_v54 = vpop.f32.mrb[8].mxu0  ;;  %v23706_v36 = vmax.f32 %v18010_v19, 0.0 }
 0x3e7   :  { %v18015_v31 = vadd.f32 %v17923_v16, %v4230_v54  ;;  %4312 = vrot.lane.b32.xlu1 %v23704_v26, %s16400_s2  ;;  %4314 = vrot.lane.b32.xlu0 %v23707_v6, %s16400_s2  ;;  %v4232_v55 = vpop.f32.mrb[9].mxu0  ;;  %v14682_v47 = vpack.c.bf16 %v7281_v43, %v7274_v44  ;;  %v24517_v54 = vmov 0.0|0.0   ;;  %v18064_v6 = vld [vmem:[#allocation4 + $0x248] sm:$0xff] }
 0x3e8   :  { %v18027_v57 = vadd.f32 %v17931_v2, %v4232_v55  ;;  %14132 = vmatprep.subr.bf16.mxu1 %v24517_v54  ;;  %24523 = vst [vmem:[#allocation47_spill] sm:$0xff] %v18064_v6 }
 0x3e9   :  { %v23705_v1 = vmax.f32 %v18015_v31, 0.0  ;;  %14683 = vmatpush1.bf16.msra.mxu0 %v14682_v47 }
 0x3ea   :  { %v4237_v21 = vpop.f32.mrb[10].mxu0  ;;  %14684 = vmatprep.subr.bf16.mxu0 %v24517_v54  ;;  %v23709_v55 = vmax.f32 %v18027_v57, 0.0 }
 0x3eb   :  { %v18032_v26 = vadd.f32 %v17923_v16, %v4237_v21  ;;  %4316 = vrot.lane.b32.xlu1 %v23706_v36, %s16400_s2  ;;  %4318 = vrot.lane.b32.xlu0 %v23705_v1, %s16400_s2  ;;  %v4239_v43 = vpop.f32.mrb[11].mxu0  ;;  %v24518_v16 = vand.u32 4294901760, %v17915_v5  ;;  %v24520_v1 = vand.u32 4294901760, %v17917_v62 }
 0x3ec   :  { %v18043_v47 = vadd.f32 %v17931_v2, %v4239_v43  ;;  %v18062_v43 = vld [vmem:[#allocation4 + $0x240] sm:$0xff] }
 0x3ed   :  { %v23708_v44 = vmax.f32 %v18032_v26, 0.0  ;;  %v18054_v21 = vsub.f32 %v17915_v5, %v24518_v16  ;;  %v18059_v36 = vsub.f32 %v17917_v62, %v24520_v1  ;;  %24522 = vst [vmem:[#allocation46_spill] sm:$0xff] %v18062_v43  ;;  %v23724_v5 = vand.u32 4294901760, %v18064_v6 }
 0x3ee   :  { %v23712_v2 = vmax.f32 %v18043_v47, 0.0 }
 0x3ef   :  { %4320 = vrot.lane.b32.xlu1 %v23709_v55, %s16400_s2  ;;  %4322 = vrot.lane.b32.xlu0 %v23708_v44, %s16400_s2  ;;  %24519 = vst [vmem:[#allocation44_spill] sm:$0xff] %v18054_v21  ;;  %24521 = vst [vmem:[#allocation45_spill] sm:$0xff] %v18059_v36  ;;  %v23715_v44 = vand.u32 4294901760, %v18062_v43  ;;  %v18079_v62 = vsub.f32 %v18064_v6, %v23724_v5  ;;  %v18216_v6 = vld [vmem:[#allocation4 + $0x290] sm:$0xff] }
 0x3f0   :  { %24551 = vst [vmem:[#allocation75_spill] sm:$0xff] %v18216_v6 }
 0x3f1   :  { %v18074_v16 = vsub.f32 %v18062_v43, %v23715_v44  ;;  %24525 = vst [vmem:[#allocation49_spill] sm:$0xff] %v18079_v62  ;;  %v23732_v55 = vand.u32 4294901760, %v18079_v62 }
 0x3f3   :  { %4324 = vrot.lane.b32.xlu1 %v23712_v2, %s16400_s2  ;;  %24524 = vst [vmem:[#allocation48_spill] sm:$0xff] %v18074_v16  ;;  %v23731_v1 = vand.u32 4294901760, %v18074_v16  ;;  %v5096_v2 = vld [vmem:[#allocation4 + $0x140] sm:$0xff]  ;;  %v7294_v44 = vsub.f32 %v18079_v62, %v23732_v55  ;;  %v18100_v55 = vld [vmem:[#allocation4 + $0x258] sm:$0xff]  ;;  %v5228_v62 = vand.u32 4294901760, %v5097_v46 }
 0x3f4   :  { %v5225_v56 = vand.u32 4294901760, %v5096_v2  ;;  %24530 = vst [vmem:[#allocation54_spill] sm:$0xff] %v18100_v55 }
 0x3f5   :  { %v7287_v20 = vsub.f32 %v18074_v16, %v23731_v1  ;;  %v7295_v48 = vand.u32 4294901760, %v7294_v44  ;;  %v18098_v1 = vld [vmem:[#allocation4 + $0x250] sm:$0xff]  ;;  %v23742_v44 = vand.u32 4294901760, %v18100_v55  ;;  %v5231_v16 = vand.u32 4294901760, %v5098_v8 }
 0x3f6   :  { %v18089_v5 = vpack.c.bf16 %v5225_v56, %v5222_v45  ;;  %24529 = vst [vmem:[#allocation53_spill] sm:$0xff] %v18098_v1 }
 0x3f7   :  { %v7288_v9 = vand.u32 4294901760, %v7287_v20  ;;  %v23733_v20 = vand.u32 4294901760, %v18098_v1  ;;  %v18112_v0 = vsub.f32 %v18100_v55, %v23742_v44  ;;  %v18122_v44 = vpack.c.bf16 %v5231_v16, %v5228_v62 }
 0x3f8   :  { %24526 = vst [vmem:[#allocation50_spill] sm:$0xff] %v18089_v5  ;;  %14134 = vmatpush1.bf16.msra.mxu1 %v18089_v5 }
 0x3f9   :  { %v14685_v61 = vpack.c.bf16 %v7295_v48, %v7288_v9  ;;  %14135 = vmatprep.subr.bf16.mxu1 %v24517_v54  ;;  %24532 = vst [vmem:[#allocation56_spill] sm:$0xff] %v18112_v0  ;;  %v23750_v9 = vand.u32 4294901760, %v18112_v0  ;;  %24533 = vst [vmem:[#allocation57_spill] sm:$0xff] %v18122_v44 }
 0x3fb   :  { %14686 = vmatpush1.bf16.msra.mxu0 %v14685_v61  ;;  %v18107_v61 = vsub.f32 %v18098_v1, %v23733_v20  ;;  %v7308_v20 = vsub.f32 %v18112_v0, %v23750_v9  ;;  %v18133_v9 = vld [vmem:[#allocation4 + $0x268] sm:$0xff] }
 0x3fc   :  { %14687 = vmatprep.subr.bf16.mxu0 %v24517_v54  ;;  %14137 = vmatpush1.bf16.msra.mxu1 %v18122_v44  ;;  %24537 = vst [vmem:[#allocation61_spill] sm:$0xff] %v18133_v9 }
 0x3fd   :  { %24531 = vst [vmem:[#allocation55_spill] sm:$0xff] %v18107_v61  ;;  %v23747_v48 = vand.u32 4294901760, %v18107_v61  ;;  %v7309_v5 = vand.u32 4294901760, %v7308_v20  ;;  %14138 = vmatprep.subr.bf16.mxu1 %v24517_v54 }
 0x3ff   :  { %v7301_v24 = vsub.f32 %v18107_v61, %v23747_v48  ;;  %v18129_v48 = vsub.f32 %v5096_v2, %v5225_v56  ;;  %v18131_v61 = vld [vmem:[#allocation4 + $0x260] sm:$0xff] }
 0x400   :  { %24536 = vst [vmem:[#allocation60_spill] sm:$0xff] %v18131_v61  ;;  %v23751_v20 = vand.u32 4294901760, %v18131_v61  ;;  %v18151_v2 = vld [vmem:[#allocation4 + $0x160] sm:$0xff] }
 0x401   :  { %v7302_v49 = vand.u32 4294901760, %v7301_v24  ;;  %24535 = vst [vmem:[#allocation59_spill] sm:$0xff] %v18129_v48  ;;  %v23754_v24 = vand.u32 4294901760, %v18133_v9 }
 0x403   :  { %v14688_v35 = vpack.c.bf16 %v7309_v5, %v7302_v49  ;;  %v18140_v49 = vsub.f32 %v18131_v61, %v23751_v20  ;;  %v18145_v45 = vsub.f32 %v18133_v9, %v23754_v24  ;;  %v5237_v24 = vand.u32 4294901760, %v18151_v2  ;;  %v18194_v9 = vld [vmem:[#allocation4 + $0x168] sm:$0xff] }
 0x404   :  { %v23794_v55 = vand.u32 4294901760, %v18194_v9 }
 0x405   :  { %14689 = vmatpush1.bf16.msra.mxu0 %v14688_v35  ;;  %24538 = vst [vmem:[#allocation62_spill] sm:$0xff] %v18140_v49  ;;  %24539 = vst [vmem:[#allocation63_spill] sm:$0xff] %v18145_v45  ;;  %v23763_v56 = vand.u32 4294901760, %v18140_v49  ;;  %v23766_v42 = vand.u32 4294901760, %v18145_v45  ;;  %v18149_v35 = vld [vmem:[#allocation4 + $0x158] sm:$0xff] }
 0x406   :  { %14690 = vmatprep.subr.bf16.mxu0 %v24517_v54  ;;  %v5234_v0 = vand.u32 4294901760, %v18149_v35 }
 0x407   :  { %v7315_v5 = vsub.f32 %v18140_v49, %v23763_v56  ;;  %v7322_v20 = vsub.f32 %v18145_v45, %v23766_v42  ;;  %v18166_v56 = vsub.f32 %v5097_v46, %v5228_v62  ;;  %v18168_v49 = vsub.f32 %v5098_v8, %v5231_v16  ;;  %v18170_v42 = vld [vmem:[#allocation4 + $0x270] sm:$0xff]  ;;  %v18172_v45 = vld [vmem:[#allocation4 + $0x278] sm:$0xff]  ;;  %v18186_v16 = vld [vmem:[#allocation4 + $0x280] sm:$0xff] }
 0x408   :  { %v18161_v11 = vpack.c.bf16 %v5237_v24, %v5234_v0  ;;  %24543 = vst [vmem:[#allocation67_spill] sm:$0xff] %v18170_v42  ;;  %24544 = vst [vmem:[#allocation68_spill] sm:$0xff] %v18172_v45  ;;  %v18188_v62 = vld [vmem:[#allocation4 + $0x288] sm:$0xff]  ;;  %v23786_v8 = vand.u32 4294901760, %v18186_v16 }
 0x409   :  { %v7316_v44 = vand.u32 4294901760, %v7315_v5  ;;  %v7323_v22 = vand.u32 4294901760, %v7322_v20  ;;  %24541 = vst [vmem:[#allocation65_spill] sm:$0xff] %v18166_v56  ;;  %24542 = vst [vmem:[#allocation66_spill] sm:$0xff] %v18168_v49  ;;  %v23772_v20 = vand.u32 4294901760, %v18170_v42  ;;  %v23773_v5 = vand.u32 4294901760, %v18172_v45 }
 0x40a   :  { %24540 = vst [vmem:[#allocation64_spill] sm:$0xff] %v18161_v11  ;;  %14140 = vmatpush1.bf16.msra.mxu1 %v18161_v11  ;;  %24547 = vst [vmem:[#allocation71_spill] sm:$0xff] %v18186_v16  ;;  %v23787_v11 = vand.u32 4294901760, %v18188_v62  ;;  %v18230_v49 = vld [vmem:[#allocation4 + $0x178] sm:$0xff]  ;;  %v18232_v56 = vld [vmem:[#allocation4 + $0x180] sm:$0xff] }
 0x40b   :  { %v14691_v17 = vpack.c.bf16 %v7323_v22, %v7316_v44  ;;  %14141 = vmatprep.subr.bf16.mxu1 %v24517_v54  ;;  %v18184_v22 = vsub.f32 %v18172_v45, %v23773_v5  ;;  %24548 = vst [vmem:[#allocation72_spill] sm:$0xff] %v18188_v62 }
 0x40c   :  { %v18212_v61 = vsub.f32 %v18188_v62, %v23787_v11  ;;  %v23801_v62 = vand.u32 4294901760, %v18216_v6 }
 0x40d   :  { %14692 = vmatpush1.bf16.msra.mxu0 %v14691_v17  ;;  %v18179_v17 = vsub.f32 %v18170_v42, %v23772_v20  ;;  %24546 = vst [vmem:[#allocation70_spill] sm:$0xff] %v18184_v22  ;;  %v23783_v46 = vand.u32 4294901760, %v18184_v22  ;;  %v18196_v20 = vld [vmem:[#allocation4 + $0x170] sm:$0xff]  ;;  %v18207_v42 = vsub.f32 %v18186_v16, %v23786_v8 }
 0x40e   :  { %14693 = vmatprep.subr.bf16.mxu0 %v24517_v54  ;;  %24550 = vst [vmem:[#allocation74_spill] sm:$0xff] %v18212_v61  ;;  %v23793_v1 = vand.u32 4294901760, %v18196_v20  ;;  %v23798_v8 = vand.u32 4294901760, %v18212_v61 }
 0x40f   :  { %24545 = vst [vmem:[#allocation69_spill] sm:$0xff] %v18179_v17  ;;  %v23780_v44 = vand.u32 4294901760, %v18179_v17  ;;  %v7336_v45 = vsub.f32 %v18184_v22, %v23783_v46  ;;  %24549 = vst [vmem:[#allocation73_spill] sm:$0xff] %v18207_v42  ;;  %v23795_v22 = vand.u32 4294901760, %v18207_v42 }
 0x410   :  { %v18226_v11 = vpack.c.bf16 %v23793_v1, %v23794_v55  ;;  %v5106_v55 = vld [vmem:[#allocation4 + $0x190] sm:$0xff] }
 0x411   :  { %v7329_v5 = vsub.f32 %v18179_v17, %v23780_v44  ;;  %v18218_v44 = vld [vmem:[#allocation4 + $0x298] sm:$0xff]  ;;  %v7337_v46 = vand.u32 4294901760, %v7336_v45  ;;  %v7343_v45 = vsub.f32 %v18207_v42, %v23795_v22  ;;  %v18253_v22 = vld [vmem:[#allocation4 + $0x2a0] sm:$0xff]  ;;  %v18255_v42 = vld [vmem:[#allocation4 + $0x2a8] sm:$0xff] }
 0x412   :  { %24552 = vst [vmem:[#allocation76_spill] sm:$0xff] %v18218_v44  ;;  %24553 = vst [vmem:[#allocation77_spill] sm:$0xff] %v18226_v11  ;;  %v23804_v16 = vand.u32 4294901760, %v18218_v44  ;;  %14143 = vmatpush1.bf16.msra.mxu1 %v18226_v11  ;;  %v18264_v11 = vsub.f32 %v18151_v2, %v5237_v24 }
 0x413   :  { %v7330_v17 = vand.u32 4294901760, %v7329_v5  ;;  %v7350_v5 = vsub.f32 %v18212_v61, %v23798_v8  ;;  %24556 = vst [vmem:[#allocation80_spill] sm:$0xff] %v18253_v22  ;;  %24557 = vst [vmem:[#allocation81_spill] sm:$0xff] %v18255_v42  ;;  %14144 = vmatprep.subr.bf16.mxu1 %v24517_v54  ;;  %v7344_v8 = vand.u32 4294901760, %v7343_v45 }
 0x414   :  { %24559 = vst [vmem:[#allocation83_spill] sm:$0xff] %v18264_v11 }
 0x415   :  { %v14694_v43 = vpack.c.bf16 %v7337_v46, %v7330_v17  ;;  %v18246_v17 = vsub.f32 %v18216_v6, %v23801_v62  ;;  %v18251_v46 = vsub.f32 %v18218_v44, %v23804_v16  ;;  %v7351_v1 = vand.u32 4294901760, %v7350_v5  ;;  %v5105_v5 = vld [vmem:[#allocation4 + $0x188] sm:$0xff] }
 0x416   :  { %v18261_v62 = vsub.f32 %v18149_v35, %v5234_v0  ;;  %v24560_v16 = vand.u32 4294901760, %v18230_v49  ;;  %v24561_v44 = vand.u32 4294901760, %v18232_v56  ;;  %v24563_v0 = vand.u32 4294901760, %v18253_v22 }
 0x417   :  { %24554 = vst [vmem:[#allocation78_spill] sm:$0xff] %v18246_v17  ;;  %24555 = vst [vmem:[#allocation79_spill] sm:$0xff] %v18251_v46  ;;  %14695 = vmatpush1.bf16.msra.mxu0 %v14694_v43  ;;  %v23812_v43 = vand.u32 4294901760, %v18246_v17  ;;  %v14697_v45 = vpack.c.bf16 %v7351_v1, %v7344_v8  ;;  %v23816_v61 = vand.u32 4294901760, %v18251_v46  ;;  %v24565_v35 = vand.u32 4294901760, %v18255_v42 }
 0x418   :  { %24558 = vst [vmem:[#allocation82_spill] sm:$0xff] %v18261_v62  ;;  %v18270_v6 = vpack.c.bf16 %v24561_v44, %v24560_v16  ;;  %14696 = vmatprep.subr.bf16.mxu0 %v24517_v54  ;;  %v18278_v24 = vsub.f32 %v18253_v22, %v24563_v0  ;;  %v5252_v16 = vand.u32 4294901760, %v5105_v5  ;;  %v5255_v44 = vand.u32 4294901760, %v5106_v55 }
 0x419   :  { %v18283_v2 = vsub.f32 %v18255_v42, %v24565_v35  ;;  %v7357_v1 = vsub.f32 %v18246_v17, %v23812_v43  ;;  %v7364_v8 = vsub.f32 %v18251_v46, %v23816_v61  ;;  %v7019_v42 = vld [vmem:[#allocation4 + $0x2b0] sm:$0x3f]  ;;  %v5108_v17 = vld [vmem:[#allocation4 + $0x1a0] sm:$0xff] }
 0x41a   :  { %24562 = vst [vmem:[#allocation84_spill] sm:$0xff] %v18270_v6  ;;  %24564 = vst [vmem:[#allocation85_spill] sm:$0xff] %v18278_v24  ;;  %14146 = vmatpush1.bf16.msra.mxu1 %v18270_v6  ;;  %v23823_v0 = vand.u32 4294901760, %v18278_v24  ;;  %v18295_v22 = vpack.c.bf16 %v5255_v44, %v5252_v16  ;;  %v7059_v11 = vsel %vm1729_vm3, %v7019_v42, 0  ;;  %v5261_v23 = vand.u32 4294901760, %v5108_v17 }
 0x41b   :  { %24566 = vst [vmem:[#allocation86_spill] sm:$0xff] %v18283_v2  ;;  %14698 = vmatpush1.bf16.msra.mxu0 %v14697_v45  ;;  %14147 = vmatprep.subr.bf16.mxu1 %v24517_v54  ;;  %v23826_v35 = vand.u32 4294901760, %v18283_v2  ;;  %v7358_v6 = vand.u32 4294901760, %v7357_v1  ;;  %v7365_v43 = vand.u32 4294901760, %v7364_v8  ;;  %v5107_v45 = vld [vmem:[#allocation4 + $0x198] sm:$0xff]  ;;  %v18305_v46 = vand.u32 4294901760, %v7059_v11 }
 0x41c   :  { %24567 = vst [vmem:[#allocation87_spill] sm:$0xff] %v18295_v22  ;;  %14699 = vmatprep.subr.bf16.mxu0 %v24517_v54  ;;  %v7371_v62 = vsub.f32 %v18278_v24, %v23823_v0  ;;  %v5258_v13 = vand.u32 4294901760, %v5107_v45  ;;  %v5109_v24 = vld [vmem:[#allocation4 + $0x1a8] sm:$0xff] }
 0x41d   :  { %v7378_v61 = vsub.f32 %v18283_v2, %v23826_v35  ;;  %24568 = vst [vmem:[#allocation88_spill] sm:$0xff] %v18305_v46  ;;  %v14700_v1 = vpack.c.bf16 %v7365_v43, %v7358_v6  ;;  %v18310_v48 = vsub.f32 %v7059_v11, %v18305_v46  ;;  %v5110_v35 = vld [vmem:[#allocation4 + $0x1b0] sm:$0xff]  ;;  %v5264_v6 = vand.u32 4294901760, %v5109_v24 }
 0x41e   :  { %14149 = vmatpush1.bf16.msra.mxu1 %v18295_v22  ;;  %v7372_v42 = vand.u32 4294901760, %v7371_v62  ;;  %v18312_v3 = vpack.c.bf16 %v5261_v23, %v5258_v13  ;;  %v5267_v43 = vand.u32 4294901760, %v5110_v35  ;;  %v18348_v46 = vsub.f32 %v5106_v55, %v5255_v44 }
 0x41f   :  { %14150 = vmatprep.subr.bf16.mxu1 %v24517_v54  ;;  %v7379_v8 = vand.u32 4294901760, %v7378_v61  ;;  %24569 = vst [vmem:[#allocation89_spill] sm:$0xff] %v18310_v48  ;;  %14701 = vmatpush1.bf16.msra.mxu0 %v14700_v1  ;;  %v23833_v2 = vand.u32 4294901760, %v18310_v48  ;;  %v24572_v1 = vmov 0.0  }
 0x420   :  { %24570 = vst [vmem:[#allocation90_spill] sm:$0xff] %v18312_v3  ;;  %14702 = vmatprep.subr.bf16.mxu0 %v24517_v54  ;;  %v18321_v61 = vpack.c.bf16 %v5267_v43, %v5264_v6  ;;  %24582 = vst [vmem:[#allocation97_spill] sm:$0xff] %v18348_v46 }
 0x421   :  { %v14703_v0 = vpack.c.bf16 %v7379_v8, %v7372_v42  ;;  %v7385_v11 = vsub.f32 %v18310_v48, %v23833_v2  ;;  %v24573_v42 = vand.u32 4294901760, %v18194_v9  ;;  %v24577_v2 = vand.u32 4294901760, %v18230_v49 }
 0x422   :  { %14152 = vmatpush1.bf16.msra.mxu1 %v18312_v3  ;;  %24571 = vst [vmem:[#allocation91_spill] sm:$0xff] %v18321_v61  ;;  %v24575_v3 = vand.u32 4294901760, %v18196_v20 }
 0x423   :  { %14153 = vmatprep.subr.bf16.mxu1 %v24517_v54  ;;  %14704 = vmatpush1.bf16.msra.mxu0 %v14703_v0  ;;  %v7386_v62 = vand.u32 4294901760, %v7385_v11  ;;  %v18329_v8 = vsub.f32 %v18194_v9, %v24573_v42  ;;  %v18339_v0 = vsub.f32 %v18230_v49, %v24577_v2  ;;  %v24579_v11 = vand.u32 4294901760, %v18232_v56  ;;  %v5111_v49 = vld [vmem:[#allocation4 + $0x1b8] sm:$0xff]  ;;  %v5112_v2 = vld [vmem:[#allocation4 + $0x1c0] sm:$0xff] }
 0x424   :  { %7381 = vmatprep.subr.mxu0 %v24572_v1  ;;  %v18334_v22 = vsub.f32 %v18196_v20, %v24575_v3  ;;  %v18350_v9 = vsub.f32 %v5107_v45, %v5258_v13  ;;  %v18352_v42 = vsub.f32 %v5108_v17, %v5261_v23  ;;  %v18354_v3 = vsub.f32 %v5109_v24, %v5264_v6  ;;  %v5113_v24 = vld [vmem:[#allocation4 + $0x1c8] sm:$0x3f] }
 0x425   :  { %24574 = vst [vmem:[#allocation92_spill] sm:$0xff] %v18329_v8  ;;  %24578 = vst [vmem:[#allocation94_spill] sm:$0xff] %v18339_v0  ;;  %v18344_v48 = vsub.f32 %v18232_v56, %v24579_v11  ;;  %v18356_v20 = vsub.f32 %v5110_v35, %v5267_v43  ;;  %v16401_v0 = vmov 1983009808   ;;  %v5270_v11 = vand.u32 4294901760, %v5111_v49 }
 0x426   :  { %14155 = vmatpush1.bf16.msra.mxu1 %v18321_v61  ;;  %24576 = vst [vmem:[#allocation93_spill] sm:$0xff] %v18334_v22  ;;  %v18346_v61 = vsub.f32 %v5105_v5, %v5252_v16  ;;  %24583 = vst [vmem:[#allocation98_spill] sm:$0xff] %v18350_v9  ;;  %v4372_v56 = vunpack.c.l.s4 %v16401_v0  ;;  %v5273_v5 = vand.u32 4294901760, %v5112_v2  ;;  %v18368_v44 = vsel %vm1729_vm3, %v5113_v24, 0 }
 0x427   :  { %14156 = vmatprep.subr.bf16.mxu1 %v24517_v54  ;;  %24580 = vst [vmem:[#allocation95_spill] sm:$0xff] %v18344_v48  ;;  %24584 = vst [vmem:[#allocation99_spill] sm:$0xff] %v18352_v42  ;;  %7387 = vmatpush1.msra.mxu0 %v7386_v62  ;;  %v18361_v13 = vsub.f32 %v5111_v49, %v5270_v11  ;;  %v18371_v45 = vand.u32 4294901760, %v18368_v44  ;;  %v24592_v43 = vmax.f32 %v17945_v34, 0.0  ;;  %v24594_v49 = vmax.f32 %v17941_v50, 0.0 }
 0x428   :  { %24581 = vst [vmem:[#allocation96_spill] sm:$0xff] %v18346_v61  ;;  %24585 = vst [vmem:[#allocation100_spill] sm:$0xff] %v18354_v3  ;;  %14747 = vmatprep.subr.bf16.mxu0 %v24517_v54  ;;  %v18359_v55 = vpack.c.bf16 %v5273_v5, %v5270_v11  ;;  %v18363_v23 = vsub.f32 %v5112_v2, %v5273_v5  ;;  %v4373_v17 = vunpack.c.0.s8 %v4372_v56 }
 0x429   :  { %24586 = vst [vmem:[#allocation101_spill] sm:$0xff] %v18356_v20  ;;  %24588 = vst [vmem:[#allocation103_spill] sm:$0xff] %v18361_v13 }
 0x42a   :  { %24587 = vst [vmem:[#allocation102_spill] sm:$0xff] %v18359_v55  ;;  %24589 = vst [vmem:[#allocation104_spill] sm:$0xff] %v18363_v23  ;;  %14158 = vmatpush1.bf16.msra.mxu1 %v18359_v55  ;;  %v18377_v0 = vsub.s32 %v4373_v17, %v17883_v41 }
 0x42b   :  { %5275 = vmatprep.subr.mxu1 %v24572_v1  ;;  %24590 = vst [vmem:[#allocation105_spill] sm:$0xff] %v18368_v44  ;;  %24591 = vst [vmem:[#allocation106_spill] sm:$0xff] %v18371_v45 }
 0x42c   :  { %24593 = vst [vmem:[#allocation107_spill] sm:$0xff] %v18377_v0 }
 0x42e   :  { %5277 = vmatpush1.msra.mxu1 %v18371_v45  ;;  %v24597_v45 = vmax.f32 %v17962_v28, 0.0 }
 0x42f   :  { %14159 = vmatprep.subr.bf16.mxu1 %v24517_v54 }
 0x44d   :  { %v4303_v16 = vpop.permute.xlu0 %4302 }
 0x451   :  { %v4305_v35 = vpop.permute.xlu0 %4304  ;;  %v4307_v56 = vpop.permute.xlu1 %4306 }
 0x452   :  { %v4327_v6 = vsel %vm4326_vm5, %v4303_v16, %v4305_v35  ;;  %v4346_v62 = vmax.f32 %v24592_v43, %v4305_v35 }
 0x453   :  { %v4345_v2 = vmax.f32 %v24594_v49, %v4327_v6 }
 0x455   :  { %v4369_v11 = vcombine.low %v4345_v2, %v4346_v62  ;;  %v4370_v5 = vcombine.high %v4345_v2, %v4346_v62  ;;  %v4309_v50 = vpop.permute.xlu1 %4308 }
 0x456   :  { %v4328_v62 = vsel %vm4326_vm5, %v4307_v56, %v4309_v50  ;;  %v4348_v1 = vmax.f32 %v24597_v45, %v4309_v50 }
 0x457   :  { %v4377_v24 = vrot.slane %v4369_v11, %v18377_v0  ;;  %v4384_v16 = vrot.slane %v4370_v5, %v18377_v0 }
 0x459   :  { %v4385_v34 = vcombine.high %v4377_v24, %v4377_v24  ;;  %v18386_v35 = vrot.slane %v4377_v24, %v18377_v0  ;;  %v4499_v41 = vrot.slane %v4384_v16, %v18377_v0  ;;  %v24596_v24 = vmax.f32 %v17950_v52, 0.0 }
 0x45a   :  { %v4386_v9 = vcombine.high %v4384_v16, %v4384_v16 }
 0x45b   :  { %24595 = vst [vmem:[#allocation108_spill] sm:$0xff] %v18386_v35  ;;  %v4491_v17 = vrot.slane %v4385_v34, %v18377_v0  ;;  %v4718_v6 = vsel %vm4717_vm6, %v18386_v35, -inf  ;;  %v4747_v43 = vsel %vm4717_vm6, %v4499_v41, -inf  ;;  %v4347_v44 = vmax.f32 %v24596_v24, %v4328_v62 }
 0x45c   :  { %v4719_v49 = vrot.slane %v4718_v6, 4  ;;  %v4748_v11 = vrot.slane %v4747_v43, 4  ;;  %v4500_v52 = vcombine.high %v4499_v41, %v4499_v41  ;;  %v4507_v45 = vrot.slane %v4386_v9, %v18377_v0 }
 0x45d   :  { %v4733_v2 = vsel %vm4717_vm6, %v4491_v17, -inf  ;;  %v4387_v42 = vcombine.low %v4347_v44, %v4348_v1  ;;  %v4388_v28 = vcombine.high %v4347_v44, %v4348_v1  ;;  %v23857_v62 = vand.u32 4294901760, %v17782_v40 }
 0x45e   :  { %v4720_v5 = vmax.f32 %v4718_v6, %v4719_v49  ;;  %v4734_v55 = vrot.slane %v4733_v2, 4  ;;  %v4749_v34 = vmax.f32 %v4747_v43, %v4748_v11  ;;  %v4508_v44 = vcombine.high %v4507_v45, %v4507_v45 }
 0x45f   :  { %v4395_v49 = vrot.slane %v4387_v42, %v18377_v0  ;;  %v4402_v1 = vrot.slane %v4388_v28, %v18377_v0  ;;  %v24600_v28 = vand.u32 4294901760, %v17743_v60 }
 0x460   :  { %v4721_v23 = vrot.slane %v4720_v5, 2  ;;  %v4735_v13 = vmax.f32 %v4733_v2, %v4734_v55  ;;  %v4750_v35 = vrot.slane %v4749_v34, 2 }
 0x461   :  { %v4531_v41 = vrot.slane %v4402_v1, %v18377_v0  ;;  %v4404_v43 = vcombine.high %v4402_v1, %v4402_v1 }
 0x462   :  { %v4722_v20 = vmax.f32 %v4720_v5, %v4721_v23  ;;  %v4736_v3 = vrot.slane %v4735_v13, 2  ;;  %v4751_v56 = vmax.f32 %v4749_v34, %v4750_v35  ;;  %v4754_v35 = vsel %vm4725_vm7, %v4500_v52, -inf }
 0x463   :  { %v24599_v52 = vand.u32 4294901760, %v17741_v27  ;;  %v24605_v27 = vmax.f32 %v17986_v59, 0.0  ;;  %v24608_v59 = vmax.f32 %v17967_v25, 0.0 }
 0x464   :  { %v4723_v46 = vrot.slane %v4722_v20, 1  ;;  %v4737_v61 = vmax.f32 %v4735_v13, %v4736_v3  ;;  %v4752_v48 = vrot.slane %v4751_v56, 1  ;;  %v4403_v3 = vcombine.high %v4395_v49, %v4395_v49 }
 0x465   :  { %v4492_v13 = vcombine.high %v4491_v17, %v4491_v17  ;;  %v4768_v17 = vsel %vm4725_vm7, %v4508_v44, -inf }
 0x466   :  { %v4738_v6 = vrot.slane %v4737_v61, 1  ;;  %v4724_v55 = vmax.f32 %v4722_v20, %v4723_v46  ;;  %v18403_v23 = vmax.f32 %v4751_v56, %v4752_v48  ;;  %v4515_v46 = vrot.slane %v4395_v49, %v18377_v0  ;;  %v4313_v56 = vpop.permute.xlu1 %4312 }
 0x467   :  { %v4761_v48 = vsel %vm4717_vm6, %v4507_v45, -inf  ;;  %v4523_v9 = vrot.slane %v4403_v3, %v18377_v0  ;;  %v4740_v20 = vsel %vm4725_vm7, %v4492_v13, -inf  ;;  %v4532_v49 = vcombine.high %v4531_v41, %v4531_v41 }
 0x468   :  { %v18401_v50 = vmax.f32 %v4737_v61, %v4738_v6  ;;  %v4755_v61 = vrot.slane %v4754_v35, 4  ;;  %v4762_v2 = vrot.slane %v4761_v48, 4  ;;  %v4516_v11 = vcombine.high %v4515_v46, %v4515_v46 }
 0x469   :  { %v4741_v5 = vrot.slane %v4740_v20, 4  ;;  %v4524_v34 = vcombine.high %v4523_v9, %v4523_v9  ;;  %v4769_v6 = vrot.slane %v4768_v17, 4  ;;  %v18424_v45 = vpack.c.bf16 %v24600_v28, %v24599_v52 }
 0x46a   :  { %v6074_v16 = vsel %vm5146_vm8, %v18401_v50, %v4724_v55  ;;  %v4756_v24 = vmax.f32 %v4754_v35, %v4755_v61  ;;  %v4539_v55 = vrot.slane %v4404_v43, %v18377_v0  ;;  %v24602_v3 = vand.u32 4294901760, %v17745_v4 }
 0x46b   :  { %v18410_v42 = vsel %vm5148_vm9, %v18403_v23, %v6074_v16  ;;  %24601 = vst [vmem:[#allocation110_spill] sm:$0xff] %v18424_v45  ;;  %v4311_v16 = vpop.permute.xlu0 %4310  ;;  %v24603_v13 = vand.u32 4294901760, %v17750_v63  ;;  %v18436_v35 = vsub.f32 %v17782_v40, %v23857_v62  ;;  %v4763_v44 = vmax.f32 %v4761_v48, %v4762_v2 }
 0x46c   :  { %24598 = vst [vmem:[#allocation109_spill] sm:$0xff] %v18410_v42  ;;  %v4775_v60 = vsel %vm4717_vm6, %v4515_v46, -inf  ;;  %v4782_v61 = vsel %vm4725_vm7, %v4516_v11, -inf  ;;  %v4789_v43 = vsel %vm4717_vm6, %v4523_v9, -inf  ;;  %v4742_v52 = vmax.f32 %v4740_v20, %v4741_v5  ;;  %v4317_v20 = vpop.permute.xlu1 %4316 }
 0x46d   :  { %v18431_v1 = vpack.c.bf16 %v24603_v13, %v24602_v3  ;;  %v4757_v4 = vrot.slane %v4756_v24, 2  ;;  %v4796_v63 = vsel %vm4725_vm7, %v4524_v34, -inf  ;;  %v4803_v28 = vsel %vm4717_vm6, %v4531_v41, -inf }
 0x46e   :  { %v4770_v3 = vmax.f32 %v4768_v17, %v4769_v6  ;;  %v4810_v13 = vsel %vm4725_vm7, %v4532_v49, -inf  ;;  %v4329_v62 = vsel %vm4326_vm5, %v4311_v16, %v4313_v56  ;;  %v18448_v48 = vmax.f32 %v24605_v27, %v4313_v56 }
 0x46f   :  { %24604 = vst [vmem:[#allocation111_spill] sm:$0xff] %v18431_v1  ;;  %v4776_v46 = vrot.slane %v4775_v60, 4  ;;  %v4783_v2 = vrot.slane %v4782_v61, 4  ;;  %v4790_v11 = vrot.slane %v4789_v43, 4  ;;  %v4817_v9 = vsel %vm4717_vm6, %v4539_v55, -inf  ;;  %v4315_v27 = vpop.permute.xlu0 %4314 }
 0x470   :  { %24606 = vst [vmem:[#allocation112_spill] sm:$0xff] %v18448_v48  ;;  %v4764_v5 = vrot.slane %v4763_v44, 2  ;;  %v4797_v42 = vrot.slane %v4796_v63, 4  ;;  %v4804_v34 = vrot.slane %v4803_v28, 4  ;;  %v24607_v41 = vand.u32 4294901760, %v17784_v10 }
 0x471   :  { %v4743_v6 = vrot.slane %v4742_v52, 2  ;;  %v4758_v49 = vmax.f32 %v4756_v24, %v4757_v4  ;;  %v4811_v16 = vrot.slane %v4810_v13, 4  ;;  %v18458_v56 = vmax.f32 %v24608_v59, %v4329_v62 }
 0x472   :  { %v18454_v17 = vsub.f32 %v17784_v10, %v24607_v41  ;;  %v4771_v40 = vrot.slane %v4770_v3, 2  ;;  %v4540_v22 = vcombine.high %v4539_v55, %v4539_v55  ;;  %v4818_v8 = vrot.slane %v4817_v9, 4 }
 0x473   :  { %24609 = vst [vmem:[#allocation113_spill] sm:$0xff] %v18458_v56  ;;  %v4330_v53 = vsel %vm4326_vm5, %v4315_v27, %v4317_v20  ;;  %v4777_v18 = vmax.f32 %v4775_v60, %v4776_v46  ;;  %v4784_v51 = vmax.f32 %v4782_v61, %v4783_v2  ;;  %v4791_v7 = vmax.f32 %v4789_v43, %v4790_v11 }
 0x474   :  { %v4765_v10 = vmax.f32 %v4763_v44, %v4764_v5  ;;  %v4798_v36 = vmax.f32 %v4796_v63, %v4797_v42  ;;  %v4805_v24 = vmax.f32 %v4803_v28, %v4804_v34  ;;  %v4812_v25 = vmax.f32 %v4810_v13, %v4811_v16 }
 0x475   :  { %v24610_v62 = vmax.f32 %v17993_v37, 0.0  ;;  %v24611_v55 = vmax.f32 %v18010_v19, 0.0  ;;  %v4744_v60 = vmax.f32 %v4742_v52, %v4743_v6  ;;  %v4772_v61 = vmax.f32 %v4770_v3, %v4771_v40  ;;  %v4321_v37 = vpop.permute.xlu1 %4320 }
 0x476   :  { %v4819_v43 = vmax.f32 %v4817_v9, %v4818_v8  ;;  %v4824_v46 = vsel %vm4725_vm7, %v4540_v22, -inf  ;;  %v4759_v2 = vrot.slane %v4758_v49, 1  ;;  %v4778_v44 = vrot.slane %v4777_v18, 2 }
 0x477   :  { %v4351_v59 = vmax.f32 %v24610_v62, %v4330_v53  ;;  %v4352_v21 = vmax.f32 %v24611_v55, %v4317_v20  ;;  %v4785_v42 = vrot.slane %v4784_v51, 2  ;;  %v4792_v63 = vrot.slane %v4791_v7, 2 }
 0x478   :  { %v4766_v28 = vrot.slane %v4765_v10, 1  ;;  %v4799_v11 = vrot.slane %v4798_v36, 2  ;;  %v4806_v13 = vrot.slane %v4805_v24, 2  ;;  %v4813_v53 = vrot.slane %v4812_v25, 2 }
 0x479   :  { %v4825_v5 = vrot.slane %v4824_v46, 4  ;;  %v4405_v19 = vcombine.low %v18458_v56, %v18448_v48  ;;  %v4423_v20 = vcombine.low %v4351_v59, %v4352_v21  ;;  %v4745_v52 = vrot.slane %v4744_v60, 1 }
 0x47a   :  { %v4773_v40 = vrot.slane %v4772_v61, 1  ;;  %v4820_v8 = vrot.slane %v4819_v43, 2  ;;  %v18474_v3 = vmax.f32 %v4758_v49, %v4759_v2  ;;  %v4779_v9 = vmax.f32 %v4777_v18, %v4778_v44 }
 0x47b   :  { %v4786_v34 = vmax.f32 %v4784_v51, %v4785_v42  ;;  %v4793_v6 = vmax.f32 %v4791_v7, %v4792_v63  ;;  %v18476_v16 = vmax.f32 %v4765_v10, %v4766_v28  ;;  %v4800_v62 = vmax.f32 %v4798_v36, %v4799_v11  ;;  %v4319_v7 = vpop.permute.xlu0 %4318 }
 0x47c   :  { %24612 = vst [vmem:[#allocation114_spill] sm:$0xff] %v18474_v3  ;;  %v4807_v55 = vmax.f32 %v4805_v24, %v4806_v13  ;;  %v4424_v41 = vcombine.high %v4351_v59, %v4352_v21  ;;  %v4814_v27 = vmax.f32 %v4812_v25, %v4813_v53  ;;  %v4826_v4 = vmax.f32 %v4824_v46, %v4825_v5 }
 0x47d   :  { %24613 = vst [vmem:[#allocation115_spill] sm:$0xff] %v18476_v16  ;;  %v4413_v48 = vrot.slane %v4405_v19, %v18377_v0  ;;  %v4431_v56 = vrot.slane %v4423_v20, %v18377_v0  ;;  %v18480_v15 = vmax.f32 %v4744_v60, %v4745_v52  ;;  %v18482_v22 = vmax.f32 %v4772_v61, %v4773_v40 }
 0x47e   :  { %v18487_v18 = vsel %vm5146_vm8, %v18403_v23, %v18401_v50  ;;  %v4821_v10 = vmax.f32 %v4819_v43, %v4820_v8  ;;  %v4780_v51 = vrot.slane %v4779_v9, 1  ;;  %v4787_v36 = vrot.slane %v4786_v34, 1 }
 0x47f   :  { %24614 = vst [vmem:[#allocation116_spill] sm:$0xff] %v18480_v15  ;;  %24615 = vst [vmem:[#allocation117_spill] sm:$0xff] %v18482_v22  ;;  %v4794_v21 = vrot.slane %v4793_v6, 1  ;;  %v4331_v49 = vsel %vm4326_vm5, %v4319_v7, %v4321_v37  ;;  %v18493_v24 = vsel %vm5146_vm8, %v18476_v16, %v18403_v23  ;;  %v4801_v25 = vrot.slane %v4800_v62, 1  ;;  %v4323_v45 = vpop.permute.xlu0 %4322 }
 0x480   :  { %v4808_v59 = vrot.slane %v4807_v55, 1  ;;  %v4438_v60 = vrot.slane %v4424_v41, %v18377_v0  ;;  %v4815_v61 = vrot.slane %v4814_v27, 1  ;;  %v4827_v46 = vrot.slane %v4826_v4, 2 }
 0x481   :  { %v4421_v50 = vcombine.high %v4413_v48, %v4413_v48  ;;  %v4439_v2 = vcombine.high %v4431_v56, %v4431_v56  ;;  %v4822_v43 = vrot.slane %v4821_v10, 1  ;;  %v4547_v44 = vrot.slane %v4413_v48, %v18377_v0 }
 0x482   :  { %v24616_v42 = vmax.f32 %v18015_v31, 0.0  ;;  %v24617_v28 = vmax.f32 %v18027_v57, 0.0  ;;  %v18508_v23 = vsel %vm5146_vm8, %v18482_v22, %v18474_v3  ;;  %v18510_v41 = vmax.f32 %v4779_v9, %v4780_v51 }
 0x483   :  { %v18512_v13 = vmax.f32 %v4786_v34, %v4787_v36  ;;  %v18514_v53 = vmax.f32 %v4793_v6, %v4794_v21  ;;  %v18516_v48 = vmax.f32 %v4800_v62, %v4801_v25  ;;  %v18518_v31 = vmax.f32 %v4807_v55, %v4808_v59 }
 0x484   :  { %v18499_v63 = vmax.f32 %v24616_v42, %v4331_v49  ;;  %v18503_v11 = vmax.f32 %v24617_v28, %v4321_v37  ;;  %24618 = vst [vmem:[#allocation118_spill] sm:$0xff] %v18510_v41  ;;  %v4440_v5 = vcombine.high %v4438_v60, %v4438_v60  ;;  %v4579_v57 = vrot.slane %v4431_v56, %v18377_v0 }
 0x485   :  { %24619 = vst [vmem:[#allocation119_spill] sm:$0xff] %v18512_v13  ;;  %24620 = vst [vmem:[#allocation120_spill] sm:$0xff] %v18514_v53  ;;  %v18521_v37 = vmax.f32 %v4814_v27, %v4815_v61  ;;  %v18523_v19 = vmax.f32 %v4826_v4, %v4827_v46  ;;  %v18526_v20 = vrot.slane %v4421_v50, %v18377_v0  ;;  %v4831_v6 = vsel %vm4717_vm6, %v4547_v44, -inf }
 0x486   :  { %24621 = vst [vmem:[#allocation121_spill] sm:$0xff] %v18516_v48  ;;  %24622 = vst [vmem:[#allocation122_spill] sm:$0xff] %v18518_v31  ;;  %v4587_v52 = vrot.slane %v4439_v2, %v18377_v0  ;;  %v18529_v40 = vmax.f32 %v4821_v10, %v4822_v43  ;;  %v4548_v8 = vcombine.high %v4547_v44, %v4547_v44  ;;  %v4887_v55 = vsel %vm4717_vm6, %v4579_v57, -inf }
 0x487   :  { %24623 = vst [vmem:[#allocation123_spill] sm:$0xff] %v18521_v37  ;;  %v4580_v9 = vcombine.high %v4579_v57, %v4579_v57  ;;  %v4441_v34 = vcombine.low %v18499_v63, %v18503_v11  ;;  %v4595_v56 = vrot.slane %v4438_v60, %v18377_v0  ;;  %v4442_v4 = vcombine.high %v18499_v63, %v18503_v11 }
 0x488   :  { %24624 = vst [vmem:[#allocation124_spill] sm:$0xff] %v18529_v40  ;;  %v4588_v62 = vcombine.high %v4587_v52, %v4587_v52  ;;  %v4603_v27 = vrot.slane %v4440_v5, %v18377_v0  ;;  %v4901_v7 = vsel %vm4717_vm6, %v4587_v52, -inf  ;;  %v4888_v21 = vrot.slane %v4887_v55, 4 }
 0x489   :  { %v4894_v10 = vsel %vm4725_vm7, %v4580_v9, -inf  ;;  %v4596_v36 = vcombine.high %v4595_v56, %v4595_v56  ;;  %v4838_v25 = vsel %vm4725_vm7, %v4548_v8, -inf  ;;  %v4902_v59 = vrot.slane %v4901_v7, 4 }
 0x48a   :  { %v4895_v49 = vrot.slane %v4894_v10, 4  ;;  %v4908_v60 = vsel %vm4725_vm7, %v4588_v62, -inf  ;;  %v4915_v61 = vsel %vm4717_vm6, %v4595_v56, -inf  ;;  %v4889_v46 = vmax.f32 %v4887_v55, %v4888_v21 }
 0x48b   :  { %v4909_v2 = vrot.slane %v4908_v60, 4  ;;  %v4916_v43 = vrot.slane %v4915_v61, 4  ;;  %v4832_v44 = vrot.slane %v4831_v6, 4  ;;  %v4604_v42 = vcombine.high %v4603_v27, %v4603_v27 }
 0x48c   :  { %v4896_v50 = vmax.f32 %v4894_v10, %v4895_v49  ;;  %v4903_v63 = vmax.f32 %v4901_v7, %v4902_v59  ;;  %v4922_v28 = vsel %vm4725_vm7, %v4596_v36, -inf  ;;  %v4890_v11 = vrot.slane %v4889_v46, 2 }
 0x48d   :  { %v4910_v57 = vmax.f32 %v4908_v60, %v4909_v2  ;;  %v4917_v52 = vmax.f32 %v4915_v61, %v4916_v43  ;;  %v4839_v9 = vrot.slane %v4838_v25, 4  ;;  %v4845_v8 = vsel %vm4717_vm6, %v18526_v20, -inf }
 0x48e   :  { %v4897_v5 = vrot.slane %v4896_v50, 2  ;;  %v4904_v62 = vrot.slane %v4903_v63, 2  ;;  %v4923_v51 = vrot.slane %v4922_v28, 4  ;;  %v4891_v56 = vmax.f32 %v4889_v46, %v4890_v11 }
 0x48f   :  { %v4911_v10 = vrot.slane %v4910_v57, 2  ;;  %v4918_v21 = vrot.slane %v4917_v52, 2  ;;  %v4929_v7 = vsel %vm4717_vm6, %v4603_v27, -inf  ;;  %v4936_v36 = vsel %vm4725_vm7, %v4604_v42, -inf }
 0x490   :  { %v4898_v55 = vmax.f32 %v4896_v50, %v4897_v5  ;;  %v4905_v49 = vmax.f32 %v4903_v63, %v4904_v62  ;;  %v4924_v33 = vmax.f32 %v4922_v28, %v4923_v51  ;;  %v4892_v59 = vrot.slane %v4891_v56, 1 }
 0x491   :  { %v4912_v60 = vmax.f32 %v4910_v57, %v4911_v10  ;;  %v4919_v61 = vmax.f32 %v4917_v52, %v4918_v21  ;;  %v4833_v2 = vmax.f32 %v4831_v6, %v4832_v44  ;;  %v4846_v43 = vrot.slane %v4845_v8, 4 }
 0x492   :  { %v4899_v39 = vrot.slane %v4898_v55, 1  ;;  %v4906_v32 = vrot.slane %v4905_v49, 1  ;;  %v4925_v58 = vrot.slane %v4924_v33, 2  ;;  %v4930_v46 = vrot.slane %v4929_v7, 4 }
 0x493   :  { %v4913_v14 = vrot.slane %v4912_v60, 1  ;;  %v4920_v1 = vrot.slane %v4919_v61, 1  ;;  %v4937_v50 = vrot.slane %v4936_v36, 4  ;;  %v4893_v11 = vmax.f32 %v4891_v56, %v4892_v59 }
 0x494   :  { %v4900_v5 = vmax.f32 %v4898_v55, %v4899_v39  ;;  %v18551_v63 = vmax.f32 %v4905_v49, %v4906_v32  ;;  %v4926_v51 = vmax.f32 %v4924_v33, %v4925_v58  ;;  %v4449_v28 = vrot.slane %v4441_v34, %v18377_v0 }
 0x495   :  { %v18553_v27 = vmax.f32 %v4912_v60, %v4913_v14  ;;  %v18555_v42 = vmax.f32 %v4919_v61, %v4920_v1  ;;  %v4456_v6 = vrot.slane %v4442_v4, %v18377_v0  ;;  %v4840_v44 = vmax.f32 %v4838_v25, %v4839_v9 }
 0x496   :  { %v4847_v57 = vmax.f32 %v4845_v8, %v4846_v43  ;;  %v4927_v52 = vrot.slane %v4926_v51, 1  ;;  %v6088_v62 = vsel %vm5146_vm8, %v18551_v63, %v4893_v11  ;;  %v4931_v10 = vmax.f32 %v4929_v7, %v4930_v46 }
 0x497   :  { %v18563_v39 = vsel %vm5148_vm9, %v18555_v42, %v6088_v62  ;;  %v6095_v14 = vsel %vm5146_vm8, %v18553_v27, %v4900_v5  ;;  %v4457_v58 = vcombine.high %v4449_v28, %v4449_v28  ;;  %v4829_v33 = vrot.slane %v18523_v19, 1 }
 0x498   :  { %24625 = vst [vmem:[#allocation125_spill] sm:$0xff] %v18563_v39  ;;  %v18568_v32 = vmax.f32 %v4926_v51, %v4927_v52  ;;  %v4938_v1 = vmax.f32 %v4936_v36, %v4937_v50  ;;  %v4458_v34 = vcombine.high %v4456_v6, %v4456_v6  ;;  %v24626_v4 = vcombine.high %v18526_v20, %v18526_v20 }
 0x499   :  { %v4611_v9 = vrot.slane %v4449_v28, %v18377_v0  ;;  %v4619_v8 = vrot.slane %v4457_v58, %v18377_v0  ;;  %v4627_v56 = vrot.slane %v4456_v6, %v18377_v0  ;;  %v4834_v55 = vrot.slane %v4833_v2, 2  ;;  %v4325_v58 = vpop.permute.xlu1 %4324 }
 0x49a   :  { %v4852_v25 = vsel %vm4725_vm7, %v24626_v4, -inf  ;;  %v4841_v21 = vrot.slane %v4840_v44, 2  ;;  %v4848_v49 = vrot.slane %v4847_v57, 2  ;;  %v18579_v7 = vsel %vm5148_vm9, %v18568_v32, %v6095_v14 }
 0x49b   :  { %24627 = vst [vmem:[#allocation126_spill] sm:$0xff] %v18579_v7  ;;  %v4932_v36 = vrot.slane %v4931_v10, 2  ;;  %v4612_v59 = vcombine.high %v4611_v9, %v4611_v9  ;;  %v4620_v60 = vcombine.high %v4619_v8, %v4619_v8  ;;  %v4628_v61 = vcombine.high %v4627_v56, %v4627_v56 }
 0x49c   :  { %v4939_v20 = vrot.slane %v4938_v1, 2  ;;  %v4635_v43 = vrot.slane %v4458_v34, %v18377_v0  ;;  %v4943_v46 = vsel %vm4717_vm6, %v4611_v9, -inf  ;;  %v4957_v50 = vsel %vm4717_vm6, %v4619_v8, -inf }
 0x49d   :  { %v4944_v11 = vrot.slane %v4943_v46, 4  ;;  %v4950_v5 = vsel %vm4725_vm7, %v4612_v59, -inf  ;;  %v4958_v51 = vrot.slane %v4957_v50, 4  ;;  %v4971_v28 = vsel %vm4717_vm6, %v4627_v56, -inf }
 0x49e   :  { %v4835_v6 = vmax.f32 %v4833_v2, %v4834_v55  ;;  %v4842_v52 = vmax.f32 %v4840_v44, %v4841_v21  ;;  %v4849_v62 = vmax.f32 %v4847_v57, %v4848_v49  ;;  %v4853_v14 = vrot.slane %v4852_v25, 4 }
 0x49f   :  { %v4933_v4 = vmax.f32 %v4931_v10, %v4932_v36  ;;  %v4951_v39 = vrot.slane %v4950_v5, 4  ;;  %v4964_v7 = vsel %vm4725_vm7, %v4620_v60, -inf  ;;  %v4978_v34 = vsel %vm4725_vm7, %v4628_v61, -inf }
 0x4a0   :  { %v18589_v9 = vmax.f32 %v18523_v19, %v4829_v33  ;;  %v4636_v8 = vcombine.high %v4635_v43, %v4635_v43  ;;  %v4945_v54 = vmax.f32 %v4943_v46, %v4944_v11  ;;  %v4972_v59 = vrot.slane %v4971_v28, 4 }
 0x4a1   :  { %v4940_v30 = vmax.f32 %v4938_v1, %v4939_v20  ;;  %v4959_v56 = vmax.f32 %v4957_v50, %v4958_v51  ;;  %v4985_v2 = vsel %vm4717_vm6, %v4635_v43, -inf  ;;  %v4332_v44 = vsel %vm4326_vm5, %v4323_v45, %v4325_v58 }
 0x4a2   :  { %24628 = vst [vmem:[#allocation127_spill] sm:$0xff] %v18589_v9  ;;  %v4836_v57 = vrot.slane %v4835_v6, 1  ;;  %v4854_v10 = vmax.f32 %v4852_v25, %v4853_v14  ;;  %v4965_v55 = vrot.slane %v4964_v7, 4  ;;  %v4979_v21 = vrot.slane %v4978_v34, 4 }
 0x4a3   :  { %v4843_v49 = vrot.slane %v4842_v52, 1  ;;  %v4850_v36 = vrot.slane %v4849_v62, 1  ;;  %v4934_v60 = vrot.slane %v4933_v4, 1  ;;  %v4952_v61 = vmax.f32 %v4950_v5, %v4951_v39 }
 0x4a4   :  { %v4946_v19 = vrot.slane %v4945_v54, 2  ;;  %v4973_v33 = vmax.f32 %v4971_v28, %v4972_v59  ;;  %v4986_v29 = vrot.slane %v4985_v2, 4  ;;  %v4992_v46 = vsel %vm4725_vm7, %v4636_v8, -inf }
 0x4a5   :  { %v4941_v1 = vrot.slane %v4940_v30, 1  ;;  %v4960_v20 = vrot.slane %v4959_v56, 2  ;;  %v24629_v43 = vmax.f32 %v18032_v26, 0.0  ;;  %v24630_v45 = vmax.f32 %v18043_v47, 0.0 }
 0x4a6   :  { %v18602_v11 = vmax.f32 %v4835_v6, %v4836_v57  ;;  %v4855_v51 = vrot.slane %v4854_v10, 2  ;;  %v4966_v39 = vmax.f32 %v4964_v7, %v4965_v55  ;;  %v4980_v5 = vmax.f32 %v4978_v34, %v4979_v21 }
 0x4a7   :  { %v18596_v50 = vmax.f32 %v24629_v43, %v4332_v44  ;;  %v18600_v25 = vmax.f32 %v24630_v45, %v4325_v58  ;;  %v18604_v28 = vmax.f32 %v4842_v52, %v4843_v49  ;;  %v18606_v14 = vmax.f32 %v4849_v62, %v4850_v36 }
 0x4a8   :  { %24632 = vst [vmem:[#allocation129_spill] sm:$0xff] %v18602_v11  ;;  %v4953_v8 = vrot.slane %v4952_v61, 2  ;;  %v4993_v59 = vrot.slane %v4992_v46, 4  ;;  %v18608_v12 = vmax.f32 %v4933_v4, %v4934_v60  ;;  %v4947_v26 = vmax.f32 %v4945_v54, %v4946_v19 }
 0x4a9   :  { %24631 = vst [vmem:[#allocation128_spill] sm:$0xff] %v18600_v25  ;;  %24633 = vst [vmem:[#allocation130_spill] sm:$0xff] %v18604_v28  ;;  %v4974_v44 = vrot.slane %v4973_v33, 2  ;;  %v4987_v43 = vmax.f32 %v4985_v2, %v4986_v29  ;;  %v18610_v47 = vmax.f32 %v4940_v30, %v4941_v1  ;;  %v4961_v58 = vmax.f32 %v4959_v56, %v4960_v20 }
 0x4aa   :  { %24634 = vst [vmem:[#allocation131_spill] sm:$0xff] %v18606_v14  ;;  %24635 = vst [vmem:[#allocation132_spill] sm:$0xff] %v18608_v12  ;;  %v4459_v6 = vcombine.low %v18596_v50, %v18600_v25  ;;  %v18619_v52 = vsel %vm5146_vm8, %v18555_v42, %v18551_v63  ;;  %v18624_v54 = vsel %vm5146_vm8, %v18568_v32, %v18553_v27  ;;  %v4967_v29 = vrot.slane %v4966_v39, 2 }
 0x4ab   :  { %24636 = vst [vmem:[#allocation133_spill] sm:$0xff] %v18610_v47  ;;  %v4981_v30 = vrot.slane %v4980_v5, 2  ;;  %v4954_v62 = vmax.f32 %v4952_v61, %v4953_v8  ;;  %v4994_v4 = vmax.f32 %v4992_v46, %v4993_v59  ;;  %v7032_v56 = vsel %vm5148_vm9, %v18512_v13, %v18508_v23 }
 0x4ac   :  { %v4467_v34 = vrot.slane %v4459_v6, %v18377_v0  ;;  %v18633_v63 = vsel %vm5146_vm8, %v18608_v12, %v18555_v42  ;;  %v4948_v2 = vrot.slane %v4947_v26, 1  ;;  %v4975_v57 = vmax.f32 %v4973_v33, %v4974_v44 }
 0x4ad   :  { %v4988_v27 = vrot.slane %v4987_v43, 2  ;;  %v18638_v55 = vsel %vm5146_vm8, %v18610_v47, %v18568_v32  ;;  %v4962_v21 = vrot.slane %v4961_v58, 1  ;;  %v4968_v60 = vmax.f32 %v4966_v39, %v4967_v29 }
 0x4ae   :  { %v4475_v49 = vcombine.high %v4467_v34, %v4467_v34  ;;  %v4643_v36 = vrot.slane %v4467_v34, %v18377_v0  ;;  %v4982_v61 = vmax.f32 %v4980_v5, %v4981_v30  ;;  %v4856_v23 = vmax.f32 %v4854_v10, %v4855_v51 }
 0x4af   :  { %v7033_v42 = vsel %vm5150_vm10, %v18516_v48, %v7032_v56  ;;  %v4955_v19 = vrot.slane %v4954_v62, 1  ;;  %v4995_v46 = vrot.slane %v4994_v4, 2  ;;  %v18644_v20 = vmax.f32 %v4947_v26, %v4948_v2 }
 0x4b0   :  { %v4644_v33 = vcombine.high %v4643_v36, %v4643_v36  ;;  %v4651_v1 = vrot.slane %v4475_v49, %v18377_v0  ;;  %v4976_v32 = vrot.slane %v4975_v57, 1  ;;  %v4989_v45 = vmax.f32 %v4987_v43, %v4988_v27 }
 0x4b1   :  { %24637 = vst [vmem:[#allocation134_spill] sm:$0xff] %v18644_v20  ;;  %v4999_v8 = vsel %vm4717_vm6, %v4643_v36, -inf  ;;  %v7034_v10 = vsel %vm5152_vm11, %v18521_v37, %v7033_v42  ;;  %v4857_v6 = vrot.slane %v4856_v23, 1  ;;  %v7025_v26 = vsel %vm5148_vm9, %v18510_v41, %v18493_v24 }
 0x4b2   :  { %v4652_v59 = vcombine.high %v4651_v1, %v4651_v1  ;;  %v5000_v44 = vrot.slane %v4999_v8, 4  ;;  %v5006_v39 = vsel %vm4725_vm7, %v4644_v33, -inf  ;;  %v5013_v5 = vsel %vm4717_vm6, %v4651_v1, -inf }
 0x4b3   :  { %v5007_v51 = vrot.slane %v5006_v39, 4  ;;  %v4996_v43 = vmax.f32 %v4994_v4, %v4995_v46  ;;  %v5014_v30 = vrot.slane %v5013_v5, 4  ;;  %v4969_v56 = vrot.slane %v4968_v60, 1 }
 0x4b4   :  { %v5001_v29 = vmax.f32 %v4999_v8, %v5000_v44  ;;  %v5020_v34 = vsel %vm4725_vm7, %v4652_v59, -inf  ;;  %v7035_v49 = vsel %vm5154_vm12, %v18589_v9, %v7034_v10  ;;  %v4983_v36 = vrot.slane %v4982_v61, 1 }
 0x4b5   :  { %v5008_v2 = vmax.f32 %v5006_v39, %v5007_v51  ;;  %v5021_v27 = vrot.slane %v5020_v34, 4  ;;  %v5015_v33 = vmax.f32 %v5013_v5, %v5014_v30  ;;  %v7026_v1 = vsel %vm5150_vm10, %v18514_v53, %v7025_v26 }
 0x4b6   :  { %v5002_v42 = vrot.slane %v5001_v29, 2  ;;  %v18659_v7 = vmax.f32 %v4961_v58, %v4962_v21  ;;  %v4990_v24 = vrot.slane %v4989_v45, 1  ;;  %v18661_v46 = vmax.f32 %v4856_v23, %v4857_v6 }
 0x4b7   :  { %v5009_v4 = vrot.slane %v5008_v2, 2  ;;  %v4997_v8 = vrot.slane %v4996_v43, 1  ;;  %v5022_v44 = vmax.f32 %v5020_v34, %v5021_v27  ;;  %v7036_v39 = vsel %vm5156_vm13, %v18604_v28, %v7035_v49 }
 0x4b8   :  { %24638 = vst [vmem:[#allocation135_spill] sm:$0xff] %v18659_v7  ;;  %24639 = vst [vmem:[#allocation136_spill] sm:$0xff] %v18661_v46  ;;  %v5003_v59 = vmax.f32 %v5001_v29, %v5002_v42  ;;  %v18665_v51 = vmax.f32 %v4954_v62, %v4955_v19  ;;  %v5016_v25 = vrot.slane %v5015_v33, 2  ;;  %v7027_v5 = vsel %vm5152_vm11, %v18518_v31, %v7026_v1 }
 0x4b9   :  { %v5010_v10 = vmax.f32 %v5008_v2, %v5009_v4  ;;  %v18669_v26 = vmax.f32 %v4968_v60, %v4969_v56  ;;  %v18671_v58 = vmax.f32 %v4975_v57, %v4976_v32  ;;  %v18673_v21 = vmax.f32 %v4982_v61, %v4983_v36 }
 0x4ba   :  { %24640 = vst [vmem:[#allocation137_spill] sm:$0xff] %v18665_v51  ;;  %v5004_v23 = vrot.slane %v5003_v59, 1  ;;  %v18675_v6 = vmax.f32 %v4989_v45, %v4990_v24  ;;  %v7037_v30 = vsel %vm5158_vm14, %v18661_v46, %v7036_v39  ;;  %v5160_v62 = vsel %vm5146_vm8, %v18474_v3, %v18480_v15 }
 0x4bb   :  { %24641 = vst [vmem:[#allocation138_spill] sm:$0xff] %v18669_v26  ;;  %24642 = vst [vmem:[#allocation139_spill] sm:$0xff] %v18671_v58  ;;  %v5011_v29 = vrot.slane %v5010_v10, 1  ;;  %v18682_v19 = vmax.f32 %v4996_v43, %v4997_v8  ;;  %v5023_v34 = vrot.slane %v5022_v44, 2  ;;  %v7054_v60 = vsel %vm5183_vm15, %v7037_v30, 0  ;;  %v24653_v8 = vld [vmem:[#allocation24_spill] sm:$0xff] }
 0x4bc   :  { %24643 = vst [vmem:[#allocation140_spill] sm:$0xff] %v18673_v21  ;;  %24644 = vst [vmem:[#allocation141_spill] sm:$0xff] %v18675_v6  ;;  %v7028_v57 = vsel %vm5154_vm12, %v18529_v40, %v7027_v5  ;;  %v18687_v61 = vmax.f32 %v5003_v59, %v5004_v23  ;;  %v5017_v32 = vmax.f32 %v5015_v33, %v5016_v25  ;;  %v18689_v45 = vand.u32 4294901760, %v7054_v60  ;;  %v24655_v23 = vld [vmem:[#allocation9_spill] sm:$0xff]  ;;  %v24657_v30 = vld [vmem:[#allocation10_spill] sm:$0xff] }
 0x4bd   :  { %24645 = vst [vmem:[#allocation142_spill] sm:$0xff] %v18682_v19  ;;  %v7029_v56 = vsel %vm5156_vm13, %v18602_v11, %v7028_v57  ;;  %v5161_v43 = vsel %vm5148_vm9, %v18482_v22, %v5160_v62  ;;  %v5149_v27 = vsel %vm5148_vm9, %v18476_v16, %v18487_v18  ;;  %v24648_v49 = vand.u32 4294901760, %v18436_v35  ;;  %v24681_v16 = vld [vmem:[#allocation28_spill] sm:$0xff] }
 0x4be   :  { %24646 = vst [vmem:[#allocation143_spill] sm:$0xff] %v18687_v61  ;;  %24647 = vst [vmem:[#allocation144_spill] sm:$0xff] %v18689_v45  ;;  %v18695_v2 = vsel %vm5158_vm14, %v18606_v14, %v7029_v56  ;;  %v24649_v25 = vand.u32 4294901760, %v18454_v17  ;;  %v18708_v42 = vmax.f32 %v5010_v10, %v5011_v29  ;;  %7395 = vmatprep.mubr.f32.mxu0 %v18689_v45  ;;  %v24652_v18 = vand.u32 4294901760, %v17820_v38  ;;  %v24738_v22 = vld [vmem:[#allocation100_spill] sm:$0xff] }
 0x4bf   :  { %v18712_v33 = vand.u32 4294901760, %v18695_v2  ;;  %v5162_v1 = vsel %vm5150_vm10, %v18512_v13, %v5161_v43  ;;  %v5151_v24 = vsel %vm5150_vm10, %v18510_v41, %v5149_v27  ;;  %v24654_v59 = vand.u32 4294901760, %v24653_v8  ;;  %v24660_v43 = vld [vmem:[#allocation110_spill] sm:$0xff]  ;;  %v24720_v41 = vld [vmem:[#allocation95_spill] sm:$0xff] }
 0x4c0   :  { %v18706_v36 = vpack.c.bf16 %v24649_v25, %v24648_v49  ;;  %24650 = vst [vmem:[#allocation145_spill] sm:$0xff] %v18708_v42  ;;  %v5163_v35 = vsel %vm5152_vm11, %v18516_v48, %v5162_v1  ;;  %v5153_v17 = vsel %vm5152_vm11, %v18514_v53, %v5151_v24  ;;  %v5333_v4 = vsub.f32 %v17820_v38, %v24652_v18 }
 0x4c1   :  { %24651 = vst [vmem:[#allocation146_spill] sm:$0xff] %v18712_v33  ;;  %v5340_v39 = vsub.f32 %v24653_v8, %v24654_v59  ;;  %7397 = vmatmul.mubr.f32.vlgmr.msra.gmra.mrb[12].mxu0 %v18712_v33  ;;  %v5164_v10 = vsel %vm5154_vm12, %v18521_v37, %v5163_v35  ;;  %v5155_v5 = vsel %vm5154_vm12, %v18518_v31, %v5153_v17  ;;  %v24656_v29 = vand.u32 4294901760, %v24655_v23  ;;  %v24732_v37 = vld [vmem:[#allocation99_spill] sm:$0xff] }
 0x4c2   :  { %v24658_v62 = vand.u32 4294901760, %v24657_v30  ;;  %v5024_v56 = vmax.f32 %v5022_v44, %v5023_v34  ;;  %14749 = vmatpush1.bf16.msra.mxu0 %v24660_v43  ;;  %v5165_v27 = vsel %vm5156_vm13, %v18589_v9, %v5164_v10  ;;  %v5157_v49 = vsel %vm5156_vm13, %v18529_v40, %v5155_v5  ;;  %v24665_v30 = vld [vmem:[#allocation111_spill] sm:$0xff] }
 0x4c3   :  { %v5334_v25 = vand.u32 4294901760, %v5333_v4  ;;  %v5341_v1 = vand.u32 4294901760, %v5340_v39  ;;  %v24661_v24 = vmov 0.0|0.0   ;;  %v5166_v35 = vsel %vm5158_vm14, %v18604_v28, %v5165_v27 }
 0x4c4   :  { %v18737_v57 = vpack.c.bf16 %v24658_v62, %v24656_v29  ;;  %14750 = vmatprep.subr.bf16.mxu0 %v24661_v24  ;;  %v5159_v17 = vsel %vm5158_vm14, %v18602_v11, %v5157_v49  ;;  %v5025_v18 = vrot.slane %v5024_v56, 1  ;;  %v7046_v44 = vsel %vm5148_vm9, %v18665_v51, %v18638_v55  ;;  %v24667_v49 = vld [vmem:[#allocation20_spill] sm:$0xff] }
 0x4c5   :  { %v5184_v34 = vsel %vm5183_vm15, %v5166_v35, 0  ;;  %v18753_v59 = vand.u32 4294901760, %v5159_v17  ;;  %v18755_v10 = vpack.c.bf16 %v5341_v1, %v5334_v25  ;;  %v7047_v4 = vsel %vm5150_vm10, %v18669_v26, %v7046_v44 }
 0x4c6   :  { %24659 = vst [vmem:[#allocation9_spill] sm:$0xff] %v18737_v57  ;;  %v18759_v39 = vand.u32 4294901760, %v5184_v34  ;;  %v18761_v5 = vmax.f32 %v5024_v56, %v5025_v18  ;;  %v7048_v23 = vsel %vm5152_vm11, %v18673_v21, %v7047_v4  ;;  %v5018_v29 = vrot.slane %v5017_v32, 1  ;;  %14752 = vmatpush1.bf16.msra.mxu0 %v24665_v30  ;;  %v24669_v56 = vld [vmem:[#allocation23_spill] sm:$0xff] }
 0x4c7   :  { %24662 = vst [vmem:[#allocation10_spill] sm:$0xff] %v18753_v59  ;;  %v18767_v55 = vsub.f32 %v5159_v17, %v18753_v59  ;;  %v7049_v62 = vsel %vm5154_vm12, %v18682_v19, %v7048_v23  ;;  %v7039_v27 = vsel %vm5148_vm9, %v18644_v20, %v18633_v63  ;;  %v24668_v25 = vand.u32 4294901760, %v24667_v49  ;;  %14753 = vmatprep.subr.bf16.mxu0 %v24661_v24 }
 0x4c8   :  { %24663 = vst [vmem:[#allocation147_spill] sm:$0xff] %v18759_v39  ;;  %24664 = vst [vmem:[#allocation148_spill] sm:$0xff] %v18761_v5  ;;  %v24670_v1 = vand.u32 4294901760, %v24669_v56  ;;  %v18781_v18 = vsub.f32 %v5184_v34, %v18759_v39  ;;  %v7050_v17 = vsel %vm5156_vm13, %v18708_v42, %v7049_v62  ;;  %v18786_v44 = vmax.f32 %v5017_v32, %v5018_v29  ;;  %v24675_v29 = vld [vmem:[#allocation34_spill] sm:$0xff] }
 0x4c9   :  { %24666 = vst [vmem:[#allocation149_spill] sm:$0xff] %v18767_v55  ;;  %v7040_v4 = vsel %vm5150_vm10, %v18659_v7, %v7039_v27  ;;  %v23886_v63 = vand.u32 4294901760, %v18767_v55  ;;  %v7051_v23 = vsel %vm5158_vm14, %v18761_v5, %v7050_v17  ;;  %v18796_v34 = vsub.f32 %v7054_v60, %v18689_v45  ;;  %v24679_v17 = vld [vmem:[#allocation27_spill] sm:$0xff] }
 0x4ca   :  { %v18778_v35 = vpack.c.bf16 %v24670_v1, %v24668_v25  ;;  %24672 = vst [vmem:[#allocation23_spill] sm:$0xff] %v18781_v18  ;;  %24673 = vst [vmem:[#allocation150_spill] sm:$0xff] %v18786_v44  ;;  %v7041_v49 = vsel %vm5152_vm11, %v18671_v58, %v7040_v4  ;;  %v23889_v25 = vand.u32 4294901760, %v18781_v18  ;;  %v18800_v62 = vsel %vm5183_vm15, %v7051_v23, 0  ;;  %14755 = vmatpush1.bf16.msra.mxu0 %v18737_v57 }
 0x4cb   :  { %24674 = vst [vmem:[#allocation151_spill] sm:$0xff] %v18796_v34  ;;  %v7042_v32 = vsel %vm5154_vm12, %v18675_v6, %v7041_v49  ;;  %v23898_v27 = vand.u32 4294901760, %v24675_v29  ;;  %v5293_v56 = vsub.f32 %v18767_v55, %v23886_v63  ;;  %v18810_v1 = vand.u32 4294901760, %v18800_v62  ;;  %14756 = vmatprep.subr.bf16.mxu0 %v24661_v24  ;;  %v24677_v63 = vld [vmem:[#allocation35_spill] sm:$0xff] }
 0x4cc   :  { %24671 = vst [vmem:[#allocation20_spill] sm:$0xff] %v18778_v35  ;;  %v7043_v60 = vsel %vm5156_vm13, %v18687_v61, %v7042_v32  ;;  %v5287_v4 = vsub.f32 %v18781_v18, %v23889_v25  ;;  %v23901_v3 = vand.u32 4294901760, %v24677_v63  ;;  %v24680_v25 = vand.u32 4294901760, %v24679_v17  ;;  %v24685_v17 = vld [vmem:[#allocation45_spill] sm:$0xff] }
 0x4cd   :  { %24676 = vst [vmem:[#allocation152_spill] sm:$0xff] %v18810_v1  ;;  %v18821_v23 = vsel %vm5158_vm14, %v18786_v44, %v7043_v60  ;;  %v5347_v49 = vsub.f32 %v24675_v29, %v23898_v27  ;;  %v5294_v15 = vand.u32 4294901760, %v5293_v56  ;;  %7402 = vmatprep.mubr.f32.mxu0 %v18810_v1  ;;  %v24682_v55 = vand.u32 4294901760, %v24681_v16 }
 0x4ce   :  { %v18829_v32 = vand.u32 4294901760, %v18821_v23  ;;  %v5175_v60 = vsel %vm5148_vm9, %v18610_v47, %v18624_v54  ;;  %v5288_v44 = vand.u32 4294901760, %v5287_v4  ;;  %v5354_v56 = vsub.f32 %v24677_v63, %v23901_v3  ;;  %14758 = vmatpush1.bf16.msra.mxu0 %v18778_v35  ;;  %v24686_v47 = vld [vmem:[#allocation31_spill] sm:$0xff] }
 0x4cf   :  { %v18835_v5 = vpack.c.bf16 %v24682_v55, %v24680_v25  ;;  %v5348_v27 = vand.u32 4294901760, %v5347_v49  ;;  %v5176_v14 = vsel %vm5150_vm10, %v18665_v51, %v5175_v60  ;;  %v5168_v55 = vsel %vm5148_vm9, %v18608_v12, %v18619_v52  ;;  %v24684_v25 = vld [vmem:[#allocation44_spill] sm:$0xff]  ;;  %14759 = vmatprep.subr.bf16.mxu0 %v24661_v24 }
 0x4d0   :  { %24678 = vst [vmem:[#allocation153_spill] sm:$0xff] %v18829_v32  ;;  %7404 = vmatmul.mubr.f32.gmra.mrb[14].mxu0 %v18829_v32  ;;  %v5177_v16 = vsel %vm5152_vm11, %v18669_v26, %v5176_v14  ;;  %v23910_v54 = vand.u32 4294901760, %v24684_v25  ;;  %v23911_v4 = vand.u32 4294901760, %v24685_v17  ;;  %5289 = vmatprep.mubr.f32.mxu1 %v5288_v44  ;;  %v5355_v49 = vand.u32 4294901760, %v5354_v56  ;;  %v24688_v26 = vld [vmem:[#allocation32_spill] sm:$0xff] }
 0x4d1   :  { %24683 = vst [vmem:[#allocation27_spill] sm:$0xff] %v18835_v5  ;;  %v5178_v60 = vsel %vm5154_vm12, %v18673_v21, %v5177_v16  ;;  %v5169_v3 = vsel %vm5150_vm10, %v18644_v20, %v5168_v55  ;;  %v24687_v14 = vand.u32 4294901760, %v24686_v47  ;;  %v24689_v51 = vand.u32 4294901760, %v24688_v26  ;;  %5295 = vmatmul.mubr.f32.vlgmr.msra.gmra.mrb[0].mxu1 %v5294_v15  ;;  %v24692_v55 = vld [vmem:[#allocation51_spill] sm:$0xff] }
 0x4d2   :  { %v24691_v52 = vand.u32 4294901760, %v18796_v34  ;;  %v5179_v44 = vsel %vm5156_vm13, %v18682_v19, %v5178_v60  ;;  %v5170_v56 = vsel %vm5152_vm11, %v18659_v7, %v5169_v3  ;;  %v5361_v16 = vsub.f32 %v24684_v25, %v23910_v54  ;;  %14161 = vmatpush1.bf16.msra.mxu1 %v18706_v36  ;;  %v24693_v60 = vld [vmem:[#allocation52_spill] sm:$0xff]  ;;  %14761 = vmatpush1.bf16.msra.mxu0 %v18835_v5  ;;  %v24709_v19 = vld [vmem:[#allocation46_spill] sm:$0xff] }
 0x4d3   :  { %v18862_v11 = vpack.c.bf16 %v24689_v51, %v24687_v14  ;;  %v23918_v47 = vand.u32 4294901760, %v24692_v55  ;;  %v14166_v51 = vpack.c.bf16 %v5355_v49, %v5348_v27  ;;  %v5180_v15 = vsel %vm5158_vm14, %v18708_v42, %v5179_v44  ;;  %14162 = vmatprep.subr.bf16.mxu1 %v24661_v24  ;;  %14762 = vmatprep.subr.bf16.mxu0 %v24661_v24  ;;  %v24702_v7 = vld [vmem:[#allocation40_spill] sm:$0xff] }
 0x4d4   :  { %7646 = vmatprep.mubr.f32.mxu0 %v24691_v52  ;;  %v5171_v26 = vsel %vm5154_vm12, %v18671_v58, %v5170_v56  ;;  %v23919_v14 = vand.u32 4294901760, %v24693_v60  ;;  %v5186_v3 = vsel %vm5183_vm15, %v5180_v15, 0  ;;  %v5362_v54 = vand.u32 4294901760, %v5361_v16  ;;  %v24744_v5 = vld [vmem:[#allocation68_spill] sm:$0xff] }
 0x4d5   :  { %24690 = vst [vmem:[#allocation28_spill] sm:$0xff] %v18862_v11  ;;  %v5172_v52 = vsel %vm5156_vm13, %v18675_v6, %v5171_v26  ;;  %v5368_v36 = vsub.f32 %v24685_v17, %v23911_v4  ;;  %v18889_v27 = vand.u32 4294901760, %v5186_v3  ;;  %v5375_v44 = vsub.f32 %v24692_v55, %v23918_v47  ;;  %v24696_v26 = vld [vmem:[#allocation58_spill] sm:$0xff] }
 0x4d6   :  { %v5173_v49 = vsel %vm5158_vm14, %v18687_v61, %v5172_v52  ;;  %v5382_v56 = vsub.f32 %v24693_v60, %v23919_v14  ;;  %14164 = vmatpush1.bf16.msra.mxu1 %v18755_v10  ;;  %v24698_v61 = vld [vmem:[#allocation59_spill] sm:$0xff]  ;;  %v24703_v20 = vand.u32 4294901760, %v24702_v7  ;;  %v24705_v10 = vand.u32 4294901760, %v24696_v26  ;;  %14764 = vmatpush1.bf16.msra.mxu0 %v18862_v11 }
 0x4d7   :  { %24694 = vst [vmem:[#allocation31_spill] sm:$0xff] %v18889_v27  ;;  %v18899_v16 = vand.u32 4294901760, %v5173_v49  ;;  %v5369_v15 = vand.u32 4294901760, %v5368_v36  ;;  %v18905_v34 = vsub.f32 %v5186_v3, %v18889_v27  ;;  %v5376_v52 = vand.u32 4294901760, %v5375_v44  ;;  %14165 = vmatprep.subr.bf16.mxu1 %v24661_v24  ;;  %v24700_v36 = vld [vmem:[#allocation39_spill] sm:$0xff]  ;;  %14765 = vmatprep.subr.bf16.mxu0 %v24661_v24 }
 0x4d8   :  { %v5383_v12 = vand.u32 4294901760, %v5382_v56  ;;  %v23930_v47 = vand.u32 4294901760, %v24698_v61  ;;  %v24701_v58 = vand.u32 4294901760, %v24700_v36  ;;  %v5389_v3 = vsub.f32 %v24696_v26, %v24705_v10 }
 0x4d9   :  { %24695 = vst [vmem:[#allocation32_spill] sm:$0xff] %v18899_v16  ;;  %24697 = vst [vmem:[#allocation154_spill] sm:$0xff] %v18905_v34  ;;  %v18910_v14 = vsub.f32 %v5173_v49, %v18899_v16  ;;  %v14169_v6 = vpack.c.bf16 %v5369_v15, %v5362_v54  ;;  %v23937_v44 = vand.u32 4294901760, %v18905_v34  ;;  %v24706_v54 = vld [vmem:[#allocation65_spill] sm:$0xff]  ;;  %v24747_v16 = vld [vmem:[#allocation104_spill] sm:$0xff] }
 0x4da   :  { %v18916_v4 = vpack.c.bf16 %v24703_v20, %v24701_v58  ;;  %v14172_v56 = vpack.c.bf16 %v5383_v12, %v5376_v52  ;;  %v5396_v49 = vsub.f32 %v24698_v61, %v23930_v47  ;;  %v23940_v15 = vand.u32 4294901760, %v24706_v54  ;;  %v24707_v20 = vld [vmem:[#allocation66_spill] sm:$0xff]  ;;  %14167 = vmatpush1.bf16.msra.mxu1 %v14166_v51  ;;  %v24711_v51 = vld [vmem:[#allocation47_spill] sm:$0xff] }
 0x4db   :  { %24699 = vst [vmem:[#allocation155_spill] sm:$0xff] %v18910_v14  ;;  %v23947_v36 = vand.u32 4294901760, %v18910_v14  ;;  %v5390_v7 = vand.u32 4294901760, %v5389_v3  ;;  %v5302_v10 = vsub.f32 %v18905_v34, %v23937_v44  ;;  %v24708_v52 = vld [vmem:[#allocation82_spill] sm:$0xff]  ;;  %14168 = vmatprep.subr.bf16.mxu1 %v24661_v24  ;;  %v24710_v58 = vand.u32 4294901760, %v24709_v19  ;;  %v24715_v34 = vld [vmem:[#allocation83_spill] sm:$0xff] }
 0x4dc   :  { %24704 = vst [vmem:[#allocation39_spill] sm:$0xff] %v18916_v4  ;;  %v5397_v42 = vand.u32 4294901760, %v5396_v49  ;;  %v5403_v12 = vsub.f32 %v24706_v54, %v23940_v15  ;;  %v24712_v21 = vand.u32 4294901760, %v24711_v51  ;;  %v24714_v49 = vand.u32 4294901760, %v24707_v20  ;;  %14767 = vmatpush1.bf16.msra.mxu0 %v18916_v4  ;;  %v24717_v51 = vld [vmem:[#allocation92_spill] sm:$0xff] }
 0x4dd   :  { %v5308_v3 = vsub.f32 %v18910_v14, %v23947_v36  ;;  %v23952_v15 = vand.u32 4294901760, %v24715_v34  ;;  %v5303_v31 = vand.u32 4294901760, %v5302_v10  ;;  %v24716_v53 = vand.u32 4294901760, %v24708_v52  ;;  %14768 = vmatprep.subr.bf16.mxu0 %v24661_v24  ;;  %v24718_v14 = vld [vmem:[#allocation93_spill] sm:$0xff] }
 0x4de   :  { %v18945_v40 = vpack.c.bf16 %v24712_v21, %v24710_v58  ;;  %v5410_v44 = vsub.f32 %v24707_v20, %v24714_v49  ;;  %v14175_v47 = vpack.c.bf16 %v5397_v42, %v5390_v7  ;;  %v5404_v46 = vand.u32 4294901760, %v5403_v12  ;;  %14170 = vmatpush1.bf16.msra.mxu1 %v14169_v6  ;;  %v24719_v7 = vld [vmem:[#allocation94_spill] sm:$0xff] }
 0x4df   :  { %v5417_v36 = vsub.f32 %v24708_v52, %v24716_v53  ;;  %v5309_v19 = vand.u32 4294901760, %v5308_v3  ;;  %v5424_v58 = vsub.f32 %v24715_v34, %v23952_v15  ;;  %v23953_v49 = vand.u32 4294901760, %v24717_v51  ;;  %5304 = vmatprep.mubr.f32.mxu1 %v5303_v31  ;;  %14171 = vmatprep.subr.bf16.mxu1 %v24661_v24  ;;  %v24721_v31 = vld [vmem:[#allocation53_spill] sm:$0xff] }
 0x4e0   :  { %24713 = vst [vmem:[#allocation40_spill] sm:$0xff] %v18945_v40  ;;  %v5411_v21 = vand.u32 4294901760, %v5410_v44  ;;  %14770 = vmatpush1.bf16.msra.mxu0 %v18945_v40  ;;  %v24722_v6 = vand.u32 4294901760, %v24721_v31  ;;  %v24729_v31 = vand.u32 4294901760, %v24720_v41  ;;  %v23991_v35 = vand.u32 4294901760, %v24747_v16 }
 0x4e1   :  { %v5418_v10 = vand.u32 4294901760, %v5417_v36  ;;  %5310 = vmatmul.mubr.f32.gmra.mrb[2].mxu1 %v5309_v19  ;;  %v5425_v3 = vand.u32 4294901760, %v5424_v58  ;;  %v5431_v44 = vsub.f32 %v24717_v51, %v23953_v49  ;;  %v24723_v36 = vld [vmem:[#allocation54_spill] sm:$0xff]  ;;  %v24726_v19 = vand.u32 4294901760, %v24718_v14  ;;  %v24728_v49 = vld [vmem:[#allocation96_spill] sm:$0xff]  ;;  %14771 = vmatprep.subr.bf16.mxu0 %v24661_v24 }
 0x4e2   :  { %v14178_v53 = vpack.c.bf16 %v5411_v21, %v5404_v46  ;;  %5525 = vmatprep.mubr.f32.mxu1 %v18759_v39  ;;  %v24724_v42 = vand.u32 4294901760, %v24723_v36  ;;  %v24727_v21 = vand.u32 4294901760, %v24719_v7  ;;  %v23968_v15 = vand.u32 4294901760, %v24728_v49  ;;  %14173 = vmatpush1.bf16.msra.mxu1 %v14172_v56  ;;  %v24733_v56 = vld [vmem:[#allocation60_spill] sm:$0xff] }
 0x4e3   :  { %v5438_v46 = vsub.f32 %v24718_v14, %v24726_v19  ;;  %v14181_v39 = vpack.c.bf16 %v5425_v3, %v5418_v10  ;;  %v5432_v28 = vand.u32 4294901760, %v5431_v44  ;;  %v5452_v36 = vsub.f32 %v24720_v41, %v24729_v31  ;;  %14174 = vmatprep.subr.bf16.mxu1 %v24661_v24  ;;  %v24731_v3 = vld [vmem:[#allocation98_spill] sm:$0xff] }
 0x4e4   :  { %v18973_v12 = vpack.c.bf16 %v24724_v42, %v24722_v6  ;;  %v5445_v58 = vsub.f32 %v24719_v7, %v24727_v21  ;;  %v24730_v42 = vld [vmem:[#allocation97_spill] sm:$0xff]  ;;  %v5459_v19 = vsub.f32 %v24728_v49, %v23968_v15  ;;  %v23978_v44 = vand.u32 4294901760, %v24731_v3 }
 0x4e5   :  { %v23975_v6 = vand.u32 4294901760, %v24730_v42  ;;  %v5439_v9 = vand.u32 4294901760, %v5438_v46  ;;  %v5453_v21 = vand.u32 4294901760, %v5452_v36  ;;  %v24734_v46 = vand.u32 4294901760, %v24733_v56 }
 0x4e6   :  { %24725 = vst [vmem:[#allocation46_spill] sm:$0xff] %v18973_v12  ;;  %v5446_v40 = vand.u32 4294901760, %v5445_v58  ;;  %14773 = vmatpush1.bf16.msra.mxu0 %v18973_v12  ;;  %v24735_v58 = vld [vmem:[#allocation61_spill] sm:$0xff]  ;;  %v5460_v13 = vand.u32 4294901760, %v5459_v19  ;;  %v23983_v36 = vand.u32 4294901760, %v24738_v22  ;;  %v5473_v31 = vsub.f32 %v24731_v3, %v23978_v44  ;;  %14176 = vmatpush1.bf16.msra.mxu1 %v14175_v47 }
 0x4e7   :  { %v5466_v10 = vsub.f32 %v24730_v42, %v23975_v6  ;;  %v24736_v48 = vand.u32 4294901760, %v24735_v58  ;;  %v14184_v15 = vpack.c.bf16 %v5439_v9, %v5432_v28  ;;  %14774 = vmatprep.subr.bf16.mxu0 %v24661_v24  ;;  %v24739_v12 = vand.u32 4294901760, %v24732_v37  ;;  %v24740_v9 = vld [vmem:[#allocation101_spill] sm:$0xff]  ;;  %14177 = vmatprep.subr.bf16.mxu1 %v24661_v24  ;;  %v24742_v58 = vld [vmem:[#allocation67_spill] sm:$0xff] }
 0x4e8   :  { %v14187_v11 = vpack.c.bf16 %v5453_v21, %v5446_v40  ;;  %v23988_v28 = vand.u32 4294901760, %v24740_v9  ;;  %v5474_v40 = vand.u32 4294901760, %v5473_v31  ;;  %v24743_v44 = vand.u32 4294901760, %v24742_v58 }
 0x4e9   :  { %v19001_v4 = vpack.c.bf16 %v24736_v48, %v24734_v46  ;;  %v5467_v6 = vand.u32 4294901760, %v5466_v10  ;;  %v5480_v56 = vsub.f32 %v24732_v37, %v24739_v12  ;;  %v5487_v48 = vsub.f32 %v24738_v22, %v23983_v36  ;;  %v24741_v10 = vld [vmem:[#allocation103_spill] sm:$0xff] }
 0x4ea   :  { %v23992_v46 = vand.u32 4294901760, %v24741_v10  ;;  %v24745_v12 = vand.u32 4294901760, %v24744_v5  ;;  %v5494_v36 = vsub.f32 %v24740_v9, %v23988_v28  ;;  %14179 = vmatpush1.bf16.msra.mxu1 %v14178_v53  ;;  %v5508_v5 = vsub.f32 %v24747_v16, %v23991_v35  ;;  %v19287_v22 = vld [vmem:[#allocation4 + $0x358] sm:$0xff] }
 0x4eb   :  { %24737 = vst [vmem:[#allocation47_spill] sm:$0xff] %v19001_v4  ;;  %v14190_v19 = vpack.c.bf16 %v5467_v6, %v5460_v13  ;;  %v5481_v21 = vand.u32 4294901760, %v5480_v56  ;;  %14776 = vmatpush1.bf16.msra.mxu0 %v19001_v4  ;;  %v5488_v18 = vand.u32 4294901760, %v5487_v48  ;;  %v24749_v56 = vld [vmem:[#allocation17_spill] sm:$0xff]  ;;  %14180 = vmatprep.subr.bf16.mxu1 %v24661_v24 }
 0x4ec   :  { %v19022_v47 = vpack.c.bf16 %v24745_v12, %v24743_v44  ;;  %14777 = vmatprep.subr.bf16.mxu0 %v24661_v24  ;;  %v5501_v6 = vsub.f32 %v24741_v10, %v23992_v46  ;;  %v5495_v31 = vand.u32 4294901760, %v5494_v36  ;;  %v24748_v44 = vld [vmem:[#allocation16_spill] sm:$0xff]  ;;  %v24750_v12 = vld [vmem:[#allocation71_spill] sm:$0xff]  ;;  %v5509_v46 = vand.u32 4294901760, %v5508_v5 }
 0x4ed   :  { %v14193_v13 = vpack.c.bf16 %v5481_v21, %v5474_v40  ;;  %v24751_v40 = vand.u32 4294901760, %v24750_v12  ;;  %v24752_v21 = vld [vmem:[#allocation72_spill] sm:$0xff] }
 0x4ee   :  { %24746 = vst [vmem:[#allocation53_spill] sm:$0xff] %v19022_v47  ;;  %v24753_v28 = vand.u32 4294901760, %v24752_v21  ;;  %v5502_v53 = vand.u32 4294901760, %v5501_v6  ;;  %v14196_v35 = vpack.c.bf16 %v5495_v31, %v5488_v18  ;;  %14182 = vmatpush1.bf16.msra.mxu1 %v14181_v39  ;;  %v24755_v39 = vld [vmem:[#allocation75_spill] sm:$0xff]  ;;  %v24760_v21 = vld [vmem:[#allocation80_spill] sm:$0xff] }
 0x4ef   :  { %14779 = vmatpush1.bf16.msra.mxu0 %v19022_v47  ;;  %14183 = vmatprep.subr.bf16.mxu1 %v24661_v24  ;;  %v24761_v6 = vand.u32 4294901760, %v24760_v21  ;;  %v24767_v21 = vld [vmem:[#allocation113_spill] sm:$0xff]  ;;  %v24775_v5 = vld [vmem:[#allocation88_spill] sm:$0xff] }
 0x4f0   :  { %v19044_v4 = vpack.c.bf16 %v24753_v28, %v24751_v40  ;;  %14780 = vmatprep.subr.bf16.mxu0 %v24661_v24  ;;  %v14199_v18 = vpack.c.bf16 %v5509_v46, %v5502_v53  ;;  %v24756_v46 = vand.u32 4294901760, %v24755_v39  ;;  %v24757_v53 = vld [vmem:[#allocation76_spill] sm:$0xff]  ;;  %v24762_v40 = vld [vmem:[#allocation81_spill] sm:$0xff]  ;;  %v24770_v39 = vmov 0.0  }
 0x4f1   :  { %v24758_v31 = vand.u32 4294901760, %v24757_v53  ;;  %v24763_v28 = vand.u32 4294901760, %v24762_v40  ;;  %v24768_v40 = vld [vmem:[#allocation112_spill] sm:$0xff] }
 0x4f2   :  { %24754 = vst [vmem:[#allocation54_spill] sm:$0xff] %v19044_v4  ;;  %14185 = vmatpush1.bf16.msra.mxu1 %v14184_v15  ;;  %v19098_v15 = vsub.f32 %v18800_v62, %v18810_v1  ;;  %v19113_v62 = vsub.f32 %v18821_v23, %v18829_v32 }
 0x4f3   :  { %14782 = vmatpush1.bf16.msra.mxu0 %v19044_v4  ;;  %v19076_v12 = vpack.c.bf16 %v24758_v31, %v24756_v46  ;;  %14186 = vmatprep.subr.bf16.mxu1 %v24661_v24  ;;  %v19087_v58 = vpack.c.bf16 %v24763_v28, %v24761_v6  ;;  %v19092_v31 = vsub.f32 %v18695_v2, %v18712_v33  ;;  %v24772_v46 = vld [vmem:[#allocation105_spill] sm:$0xff]  ;;  %v19308_v33 = vld [vmem:[#allocation4 + $0x378] sm:$0xff] }
 0x4f4   :  { %14783 = vmatprep.subr.bf16.mxu0 %v24661_v24  ;;  %24766 = vst [vmem:[#allocation68_spill] sm:$0xff] %v19098_v15  ;;  %v24769_v28 = vcombine.high %v24767_v21, %v24768_v40  ;;  %24774 = vst [vmem:[#allocation72_spill] sm:$0xff] %v19113_v62  ;;  %v23994_v21 = vand.u32 4294901760, %v19098_v15  ;;  %v23995_v23 = vand.u32 4294901760, %v19113_v62 }
 0x4f5   :  { %24759 = vst [vmem:[#allocation60_spill] sm:$0xff] %v19076_v12  ;;  %24764 = vst [vmem:[#allocation61_spill] sm:$0xff] %v19087_v58  ;;  %v23993_v2 = vand.u32 4294901760, %v19092_v31 }
 0x4f6   :  { %14188 = vmatpush1.bf16.msra.mxu1 %v14187_v11  ;;  %24765 = vst [vmem:[#allocation67_spill] sm:$0xff] %v19092_v31  ;;  %v4420_v6 = vrot.slane %v24769_v28, %v18377_v0  ;;  %v24771_v11 = vld [vmem:[#allocation106_spill] sm:$0xff] }
 0x4f7   :  { %14785 = vmatpush1.bf16.msra.mxu0 %v19076_v12  ;;  %14189 = vmatprep.subr.bf16.mxu1 %v24661_v24  ;;  %v19107_v53 = vsub.f32 %v24772_v46, %v24771_v11 }
 0x4f8   :  { %14786 = vmatprep.subr.bf16.mxu0 %v24661_v24  ;;  %v4422_v40 = vcombine.high %v4420_v6, %v4420_v6  ;;  %v4563_v28 = vrot.slane %v4420_v6, %v18377_v0 }
 0x4f9   :  { %24773 = vst [vmem:[#allocation71_spill] sm:$0xff] %v19107_v53 }
 0x4fa   :  { %14191 = vmatpush1.bf16.msra.mxu1 %v14190_v19  ;;  %v23996_v19 = vand.u32 4294901760, %v19107_v53  ;;  %v4571_v46 = vrot.slane %v4422_v40, %v18377_v0  ;;  %v4564_v40 = vcombine.high %v4563_v28, %v4563_v28 }
 0x4fb   :  { %14788 = vmatpush1.bf16.msra.mxu0 %v19087_v58  ;;  %14192 = vmatprep.subr.bf16.mxu1 %v24661_v24 }
 0x4fc   :  { %7634 = vmatprep.subr.mxu0 %v24770_v39  ;;  %v5515_v6 = vsub.f32 %v19107_v53, %v23996_v19  ;;  %v4866_v15 = vsel %vm4725_vm7, %v4564_v40, -inf  ;;  %v24779_v40 = vld [vmem:[#allocation20_spill] sm:$0xff]  ;;  %v19259_v53 = vld [vmem:[#allocation4 + $0x330] sm:$0xff] }
 0x4fe   :  { %14194 = vmatpush1.bf16.msra.mxu1 %v14193_v13  ;;  %v24776_v13 = vld [vmem:[#allocation128_spill] sm:$0xff] }
 0x4ff   :  { %7636 = vmatpush1.msra.mxu0 %v24775_v5  ;;  %14195 = vmatprep.subr.bf16.mxu1 %v24661_v24 }
 0x500   :  { %7650 = vmatmul.mubr.f32.vlgmr.msra.gmra.mrb[16].mxu0 %v23993_v2  ;;  %14831 = vmatprep.subr.bf16.mxu0 %v24661_v24  ;;  %v24777_v2 = vcombine.high %v18596_v50, %v24776_v13  ;;  %v4873_v50 = vsel %vm4717_vm6, %v4571_v46, -inf }
 0x501   :  { %7657 = vmatprep.mubr.f32.mxu0 %v23994_v21  ;;  %14833 = vmatpush1.bf16.msra.mxu0 %v24660_v43  ;;  %v4859_v21 = vsel %vm4717_vm6, %v4563_v28, -inf  ;;  %v4874_v19 = vrot.slane %v4873_v50, 4 }
 0x502   :  { %14834 = vmatprep.subr.bf16.mxu0 %v24661_v24  ;;  %v4474_v48 = vrot.slane %v24777_v2, %v18377_v0  ;;  %14197 = vmatpush1.bf16.msra.mxu1 %v14196_v35  ;;  %v4860_v35 = vrot.slane %v4859_v21, 4 }
 0x503   :  { %14198 = vmatprep.subr.bf16.mxu1 %v24661_v24 }
 0x504   :  { %7661 = vmatmul.mubr.f32.gmra.mrb[18].mxu0 %v23995_v23  ;;  %v4659_v2 = vrot.slane %v4474_v48, %v18377_v0  ;;  %v4476_v13 = vcombine.high %v4474_v48, %v4474_v48  ;;  %v5516_v23 = vand.u32 4294901760, %v5515_v6  ;;  %v4861_v62 = vmax.f32 %v4859_v21, %v4860_v35 }
 0x505   :  { %7926 = vmatprep.mubr.f32.mxu0 %v18689_v45  ;;  %14836 = vmatpush1.bf16.msra.mxu0 %v24665_v30  ;;  %v4572_v48 = vcombine.high %v4571_v46, %v4571_v46  ;;  %v24778_v6 = vpack.c.bf16 %v24749_v56, %v24748_v44 }
 0x506   :  { %14837 = vmatprep.subr.bf16.mxu0 %v24661_v24  ;;  %14200 = vmatpush1.bf16.msra.mxu1 %v14199_v18  ;;  %v4660_v36 = vcombine.high %v4659_v2, %v4659_v2  ;;  %v5027_v45 = vsel %vm4717_vm6, %v4659_v2, -inf  ;;  %v4667_v31 = vrot.slane %v4476_v13, %v18377_v0  ;;  %v4875_v18 = vmax.f32 %v4873_v50, %v4874_v19  ;;  %v24780_v19 = vld [vmem:[#allocation32_spill] sm:$0xff] }
 0x507   :  { %5511 = vmatprep.subr.mxu1 %v24770_v39  ;;  %v5028_v28 = vrot.slane %v5027_v45, 4  ;;  %v4867_v2 = vrot.slane %v4866_v15, 4  ;;  %v4880_v50 = vsel %vm4725_vm7, %v4572_v48, -inf }
 0x508   :  { %v5034_v21 = vsel %vm4725_vm7, %v4660_v36, -inf  ;;  %v4668_v35 = vcombine.high %v4667_v31, %v4667_v31  ;;  %v5041_v13 = vsel %vm4717_vm6, %v4667_v31, -inf  ;;  %v4876_v46 = vrot.slane %v4875_v18, 2  ;;  %v24783_v31 = vld [vmem:[#allocation27_spill] sm:$0xff] }
 0x509   :  { %14839 = vmatpush1.bf16.msra.mxu0 %v18737_v57  ;;  %v5029_v0 = vmax.f32 %v5027_v45, %v5028_v28  ;;  %v24781_v36 = vpack.c.bf16 %v24653_v8, %v17820_v38  ;;  %v24782_v57 = vld [vmem:[#allocation23_spill] sm:$0xff]  ;;  %v5042_v30 = vrot.slane %v5041_v13, 4  ;;  %v4881_v48 = vrot.slane %v4880_v50, 4 }
 0x50a   :  { %14840 = vmatprep.subr.bf16.mxu0 %v24661_v24  ;;  %5517 = vmatpush1.msra.mxu1 %v5516_v23  ;;  %v4862_v23 = vrot.slane %v4861_v62, 2  ;;  %v4877_v45 = vmax.f32 %v4875_v18, %v4876_v46  ;;  %v24787_v18 = vld [vmem:[#allocation119_spill] sm:$0xff] }
 0x50b   :  { %5527 = vmatmul.mubr.f32.vlgmr.msra.gmra.mrb[4].mxu1 %v18753_v59  ;;  %14201 = vmatprep.subr.bf16.mxu1 %v24661_v24  ;;  %v5030_v28 = vrot.slane %v5029_v0, 2  ;;  %v7943_v59 = vld [vmem:[#allocation4 + $0x2b8] sm:$0xff]  ;;  %v5043_v8 = vmax.f32 %v5041_v13, %v5042_v30  ;;  %v19181_v46 = vmax.f32 %v4880_v50, %v4881_v48  ;;  %v24789_v13 = vpack.c.bf16 %v24685_v17, %v24684_v25  ;;  %v24791_v48 = vld [vmem:[#allocation121_spill] sm:$0xff] }
 0x50c   :  { %5532 = vmatprep.mubr.f32.mxu1 %v18889_v27  ;;  %14203 = vmatpush1.bf16.msra.mxu1 %v24778_v6  ;;  %v5035_v6 = vrot.slane %v5034_v21, 4  ;;  %v4863_v43 = vmax.f32 %v4861_v62, %v4862_v23  ;;  %v24785_v62 = vld [vmem:[#allocation28_spill] sm:$0xff]  ;;  %v24790_v50 = vld [vmem:[#allocation39_spill] sm:$0xff] }
 0x50d   :  { %14204 = vmatprep.subr.bf16.mxu1 %v24661_v24  ;;  %14842 = vmatpush1.bf16.msra.mxu0 %v24779_v40  ;;  %v4868_v40 = vmax.f32 %v4866_v15, %v4867_v2  ;;  %v7944_v15 = vld [vmem:[#allocation4 + $0x2c0] sm:$0xff]  ;;  %v5044_v56 = vrot.slane %v5043_v8, 2 }
 0x50e   :  { %14843 = vmatprep.subr.bf16.mxu0 %v24661_v24  ;;  %v5036_v27 = vmax.f32 %v5034_v21, %v5035_v6  ;;  %v4864_v23 = vrot.slane %v4863_v43, 1  ;;  %v8014_v6 = vand.u32 4294901760, %v7943_v59 }
 0x50f   :  { %5534 = vmatmul.mubr.f32.gmra.mrb[6].mxu1 %v24780_v19  ;;  %v5048_v19 = vsel %vm4725_vm7, %v4668_v35, -inf  ;;  %v4869_v2 = vrot.slane %v4868_v40, 2  ;;  %v24786_v35 = vld [vmem:[#allocation117_spill] sm:$0xff]  ;;  %v19220_v25 = vmax.f32 %v5043_v8, %v5044_v56  ;;  %v19255_v56 = vld [vmem:[#allocation4 + $0x320] sm:$0xff] }
 0x510   :  { %14206 = vmatpush1.bf16.msra.mxu1 %v24781_v36  ;;  %5663 = vmatprep.mubr.f32.mxu1 %v24782_v57  ;;  %v24784_v36 = vpack.c.bf16 %v24677_v63, %v24675_v29  ;;  %v5049_v38 = vrot.slane %v5048_v19, 4  ;;  %v7983_v21 = vsel %vm5146_vm8, %v24787_v18, %v24786_v35  ;;  %v4878_v63 = vrot.slane %v4877_v45, 1  ;;  %v19239_v57 = vld [vmem:[#allocation4 + $0x308] sm:$0xff] }
 0x511   :  { %14207 = vmatprep.subr.bf16.mxu1 %v24661_v24  ;;  %14845 = vmatpush1.bf16.msra.mxu0 %v24783_v31  ;;  %v7945_v31 = vld [vmem:[#allocation4 + $0x2c8] sm:$0xff]  ;;  %v19183_v29 = vmax.f32 %v5029_v0, %v5030_v28  ;;  %v5037_v30 = vrot.slane %v5036_v27, 2  ;;  %v19188_v11 = vmax.f32 %v4868_v40, %v4869_v2  ;;  %v7984_v35 = vsel %vm5148_vm9, %v24791_v48, %v7983_v21  ;;  %v19206_v2 = vld [vmem:[#allocation4 + $0x2e0] sm:$0xff] }
 0x512   :  { %14846 = vmatprep.subr.bf16.mxu0 %v24661_v24  ;;  %v19190_v44 = vmax.f32 %v5048_v19, %v5049_v38  ;;  %v19196_v0 = vmax.f32 %v4863_v43, %v4864_v23  ;;  %v8020_v28 = vand.u32 4294901760, %v7945_v31  ;;  %v19200_v17 = vsub.f32 %v7943_v59, %v8014_v6  ;;  %v19204_v19 = vld [vmem:[#allocation4 + $0x2d8] sm:$0xff] }
 0x513   :  { %24788 = vst [vmem:[#allocation75_spill] sm:$0xff] %v19183_v29  ;;  %v19211_v43 = vmax.f32 %v5036_v27, %v5037_v30  ;;  %v24795_v23 = vpack.c.bf16 %v24693_v60, %v24692_v55  ;;  %v19228_v30 = vld [vmem:[#allocation4 + $0x2f8] sm:$0xff]  ;;  %v24805_v10 = vand.u32 4294901760, %v19204_v19  ;;  %v24806_v16 = vand.u32 4294901760, %v19206_v2 }
 0x514   :  { %14209 = vmatpush1.bf16.msra.mxu1 %v24784_v36  ;;  %v8017_v36 = vand.u32 4294901760, %v7944_v15  ;;  %24792 = vst [vmem:[#allocation76_spill] sm:$0xff] %v19196_v0  ;;  %24793 = vst [vmem:[#allocation80_spill] sm:$0xff] %v19200_v17  ;;  %v19235_v8 = vsub.f32 %v7945_v31, %v8020_v28  ;;  %v19243_v27 = vld [vmem:[#allocation4 + $0x318] sm:$0xff]  ;;  %v24812_v5 = vand.u32 4294901760, %v19228_v30 }
 0x515   :  { %14210 = vmatprep.subr.bf16.mxu1 %v24661_v24  ;;  %14848 = vmatpush1.bf16.msra.mxu0 %v24785_v62  ;;  %v7946_v62 = vld [vmem:[#allocation4 + $0x2d0] sm:$0xff]  ;;  %v24803_v31 = vld [vmem:[#allocation127_spill] sm:$0xff]  ;;  %v19277_v32 = vpack.c.bf16 %v24806_v16, %v24805_v10  ;;  %v24816_v10 = vand.u32 4294901760, %v19239_v57  ;;  %v24819_v29 = vand.u32 4294901760, %v19243_v27 }
 0x516   :  { %14849 = vmatprep.subr.bf16.mxu0 %v24661_v24  ;;  %v19202_v40 = vsub.f32 %v7944_v15, %v8017_v36  ;;  %v8023_v38 = vand.u32 4294901760, %v7946_v62  ;;  %v19218_v15 = vld [vmem:[#allocation4 + $0x2e8] sm:$0xff]  ;;  %v19232_v21 = vpack.c.bf16 %v8017_v36, %v8014_v6  ;;  %24800 = vst [vmem:[#allocation105_spill] sm:$0xff] %v19235_v8 }
 0x517   :  { %24807 = vst [vmem:[#allocation157_spill] sm:$0xff] %v19277_v32  ;;  %v19293_v32 = vld [vmem:[#allocation4 + $0x360] sm:$0xff]  ;;  %v19295_v6 = vld [vmem:[#allocation4 + $0x368] sm:$0xff] }
 0x518   :  { %14212 = vmatpush1.bf16.msra.mxu1 %v24789_v13  ;;  %24794 = vst [vmem:[#allocation81_spill] sm:$0xff] %v19202_v40  ;;  %v24796_v13 = vld [vmem:[#allocation123_spill] sm:$0xff]  ;;  %24799 = vst [vmem:[#allocation112_spill] sm:$0xff] %v19232_v21  ;;  %v19245_v60 = vpack.c.bf16 %v8023_v38, %v8020_v28  ;;  %v19249_v36 = vsub.f32 %v7946_v62, %v8023_v38  ;;  %v24804_v28 = vpack.c.bf16 %v24698_v61, %v24696_v26  ;;  %v19285_v26 = vld [vmem:[#allocation4 + $0x350] sm:$0xff] }
 0x519   :  { %14213 = vmatprep.subr.bf16.mxu1 %v24661_v24  ;;  %14851 = vmatpush1.bf16.msra.mxu0 %v24790_v50  ;;  %v19208_v50 = vmax.f32 %v4877_v45, %v4878_v63  ;;  %v7985_v59 = vsel %vm5150_vm10, %v24796_v13, %v7984_v35  ;;  %v24797_v63 = vld [vmem:[#allocation40_spill] sm:$0xff]  ;;  %v19226_v45 = vld [vmem:[#allocation4 + $0x2f0] sm:$0xff]  ;;  %v19257_v35 = vld [vmem:[#allocation4 + $0x328] sm:$0xff]  ;;  %v24809_v61 = vand.u32 4294901760, %v19218_v15  ;;  %v24830_v16 = vand.u32 4294901760, %v19285_v26 }
 0x51a   :  { %14852 = vmatprep.subr.bf16.mxu0 %v24661_v24  ;;  %24801 = vst [vmem:[#allocation128_spill] sm:$0xff] %v19245_v60  ;;  %24802 = vst [vmem:[#allocation156_spill] sm:$0xff] %v19249_v36  ;;  %v19253_v21 = vsel %vm5152_vm11, %v24803_v31, %v7985_v59  ;;  %v19267_v38 = vld [vmem:[#allocation4 + $0x338] sm:$0xff]  ;;  %v19269_v59 = vld [vmem:[#allocation4 + $0x340] sm:$0xff]  ;;  %v24810_v55 = vand.u32 4294901760, %v19226_v45 }
 0x51b   :  { %v19271_v60 = vld [vmem:[#allocation4 + $0x348] sm:$0xff]  ;;  %v19297_v62 = vld [vmem:[#allocation4 + $0x370] sm:$0xff] }
 0x51c   :  { %14215 = vmatpush1.bf16.msra.mxu1 %v24795_v23  ;;  %v19230_v23 = vld [vmem:[#allocation4 + $0x300] sm:$0xff]  ;;  %v19303_v9 = vpack.c.bf16 %v24810_v55, %v24809_v61  ;;  %v24815_v61 = vpack.c.bf16 %v24707_v20, %v24706_v54  ;;  %v24823_v20 = vand.u32 4294901760, %v19257_v35  ;;  %v24829_v55 = vand.u32 4294901760, %v19271_v60 }
 0x51d   :  { %14216 = vmatprep.subr.bf16.mxu1 %v24661_v24  ;;  %14854 = vmatpush1.bf16.msra.mxu0 %v24797_v63  ;;  %24798 = vst [vmem:[#allocation113_spill] sm:$0xff] %v19230_v23  ;;  %v19241_v63 = vld [vmem:[#allocation4 + $0x310] sm:$0xff]  ;;  %v24813_v3 = vand.u32 4294901760, %v19230_v23  ;;  %v24820_v23 = vand.u32 4294901760, %v19255_v56 }
 0x51e   :  { %14855 = vmatprep.subr.bf16.mxu0 %v24661_v24  ;;  %24811 = vst [vmem:[#allocation158_spill] sm:$0xff] %v19303_v9  ;;  %v24817_v1 = vand.u32 4294901760, %v19241_v63 }
 0x51f   :  { %v19316_v37 = vpack.c.bf16 %v24813_v3, %v24812_v5  ;;  %v19333_v3 = vpack.c.bf16 %v24820_v23, %v24819_v29  ;;  %v24822_v5 = vld [vmem:[#allocation47_spill] sm:$0xff]  ;;  %v19367_v23 = vld [vmem:[#allocation4 + $0x390] sm:$0xff] }
 0x520   :  { %14218 = vmatpush1.bf16.msra.mxu1 %v24804_v28  ;;  %v24808_v28 = vld [vmem:[#allocation46_spill] sm:$0xff]  ;;  %v19327_v9 = vpack.c.bf16 %v24817_v1, %v24816_v10  ;;  %v24824_v1 = vand.u32 4294901760, %v19259_v53 }
 0x521   :  { %14219 = vmatprep.subr.bf16.mxu1 %v24661_v24  ;;  %14857 = vmatpush1.bf16.msra.mxu0 %v24808_v28  ;;  %v19310_v28 = vld [vmem:[#allocation4 + $0x380] sm:$0xff]  ;;  %24814 = vst [vmem:[#allocation159_spill] sm:$0xff] %v19316_v37  ;;  %24821 = vst [vmem:[#allocation161_spill] sm:$0xff] %v19333_v3  ;;  %v19359_v3 = vpack.c.bf16 %v24830_v16, %v24829_v55  ;;  %v24837_v16 = vand.u32 4294901760, %v19297_v62 }
 0x522   :  { %14858 = vmatprep.subr.bf16.mxu0 %v24661_v24  ;;  %24818 = vst [vmem:[#allocation160_spill] sm:$0xff] %v19327_v9  ;;  %v19344_v10 = vpack.c.bf16 %v24824_v1, %v24823_v20  ;;  %v24832_v1 = vrot.slane %v19188_v11, 1  ;;  %v24833_v9 = vand.u32 4294901760, %v19287_v22  ;;  %v24839_v20 = vpack.c.bf16 %v24715_v34, %v24708_v52 }
 0x523   :  { %24831 = vst [vmem:[#allocation164_spill] sm:$0xff] %v19359_v3  ;;  %v24841_v3 = vand.u32 4294901760, %v19202_v40 }
 0x524   :  { %14221 = vmatpush1.bf16.msra.mxu1 %v24815_v61  ;;  %24825 = vst [vmem:[#allocation162_spill] sm:$0xff] %v19344_v10  ;;  %v24827_v61 = vand.u32 4294901760, %v19269_v59  ;;  %v4872_v29 = vmax.f32 %v19188_v11, %v24832_v1  ;;  %v19365_v10 = vld [vmem:[#allocation4 + $0x388] sm:$0xff]  ;;  %v24840_v11 = vand.u32 4294901760, %v19200_v17 }
 0x525   :  { %14222 = vmatprep.subr.bf16.mxu1 %v24661_v24  ;;  %14860 = vmatpush1.bf16.msra.mxu0 %v24822_v5  ;;  %v24826_v5 = vand.u32 4294901760, %v19267_v38  ;;  %v8148_v37 = vsub.f32 %v19202_v40, %v24841_v3  ;;  %v24848_v40 = vrot.slane %v19181_v46, 2 }
 0x526   :  { %14861 = vmatprep.subr.bf16.mxu0 %v24661_v24  ;;  %v8141_v1 = vsub.f32 %v19200_v17, %v24840_v11  ;;  %v24847_v11 = vld [vmem:[#allocation130_spill] sm:$0xff]  ;;  %v24855_v17 = vld [vmem:[#allocation136_spill] sm:$0xff] }
 0x527   :  { %v19353_v54 = vpack.c.bf16 %v24827_v61, %v24826_v5  ;;  %v24834_v5 = vand.u32 4294901760, %v19293_v32  ;;  %v7987_v3 = vsel %vm5154_vm12, %v24847_v11, %v19253_v21 }
 0x528   :  { %14224 = vmatpush1.bf16.msra.mxu1 %v24839_v20  ;;  %v24070_v20 = vand.u32 4294901760, %v19365_v10 }
 0x529   :  { %24828 = vst [vmem:[#allocation163_spill] sm:$0xff] %v19353_v54  ;;  %v19373_v61 = vpack.c.bf16 %v24834_v5, %v24833_v9  ;;  %v24836_v54 = vand.u32 4294901760, %v19295_v6  ;;  %v24842_v9 = vand.u32 4294901760, %v19204_v19  ;;  %14225 = vmatprep.subr.bf16.mxu1 %v24661_v24  ;;  %14863 = vmatpush1.bf16.msra.mxu0 %v19022_v47 }
 0x52a   :  { %14864 = vmatprep.subr.bf16.mxu0 %v24661_v24 }
 0x52b   :  { %24835 = vst [vmem:[#allocation165_spill] sm:$0xff] %v19373_v61  ;;  %v19379_v55 = vpack.c.bf16 %v24837_v16, %v24836_v54  ;;  %v19393_v5 = vsub.f32 %v19204_v19, %v24842_v9  ;;  %v24844_v54 = vand.u32 4294901760, %v19308_v33  ;;  %v24845_v16 = vand.u32 4294901760, %v19310_v28 }
 0x52c   :  { %v4884_v19 = vmax.f32 %v19181_v46, %v24848_v40  ;;  %v8935_v9 = vsel %vm5146_vm8, %v24791_v48, %v24787_v18  ;;  %v24851_v46 = vand.u32 4294901760, %v19235_v8  ;;  %v24852_v18 = vld [vmem:[#allocation118_spill] sm:$0xff] }
 0x52d   :  { %24838 = vst [vmem:[#allocation166_spill] sm:$0xff] %v19379_v55  ;;  %24843 = vst [vmem:[#allocation167_spill] sm:$0xff] %v19393_v5  ;;  %v19399_v55 = vpack.c.bf16 %v24845_v16, %v24844_v54  ;;  %v24849_v54 = vand.u32 4294901760, %v19206_v2  ;;  %v8936_v21 = vsel %vm5148_vm9, %v24796_v13, %v8935_v9  ;;  %v7988_v9 = vsel %vm5156_vm13, %v24855_v17, %v7987_v3 }
 0x52e   :  { %v19426_v40 = vsub.f32 %v19235_v8, %v24851_v46  ;;  %v4885_v47 = vrot.slane %v4884_v19, 1  ;;  %v8937_v48 = vsel %vm5150_vm10, %v24803_v31, %v8936_v21  ;;  %v24856_v46 = vand.u32 4294901760, %v19367_v23  ;;  %v24858_v31 = vld [vmem:[#allocation122_spill] sm:$0xff]  ;;  %14866 = vmatpush1.bf16.msra.mxu0 %v19044_v4  ;;  %v24867_v4 = vld [vmem:[#allocation131_spill] sm:$0xff] }
 0x52f   :  { %24846 = vst [vmem:[#allocation168_spill] sm:$0xff] %v19399_v55  ;;  %v19417_v16 = vsub.f32 %v19206_v2, %v24849_v54  ;;  %v24853_v55 = vld [vmem:[#allocation120_spill] sm:$0xff]  ;;  %v24854_v54 = vpack.c.bf16 %v24718_v14, %v24717_v51  ;;  %v8938_v21 = vsel %vm5152_vm11, %v24847_v11, %v8937_v48  ;;  %14867 = vmatprep.subr.bf16.mxu0 %v24661_v24  ;;  %v24890_v51 = vld [vmem:[#allocation75_spill] sm:$0xff] }
 0x530   :  { %v8928_v2 = vsel %vm5146_vm8, %v24853_v55, %v24852_v18  ;;  %v19442_v8 = vpack.c.bf16 %v24856_v46, %v24070_v20  ;;  %v4886_v3 = vmax.f32 %v4884_v19, %v4885_v47  ;;  %v8939_v14 = vsel %vm5154_vm12, %v24855_v17, %v8938_v21  ;;  %v24859_v48 = vld [vmem:[#allocation124_spill] sm:$0xff]  ;;  %v24862_v47 = vld [vmem:[#allocation129_spill] sm:$0xff]  ;;  %v24864_v21 = vld [vmem:[#allocation138_spill] sm:$0xff] }
 0x531   :  { %24850 = vst [vmem:[#allocation130_spill] sm:$0xff] %v19417_v16  ;;  %14227 = vmatpush1.bf16.msra.mxu1 %v24854_v54  ;;  %v8929_v13 = vsel %vm5148_vm9, %v24858_v31, %v8928_v2  ;;  %v8142_v54 = vand.u32 4294901760, %v8141_v1  ;;  %v8149_v46 = vand.u32 4294901760, %v8148_v37  ;;  %v8940_v20 = vsel %vm5156_vm13, %v4872_v29, %v8939_v14  ;;  %v24863_v19 = vld [vmem:[#allocation137_spill] sm:$0xff] }
 0x532   :  { %24857 = vst [vmem:[#allocation136_spill] sm:$0xff] %v19442_v8  ;;  %14228 = vmatprep.subr.bf16.mxu1 %v24661_v24  ;;  %v8930_v11 = vsel %vm5150_vm10, %v24859_v48, %v8929_v13  ;;  %v24860_v2 = vrot.slane %v19190_v44, 2  ;;  %v5039_v1 = vrot.slane %v19211_v43, 1  ;;  %v19462_v61 = vsel %vm5158_vm14, %v4886_v3, %v8940_v20  ;;  %14869 = vmatpush1.bf16.msra.mxu0 %v19076_v12 }
 0x533   :  { %24861 = vst [vmem:[#allocation169_spill] sm:$0xff] %v19462_v61  ;;  %v8931_v17 = vsel %vm5152_vm11, %v24862_v47, %v8930_v11  ;;  %v8949_v37 = vsel %vm5146_vm8, %v24864_v21, %v24863_v19  ;;  %v24865_v14 = vpack.c.bf16 %v24720_v41, %v24719_v7  ;;  %v24866_v13 = vand.u32 4294901760, %v19249_v36  ;;  %v24868_v41 = vld [vmem:[#allocation140_spill] sm:$0xff]  ;;  %14870 = vmatprep.subr.bf16.mxu0 %v24661_v24  ;;  %v24880_v7 = vld [vmem:[#allocation135_spill] sm:$0xff] }
 0x534   :  { %v5052_v8 = vmax.f32 %v19190_v44, %v24860_v2  ;;  %v7989_v2 = vsel %vm5158_vm14, %v4872_v29, %v7988_v9  ;;  %v8932_v20 = vsel %vm5154_vm12, %v24867_v4, %v8931_v17  ;;  %v8156_v11 = vand.u32 4294901760, %v19426_v40  ;;  %v24871_v40 = vld [vmem:[#allocation142_spill] sm:$0xff] }
 0x535   :  { %14230 = vmatpush1.bf16.msra.mxu1 %v24865_v14  ;;  %v8162_v44 = vsub.f32 %v19249_v36, %v24866_v13  ;;  %v8933_v14 = vsel %vm5156_vm13, %v19196_v0, %v8932_v20  ;;  %v8950_v13 = vsel %vm5148_vm9, %v24868_v41, %v8949_v37  ;;  %v14916_v29 = vpack.c.bf16 %v8149_v46, %v8142_v54 }
 0x536   :  { %v5053_v3 = vrot.slane %v5052_v8, 1  ;;  %14231 = vmatprep.subr.bf16.mxu1 %v24661_v24  ;;  %v24869_v9 = vand.u32 4294901760, %v19393_v5  ;;  %v19492_v36 = vsel %vm5158_vm14, %v19208_v50, %v8933_v14  ;;  %v8951_v61 = vsel %vm5150_vm10, %v24871_v40, %v8950_v13  ;;  %14872 = vmatpush1.bf16.msra.mxu0 %v19087_v58 }
 0x537   :  { %24870 = vst [vmem:[#allocation129_spill] sm:$0xff] %v19492_v36  ;;  %v24872_v12 = vand.u32 4294901760, %v19218_v15  ;;  %v24874_v37 = vand.u32 4294901760, %v19226_v45  ;;  %v19507_v46 = vmax.f32 %v19211_v43, %v5039_v1  ;;  %v24877_v14 = vpack.c.bf16 %v24730_v42, %v24728_v49  ;;  %v24879_v36 = vld [vmem:[#allocation134_spill] sm:$0xff]  ;;  %7916 = vmatprep.subr.mxu0 %v24770_v39  ;;  %v24885_v42 = vld [vmem:[#allocation113_spill] sm:$0xff]  ;;  %v24897_v49 = vld [vmem:[#allocation88_spill] sm:$0xff] }
 0x538   :  { %v8169_v17 = vsub.f32 %v19393_v5, %v24869_v9  ;;  %v24876_v9 = vld [vmem:[#allocation145_spill] sm:$0xff]  ;;  %v5054_v13 = vmax.f32 %v5052_v8, %v5053_v3  ;;  %v24878_v5 = vld [vmem:[#allocation148_spill] sm:$0xff]  ;;  %v8163_v43 = vand.u32 4294901760, %v8162_v44  ;;  %v24882_v3 = vld [vmem:[#allocation139_spill] sm:$0xff]  ;;  %v24886_v58 = vand.u32 4294901760, %v24885_v42 }
 0x539   :  { %v19499_v20 = vsub.f32 %v19218_v15, %v24872_v12  ;;  %v19504_v54 = vsub.f32 %v19226_v45, %v24874_v37  ;;  %v8952_v50 = vsel %vm5152_vm11, %v24876_v9, %v8951_v61  ;;  %14233 = vmatpush1.bf16.msra.mxu1 %v24877_v14  ;;  %v5046_v15 = vrot.slane %v19220_v25, 1 }
 0x53a   :  { %v8953_v12 = vsel %vm5154_vm12, %v24878_v5, %v8952_v50  ;;  %v8942_v45 = vsel %vm5146_vm8, %v24880_v7, %v24879_v36  ;;  %14234 = vmatprep.subr.bf16.mxu1 %v24661_v24  ;;  %v24881_v61 = vand.u32 4294901760, %v19417_v16  ;;  %v24883_v50 = vand.u32 4294901760, %v19228_v30  ;;  %7918 = vmatpush1.msra.mxu0 %v24897_v49 }
 0x53b   :  { %24873 = vst [vmem:[#allocation131_spill] sm:$0xff] %v19499_v20  ;;  %24875 = vst [vmem:[#allocation170_spill] sm:$0xff] %v19504_v54  ;;  %v8954_v8 = vsel %vm5156_vm13, %v19507_v46, %v8953_v12  ;;  %v8943_v37 = vsel %vm5148_vm9, %v24882_v3, %v8942_v45  ;;  %v19538_v44 = vsub.f32 %v24885_v42, %v24886_v58  ;;  %v24891_v34 = vrot.slane %v24890_v51, 1  ;;  %v24893_v42 = vld [vmem:[#allocation99_spill] sm:$0xff]  ;;  %v24894_v58 = vld [vmem:[#allocation98_spill] sm:$0xff] }
 0x53c   :  { %v8176_v1 = vsub.f32 %v19417_v16, %v24881_v61  ;;  %v19533_v14 = vsub.f32 %v19228_v30, %v24883_v50  ;;  %v19541_v61 = vsel %vm5158_vm14, %v5054_v13, %v8954_v8  ;;  %v24889_v16 = vld [vmem:[#allocation141_spill] sm:$0xff]  ;;  %v24892_v50 = vld [vmem:[#allocation143_spill] sm:$0xff]  ;;  %v24895_v0 = vpack.c.bf16 %v24893_v42, %v24894_v58  ;;  %v24896_v8 = vld [vmem:[#allocation150_spill] sm:$0xff]  ;;  %14915 = vmatprep.subr.bf16.mxu0 %v24661_v24 }
 0x53d   :  { %24887 = vst [vmem:[#allocation148_spill] sm:$0xff] %v19538_v44  ;;  %24888 = vst [vmem:[#allocation113_spill] sm:$0xff] %v19541_v61  ;;  %v8944_v12 = vsel %vm5150_vm10, %v24889_v16, %v8943_v37  ;;  %v19550_v30 = vmax.f32 %v24890_v51, %v24891_v34  ;;  %v5047_v13 = vmax.f32 %v19220_v25, %v5046_v15  ;;  %v19563_v34 = vsel %vm5183_vm15, %v7989_v2, 0  ;;  %v24900_v25 = vld [vmem:[#allocation146_spill] sm:$0xff]  ;;  %v24907_v61 = vld [vmem:[#allocation101_spill] sm:$0xff] }
 0x53e   :  { %24884 = vst [vmem:[#allocation145_spill] sm:$0xff] %v19533_v14  ;;  %v8945_v52 = vsel %vm5152_vm11, %v24892_v50, %v8944_v12  ;;  %14236 = vmatpush1.bf16.msra.mxu1 %v24895_v0  ;;  %v14919_v45 = vpack.c.bf16 %v8163_v43, %v8156_v11  ;;  %v24898_v51 = vand.u32 4294901760, %v19239_v57  ;;  %7928 = vmatmul.mubr.f32.vlgmr.msra.gmra.mrb[20].mxu0 %v24900_v25  ;;  %v24901_v11 = vand.u32 4294901760, %v19241_v63  ;;  %v24908_v42 = vld [vmem:[#allocation100_spill] sm:$0xff] }
 0x53f   :  { %v8946_v37 = vsel %vm5154_vm12, %v24896_v8, %v8945_v52  ;;  %14237 = vmatprep.subr.bf16.mxu1 %v24661_v24  ;;  %14917 = vmatpush1.bf16.msra.mxu0 %v14916_v29  ;;  %v24905_v25 = vand.u32 4294901760, %v19499_v20  ;;  %v24906_v52 = vand.u32 4294901760, %v19504_v54  ;;  %v19597_v29 = vand.u32 4294901760, %v19563_v34 }
 0x540   :  { %v19568_v12 = vsub.f32 %v19239_v57, %v24898_v51  ;;  %v8947_v0 = vsel %vm5156_vm13, %v19550_v30, %v8946_v37  ;;  %v19579_v2 = vsub.f32 %v19241_v63, %v24901_v11  ;;  %v24904_v57 = vld [vmem:[#allocation152_spill] sm:$0xff]  ;;  %v8170_v37 = vand.u32 4294901760, %v8169_v17  ;;  %14918 = vmatprep.subr.bf16.mxu0 %v24661_v24 }
 0x541   :  { %v19582_v43 = vsel %vm5158_vm14, %v5047_v13, %v8947_v0  ;;  %7933 = vmatprep.mubr.f32.mxu0 %v24904_v57  ;;  %v8177_v51 = vand.u32 4294901760, %v8176_v1  ;;  %v8183_v49 = vsub.f32 %v19499_v20, %v24905_v25  ;;  %v8190_v15 = vsub.f32 %v19504_v54, %v24906_v52  ;;  %24910 = vst [vmem:[#allocation150_spill] sm:$0xff] %v19597_v29  ;;  %v24913_v0 = vld [vmem:[#allocation153_spill] sm:$0xff]  ;;  %v24918_v57 = vld [vmem:[#allocation104_spill] sm:$0xff] }
 0x542   :  { %24899 = vst [vmem:[#allocation75_spill] sm:$0xff] %v19568_v12  ;;  %24902 = vst [vmem:[#allocation143_spill] sm:$0xff] %v19579_v2  ;;  %v24909_v63 = vpack.c.bf16 %v24907_v61, %v24908_v42  ;;  %v24911_v1 = vand.u32 4294901760, %v19243_v27  ;;  %7935 = vmatmul.mubr.f32.gmra.mrb[22].mxu0 %v24913_v0  ;;  %v24914_v25 = vand.u32 4294901760, %v19533_v14  ;;  %v24915_v11 = vand.u32 4294901760, %v19538_v44 }
 0x543   :  { %24903 = vst [vmem:[#allocation98_spill] sm:$0xff] %v19582_v43  ;;  %v24916_v20 = vand.u32 4294901760, %v19255_v56  ;;  %14920 = vmatpush1.bf16.msra.mxu0 %v14919_v45  ;;  %8347 = vmatprep.mubr.f32.mxu0 %v19597_v29  ;;  %v8191_v0 = vand.u32 4294901760, %v8190_v15  ;;  %v24919_v43 = vld [vmem:[#allocation103_spill] sm:$0xff] }
 0x544   :  { %14239 = vmatpush1.bf16.msra.mxu1 %v24909_v63  ;;  %v19603_v13 = vsub.f32 %v19243_v27, %v24911_v1  ;;  %v8197_v52 = vsub.f32 %v19533_v14, %v24914_v25  ;;  %v8204_v63 = vsub.f32 %v19538_v44, %v24915_v11  ;;  %v14922_v27 = vpack.c.bf16 %v8177_v51, %v8170_v37 }
 0x545   :  { %14240 = vmatprep.subr.bf16.mxu1 %v24661_v24  ;;  %v19616_v17 = vsub.f32 %v19255_v56, %v24916_v20  ;;  %v8184_v1 = vand.u32 4294901760, %v8183_v49  ;;  %v24920_v25 = vpack.c.bf16 %v24918_v57, %v24919_v43  ;;  %14921 = vmatprep.subr.bf16.mxu0 %v24661_v24  ;;  %v24921_v11 = vand.u32 4294901760, %v19568_v12 }
 0x546   :  { %24912 = vst [vmem:[#allocation101_spill] sm:$0xff] %v19603_v13  ;;  %v24102_v56 = vand.u32 4294901760, %v19603_v13  ;;  %v8198_v20 = vand.u32 4294901760, %v8197_v52  ;;  %v8205_v45 = vand.u32 4294901760, %v8204_v63  ;;  %v24922_v37 = vand.u32 4294901760, %v19579_v2  ;;  %v24927_v52 = vld [vmem:[#allocation71_spill] sm:$0xff] }
 0x547   :  { %24917 = vst [vmem:[#allocation100_spill] sm:$0xff] %v19616_v17  ;;  %v8211_v54 = vsub.f32 %v19568_v12, %v24921_v11  ;;  %v24101_v15 = vand.u32 4294901760, %v19616_v17  ;;  %14923 = vmatpush1.bf16.msra.mxu0 %v14922_v27  ;;  %v14925_v51 = vpack.c.bf16 %v8191_v0, %v8184_v1  ;;  %v24925_v14 = vand.u32 4294901760, %v19259_v53  ;;  %v24928_v63 = vld [vmem:[#allocation149_spill] sm:$0xff]  ;;  %v24929_v0 = vld [vmem:[#allocation154_spill] sm:$0xff]  ;;  %v24930_v1 = vld [vmem:[#allocation15_spill] sm:$0xff] }
 0x548   :  { %14242 = vmatpush1.bf16.msra.mxu1 %v24920_v25  ;;  %v8218_v49 = vsub.f32 %v19579_v2, %v24922_v37  ;;  %v24923_v25 = vand.u32 4294901760, %v19257_v35  ;;  %14924 = vmatprep.subr.bf16.mxu0 %v24661_v24  ;;  %v24931_v2 = vand.u32 4294901760, %v19267_v38 }
 0x549   :  { %5651 = vmatprep.subr.mxu1 %v24770_v39  ;;  %v19640_v11 = vsub.f32 %v19259_v53, %v24925_v14  ;;  %v8212_v27 = vand.u32 4294901760, %v8211_v54  ;;  %v8225_v53 = vsub.f32 %v19603_v13, %v24102_v56  ;;  %v8232_v14 = vsub.f32 %v19616_v17, %v24101_v15  ;;  %v24935_v15 = vld [vmem:[#allocation155_spill] sm:$0xff] }
 0x54a   :  { %v19635_v44 = vsub.f32 %v19257_v35, %v24923_v25  ;;  %v14928_v35 = vpack.c.bf16 %v8205_v45, %v8198_v20  ;;  %v8219_v37 = vand.u32 4294901760, %v8218_v49  ;;  %v19660_v20 = vsub.f32 %v19267_v38, %v24931_v2  ;;  %v24940_v38 = vld [vmem:[#allocation21_spill] sm:$0xff]  ;;  %v24941_v2 = vld [vmem:[#allocation23_spill] sm:$0xff] }
 0x54b   :  { %24926 = vst [vmem:[#allocation103_spill] sm:$0xff] %v19640_v11  ;;  %14926 = vmatpush1.bf16.msra.mxu0 %v14925_v51  ;;  %v24933_v45 = vand.u32 4294901760, %v19269_v59  ;;  %v24936_v51 = vand.u32 4294901760, %v19271_v60  ;;  %v24938_v54 = vand.u32 4294901760, %v19285_v26  ;;  %v24942_v17 = vand.u32 4294901760, %v24941_v2 }
 0x54c   :  { %24924 = vst [vmem:[#allocation104_spill] sm:$0xff] %v19635_v44  ;;  %5654 = vmatpush1.msra.mxu1 %v24927_v52  ;;  %24932 = vst [vmem:[#allocation71_spill] sm:$0xff] %v19660_v20  ;;  %14927 = vmatprep.subr.bf16.mxu0 %v24661_v24  ;;  %v8233_v13 = vand.u32 4294901760, %v8232_v14  ;;  %v24943_v12 = vand.u32 4294901760, %v19635_v44  ;;  %v24949_v14 = vld [vmem:[#allocation33_spill] sm:$0xff] }
 0x54d   :  { %5666 = vmatmul.mubr.f32.vlgmr.msra.gmra.mrb[8].mxu1 %v24928_v63  ;;  %14243 = vmatprep.subr.bf16.mxu1 %v24661_v24  ;;  %v19665_v49 = vsub.f32 %v19269_v59, %v24933_v45  ;;  %v19672_v56 = vsub.f32 %v19271_v60, %v24936_v51  ;;  %v19677_v25 = vsub.f32 %v19285_v26, %v24938_v54  ;;  %v8226_v45 = vand.u32 4294901760, %v8225_v53 }
 0x54e   :  { %5672 = vmatprep.mubr.f32.mxu1 %v24929_v0  ;;  %14245 = vmatpush1.bf16.msra.mxu1 %v24930_v1  ;;  %v14931_v59 = vpack.c.bf16 %v8219_v37, %v8212_v27  ;;  %v8239_v60 = vsub.f32 %v19635_v44, %v24943_v12  ;;  %v24944_v51 = vand.u32 4294901760, %v19640_v11  ;;  %v24110_v54 = vand.u32 4294901760, %v19660_v20 }
 0x54f   :  { %14246 = vmatprep.subr.bf16.mxu1 %v24661_v24  ;;  %24934 = vst [vmem:[#allocation149_spill] sm:$0xff] %v19665_v49  ;;  %24937 = vst [vmem:[#allocation154_spill] sm:$0xff] %v19672_v56  ;;  %14929 = vmatpush1.bf16.msra.mxu0 %v14928_v35  ;;  %v24945_v35 = vand.u32 4294901760, %v19287_v22  ;;  %v24947_v12 = vand.u32 4294901760, %v19293_v32  ;;  %v14934_v2 = vpack.c.bf16 %v8233_v13, %v8226_v45  ;;  %v24951_v13 = vand.u32 4294901760, %v19677_v25 }
 0x550   :  { %24939 = vst [vmem:[#allocation15_spill] sm:$0xff] %v19677_v25  ;;  %v8246_v26 = vsub.f32 %v19640_v11, %v24944_v51  ;;  %14930 = vmatprep.subr.bf16.mxu0 %v24661_v24  ;;  %v8240_v51 = vand.u32 4294901760, %v8239_v60  ;;  %v8253_v27 = vsub.f32 %v19660_v20, %v24110_v54 }
 0x551   :  { %5675 = vmatmul.mubr.f32.gmra.mrb[10].mxu1 %v24935_v15  ;;  %v19697_v37 = vsub.f32 %v19287_v22, %v24945_v35  ;;  %v19702_v53 = vsub.f32 %v19293_v32, %v24947_v12  ;;  %v24950_v32 = vand.u32 4294901760, %v19672_v56  ;;  %v24953_v12 = vand.u32 4294901760, %v19295_v6 }
 0x552   :  { %14248 = vmatpush1.bf16.msra.mxu1 %v24940_v38  ;;  %5776 = vmatprep.mubr.f32.mxu1 %v24942_v17  ;;  %v24109_v38 = vand.u32 4294901760, %v19665_v49  ;;  %v8247_v17 = vand.u32 4294901760, %v8246_v26  ;;  %v24952_v26 = vld [vmem:[#allocation38_spill] sm:$0xff] }
 0x553   :  { %14249 = vmatprep.subr.bf16.mxu1 %v24661_v24  ;;  %24946 = vst [vmem:[#allocation155_spill] sm:$0xff] %v19697_v37  ;;  %24948 = vst [vmem:[#allocation23_spill] sm:$0xff] %v19702_v53  ;;  %14932 = vmatpush1.bf16.msra.mxu0 %v14931_v59  ;;  %v8267_v35 = vsub.f32 %v19672_v56, %v24950_v32  ;;  %v8274_v59 = vsub.f32 %v19677_v25, %v24951_v13  ;;  %v8254_v32 = vand.u32 4294901760, %v8253_v27 }
 0x554   :  { %v8260_v22 = vsub.f32 %v19665_v49, %v24109_v38  ;;  %14933 = vmatprep.subr.bf16.mxu0 %v24661_v24  ;;  %v19725_v38 = vsub.f32 %v19295_v6, %v24953_v12  ;;  %v14937_v54 = vpack.c.bf16 %v8247_v17, %v8240_v51  ;;  %v24955_v49 = vand.u32 4294901760, %v19297_v62  ;;  %v24959_v17 = vld [vmem:[#allocation43_spill] sm:$0xff] }
 0x555   :  { %v8268_v60 = vand.u32 4294901760, %v8267_v35  ;;  %v8275_v45 = vand.u32 4294901760, %v8274_v59  ;;  %v24957_v25 = vand.u32 4294901760, %v19697_v37  ;;  %v24958_v12 = vand.u32 4294901760, %v19702_v53  ;;  %v7971_v59 = vld [vmem:[#allocation4 + $0x398] sm:$0x3f] }
 0x556   :  { %14251 = vmatpush1.bf16.msra.mxu1 %v24949_v14  ;;  %24954 = vst [vmem:[#allocation33_spill] sm:$0xff] %v19725_v38  ;;  %v8261_v56 = vand.u32 4294901760, %v8260_v22  ;;  %v19731_v13 = vsub.f32 %v19297_v62, %v24955_v49  ;;  %v24960_v51 = vand.u32 4294901760, %v19308_v33 }
 0x557   :  { %14252 = vmatprep.subr.bf16.mxu1 %v24661_v24  ;;  %14935 = vmatpush1.bf16.msra.mxu0 %v14934_v2  ;;  %v8281_v6 = vsub.f32 %v19697_v37, %v24957_v25  ;;  %v8288_v2 = vsub.f32 %v19702_v53, %v24958_v12  ;;  %v24962_v25 = vand.u32 4294901760, %v19310_v28  ;;  %v14943_v12 = vpack.c.bf16 %v8275_v45, %v8268_v60  ;;  %v24964_v37 = vld [vmem:[#allocation50_spill] sm:$0xff] }
 0x558   :  { %24956 = vst [vmem:[#allocation38_spill] sm:$0xff] %v19731_v13  ;;  %14936 = vmatprep.subr.bf16.mxu0 %v24661_v24  ;;  %v19745_v62 = vsub.f32 %v19308_v33, %v24960_v51  ;;  %v14940_v49 = vpack.c.bf16 %v8261_v56, %v8254_v32  ;;  %v24121_v22 = vand.u32 4294901760, %v19731_v13  ;;  %v24965_v33 = vand.u32 4294901760, %v19725_v38 }
 0x559   :  { %v19752_v35 = vsub.f32 %v19310_v28, %v24962_v25  ;;  %v8282_v27 = vand.u32 4294901760, %v8281_v6  ;;  %v8289_v53 = vand.u32 4294901760, %v8288_v2  ;;  %v24966_v32 = vand.u32 4294901760, %v19365_v10  ;;  %v24970_v25 = vld [vmem:[#allocation133_spill] sm:$0xff] }
 0x55a   :  { %14254 = vmatpush1.bf16.msra.mxu1 %v24952_v26  ;;  %24961 = vst [vmem:[#allocation43_spill] sm:$0xff] %v19745_v62  ;;  %v24128_v56 = vand.u32 4294901760, %v19745_v62  ;;  %v8011_v28 = vsel %vm1729_vm3, %v7971_v59, 0  ;;  %v8302_v45 = vsub.f32 %v19731_v13, %v24121_v22  ;;  %v24968_v6 = vand.u32 4294901760, %v19367_v23 }
 0x55b   :  { %14255 = vmatprep.subr.bf16.mxu1 %v24661_v24  ;;  %14938 = vmatpush1.bf16.msra.mxu0 %v14937_v54  ;;  %24963 = vst [vmem:[#allocation171_spill] sm:$0xff] %v19752_v35  ;;  %v8295_v54 = vsub.f32 %v19725_v38, %v24965_v33  ;;  %v19763_v51 = vsub.f32 %v19365_v10, %v24966_v32  ;;  %v24971_v33 = vld [vmem:[#allocation115_spill] sm:$0xff]  ;;  %v24972_v32 = vld [vmem:[#allocation57_spill] sm:$0xff]  ;;  %v24974_v13 = vand.u32 4294901760, %v19752_v35 }
 0x55c   :  { %14939 = vmatprep.subr.bf16.mxu0 %v24661_v24  ;;  %v19774_v2 = vsub.f32 %v19367_v23, %v24968_v6  ;;  %v7997_v10 = vsel %vm5146_vm8, %v24863_v19, %v24970_v25  ;;  %v14946_v59 = vpack.c.bf16 %v8289_v53, %v8282_v27  ;;  %v8309_v22 = vsub.f32 %v19745_v62, %v24128_v56 }
 0x55d   :  { %24967 = vst [vmem:[#allocation50_spill] sm:$0xff] %v19763_v51  ;;  %v19788_v6 = vand.u32 4294901760, %v8011_v28  ;;  %v7998_v60 = vsel %vm5148_vm9, %v24864_v21, %v7997_v10  ;;  %v8296_v53 = vand.u32 4294901760, %v8295_v54  ;;  %v8303_v27 = vand.u32 4294901760, %v8302_v45  ;;  %v24975_v10 = vld [vmem:[#allocation132_spill] sm:$0xff] }
 0x55e   :  { %14257 = vmatpush1.bf16.msra.mxu1 %v24959_v17  ;;  %24969 = vst [vmem:[#allocation172_spill] sm:$0xff] %v19774_v2  ;;  %v8316_v38 = vsub.f32 %v19752_v35, %v24974_v13  ;;  %v7999_v23 = vsel %vm5150_vm10, %v24868_v41, %v7998_v60  ;;  %v24976_v54 = vld [vmem:[#allocation64_spill] sm:$0xff]  ;;  %v8310_v45 = vand.u32 4294901760, %v8309_v22  ;;  %v24977_v62 = vand.u32 4294901760, %v19763_v51  ;;  %v25053_v41 = vld [vmem:[#allocation97_spill] sm:$0xff] }
 0x55f   :  { %14258 = vmatprep.subr.bf16.mxu1 %v24661_v24  ;;  %14941 = vmatpush1.bf16.msra.mxu0 %v14940_v49  ;;  %v7976_v49 = vsel %vm5146_vm8, %v24852_v18, %v24971_v33  ;;  %24973 = vst [vmem:[#allocation115_spill] sm:$0xff] %v19788_v6  ;;  %v19810_v20 = vsub.f32 %v8011_v28, %v19788_v6  ;;  %v24979_v60 = vand.u32 4294901760, %v19774_v2  ;;  %v24980_v28 = vld [vmem:[#allocation77_spill] sm:$0xff]  ;;  %v25066_v18 = vand.u32 4294901760, %v24907_v61 }
 0x560   :  { %14942 = vmatprep.subr.bf16.mxu0 %v24661_v24  ;;  %v7977_v56 = vsel %vm5148_vm9, %v24853_v55, %v7976_v49  ;;  %v8323_v13 = vsub.f32 %v19763_v51, %v24977_v62  ;;  %v14949_v49 = vpack.c.bf16 %v8303_v27, %v8296_v53  ;;  %v8317_v35 = vand.u32 4294901760, %v8316_v38 }
 0x561   :  { %24978 = vst [vmem:[#allocation57_spill] sm:$0xff] %v19810_v20  ;;  %v8330_v11 = vsub.f32 %v19774_v2, %v24979_v60  ;;  %v7978_v44 = vsel %vm5150_vm10, %v24858_v31, %v7977_v56  ;;  %v8000_v62 = vsel %vm5152_vm11, %v24871_v40, %v7999_v23  ;;  %v24137_v38 = vand.u32 4294901760, %v19810_v20  ;;  %v25015_v2 = vld [vmem:[#allocation45_spill] sm:$0xff] }
 0x562   :  { %14260 = vmatpush1.bf16.msra.mxu1 %v24964_v37  ;;  %v7979_v53 = vsel %vm5152_vm11, %v24859_v48, %v7978_v44  ;;  %v14952_v56 = vpack.c.bf16 %v8317_v35, %v8310_v45  ;;  %v8001_v60 = vsel %vm5154_vm12, %v24876_v9, %v8000_v62  ;;  %v19989_v31 = vld [vmem:[#allocation4 + $0x3a8] sm:$0xff]  ;;  %v25069_v61 = vand.u32 4294901760, %v24919_v43 }
 0x563   :  { %14261 = vmatprep.subr.bf16.mxu1 %v24661_v24  ;;  %14944 = vmatpush1.bf16.msra.mxu0 %v14943_v12  ;;  %v7990_v12 = vsel %vm5146_vm8, %v24879_v36, %v24975_v10  ;;  %v8331_v27 = vand.u32 4294901760, %v8330_v11  ;;  %v8002_v44 = vsel %vm5156_vm13, %v24878_v5, %v8001_v60  ;;  %v8337_v11 = vsub.f32 %v19810_v20, %v24137_v38  ;;  %v25001_v38 = vld [vmem:[#allocation22_spill] sm:$0xff] }
 0x564   :  { %14945 = vmatprep.subr.bf16.mxu0 %v24661_v24  ;;  %v7991_v22 = vsel %vm5148_vm9, %v24880_v7, %v7990_v12  ;;  %v7980_v12 = vsel %vm5154_vm12, %v24862_v47, %v7979_v53  ;;  %v8003_v45 = vsel %vm5158_vm14, %v19507_v46, %v8002_v44  ;;  %v24984_v53 = vld [vmem:[#allocation90_spill] sm:$0xff]  ;;  %v19877_v60 = vsub.f32 %v19563_v34, %v19597_v29  ;;  %v24991_v34 = vld [vmem:[#allocation128_spill] sm:$0xff] }
 0x565   :  { %v7992_v23 = vsel %vm5150_vm10, %v24882_v3, %v7991_v22  ;;  %v7981_v47 = vsel %vm5156_vm13, %v24867_v4, %v7980_v12  ;;  %v8338_v62 = vand.u32 4294901760, %v8337_v11  ;;  %v24983_v22 = vld [vmem:[#allocation76_spill] sm:$0xff]  ;;  %v19859_v4 = vsel %vm5183_vm15, %v8003_v45, 0  ;;  %v24992_v44 = vld [vmem:[#allocation102_spill] sm:$0xff]  ;;  %v24995_v11 = vld [vmem:[#allocation17_spill] sm:$0xff] }
 0x566   :  { %14263 = vmatpush1.bf16.msra.mxu1 %v24972_v32  ;;  %v7993_v35 = vsel %vm5152_vm11, %v24889_v16, %v7992_v23  ;;  %v24989_v23 = vld [vmem:[#allocation91_spill] sm:$0xff]  ;;  %v19993_v10 = vld [vmem:[#allocation4 + $0x3b0] sm:$0xff] }
 0x567   :  { %14264 = vmatprep.subr.bf16.mxu1 %v24661_v24  ;;  %14947 = vmatpush1.bf16.msra.mxu0 %v14946_v59  ;;  %v8324_v59 = vand.u32 4294901760, %v8323_v13  ;;  %v24981_v13 = vld [vmem:[#allocation84_spill] sm:$0xff]  ;;  %v7994_v5 = vsel %vm5154_vm12, %v24892_v50, %v7993_v35  ;;  %v25036_v3 = vld [vmem:[#allocation83_spill] sm:$0xff]  ;;  %v24161_v55 = vand.u32 4294901760, %v19993_v10 }
 0x568   :  { %14948 = vmatprep.subr.bf16.mxu0 %v24661_v24  ;;  %v7995_v46 = vsel %vm5156_vm13, %v24896_v8, %v7994_v5  ;;  %24987 = vst [vmem:[#allocation84_spill] sm:$0xff] %v19877_v60  ;;  %v24988_v8 = vld [vmem:[#allocation112_spill] sm:$0xff]  ;;  %v24997_v5 = vld [vmem:[#allocation157_spill] sm:$0xff]  ;;  %v25037_v48 = vand.u32 4294901760, %v25036_v3 }
 0x569   :  { %v14955_v9 = vpack.c.bf16 %v8331_v27, %v8324_v59  ;;  %v19855_v59 = vsel %vm5158_vm14, %v24983_v22, %v7981_v47  ;;  %v19873_v27 = vsel %vm5158_vm14, %v19550_v30, %v7995_v46  ;;  %v24138_v30 = vand.u32 4294901760, %v19877_v60  ;;  %v24993_v35 = vld [vmem:[#allocation16_spill] sm:$0xff] }
 0x56a   :  { %14266 = vmatpush1.bf16.msra.mxu1 %v24976_v54  ;;  %v19865_v50 = vand.u32 4294901760, %v19855_v59  ;;  %v19885_v12 = vand.u32 4294901760, %v19873_v27  ;;  %v24996_v47 = vand.u32 4294901760, %v24995_v11  ;;  %v24999_v22 = vand.u32 4294901760, %v24928_v63 }
 0x56b   :  { %14267 = vmatprep.subr.bf16.mxu1 %v24661_v24  ;;  %14950 = vmatpush1.bf16.msra.mxu0 %v14949_v49  ;;  %v24982_v49 = vld [vmem:[#allocation87_spill] sm:$0xff]  ;;  %v25000_v46 = vand.u32 4294901760, %v24929_v0  ;;  %v25006_v63 = vand.u32 4294901760, %v24935_v15  ;;  %v25008_v0 = vld [vmem:[#allocation34_spill] sm:$0xff]  ;;  %v25016_v15 = vand.u32 4294901760, %v25015_v2 }
 0x56c   :  { %14951 = vmatprep.subr.bf16.mxu0 %v24661_v24  ;;  %24985 = vst [vmem:[#allocation64_spill] sm:$0xff] %v19865_v50  ;;  %24990 = vst [vmem:[#allocation87_spill] sm:$0xff] %v19885_v12  ;;  %v25023_v2 = vld [vmem:[#allocation58_spill] sm:$0xff] }
 0x56e   :  { %14269 = vmatpush1.bf16.msra.mxu1 %v24980_v28 }
 0x56f   :  { %14270 = vmatprep.subr.bf16.mxu1 %v24661_v24  ;;  %14953 = vmatpush1.bf16.msra.mxu0 %v14952_v56  ;;  %v19869_v56 = vand.u32 4294901760, %v19859_v4 }
 0x570   :  { %14954 = vmatprep.subr.bf16.mxu0 %v24661_v24 }
 0x571   :  { %24986 = vst [vmem:[#allocation77_spill] sm:$0xff] %v19869_v56 }
 0x572   :  { %14272 = vmatpush1.bf16.msra.mxu1 %v24981_v13 }
 0x573   :  { %14273 = vmatprep.subr.bf16.mxu1 %v24661_v24  ;;  %14956 = vmatpush1.bf16.msra.mxu0 %v14955_v9  ;;  %v24994_v9 = vand.u32 4294901760, %v24993_v35  ;;  %v25002_v35 = vand.u32 4294901760, %v25001_v38 }
 0x574   :  { %8333 = vmatprep.subr.mxu0 %v24770_v39 }
 0x575   :  { %v14286_v45 = vpack.c.bf16 %v24996_v47, %v24994_v9  ;;  %v25005_v47 = vld [vmem:[#allocation158_spill] sm:$0xff] }
 0x576   :  { %14275 = vmatpush1.bf16.msra.mxu1 %v24982_v49 }
 0x577   :  { %14276 = vmatprep.subr.bf16.mxu1 %v24661_v24  ;;  %8339 = vmatpush1.msra.mxu0 %v8338_v62  ;;  %v24998_v62 = vld [vmem:[#allocation106_spill] sm:$0xff] }
 0x578   :  { %8349 = vmatmul.mubr.f32.vlgmr.msra.gmra.mrb[24].mxu0 %v19865_v50  ;;  %14999 = vmatprep.subr.bf16.mxu0 %v24661_v24 }
 0x579   :  { %8354 = vmatprep.mubr.f32.mxu0 %v19869_v56  ;;  %15001 = vmatpush1.bf16.msra.mxu0 %v24988_v8 }
 0x57a   :  { %14278 = vmatpush1.bf16.msra.mxu1 %v24984_v53  ;;  %15002 = vmatprep.subr.bf16.mxu0 %v24661_v24 }
 0x57b   :  { %14279 = vmatprep.subr.bf16.mxu1 %v24661_v24 }
 0x57c   :  { %8356 = vmatmul.mubr.f32.gmra.mrb[26].mxu0 %v19885_v12 }
 0x57d   :  { %15004 = vmatpush1.bf16.msra.mxu0 %v24991_v34  ;;  %8598 = vmatprep.mubr.f32.mxu0 %v24138_v30  ;;  %v25003_v30 = vld [vmem:[#allocation24_spill] sm:$0xff] }
 0x57e   :  { %14281 = vmatpush1.bf16.msra.mxu1 %v24989_v23  ;;  %15005 = vmatprep.subr.bf16.mxu0 %v24661_v24  ;;  %v25004_v11 = vand.u32 4294901760, %v25003_v30  ;;  %v25012_v30 = vld [vmem:[#allocation159_spill] sm:$0xff] }
 0x57f   :  { %14282 = vmatprep.subr.bf16.mxu1 %v24661_v24 }
 0x580   :  { %v14289_v9 = vpack.c.bf16 %v25004_v11, %v25002_v35  ;;  %v25013_v35 = vld [vmem:[#allocation44_spill] sm:$0xff] }
 0x581   :  { %15007 = vmatpush1.bf16.msra.mxu0 %v24997_v5  ;;  %v25014_v11 = vand.u32 4294901760, %v25013_v35  ;;  %v25024_v35 = vand.u32 4294901760, %v25023_v2 }
 0x582   :  { %14284 = vmatpush1.bf16.msra.mxu1 %v24992_v44  ;;  %15008 = vmatprep.subr.bf16.mxu0 %v24661_v24 }
 0x583   :  { %5764 = vmatprep.subr.mxu1 %v24770_v39 }
 0x585   :  { %15010 = vmatpush1.bf16.msra.mxu0 %v25005_v47 }
 0x586   :  { %5766 = vmatpush1.msra.mxu1 %v24998_v62  ;;  %15011 = vmatprep.subr.bf16.mxu0 %v24661_v24 }
 0x587   :  { %5780 = vmatmul.mubr.f32.vlgmr.msra.gmra.mrb[12].mxu1 %v24999_v22  ;;  %14285 = vmatprep.subr.bf16.mxu1 %v24661_v24  ;;  %v25007_v22 = vld [vmem:[#allocation147_spill] sm:$0xff] }
 0x588   :  { %5787 = vmatprep.mubr.f32.mxu1 %v25000_v46  ;;  %14287 = vmatpush1.bf16.msra.mxu1 %v14286_v45  ;;  %v25009_v46 = vand.u32 4294901760, %v25008_v0  ;;  %v25010_v45 = vld [vmem:[#allocation35_spill] sm:$0xff] }
 0x589   :  { %14288 = vmatprep.subr.bf16.mxu1 %v24661_v24  ;;  %v25011_v20 = vand.u32 4294901760, %v25010_v45  ;;  %15013 = vmatpush1.bf16.msra.mxu0 %v25012_v30 }
 0x58a   :  { %15014 = vmatprep.subr.bf16.mxu0 %v24661_v24 }
 0x58b   :  { %5791 = vmatmul.mubr.f32.gmra.mrb[14].mxu1 %v25006_v63  ;;  %v14292_v38 = vpack.c.bf16 %v25011_v20, %v25009_v46  ;;  %v14295_v63 = vpack.c.bf16 %v25016_v15, %v25014_v11  ;;  %v25018_v20 = vld [vmem:[#allocation51_spill] sm:$0xff]  ;;  %v25020_v46 = vld [vmem:[#allocation52_spill] sm:$0xff] }
 0x58c   :  { %14290 = vmatpush1.bf16.msra.mxu1 %v14289_v9  ;;  %5948 = vmatprep.mubr.f32.mxu1 %v25007_v22  ;;  %v25017_v9 = vld [vmem:[#allocation160_spill] sm:$0xff]  ;;  %v25019_v0 = vand.u32 4294901760, %v25018_v20  ;;  %v25021_v45 = vand.u32 4294901760, %v25020_v46  ;;  %v25025_v11 = vld [vmem:[#allocation59_spill] sm:$0xff]  ;;  %v25028_v20 = vld [vmem:[#allocation65_spill] sm:$0xff] }
 0x58d   :  { %14291 = vmatprep.subr.bf16.mxu1 %v24661_v24  ;;  %15016 = vmatpush1.bf16.msra.mxu0 %v25017_v9  ;;  %v25026_v15 = vand.u32 4294901760, %v25025_v11  ;;  %v25030_v46 = vld [vmem:[#allocation66_spill] sm:$0xff] }
 0x58e   :  { %15017 = vmatprep.subr.bf16.mxu0 %v24661_v24  ;;  %v14298_v51 = vpack.c.bf16 %v25021_v45, %v25019_v0  ;;  %v25029_v0 = vand.u32 4294901760, %v25028_v20  ;;  %v25031_v45 = vand.u32 4294901760, %v25030_v46  ;;  %v25034_v11 = vld [vmem:[#allocation82_spill] sm:$0xff]  ;;  %v25038_v20 = vld [vmem:[#allocation164_spill] sm:$0xff] }
 0x58f   :  { %v14301_v60 = vpack.c.bf16 %v25026_v15, %v25024_v35  ;;  %v25035_v15 = vand.u32 4294901760, %v25034_v11 }
 0x590   :  { %14293 = vmatpush1.bf16.msra.mxu1 %v14292_v38  ;;  %v25022_v38 = vld [vmem:[#allocation161_spill] sm:$0xff]  ;;  %v14304_v16 = vpack.c.bf16 %v25031_v45, %v25029_v0  ;;  %v25039_v0 = vld [vmem:[#allocation92_spill] sm:$0xff] }
 0x591   :  { %14294 = vmatprep.subr.bf16.mxu1 %v24661_v24  ;;  %15019 = vmatpush1.bf16.msra.mxu0 %v25022_v38  ;;  %v25040_v46 = vand.u32 4294901760, %v25039_v0  ;;  %v25041_v45 = vld [vmem:[#allocation93_spill] sm:$0xff]  ;;  %v25049_v0 = vld [vmem:[#allocation108_spill] sm:$0xff] }
 0x592   :  { %15020 = vmatprep.subr.bf16.mxu0 %v24661_v24 }
 0x594   :  { %14296 = vmatpush1.bf16.msra.mxu1 %v14295_v63  ;;  %v25027_v63 = vld [vmem:[#allocation162_spill] sm:$0xff]  ;;  %v19953_v2 = vpop.f32.mrb[12].mxu0 }
 0x595   :  { %14297 = vmatprep.subr.bf16.mxu1 %v24661_v24  ;;  %15022 = vmatpush1.bf16.msra.mxu0 %v25027_v63  ;;  %25033 = vst [vmem:[#allocation76_spill] sm:$0xff] %v19953_v2  ;;  %v7400_v35 = vpop.f32.mrb[13].mxu0  ;;  %v25042_v2 = vand.u32 4294901760, %v25041_v45  ;;  %v4484_v45 = vcombine.high %v25049_v0, %v25049_v0  ;;  %v25055_v0 = vld [vmem:[#allocation168_spill] sm:$0xff] }
 0x596   :  { %15023 = vmatprep.subr.bf16.mxu0 %v24661_v24  ;;  %v25046_v35 = vld [vmem:[#allocation95_spill] sm:$0xff] }
 0x597   :  { %v14310_v40 = vpack.c.bf16 %v25042_v2, %v25040_v46  ;;  %v25047_v11 = vand.u32 4294901760, %v25046_v35  ;;  %v25054_v35 = vand.u32 4294901760, %v25053_v41  ;;  %v25060_v41 = vld [vmem:[#allocation136_spill] sm:$0xff] }
 0x598   :  { %14299 = vmatpush1.bf16.msra.mxu1 %v14298_v51  ;;  %v25032_v51 = vld [vmem:[#allocation163_spill] sm:$0xff] }
 0x599   :  { %14300 = vmatprep.subr.bf16.mxu1 %v24661_v24  ;;  %15025 = vmatpush1.bf16.msra.mxu0 %v25032_v51 }
 0x59a   :  { %15026 = vmatprep.subr.bf16.mxu0 %v24661_v24 }
 0x59c   :  { %14302 = vmatpush1.bf16.msra.mxu1 %v14301_v60  ;;  %v14307_v60 = vpack.c.bf16 %v25037_v48, %v25035_v15  ;;  %v25044_v48 = vld [vmem:[#allocation94_spill] sm:$0xff] }
 0x59d   :  { %14303 = vmatprep.subr.bf16.mxu1 %v24661_v24  ;;  %15028 = vmatpush1.bf16.msra.mxu0 %v25038_v20  ;;  %v25045_v3 = vand.u32 4294901760, %v25044_v48 }
 0x59e   :  { %15029 = vmatprep.subr.bf16.mxu0 %v24661_v24 }
 0x59f   :  { %v14313_v15 = vpack.c.bf16 %v25047_v11, %v25045_v3  ;;  %v19987_v11 = vld [vmem:[#allocation4 + $0x3a0] sm:$0xff] }
 0x5a0   :  { %14305 = vmatpush1.bf16.msra.mxu1 %v14304_v16  ;;  %v25043_v16 = vld [vmem:[#allocation165_spill] sm:$0xff] }
 0x5a1   :  { %14306 = vmatprep.subr.bf16.mxu1 %v24661_v24  ;;  %15031 = vmatpush1.bf16.msra.mxu0 %v25043_v16 }
 0x5a2   :  { %15032 = vmatprep.subr.bf16.mxu0 %v24661_v24 }
 0x5a3   :  { %v19979_v2 = vpop.f32.mrb[14].mxu0 }
 0x5a4   :  { %14308 = vmatpush1.bf16.msra.mxu1 %v14307_v60  ;;  %v25048_v60 = vld [vmem:[#allocation166_spill] sm:$0xff]  ;;  %25050 = vst [vmem:[#allocation90_spill] sm:$0xff] %v19979_v2  ;;  %v7407_v46 = vpop.f32.mrb[15].mxu0  ;;  %v19981_v7 = vpop.f32.mrb[0].mxu1 }
 0x5a5   :  { %14309 = vmatprep.subr.bf16.mxu1 %v24661_v24  ;;  %15034 = vmatpush1.bf16.msra.mxu0 %v25048_v60  ;;  %v5298_v36 = vpop.f32.mrb[1].mxu1  ;;  %v19995_v46 = vld [vmem:[#allocation4 + $0x3b8] sm:$0xff] }
 0x5a6   :  { %15035 = vmatprep.subr.bf16.mxu0 %v24661_v24  ;;  %v25057_v36 = vand.u32 4294901760, %v24894_v58  ;;  %v25063_v58 = vand.u32 4294901760, %v19989_v31 }
 0x5a8   :  { %14311 = vmatpush1.bf16.msra.mxu1 %v14310_v40  ;;  %v25051_v40 = vld [vmem:[#allocation96_spill] sm:$0xff] }
 0x5a9   :  { %14312 = vmatprep.subr.bf16.mxu1 %v24661_v24  ;;  %v25052_v48 = vand.u32 4294901760, %v25051_v40  ;;  %15037 = vmatpush1.bf16.msra.mxu0 %v25055_v0  ;;  %v20015_v40 = vsub.f32 %v19859_v4, %v19869_v56  ;;  %v25065_v4 = vand.u32 4294901760, %v24908_v42 }
 0x5aa   :  { %15038 = vmatprep.subr.bf16.mxu0 %v24661_v24 }
 0x5ab   :  { %v14316_v3 = vpack.c.bf16 %v25054_v35, %v25052_v48  ;;  %v20003_v48 = vsub.f32 %v19855_v59, %v19865_v50  ;;  %v25058_v35 = vld [vmem:[#allocation99_spill] sm:$0xff]  ;;  %25061 = vst [vmem:[#allocation102_spill] sm:$0xff] %v20015_v40  ;;  %v25062_v59 = vand.u32 4294901760, %v19987_v11  ;;  %v14322_v25 = vpack.c.bf16 %v25066_v18, %v25065_v4 }
 0x5ac   :  { %14314 = vmatpush1.bf16.msra.mxu1 %v14313_v15  ;;  %v4726_v15 = vsel %vm4725_vm7, %v4484_v45, -inf  ;;  %v25059_v2 = vand.u32 4294901760, %v25058_v35  ;;  %v24160_v45 = vand.u32 4294901760, %v19995_v46  ;;  %v20050_v18 = vld [vmem:[#allocation4 + $0x3d8] sm:$0xff] }
 0x5ad   :  { %14315 = vmatprep.subr.bf16.mxu1 %v24661_v24  ;;  %25056 = vst [vmem:[#allocation91_spill] sm:$0xff] %v20003_v48  ;;  %v4727_v19 = vrot.slane %v4726_v15, 4  ;;  %15040 = vmatpush1.bf16.msra.mxu0 %v25060_v41 }
 0x5ae   :  { %v14319_v21 = vpack.c.bf16 %v25059_v2, %v25057_v36  ;;  %8586 = vmatprep.subr.mxu0 %v24770_v39  ;;  %v20024_v2 = vld [vmem:[#allocation4 + $0x3c0] sm:$0xff]  ;;  %v20026_v36 = vld [vmem:[#allocation4 + $0x3c8] sm:$0xff]  ;;  %v20032_v35 = vpack.c.bf16 %v24160_v45, %v24161_v55  ;;  %v24162_v45 = vand.u32 4294901760, %v20015_v40  ;;  %v20048_v55 = vld [vmem:[#allocation4 + $0x3d0] sm:$0xff] }
 0x5af   :  { %v24168_v42 = vand.u32 4294901760, %v20026_v36 }
 0x5b0   :  { %14317 = vmatpush1.bf16.msra.mxu1 %v14316_v3  ;;  %v20021_v3 = vpack.c.bf16 %v25063_v58, %v25062_v59  ;;  %v24163_v59 = vand.u32 4294901760, %v20003_v48  ;;  %v20041_v58 = vsub.f32 %v19873_v27, %v19885_v12  ;;  %v25070_v27 = vand.u32 4294901760, %v24918_v57  ;;  %v20073_v48 = vld [vmem:[#allocation4 + $0x3e0] sm:$0xff] }
 0x5b1   :  { %14318 = vmatprep.subr.bf16.mxu1 %v24661_v24  ;;  %8588 = vmatpush1.msra.mxu0 %v19788_v6 }
 0x5b2   :  { %25064 = vst [vmem:[#allocation16_spill] sm:$0xff] %v20021_v3  ;;  %25067 = vst [vmem:[#allocation17_spill] sm:$0xff] %v20041_v58  ;;  %v4728_v3 = vmax.f32 %v4726_v15, %v4727_v19  ;;  %8602 = vmatmul.mubr.f32.vlgmr.msra.gmra.mrb[28].mxu0 %v24163_v59  ;;  %15083 = vmatprep.subr.bf16.mxu0 %v24661_v24  ;;  %v14325_v15 = vpack.c.bf16 %v25070_v27, %v25069_v61  ;;  %v24170_v4 = vand.u32 4294901760, %v20041_v58  ;;  %v20095_v58 = vld [vmem:[#allocation4 + $0x3f8] sm:$0xff] }
 0x5b3   :  { %8609 = vmatprep.mubr.f32.mxu0 %v24162_v45  ;;  %15085 = vmatpush1.bf16.msra.mxu0 %v24988_v8  ;;  %v24174_v45 = vand.u32 4294901760, %v20048_v55  ;;  %v24173_v59 = vand.u32 4294901760, %v20050_v18  ;;  %v24177_v61 = vand.u32 4294901760, %v20073_v48  ;;  %v25077_v8 = vld [vmem:[#allocation32_spill] sm:$0xff] }
 0x5b4   :  { %14320 = vmatpush1.bf16.msra.mxu1 %v14319_v21  ;;  %v24169_v21 = vand.u32 4294901760, %v20024_v2  ;;  %15086 = vmatprep.subr.bf16.mxu0 %v24661_v24  ;;  %v4729_v40 = vrot.slane %v4728_v3, 2 }
 0x5b5   :  { %14321 = vmatprep.subr.bf16.mxu1 %v24661_v24  ;;  %v20085_v43 = vpack.c.bf16 %v24173_v59, %v24174_v45  ;;  %v25074_v45 = vld [vmem:[#allocation10_spill] sm:$0xff] }
 0x5b6   :  { %v20062_v19 = vpack.c.bf16 %v24168_v42, %v24169_v21  ;;  %v20075_v42 = vld [vmem:[#allocation4 + $0x3e8] sm:$0xff]  ;;  %8613 = vmatmul.mubr.f32.gmra.mrb[30].mxu0 %v24170_v4  ;;  %v4730_v21 = vmax.f32 %v4728_v3, %v4729_v40  ;;  %v20093_v4 = vld [vmem:[#allocation4 + $0x3f0] sm:$0xff]  ;;  %v24183_v3 = vand.u32 4294901760, %v20095_v58 }
 0x5b7   :  { %25071 = vst [vmem:[#allocation22_spill] sm:$0xff] %v20085_v43  ;;  %15088 = vmatpush1.bf16.msra.mxu0 %v24991_v34  ;;  %8878 = vmatprep.mubr.f32.mxu0 %v19597_v29  ;;  %v24176_v27 = vand.u32 4294901760, %v20075_v42  ;;  %v24184_v40 = vand.u32 4294901760, %v20093_v4  ;;  %v20111_v29 = vld [vmem:[#allocation4 + $0x400] sm:$0xff]  ;;  %v25078_v43 = vld [vmem:[#allocation21_spill] sm:$0xff] }
 0x5b8   :  { %25068 = vst [vmem:[#allocation106_spill] sm:$0xff] %v20062_v19  ;;  %14323 = vmatpush1.bf16.msra.mxu1 %v14322_v25  ;;  %v20077_v25 = vpop.f32.mrb[2].mxu1  ;;  %15089 = vmatprep.subr.bf16.mxu0 %v24661_v24  ;;  %v4731_v59 = vrot.slane %v4730_v21, 1 }
 0x5b9   :  { %14324 = vmatprep.subr.bf16.mxu1 %v24661_v24  ;;  %v5313_v57 = vpop.f32.mrb[3].mxu1 }
 0x5ba   :  { %v20101_v57 = vpack.c.bf16 %v24176_v27, %v24177_v61  ;;  %v20113_v27 = vld [vmem:[#allocation4 + $0x408] sm:$0xff]  ;;  %v25075_v61 = vld [vmem:[#allocation31_spill] sm:$0xff]  ;;  %v4732_v34 = vmax.f32 %v4730_v21, %v4731_v59 }
 0x5bb   :  { %15091 = vmatpush1.bf16.msra.mxu0 %v24997_v5  ;;  %v24187_v5 = vand.u32 4294901760, %v20113_v27 }
 0x5bc   :  { %14326 = vmatpush1.bf16.msra.mxu1 %v14325_v15  ;;  %25072 = vst [vmem:[#allocation24_spill] sm:$0xff] %v20101_v57  ;;  %v25073_v15 = vand.u32 4294901760, %v24927_v52  ;;  %15092 = vmatprep.subr.bf16.mxu0 %v24661_v24  ;;  %v20121_v52 = vpack.c.bf16 %v24183_v3, %v24184_v40  ;;  %v20131_v57 = vld [vmem:[#allocation4 + $0x418] sm:$0xff]  ;;  %v25080_v40 = vld [vmem:[#allocation116_spill] sm:$0xff] }
 0x5bd   :  { %5936 = vmatprep.subr.mxu1 %v24770_v39  ;;  %v24190_v21 = vand.u32 4294901760, %v20131_v57 }
 0x5be   :  { %25076 = vst [vmem:[#allocation147_spill] sm:$0xff] %v20121_v52  ;;  %v25081_v52 = vld [vmem:[#allocation114_spill] sm:$0xff] }
 0x5bf   :  { %15094 = vmatpush1.bf16.msra.mxu0 %v25005_v47  ;;  %v6081_v47 = vsel %vm5146_vm8, %v25080_v40, %v4732_v34 }
 0x5c0   :  { %5940 = vmatpush1.msra.mxu1 %v25073_v15  ;;  %15095 = vmatprep.subr.bf16.mxu0 %v24661_v24  ;;  %v24188_v15 = vand.u32 4294901760, %v20111_v29 }
 0x5c1   :  { %5950 = vmatmul.mubr.f32.vlgmr.msra.gmra.mrb[16].mxu1 %v25074_v45  ;;  %14327 = vmatprep.subr.bf16.mxu1 %v24661_v24 }
 0x5c2   :  { %5955 = vmatprep.mubr.f32.mxu1 %v25075_v61  ;;  %14329 = vmatpush1.bf16.msra.mxu1 %v24930_v1  ;;  %v20129_v1 = vld [vmem:[#allocation4 + $0x410] sm:$0xff]  ;;  %v20139_v3 = vpack.c.bf16 %v24187_v5, %v24188_v15  ;;  %v6082_v5 = vsel %vm5148_vm9, %v25081_v52, %v6081_v47  ;;  %v20170_v52 = vld [vmem:[#allocation4 + $0x438] sm:$0xff] }
 0x5c3   :  { %14330 = vmatprep.subr.bf16.mxu1 %v24661_v24  ;;  %15097 = vmatpush1.bf16.msra.mxu0 %v25012_v30  ;;  %v24191_v59 = vand.u32 4294901760, %v20129_v1  ;;  %v25083_v30 = vld [vmem:[#allocation117_spill] sm:$0xff] }
 0x5c4   :  { %25079 = vst [vmem:[#allocation34_spill] sm:$0xff] %v20139_v3  ;;  %15098 = vmatprep.subr.bf16.mxu0 %v24661_v24  ;;  %v6083_v47 = vsel %vm5150_vm10, %v25083_v30, %v6082_v5 }
 0x5c5   :  { %5957 = vmatmul.mubr.f32.gmra.mrb[18].mxu1 %v25077_v8  ;;  %v20159_v34 = vpack.c.bf16 %v24190_v21, %v24191_v59  ;;  %v25085_v59 = vld [vmem:[#allocation119_spill] sm:$0xff] }
 0x5c6   :  { %14332 = vmatpush1.bf16.msra.mxu1 %v25078_v43  ;;  %6056 = vmatprep.mubr.f32.mxu1 %v25007_v22  ;;  %v20148_v22 = vld [vmem:[#allocation4 + $0x420] sm:$0xff]  ;;  %v20150_v43 = vld [vmem:[#allocation4 + $0x428] sm:$0xff]  ;;  %v6084_v5 = vsel %vm5152_vm11, %v25085_v59, %v6083_v47 }
 0x5c7   :  { %14333 = vmatprep.subr.bf16.mxu1 %v24661_v24  ;;  %25082 = vst [vmem:[#allocation35_spill] sm:$0xff] %v20159_v34  ;;  %15100 = vmatpush1.bf16.msra.mxu0 %v25017_v9  ;;  %v24195_v40 = vand.u32 4294901760, %v20148_v22  ;;  %v24194_v15 = vand.u32 4294901760, %v20150_v43  ;;  %v24198_v9 = vand.u32 4294901760, %v20170_v52  ;;  %v20188_v34 = vld [vmem:[#allocation4 + $0x448] sm:$0xff] }
 0x5c8   :  { %15101 = vmatprep.subr.bf16.mxu0 %v24661_v24  ;;  %v25087_v59 = vld [vmem:[#allocation121_spill] sm:$0xff] }
 0x5c9   :  { %v20177_v21 = vpack.c.bf16 %v24194_v15, %v24195_v40  ;;  %v6085_v47 = vsel %vm5154_vm12, %v25087_v59, %v6084_v5 }
 0x5ca   :  { %14335 = vmatpush1.bf16.msra.mxu1 %v24949_v14  ;;  %v20168_v14 = vld [vmem:[#allocation4 + $0x430] sm:$0xff] }
 0x5cb   :  { %14336 = vmatprep.subr.bf16.mxu1 %v24661_v24  ;;  %25084 = vst [vmem:[#allocation44_spill] sm:$0xff] %v20177_v21  ;;  %15103 = vmatpush1.bf16.msra.mxu0 %v25022_v38  ;;  %v24199_v30 = vand.u32 4294901760, %v20168_v14  ;;  %v24202_v38 = vand.u32 4294901760, %v20188_v34 }
 0x5cc   :  { %15104 = vmatprep.subr.bf16.mxu0 %v24661_v24 }
 0x5cd   :  { %v20195_v15 = vpack.c.bf16 %v24198_v9, %v24199_v30  ;;  %v20207_v9 = vld [vmem:[#allocation4 + $0x450] sm:$0xff]  ;;  %v20209_v30 = vld [vmem:[#allocation4 + $0x458] sm:$0xff] }
 0x5ce   :  { %14338 = vmatpush1.bf16.msra.mxu1 %v24952_v26  ;;  %v20186_v26 = vld [vmem:[#allocation4 + $0x440] sm:$0xff] }
 0x5cf   :  { %14339 = vmatprep.subr.bf16.mxu1 %v24661_v24  ;;  %25086 = vst [vmem:[#allocation45_spill] sm:$0xff] %v20195_v15  ;;  %15106 = vmatpush1.bf16.msra.mxu0 %v25027_v63  ;;  %v24203_v40 = vand.u32 4294901760, %v20186_v26  ;;  %v24208_v63 = vand.u32 4294901760, %v20207_v9  ;;  %v24207_v15 = vand.u32 4294901760, %v20209_v30 }
 0x5d0   :  { %15107 = vmatprep.subr.bf16.mxu0 %v24661_v24 }
 0x5d1   :  { %v20215_v5 = vpack.c.bf16 %v24202_v38, %v24203_v40  ;;  %v25092_v38 = vand.u32 4294901760, %v19987_v11 }
 0x5d2   :  { %14341 = vmatpush1.bf16.msra.mxu1 %v24959_v17  ;;  %v25088_v17 = vld [vmem:[#allocation123_spill] sm:$0xff] }
 0x5d3   :  { %14342 = vmatprep.subr.bf16.mxu1 %v24661_v24  ;;  %v6086_v21 = vsel %vm5156_vm13, %v25088_v17, %v6085_v47  ;;  %25089 = vst [vmem:[#allocation51_spill] sm:$0xff] %v20215_v5  ;;  %15109 = vmatpush1.bf16.msra.mxu0 %v25032_v51  ;;  %v25091_v47 = vld [vmem:[#allocation127_spill] sm:$0xff]  ;;  %v20232_v40 = vsub.f32 %v19987_v11, %v25092_v38  ;;  %v20253_v51 = vld [vmem:[#allocation4 + $0x470] sm:$0xff] }
 0x5d4   :  { %15110 = vmatprep.subr.bf16.mxu0 %v24661_v24  ;;  %v6087_v17 = vsel %vm5158_vm14, %v25091_v47, %v6086_v21  ;;  %v20239_v21 = vld [vmem:[#allocation4 + $0x460] sm:$0xff]  ;;  %v20241_v47 = vld [vmem:[#allocation4 + $0x468] sm:$0xff] }
 0x5d5   :  { %25093 = vst [vmem:[#allocation58_spill] sm:$0xff] %v20232_v40  ;;  %v6104_v38 = vsel %vm5183_vm15, %v6087_v17, 0  ;;  %v24212_v5 = vand.u32 4294901760, %v20241_v47 }
 0x5d6   :  { %14344 = vmatpush1.bf16.msra.mxu1 %v24964_v37  ;;  %v20220_v37 = vpop.f32.mrb[16].mxu0  ;;  %v20264_v17 = vand.u32 4294901760, %v6104_v38 }
 0x5d7   :  { %14345 = vmatprep.subr.bf16.mxu1 %v24661_v24  ;;  %25090 = vst [vmem:[#allocation52_spill] sm:$0xff] %v20220_v37  ;;  %v7653_v59 = vpop.f32.mrb[17].mxu0  ;;  %15112 = vmatpush1.bf16.msra.mxu0 %v25038_v20 }
 0x5d8   :  { %v25094_v59 = vand.u32 4294901760, %v19989_v31  ;;  %15113 = vmatprep.subr.bf16.mxu0 %v24661_v24  ;;  %v20250_v20 = vpop.f32.mrb[18].mxu0  ;;  %25098 = vst [vmem:[#allocation82_spill] sm:$0xff] %v20264_v17 }
 0x5d9   :  { %25097 = vst [vmem:[#allocation66_spill] sm:$0xff] %v20250_v20  ;;  %v7664_v11 = vpop.f32.mrb[19].mxu0 }
 0x5da   :  { %14347 = vmatpush1.bf16.msra.mxu1 %v24972_v32  ;;  %v20237_v37 = vsub.f32 %v19989_v31, %v25094_v59  ;;  %v20247_v32 = vpack.c.bf16 %v24207_v15, %v24208_v63  ;;  %v20255_v31 = vld [vmem:[#allocation4 + $0x478] sm:$0xff]  ;;  %v24215_v59 = vand.u32 4294901760, %v20239_v21  ;;  %v24214_v11 = vand.u32 4294901760, %v20253_v51 }
 0x5db   :  { %14348 = vmatprep.subr.bf16.mxu1 %v24661_v24  ;;  %15115 = vmatpush1.bf16.msra.mxu0 %v25043_v16  ;;  %v25100_v16 = vand.u32 4294901760, %v19993_v10  ;;  %v25102_v63 = vand.u32 4294901760, %v19995_v46 }
 0x5dc   :  { %25095 = vst [vmem:[#allocation59_spill] sm:$0xff] %v20237_v37  ;;  %25096 = vst [vmem:[#allocation65_spill] sm:$0xff] %v20247_v32  ;;  %15116 = vmatprep.subr.bf16.mxu0 %v24661_v24  ;;  %v20273_v20 = vpack.c.bf16 %v24212_v5, %v24215_v59  ;;  %v25106_v5 = vand.u32 4294901760, %v20237_v37 }
 0x5dd   :  { %v20278_v15 = vsub.f32 %v19993_v10, %v25100_v16  ;;  %v20283_v32 = vsub.f32 %v19995_v46, %v25102_v63  ;;  %v25105_v10 = vand.u32 4294901760, %v20232_v40  ;;  %v25108_v46 = vand.u32 4294901760, %v20024_v2 }
 0x5de   :  { %14350 = vmatpush1.bf16.msra.mxu1 %v24976_v54  ;;  %v24213_v54 = vand.u32 4294901760, %v20255_v31  ;;  %25099 = vst [vmem:[#allocation83_spill] sm:$0xff] %v20273_v20  ;;  %v9100_v63 = vsub.f32 %v20237_v37, %v25106_v5  ;;  %v5528_v5 = vpop.f32.mrb[4].mxu1 }
 0x5df   :  { %14351 = vmatprep.subr.bf16.mxu1 %v24661_v24  ;;  %25101 = vst [vmem:[#allocation92_spill] sm:$0xff] %v20278_v15  ;;  %25103 = vst [vmem:[#allocation93_spill] sm:$0xff] %v20283_v32  ;;  %15118 = vmatpush1.bf16.msra.mxu0 %v25048_v60  ;;  %v9093_v16 = vsub.f32 %v20232_v40, %v25105_v10  ;;  %v25113_v60 = vand.u32 4294901760, %v20048_v55  ;;  %v5530_v40 = vpop.f32.mrb[5].mxu1  ;;  %v20336_v10 = vld [vmem:[#allocation4] sm:$0xff] }
 0x5e0   :  { %v20290_v3 = vpack.c.bf16 %v24213_v54, %v24214_v11  ;;  %15119 = vmatprep.subr.bf16.mxu0 %v24661_v24  ;;  %v20307_v54 = vsub.f32 %v20024_v2, %v25108_v46  ;;  %v25110_v11 = vand.u32 4294901760, %v20026_v36  ;;  %v25115_v46 = vand.u32 4294901760, %v20050_v18 }
 0x5e1   :  { %v20324_v2 = vsub.f32 %v20048_v55, %v25113_v60  ;;  %v20340_v60 = vld [vmem:[#allocation4 + $0x8] sm:$0xff] }
 0x5e2   :  { %14353 = vmatpush1.bf16.msra.mxu1 %v24980_v28  ;;  %25104 = vst [vmem:[#allocation94_spill] sm:$0xff] %v20290_v3  ;;  %v20301_v28 = vsub.f32 %v6104_v38, %v20264_v17  ;;  %25109 = vst [vmem:[#allocation108_spill] sm:$0xff] %v20307_v54  ;;  %v20312_v59 = vsub.f32 %v20026_v36, %v25110_v11  ;;  %v25112_v38 = vld [vmem:[#allocation169_spill] sm:$0xff]  ;;  %v20329_v36 = vsub.f32 %v20050_v18, %v25115_v46 }
 0x5e3   :  { %14354 = vmatprep.subr.bf16.mxu1 %v24661_v24  ;;  %v20319_v37 = vsel %vm5183_vm15, %v25112_v38, 0  ;;  %25114 = vst [vmem:[#allocation97_spill] sm:$0xff] %v20324_v2  ;;  %v20332_v11 = vadd.f32 %v5528_v5, %v19981_v7  ;;  %15121 = vmatpush1.bf16.msra.mxu0 %v25055_v0  ;;  %v9101_v38 = vand.u32 4294901760, %v9100_v63  ;;  %v25117_v5 = vld [vmem:[#allocation109_spill] sm:$0xff]  ;;  %v25119_v46 = vand.u32 4294901760, %v20283_v32  ;;  %v5535_v0 = vpop.f32.mrb[6].mxu1 }
 0x5e4   :  { %25107 = vst [vmem:[#allocation95_spill] sm:$0xff] %v20301_v28  ;;  %25111 = vst [vmem:[#allocation96_spill] sm:$0xff] %v20312_v59  ;;  %15122 = vmatprep.subr.bf16.mxu0 %v24661_v24  ;;  %v20347_v40 = vsel %vm5150_vm10, %v24971_v33, %v25117_v5  ;;  %v20357_v18 = vand.u32 4294901760, %v20319_v37  ;;  %v20363_v5 = vadd.f32 %v5535_v0, %v20077_v25  ;;  %v25121_v7 = vand.u32 4294901760, %v20301_v28 }
 0x5e5   :  { %25116 = vst [vmem:[#allocation99_spill] sm:$0xff] %v20329_v36  ;;  %v9114_v55 = vsub.f32 %v20283_v32, %v25119_v46  ;;  %v20368_v32 = vld [vmem:[#allocation4 + $0x10] sm:$0xff]  ;;  %v25122_v0 = vand.u32 4294901760, %v20336_v10  ;;  %v25127_v17 = vand.u32 4294901760, %v20340_v60 }
 0x5e6   :  { %14356 = vmatpush1.bf16.msra.mxu1 %v24981_v13  ;;  %v9094_v13 = vand.u32 4294901760, %v9093_v16  ;;  %v25118_v16 = vand.u32 4294901760, %v20278_v15  ;;  %25120 = vst [vmem:[#allocation10_spill] sm:$0xff] %v20357_v18  ;;  %v20375_v3 = vsub.f32 %v20301_v28, %v25121_v7  ;;  %v25125_v7 = vand.u32 4294901760, %v20073_v48 }
 0x5e7   :  { %14357 = vmatprep.subr.bf16.mxu1 %v24661_v24  ;;  %15124 = vmatpush1.bf16.msra.mxu0 %v25060_v41  ;;  %v20381_v25 = vsub.f32 %v20336_v10, %v25122_v0  ;;  %v20391_v41 = vld [vmem:[#allocation4 + $0x28] sm:$0xff]  ;;  %v9115_v0 = vand.u32 4294901760, %v9114_v55  ;;  %v20401_v19 = vsub.f32 %v20340_v60, %v25127_v17 }
 0x5e8   :  { %v9107_v63 = vsub.f32 %v20278_v15, %v25118_v16  ;;  %v5537_v16 = vpop.f32.mrb[7].mxu1  ;;  %v15168_v46 = vpack.c.bf16 %v9101_v38, %v9094_v13  ;;  %v20370_v15 = vld [vmem:[#allocation4 + $0x18] sm:$0xff]  ;;  %8868 = vmatprep.subr.mxu0 %v24770_v39  ;;  %v25123_v13 = vand.u32 4294901760, %v20307_v54  ;;  %v20396_v28 = vsub.f32 %v20073_v48, %v25125_v7 }
 0x5e9   :  { %v25124_v16 = vand.u32 4294901760, %v20312_v59  ;;  %v25130_v48 = vand.u32 4294901760, %v20324_v2  ;;  %v25132_v7 = vand.u32 4294901760, %v20093_v4 }
 0x5ea   :  { %14359 = vmatpush1.bf16.msra.mxu1 %v24982_v49  ;;  %v9121_v38 = vsub.f32 %v20307_v54, %v25123_v13  ;;  %v20389_v49 = vld [vmem:[#allocation4 + $0x20] sm:$0xff]  ;;  %25126 = vst [vmem:[#allocation31_spill] sm:$0xff] %v20396_v28  ;;  %v9108_v20 = vand.u32 4294901760, %v9107_v63  ;;  %v25128_v13 = vand.u32 4294901760, %v20075_v42  ;;  %v25131_v63 = vand.u32 4294901760, %v20329_v36 }
 0x5eb   :  { %14360 = vmatprep.subr.bf16.mxu1 %v24661_v24  ;;  %v9128_v33 = vsub.f32 %v20312_v59, %v25124_v16  ;;  %v9135_v55 = vsub.f32 %v20324_v2, %v25130_v48  ;;  %8870 = vmatpush1.msra.mxu0 %v19788_v6  ;;  %v25134_v54 = vand.u32 4294901760, %v20095_v58  ;;  %v25142_v2 = vand.u32 4294901760, %v20111_v29  ;;  %v20764_v6 = vld [vmem:[#allocation4 + $0x98] sm:$0xff] }
 0x5ec   :  { %v20406_v16 = vsub.f32 %v20075_v42, %v25128_v13  ;;  %v9142_v17 = vsub.f32 %v20329_v36, %v25131_v63  ;;  %v20424_v13 = vsub.f32 %v20093_v4, %v25132_v7  ;;  %8880 = vmatmul.mubr.f32.vlgmr.msra.gmra.mrb[32].mxu0 %v19865_v50  ;;  %15167 = vmatprep.subr.bf16.mxu0 %v24661_v24  ;;  %v9122_v63 = vand.u32 4294901760, %v9121_v38  ;;  %v20448_v38 = vld [vmem:[#allocation4 + $0x30] sm:$0xff]  ;;  %v20450_v42 = vld [vmem:[#allocation4 + $0x38] sm:$0xff] }
 0x5ed   :  { %v20429_v48 = vsub.f32 %v20095_v58, %v25134_v54  ;;  %v9129_v59 = vand.u32 4294901760, %v9128_v33  ;;  %8885 = vmatprep.mubr.f32.mxu0 %v19869_v56  ;;  %15169 = vmatpush1.bf16.msra.mxu0 %v15168_v46  ;;  %v15171_v4 = vpack.c.bf16 %v9115_v0, %v9108_v20  ;;  %v25136_v7 = vand.u32 4294901760, %v20368_v32 }
 0x5ee   :  { %25129 = vst [vmem:[#allocation32_spill] sm:$0xff] %v20406_v16  ;;  %14362 = vmatpush1.bf16.msra.mxu1 %v24984_v53  ;;  %25133 = vst [vmem:[#allocation21_spill] sm:$0xff] %v20424_v13  ;;  %v25138_v54 = vand.u32 4294901760, %v20370_v15  ;;  %15170 = vmatprep.subr.bf16.mxu0 %v24661_v24  ;;  %v9136_v20 = vand.u32 4294901760, %v9135_v55  ;;  %v9143_v46 = vand.u32 4294901760, %v9142_v17  ;;  %v25140_v0 = vand.u32 4294901760, %v20389_v49 }
 0x5ef   :  { %14363 = vmatprep.subr.bf16.mxu1 %v24661_v24  ;;  %25135 = vst [vmem:[#allocation116_spill] sm:$0xff] %v20429_v48  ;;  %v20440_v58 = vsub.f32 %v20368_v32, %v25136_v7  ;;  %v20470_v55 = vsub.f32 %v20111_v29, %v25142_v2  ;;  %v25145_v29 = vand.u32 4294901760, %v20406_v16  ;;  %v20486_v17 = vld [vmem:[#allocation4 + $0x48] sm:$0xff]  ;;  %v25149_v33 = vand.u32 4294901760, %v20340_v60 }
 0x5f0   :  { %v20445_v36 = vsub.f32 %v20370_v15, %v25138_v54  ;;  %v20457_v7 = vsub.f32 %v20389_v49, %v25140_v0  ;;  %v25141_v54 = vand.u32 4294901760, %v20391_v41  ;;  %8887 = vmatmul.mubr.f32.gmra.mrb[34].mxu0 %v19885_v12  ;;  %v15174_v0 = vpack.c.bf16 %v9129_v59, %v9122_v63  ;;  %v20525_v12 = vld [vmem:[#allocation4 + $0x58] sm:$0xff] }
 0x5f1   :  { %25137 = vst [vmem:[#allocation114_spill] sm:$0xff] %v20440_v58  ;;  %25143 = vst [vmem:[#allocation119_spill] sm:$0xff] %v20470_v55  ;;  %15172 = vmatpush1.bf16.msra.mxu0 %v15171_v4  ;;  %9299 = vmatprep.mubr.f32.mxu0 %v20357_v18  ;;  %v9156_v2 = vsub.f32 %v20406_v16, %v25145_v29  ;;  %v25146_v59 = vand.u32 4294901760, %v20113_v27  ;;  %v25148_v4 = vand.u32 4294901760, %v20336_v10  ;;  %v25151_v29 = vand.u32 4294901760, %v20448_v38 }
 0x5f2   :  { %25139 = vst [vmem:[#allocation117_spill] sm:$0xff] %v20445_v36  ;;  %14365 = vmatpush1.bf16.msra.mxu1 %v24989_v23  ;;  %v20462_v53 = vsub.f32 %v20391_v41, %v25141_v54  ;;  %v25144_v54 = vand.u32 4294901760, %v20396_v28  ;;  %v20484_v23 = vld [vmem:[#allocation4 + $0x40] sm:$0xff]  ;;  %15173 = vmatprep.subr.bf16.mxu0 %v24661_v24  ;;  %v25153_v10 = vand.u32 4294901760, %v20424_v13 }
 0x5f3   :  { %14366 = vmatprep.subr.bf16.mxu1 %v24661_v24  ;;  %v20491_v63 = vsub.f32 %v20113_v27, %v25146_v59  ;;  %v20500_v50 = vpack.c.bf16 %v25149_v33, %v25148_v4  ;;  %v20506_v16 = vsub.f32 %v20448_v38, %v25151_v29  ;;  %v25152_v27 = vand.u32 4294901760, %v20450_v42  ;;  %v20521_v29 = vld [vmem:[#allocation4 + $0x50] sm:$0xff] }
 0x5f4   :  { %v9149_v56 = vsub.f32 %v20396_v28, %v25144_v54  ;;  %v9163_v60 = vsub.f32 %v20424_v13, %v25153_v10  ;;  %v25154_v33 = vand.u32 4294901760, %v20429_v48  ;;  %v25157_v10 = vand.u32 4294901760, %v20131_v57 }
 0x5f5   :  { %25147 = vst [vmem:[#allocation121_spill] sm:$0xff] %v20491_v63  ;;  %25150 = vst [vmem:[#allocation123_spill] sm:$0xff] %v20500_v50  ;;  %v20511_v59 = vsub.f32 %v20450_v42, %v25152_v27  ;;  %15175 = vmatpush1.bf16.msra.mxu0 %v15174_v0  ;;  %v9157_v54 = vand.u32 4294901760, %v9156_v2  ;;  %v25159_v28 = vand.u32 4294901760, %v20368_v32  ;;  %v25163_v0 = vand.u32 4294901760, %v20486_v17  ;;  %v20569_v27 = vld [vmem:[#allocation4 + $0x60] sm:$0xff] }
 0x5f6   :  { %14368 = vmatpush1.bf16.msra.mxu1 %v24992_v44  ;;  %v15177_v44 = vpack.c.bf16 %v9143_v46, %v9136_v20  ;;  %v9170_v4 = vsub.f32 %v20429_v48, %v25154_v33  ;;  %v25155_v20 = vand.u32 4294901760, %v20129_v1  ;;  %v20535_v13 = vsub.f32 %v20131_v57, %v25157_v10  ;;  %15176 = vmatprep.subr.bf16.mxu0 %v24661_v24 }
 0x5f7   :  { %6046 = vmatprep.subr.mxu1 %v24770_v39  ;;  %v9150_v33 = vand.u32 4294901760, %v9149_v56  ;;  %v24255_v48 = vand.u32 4294901760, %v20491_v63  ;;  %v25162_v57 = vand.u32 4294901760, %v20484_v23  ;;  %v20556_v2 = vsub.f32 %v20486_v17, %v25163_v0 }
 0x5f8   :  { %v20530_v46 = vsub.f32 %v20129_v1, %v25155_v20  ;;  %25158 = vst [vmem:[#allocation169_spill] sm:$0xff] %v20535_v13  ;;  %v25160_v1 = vand.u32 4294901760, %v20370_v15  ;;  %v9164_v15 = vand.u32 4294901760, %v9163_v60  ;;  %v9171_v32 = vand.u32 4294901760, %v9170_v4 }
 0x5f9   :  { %v20551_v56 = vsub.f32 %v20484_v23, %v25162_v57  ;;  %v25165_v60 = vand.u32 4294901760, %v20148_v22  ;;  %15178 = vmatpush1.bf16.msra.mxu0 %v15177_v44  ;;  %v9184_v0 = vsub.f32 %v20491_v63, %v24255_v48  ;;  %v25173_v44 = vand.u32 4294901760, %v20525_v12 }
 0x5fa   :  { %25156 = vst [vmem:[#allocation127_spill] sm:$0xff] %v20530_v46  ;;  %6048 = vmatpush1.msra.mxu1 %v24998_v62  ;;  %v20545_v20 = vpack.c.bf16 %v25160_v1, %v25159_v28  ;;  %v25164_v28 = vand.u32 4294901760, %v20470_v55  ;;  %v6208_v62 = vand.u32 4294901760, %v20375_v3  ;;  %15179 = vmatprep.subr.bf16.mxu0 %v24661_v24  ;;  %v15183_v3 = vpack.c.bf16 %v9171_v32, %v9164_v15  ;;  %v20619_v15 = vld [vmem:[#allocation4 + $0x70] sm:$0xff]  ;;  %v20621_v32 = vld [vmem:[#allocation4 + $0x78] sm:$0xff] }
 0x5fb   :  { %6058 = vmatmul.mubr.f32.vlgmr.msra.gmra.mrb[20].mxu1 %v25074_v45  ;;  %14369 = vmatprep.subr.bf16.mxu1 %v24661_v24  ;;  %v20571_v45 = vld [vmem:[#allocation4 + $0x68] sm:$0xff]  ;;  %v20576_v4 = vsub.f32 %v20148_v22, %v25165_v60  ;;  %v25169_v22 = vand.u32 4294901760, %v20389_v49  ;;  %v25170_v60 = vand.u32 4294901760, %v20391_v41  ;;  %v25178_v57 = vand.u32 4294901760, %v20170_v52 }
 0x5fc   :  { %25161 = vst [vmem:[#allocation109_spill] sm:$0xff] %v20545_v20  ;;  %v9177_v10 = vsub.f32 %v20470_v55, %v25164_v28  ;;  %6063 = vmatprep.mubr.f32.mxu1 %v25075_v61  ;;  %14371 = vmatpush1.bf16.msra.mxu1 %v20500_v50  ;;  %v25167_v28 = vand.u32 4294901760, %v20150_v43  ;;  %v15180_v61 = vpack.c.bf16 %v9157_v54, %v9150_v33  ;;  %v25180_v48 = vand.u32 4294901760, %v20448_v38 }
 0x5fd   :  { %25166 = vst [vmem:[#allocation173_spill] sm:$0xff] %v20576_v4  ;;  %14372 = vmatprep.subr.bf16.mxu1 %v24661_v24  ;;  %v20594_v55 = vpack.c.bf16 %v25170_v60, %v25169_v22  ;;  %v20605_v33 = vsub.f32 %v20525_v12, %v25173_v44  ;;  %v25174_v22 = vand.u32 4294901760, %v20530_v46 }
 0x5fe   :  { %v20581_v1 = vsub.f32 %v20150_v43, %v25167_v28  ;;  %v25172_v43 = vand.u32 4294901760, %v20521_v29  ;;  %v9178_v49 = vand.u32 4294901760, %v9177_v10  ;;  %15181 = vmatpush1.bf16.msra.mxu0 %v15180_v61  ;;  %v25176_v10 = vand.u32 4294901760, %v20168_v14 }
 0x5ff   :  { %25171 = vst [vmem:[#allocation175_spill] sm:$0xff] %v20594_v55  ;;  %6065 = vmatmul.mubr.f32.gmra.mrb[22].mxu1 %v25077_v8  ;;  %v9191_v60 = vsub.f32 %v20530_v46, %v25174_v22  ;;  %v25181_v28 = vand.u32 4294901760, %v20450_v42  ;;  %15182 = vmatprep.subr.bf16.mxu0 %v24661_v24  ;;  %v25185_v61 = vand.u32 4294901760, %v20571_v45  ;;  %v25188_v8 = vand.u32 4294901760, %v20186_v26 }
 0x600   :  { %25168 = vst [vmem:[#allocation174_spill] sm:$0xff] %v20581_v1  ;;  %v20600_v54 = vsub.f32 %v20521_v29, %v25172_v43  ;;  %14374 = vmatpush1.bf16.msra.mxu1 %v20545_v20  ;;  %6209 = vmatprep.mubr.f32.mxu1 %v6208_v62  ;;  %v25175_v43 = vand.u32 4294901760, %v20535_v13  ;;  %v9185_v62 = vand.u32 4294901760, %v9184_v0  ;;  %v20627_v22 = vsub.f32 %v20168_v14, %v25176_v10  ;;  %v25187_v10 = vld [vmem:[#allocation133_spill] sm:$0xff] }
 0x601   :  { %14375 = vmatprep.subr.bf16.mxu1 %v24661_v24  ;;  %v20640_v41 = vpack.c.bf16 %v25181_v28, %v25180_v48  ;;  %v25183_v0 = vand.u32 4294901760, %v20569_v27  ;;  %v20658_v28 = vld [vmem:[#allocation4 + $0x80] sm:$0xff]  ;;  %v9192_v46 = vand.u32 4294901760, %v9191_v60  ;;  %v25193_v42 = vand.u32 4294901760, %v20581_v1 }
 0x602   :  { %v9198_v44 = vsub.f32 %v20535_v13, %v25175_v43  ;;  %25177 = vst [vmem:[#allocation176_spill] sm:$0xff] %v20627_v22  ;;  %v20632_v43 = vsub.f32 %v20170_v52, %v25178_v57  ;;  %v20651_v52 = vsub.f32 %v20571_v45, %v25185_v61  ;;  %v25186_v57 = vld [vmem:[#allocation126_spill] sm:$0xff]  ;;  %v25190_v13 = vand.u32 4294901760, %v20188_v34  ;;  %15184 = vmatpush1.bf16.msra.mxu0 %v15183_v3 }
 0x603   :  { %25182 = vst [vmem:[#allocation178_spill] sm:$0xff] %v20640_v41  ;;  %v20646_v14 = vsub.f32 %v20569_v27, %v25183_v0  ;;  %v6097_v38 = vsel %vm5150_vm10, %v25187_v10, %v25186_v57  ;;  %v20663_v0 = vsub.f32 %v20186_v26, %v25188_v8  ;;  %v25192_v10 = vand.u32 4294901760, %v20576_v4  ;;  %15185 = vmatprep.subr.bf16.mxu0 %v24661_v24 }
 0x604   :  { %25179 = vst [vmem:[#allocation177_spill] sm:$0xff] %v20632_v43  ;;  %v20668_v61 = vsub.f32 %v20188_v34, %v25190_v13  ;;  %14377 = vmatpush1.bf16.msra.mxu1 %v20594_v55  ;;  %v9199_v57 = vand.u32 4294901760, %v9198_v44  ;;  %v9212_v63 = vsub.f32 %v20581_v1, %v25193_v42  ;;  %v15186_v26 = vpack.c.bf16 %v9185_v62, %v9178_v49  ;;  %v20680_v13 = vld [vmem:[#allocation4 + $0x88] sm:$0xff] }
 0x605   :  { %25184 = vst [vmem:[#allocation179_spill] sm:$0xff] %v20646_v14  ;;  %25189 = vst [vmem:[#allocation126_spill] sm:$0xff] %v20663_v0  ;;  %v9205_v48 = vsub.f32 %v20576_v4, %v25192_v10  ;;  %14378 = vmatprep.subr.bf16.mxu1 %v24661_v24  ;;  %v25194_v44 = vand.u32 4294901760, %v20484_v23  ;;  %v25195_v10 = vand.u32 4294901760, %v20486_v17  ;;  %v25197_v3 = vand.u32 4294901760, %v20619_v15 }
 0x606   :  { %25191 = vst [vmem:[#allocation133_spill] sm:$0xff] %v20668_v61  ;;  %v25198_v62 = vand.u32 4294901760, %v20621_v32  ;;  %v25201_v34 = vand.u32 4294901760, %v20209_v30  ;;  %v9213_v1 = vand.u32 4294901760, %v9212_v63  ;;  %v24270_v60 = vand.u32 4294901760, %v20680_v13  ;;  %15187 = vmatpush1.bf16.msra.mxu0 %v15186_v26 }
 0x607   :  { %v20688_v4 = vpack.c.bf16 %v25195_v10, %v25194_v44  ;;  %v20694_v49 = vsub.f32 %v20619_v15, %v25197_v3  ;;  %v25199_v44 = vand.u32 4294901760, %v20207_v9  ;;  %v9206_v8 = vand.u32 4294901760, %v9205_v48  ;;  %15188 = vmatprep.subr.bf16.mxu0 %v24661_v24 }
 0x608   :  { %v20699_v42 = vsub.f32 %v20621_v32, %v25198_v62  ;;  %v20712_v3 = vsub.f32 %v20209_v30, %v25201_v34  ;;  %14380 = vmatpush1.bf16.msra.mxu1 %v20640_v41  ;;  %v15189_v62 = vpack.c.bf16 %v9199_v57, %v9192_v46  ;;  %v25203_v17 = vand.u32 4294901760, %v20627_v22  ;;  %v25208_v57 = vld [vmem:[#allocation118_spill] sm:$0xff]  ;;  %v25209_v34 = vld [vmem:[#allocation137_spill] sm:$0xff]  ;;  %v20848_v41 = vld [vmem:[#allocation4 + $0xc0] sm:$0xff] }
 0x609   :  { %25196 = vst [vmem:[#allocation180_spill] sm:$0xff] %v20688_v4  ;;  %v20707_v10 = vsub.f32 %v20207_v9, %v25199_v44  ;;  %14381 = vmatprep.subr.bf16.mxu1 %v24661_v24  ;;  %v25204_v44 = vand.u32 4294901760, %v20632_v43  ;;  %v25205_v63 = vand.u32 4294901760, %v20658_v28  ;;  %v20734_v48 = vsub.f32 %v20680_v13, %v24270_v60 }
 0x60a   :  { %25202 = vst [vmem:[#allocation182_spill] sm:$0xff] %v20712_v3  ;;  %v9219_v9 = vsub.f32 %v20627_v22, %v25203_v17  ;;  %v6077_v26 = vsel %vm5152_vm11, %v25208_v57, %v20347_v40  ;;  %v6098_v17 = vsel %vm5152_vm11, %v25209_v34, %v6097_v38  ;;  %v20747_v22 = vld [vmem:[#allocation4 + $0x90] sm:$0xff]  ;;  %v25212_v40 = vand.u32 4294901760, %v20521_v29  ;;  %15190 = vmatpush1.bf16.msra.mxu0 %v15189_v62  ;;  %v25222_v62 = vld [vmem:[#allocation120_spill] sm:$0xff] }
 0x60b   :  { %25200 = vst [vmem:[#allocation181_spill] sm:$0xff] %v20707_v10  ;;  %v9226_v23 = vsub.f32 %v20632_v43, %v25204_v44  ;;  %v20729_v46 = vsub.f32 %v20658_v28, %v25205_v63  ;;  %25207 = vst [vmem:[#allocation184_spill] sm:$0xff] %v20734_v48  ;;  %v25210_v44 = vand.u32 4294901760, %v20663_v0  ;;  %v25211_v43 = vand.u32 4294901760, %v20668_v61  ;;  %15191 = vmatprep.subr.bf16.mxu0 %v24661_v24 }
 0x60c   :  { %14383 = vmatpush1.bf16.msra.mxu1 %v20688_v4  ;;  %v25213_v38 = vand.u32 4294901760, %v20525_v12  ;;  %v15192_v34 = vpack.c.bf16 %v9213_v1, %v9206_v8  ;;  %v25219_v1 = vand.u32 4294901760, %v20569_v27  ;;  %v25224_v27 = vand.u32 4294901760, %v20707_v10  ;;  %v8923_v12 = vld [vmem:[#allocation4 + $0x480] sm:$0x3f] }
 0x60d   :  { %25206 = vst [vmem:[#allocation183_spill] sm:$0xff] %v20729_v46  ;;  %v9233_v30 = vsub.f32 %v20663_v0, %v25210_v44  ;;  %v9240_v63 = vsub.f32 %v20668_v61, %v25211_v43  ;;  %v25215_v44 = vand.u32 4294901760, %v20239_v21  ;;  %14384 = vmatprep.subr.bf16.mxu1 %v24661_v24  ;;  %v9220_v43 = vand.u32 4294901760, %v9219_v9 }
 0x60e   :  { %v20756_v57 = vpack.c.bf16 %v25213_v38, %v25212_v40  ;;  %v9227_v60 = vand.u32 4294901760, %v9226_v23  ;;  %v25217_v61 = vand.u32 4294901760, %v20241_v47  ;;  %v20783_v9 = vsel %vm5154_vm12, %v25222_v62, %v6077_v26  ;;  %v25223_v40 = vld [vmem:[#allocation138_spill] sm:$0xff]  ;;  %v20799_v62 = vld [vmem:[#allocation4 + $0xa8] sm:$0xff]  ;;  %15193 = vmatpush1.bf16.msra.mxu0 %v15192_v34 }
 0x60f   :  { %v20761_v0 = vsub.f32 %v20239_v21, %v25215_v44  ;;  %v25220_v21 = vand.u32 4294901760, %v20571_v45  ;;  %v9241_v38 = vand.u32 4294901760, %v9240_v63  ;;  %v9247_v45 = vsub.f32 %v20707_v10, %v25224_v27  ;;  %v20820_v10 = vld [vmem:[#allocation4 + $0xb0] sm:$0xff]  ;;  %15194 = vmatprep.subr.bf16.mxu0 %v24661_v24 }
 0x610   :  { %25214 = vst [vmem:[#allocation118_spill] sm:$0xff] %v20756_v57  ;;  %v20769_v29 = vsub.f32 %v20241_v47, %v25217_v61  ;;  %v20787_v47 = vsel %vm5154_vm12, %v25223_v40, %v6098_v17  ;;  %v9234_v61 = vand.u32 4294901760, %v9233_v30  ;;  %v25225_v44 = vand.u32 4294901760, %v20712_v3  ;;  %14386 = vmatpush1.bf16.msra.mxu1 %v20756_v57 }
 0x611   :  { %25216 = vst [vmem:[#allocation137_spill] sm:$0xff] %v20761_v0  ;;  %v20777_v8 = vpack.c.bf16 %v25220_v21, %v25219_v1  ;;  %v20795_v21 = vld [vmem:[#allocation4 + $0xa0] sm:$0xff]  ;;  %v25226_v17 = vand.u32 4294901760, %v20253_v51  ;;  %v25228_v40 = vand.u32 4294901760, %v20255_v31  ;;  %14387 = vmatprep.subr.bf16.mxu1 %v24661_v24  ;;  %v25231_v26 = vand.u32 4294901760, %v20621_v32 }
 0x612   :  { %25218 = vst [vmem:[#allocation185_spill] sm:$0xff] %v20769_v29  ;;  %v9254_v1 = vsub.f32 %v20712_v3, %v25225_v44  ;;  %v25230_v44 = vand.u32 4294901760, %v20619_v15  ;;  %v15195_v30 = vpack.c.bf16 %v9227_v60, %v9220_v43  ;;  %v25237_v15 = vand.u32 4294901760, %v20764_v6  ;;  %v20837_v43 = vld [vmem:[#allocation4 + $0xb8] sm:$0xff]  ;;  %v25249_v60 = vld [vmem:[#allocation134_spill] sm:$0xff] }
 0x613   :  { %25221 = vst [vmem:[#allocation186_spill] sm:$0xff] %v20777_v8  ;;  %v20805_v63 = vsub.f32 %v20253_v51, %v25226_v17  ;;  %v20810_v27 = vsub.f32 %v20255_v31, %v25228_v40  ;;  %v25233_v51 = vld [vmem:[#allocation125_spill] sm:$0xff]  ;;  %v25234_v17 = vld [vmem:[#allocation132_spill] sm:$0xff]  ;;  %v25235_v31 = vand.u32 4294901760, %v20747_v22  ;;  %v15198_v40 = vpack.c.bf16 %v9241_v38, %v9234_v61 }
 0x614   :  { %v20817_v23 = vpack.c.bf16 %v25231_v26, %v25230_v44  ;;  %v6090_v57 = vsel %vm5150_vm10, %v25234_v17, %v25233_v51  ;;  %v20834_v32 = vsub.f32 %v20764_v6, %v25237_v15  ;;  %v8963_v26 = vsel %vm1729_vm3, %v8923_v12, 0  ;;  %14389 = vmatpush1.bf16.msra.mxu1 %v20777_v8  ;;  %v20851_v12 = vpop.f32.mrb[20].mxu0  ;;  %15196 = vmatpush1.bf16.msra.mxu0 %v15195_v30 }
 0x615   :  { %25227 = vst [vmem:[#allocation120_spill] sm:$0xff] %v20805_v63  ;;  %25229 = vst [vmem:[#allocation138_spill] sm:$0xff] %v20810_v27  ;;  %v20829_v34 = vsub.f32 %v20747_v22, %v25235_v31  ;;  %v9248_v44 = vand.u32 4294901760, %v9247_v45  ;;  %v9255_v51 = vand.u32 4294901760, %v9254_v1  ;;  %v25239_v31 = vand.u32 4294901760, %v20761_v0  ;;  %14390 = vmatprep.subr.bf16.mxu1 %v24661_v24  ;;  %v20857_v1 = vld [vmem:[#allocation4 + $0xc8] sm:$0xff]  ;;  %15197 = vmatprep.subr.bf16.mxu0 %v24661_v24 }
 0x616   :  { %25232 = vst [vmem:[#allocation187_spill] sm:$0xff] %v20817_v23  ;;  %25238 = vst [vmem:[#allocation132_spill] sm:$0xff] %v20834_v32  ;;  %v25241_v61 = vand.u32 4294901760, %v20769_v29  ;;  %v7931_v4 = vpop.f32.mrb[21].mxu0  ;;  %v25243_v15 = vand.u32 4294901760, %v20658_v28  ;;  %v25244_v17 = vand.u32 4294901760, %v20680_v13 }
 0x617   :  { %25236 = vst [vmem:[#allocation125_spill] sm:$0xff] %v20829_v34  ;;  %v9261_v3 = vsub.f32 %v20761_v0, %v25239_v31  ;;  %25240 = vst [vmem:[#allocation188_spill] sm:$0xff] %v20851_v12  ;;  %v20859_v31 = vand.u32 4294901760, %v8963_v26  ;;  %v25246_v30 = vand.u32 4294901760, %v20795_v21  ;;  %v25248_v45 = vand.u32 4294901760, %v20799_v62 }
 0x618   :  { %v9268_v38 = vsub.f32 %v20769_v29, %v25241_v61  ;;  %v20867_v0 = vpack.c.bf16 %v25244_v17, %v25243_v15  ;;  %v6091_v4 = vsel %vm5152_vm11, %v25249_v60, %v6090_v57  ;;  %v15201_v28 = vpack.c.bf16 %v9255_v51, %v9248_v44  ;;  %14392 = vmatpush1.bf16.msra.mxu1 %v20817_v23  ;;  %v20914_v51 = vld [vmem:[#allocation4 + $0xd8] sm:$0xff] }
 0x619   :  { %25242 = vst [vmem:[#allocation189_spill] sm:$0xff] %v20859_v31  ;;  %v20873_v61 = vsub.f32 %v20795_v21, %v25246_v30  ;;  %v20878_v29 = vsub.f32 %v20799_v62, %v25248_v45  ;;  %v25250_v13 = vand.u32 4294901760, %v20820_v10  ;;  %v25251_v15 = vand.u32 4294901760, %v20837_v43  ;;  %14393 = vmatprep.subr.bf16.mxu1 %v24661_v24  ;;  %15199 = vmatpush1.bf16.msra.mxu0 %v15198_v40  ;;  %v25261_v23 = vld [vmem:[#allocation135_spill] sm:$0xff] }
 0x61a   :  { %25245 = vst [vmem:[#allocation190_spill] sm:$0xff] %v20867_v0  ;;  %v9262_v45 = vand.u32 4294901760, %v9261_v3  ;;  %v25252_v8 = vand.u32 4294901760, %v20805_v63  ;;  %v25253_v60 = vand.u32 4294901760, %v20810_v27  ;;  %v20905_v30 = vsub.f32 %v8963_v26, %v20859_v31  ;;  %v20907_v3 = vld [vmem:[#allocation4 + $0xd0] sm:$0xff]  ;;  %15200 = vmatprep.subr.bf16.mxu0 %v24661_v24 }
 0x61b   :  { %25247 = vst [vmem:[#allocation191_spill] sm:$0xff] %v20873_v61  ;;  %v20885_v17 = vsub.f32 %v20820_v10, %v25250_v13  ;;  %v20890_v12 = vsub.f32 %v20837_v43, %v25251_v15  ;;  %v20902_v13 = vpop.f32.mrb[22].mxu0  ;;  %v9269_v15 = vand.u32 4294901760, %v9268_v38  ;;  %v25257_v26 = vand.u32 4294901760, %v20848_v41 }
 0x61c   :  { %v9275_v57 = vsub.f32 %v20805_v63, %v25252_v8  ;;  %v9282_v44 = vsub.f32 %v20810_v27, %v25253_v60  ;;  %25254 = vst [vmem:[#allocation134_spill] sm:$0xff] %v20902_v13  ;;  %25255 = vst [vmem:[#allocation192_spill] sm:$0xff] %v20905_v30  ;;  %v7938_v60 = vpop.f32.mrb[23].mxu0  ;;  %v25256_v27 = vld [vmem:[#allocation122_spill] sm:$0xff]  ;;  %v25259_v13 = vand.u32 4294901760, %v20857_v1  ;;  %v6092_v55 = vsel %vm5154_vm12, %v25261_v23, %v6091_v4 }
 0x61d   :  { %v6079_v40 = vsel %vm5156_vm13, %v25256_v27, %v20783_v9  ;;  %v20922_v38 = vsub.f32 %v20848_v41, %v25257_v26  ;;  %v25260_v60 = vld [vmem:[#allocation140_spill] sm:$0xff]  ;;  %14395 = vmatpush1.bf16.msra.mxu1 %v20867_v0  ;;  %v25262_v9 = vand.u32 4294901760, %v20747_v22  ;;  %v25263_v27 = vand.u32 4294901760, %v20764_v6  ;;  %15202 = vmatpush1.bf16.msra.mxu0 %v15201_v28  ;;  %v25265_v6 = vld [vmem:[#allocation142_spill] sm:$0xff] }
 0x61e   :  { %v20927_v8 = vsub.f32 %v20857_v1, %v25259_v13  ;;  %v6100_v63 = vsel %vm5156_vm13, %v25260_v60, %v20787_v47  ;;  %v9276_v20 = vand.u32 4294901760, %v9275_v57  ;;  %v9283_v50 = vand.u32 4294901760, %v9282_v44  ;;  %14396 = vmatprep.subr.bf16.mxu1 %v24661_v24  ;;  %15203 = vmatprep.subr.bf16.mxu0 %v24661_v24 }
 0x61f   :  { %25258 = vst [vmem:[#allocation122_spill] sm:$0xff] %v20922_v38  ;;  %v20939_v26 = vpack.c.bf16 %v25263_v27, %v25262_v9  ;;  %v6190_v13 = vand.u32 4294901760, %v20907_v3  ;;  %v15204_v31 = vpack.c.bf16 %v9269_v15, %v9262_v45  ;;  %v24306_v47 = vand.u32 4294901760, %v20905_v30  ;;  %v25269_v27 = vld [vmem:[#allocation124_spill] sm:$0xff] }
 0x620   :  { %v6193_v23 = vand.u32 4294901760, %v20914_v51  ;;  %v6101_v22 = vsel %vm5158_vm14, %v25265_v6, %v6100_v63  ;;  %v5667_v28 = vpop.f32.mrb[8].mxu1  ;;  %v25266_v45 = vand.u32 4294901760, %v20795_v21  ;;  %v25267_v15 = vand.u32 4294901760, %v20799_v62  ;;  %v25270_v63 = vld [vmem:[#allocation139_spill] sm:$0xff] }
 0x621   :  { %25264 = vst [vmem:[#allocation140_spill] sm:$0xff] %v20939_v26  ;;  %v20951_v57 = vsub.f32 %v20907_v3, %v6190_v13  ;;  %14398 = vmatpush1.bf16.msra.mxu1 %v20939_v26  ;;  %v15207_v9 = vpack.c.bf16 %v9283_v50, %v9276_v20  ;;  %v6080_v4 = vsel %vm5158_vm14, %v25269_v27, %v6079_v40  ;;  %v6106_v62 = vsel %vm5183_vm15, %v6101_v22, 0  ;;  %v25288_v50 = vld [vmem:[#allocation98_spill] sm:$0xff] }
 0x622   :  { %v20954_v44 = vsub.f32 %v20914_v51, %v6193_v23  ;;  %v20961_v60 = vpack.c.bf16 %v25267_v15, %v25266_v45  ;;  %v6093_v3 = vsel %vm5156_vm13, %v25270_v63, %v6092_v55  ;;  %v20968_v6 = vadd.f32 %v5667_v28, %v20332_v11  ;;  %v5669_v51 = vpop.f32.mrb[9].mxu1  ;;  %14399 = vmatprep.subr.bf16.mxu1 %v24661_v24  ;;  %v25274_v45 = vld [vmem:[#allocation141_spill] sm:$0xff] }
 0x623   :  { %15205 = vmatpush1.bf16.msra.mxu0 %v15204_v31  ;;  %v9289_v21 = vsub.f32 %v20905_v30, %v24306_v47  ;;  %v20978_v20 = vand.u32 4294901760, %v6080_v4  ;;  %v25271_v11 = vand.u32 4294901760, %v20820_v10  ;;  %v25272_v31 = vand.u32 4294901760, %v20837_v43  ;;  %v25275_v10 = vld [vmem:[#allocation113_spill] sm:$0xff] }
 0x624   :  { %25268 = vst [vmem:[#allocation135_spill] sm:$0xff] %v20961_v60  ;;  %15206 = vmatprep.subr.bf16.mxu0 %v24661_v24  ;;  %v5676_v55 = vpop.f32.mrb[10].mxu1  ;;  %v20987_v28 = vand.u32 4294901760, %v6106_v62  ;;  %v6094_v22 = vsel %vm5158_vm14, %v25274_v45, %v6093_v3  ;;  %v20998_v43 = vsel %vm5183_vm15, %v25275_v10, 0  ;;  %v24307_v51 = vand.u32 4294901760, %v20381_v25 }
 0x625   :  { %14401 = vmatpush1.bf16.msra.mxu1 %v20961_v60  ;;  %v20985_v40 = vpack.c.bf16 %v25272_v31, %v25271_v11  ;;  %v20992_v15 = vadd.f32 %v5676_v55, %v20363_v5  ;;  %v5678_v27 = vpop.f32.mrb[11].mxu1  ;;  %v9290_v63 = vand.u32 4294901760, %v9289_v21  ;;  %v24310_v11 = vand.u32 4294901760, %v20401_v19  ;;  %v25280_v31 = vld [vmem:[#allocation129_spill] sm:$0xff] }
 0x626   :  { %14402 = vmatprep.subr.bf16.mxu1 %v24661_v24  ;;  %v21003_v3 = vsub.f32 %v6080_v4, %v20978_v20  ;;  %v21005_v5 = vand.u32 4294901760, %v6094_v22  ;;  %v25278_v21 = vand.u32 4294901760, %v20857_v1  ;;  %v21015_v45 = vand.u32 4294901760, %v25280_v31 }
 0x627   :  { %25273 = vst [vmem:[#allocation142_spill] sm:$0xff] %v20985_v40  ;;  %15208 = vmatpush1.bf16.msra.mxu0 %v15207_v9  ;;  %v25277_v9 = vand.u32 4294901760, %v20848_v41  ;;  %v21018_v27 = vsub.f32 %v6106_v62, %v20987_v28  ;;  %v21022_v4 = vand.u32 4294901760, %v20998_v43  ;;  %v21026_v10 = vsub.f32 %v20319_v37, %v20357_v18  ;;  %v5083_v41 = vld [vmem:[#allocation4 + $0xe0] sm:$0x3f] }
 0x628   :  { %9285 = vmatprep.subr.mxu0 %v24770_v39  ;;  %25276 = vst [vmem:[#allocation124_spill] sm:$0xff] %v21003_v3  ;;  %25281 = vst [vmem:[#allocation141_spill] sm:$0xff] %v21015_v45  ;;  %v6239_v1 = vsub.f32 %v20381_v25, %v24307_v51  ;;  %v6246_v62 = vsub.f32 %v20401_v19, %v24310_v11  ;;  %v25285_v37 = vld [vmem:[#allocation16_spill] sm:$0xff]  ;;  %v21042_v47 = vsub.f32 %v6094_v22, %v21005_v5 }
 0x629   :  { %14404 = vmatpush1.bf16.msra.mxu1 %v20985_v40  ;;  %v21012_v55 = vpack.c.bf16 %v25278_v21, %v25277_v9  ;;  %25282 = vst [vmem:[#allocation113_spill] sm:$0xff] %v21018_v27  ;;  %25283 = vst [vmem:[#allocation129_spill] sm:$0xff] %v21022_v4  ;;  %v21045_v51 = vpack.c.bf16 %v6193_v23, %v6190_v13  ;;  %v21048_v30 = vand.u32 4294901760, %v25288_v50  ;;  %v24317_v9 = vand.u32 4294901760, %v21026_v10 }
 0x62a   :  { %14405 = vmatprep.subr.bf16.mxu1 %v24661_v24  ;;  %25284 = vst [vmem:[#allocation193_spill] sm:$0xff] %v21026_v10  ;;  %25286 = vst [vmem:[#allocation16_spill] sm:$0xff] %v21042_v47  ;;  %v21055_v21 = vsel %vm1729_vm3, %v5083_v41, 0  ;;  %v24334_v22 = vand.u32 4294901760, %v20457_v7  ;;  %v6240_v13 = vand.u32 4294901760, %v6239_v1  ;;  %v6247_v23 = vand.u32 4294901760, %v6246_v62 }
 0x62b   :  { %25279 = vst [vmem:[#allocation139_spill] sm:$0xff] %v21012_v55  ;;  %9291 = vmatpush1.msra.mxu0 %v9290_v63  ;;  %25287 = vst [vmem:[#allocation194_spill] sm:$0xff] %v21045_v51  ;;  %v25291_v11 = vand.u32 4294901760, %v20445_v36  ;;  %v25292_v41 = vand.u32 4294901760, %v21003_v3  ;;  %v21075_v62 = vand.u32 4294901760, %v21055_v21  ;;  %v24335_v10 = vand.u32 4294901760, %v20506_v16 }
 0x62c   :  { %9301 = vmatmul.mubr.f32.vlgmr.msra.gmra.mrb[36].mxu0 %v21015_v45  ;;  %15251 = vmatprep.subr.bf16.mxu0 %v24661_v24  ;;  %25289 = vst [vmem:[#allocation98_spill] sm:$0xff] %v21048_v30  ;;  %v14412_v26 = vpack.c.bf16 %v6247_v23, %v6240_v13  ;;  %v24337_v13 = vand.u32 4294901760, %v20551_v56  ;;  %v24336_v23 = vand.u32 4294901760, %v20556_v2 }
 0x62d   :  { %9306 = vmatprep.mubr.f32.mxu0 %v21022_v4  ;;  %15253 = vmatpush1.bf16.msra.mxu0 %v25285_v37  ;;  %v6260_v60 = vsub.f32 %v20445_v36, %v25291_v11  ;;  %v6213_v63 = vsub.f32 %v21003_v3, %v25292_v41  ;;  %v25294_v41 = vand.u32 4294901760, %v20462_v53 }
 0x62e   :  { %14407 = vmatpush1.bf16.msra.mxu1 %v21012_v55  ;;  %15254 = vmatprep.subr.bf16.mxu0 %v24661_v24  ;;  %v25290_v55 = vand.u32 4294901760, %v20440_v58 }
 0x62f   :  { %14408 = vmatprep.subr.bf16.mxu1 %v24661_v24  ;;  %v6274_v1 = vsub.f32 %v20462_v53, %v25294_v41  ;;  %v6261_v3 = vand.u32 4294901760, %v6260_v60  ;;  %v6281_v60 = vsub.f32 %v20506_v16, %v24335_v10 }
 0x630   :  { %9308 = vmatmul.mubr.f32.gmra.mrb[38].mxu0 %v21048_v30  ;;  %v6253_v40 = vsub.f32 %v20440_v58, %v25290_v55  ;;  %v25293_v55 = vand.u32 4294901760, %v21018_v27  ;;  %v25296_v58 = vand.u32 4294901760, %v21042_v47 }
 0x631   :  { %15256 = vmatpush1.bf16.msra.mxu0 %v20032_v35  ;;  %9550 = vmatprep.mubr.f32.mxu0 %v24317_v9  ;;  %v6267_v9 = vsub.f32 %v20457_v7, %v24334_v22 }
 0x632   :  { %14410 = vmatpush1.bf16.msra.mxu1 %v21045_v51  ;;  %v6222_v11 = vsub.f32 %v21018_v27, %v25293_v55  ;;  %15257 = vmatprep.subr.bf16.mxu0 %v24661_v24  ;;  %v6254_v0 = vand.u32 4294901760, %v6253_v40  ;;  %v6214_v55 = vand.u32 4294901760, %v6213_v63  ;;  %v25295_v27 = vld [vmem:[#allocation106_spill] sm:$0xff]  ;;  %v6228_v36 = vsub.f32 %v21042_v47, %v25296_v58 }
 0x633   :  { %6195 = vmatprep.subr.mxu1 %v24770_v39  ;;  %v6268_v41 = vand.u32 4294901760, %v6267_v9  ;;  %v6275_v51 = vand.u32 4294901760, %v6274_v1  ;;  %v25297_v40 = vand.u32 4294901760, %v20511_v59  ;;  %v25298_v9 = vld [vmem:[#allocation22_spill] sm:$0xff] }
 0x634   :  { %v6223_v22 = vand.u32 4294901760, %v6222_v11  ;;  %v14415_v58 = vpack.c.bf16 %v6261_v3, %v6254_v0  ;;  %v6229_v11 = vand.u32 4294901760, %v6228_v36  ;;  %v6295_v0 = vsub.f32 %v20551_v56, %v24337_v13  ;;  %v25301_v13 = vld [vmem:[#allocation147_spill] sm:$0xff] }
 0x635   :  { %15259 = vmatpush1.bf16.msra.mxu0 %v25295_v27  ;;  %v6288_v63 = vsub.f32 %v20511_v59, %v25297_v40  ;;  %v14418_v1 = vpack.c.bf16 %v6275_v51, %v6268_v41  ;;  %v25299_v40 = vld [vmem:[#allocation82_spill] sm:$0xff]  ;;  %v6302_v36 = vsub.f32 %v20556_v2, %v24336_v23  ;;  %v24338_v3 = vand.u32 4294901760, %v20605_v33  ;;  %v25300_v51 = vld [vmem:[#allocation24_spill] sm:$0xff] }
 0x636   :  { %6197 = vmatpush1.msra.mxu1 %v21075_v62  ;;  %15260 = vmatprep.subr.bf16.mxu0 %v24661_v24  ;;  %v24342_v41 = vand.u32 4294901760, %v20646_v14 }
 0x637   :  { %6215 = vmatmul.mubr.f32.vlgmr.msra.gmra.mrb[24].mxu1 %v6214_v55  ;;  %14411 = vmatprep.subr.bf16.mxu1 %v24661_v24  ;;  %v6282_v55 = vand.u32 4294901760, %v6281_v60  ;;  %v6289_v10 = vand.u32 4294901760, %v6288_v63  ;;  %v24343_v60 = vand.u32 4294901760, %v20651_v52  ;;  %v6296_v63 = vand.u32 4294901760, %v6295_v0 }
 0x638   :  { %6224 = vmatprep.mubr.f32.mxu1 %v6223_v22  ;;  %14413 = vmatpush1.bf16.msra.mxu1 %v14412_v26  ;;  %v24339_v26 = vand.u32 4294901760, %v20600_v54  ;;  %v6316_v23 = vsub.f32 %v20605_v33, %v24338_v3  ;;  %v24346_v0 = vand.u32 4294901760, %v20699_v42 }
 0x639   :  { %14414 = vmatprep.subr.bf16.mxu1 %v24661_v24  ;;  %15262 = vmatpush1.bf16.msra.mxu0 %v25298_v9  ;;  %v14421_v22 = vpack.c.bf16 %v6289_v10, %v6282_v55  ;;  %v6323_v10 = vsub.f32 %v20646_v14, %v24342_v41  ;;  %v24347_v55 = vand.u32 4294901760, %v20694_v49 }
 0x63a   :  { %15263 = vmatprep.subr.bf16.mxu0 %v24661_v24  ;;  %v6344_v14 = vsub.f32 %v20699_v42, %v24346_v0 }
 0x63b   :  { %6230 = vmatmul.mubr.f32.gmra.mrb[26].mxu1 %v6229_v11  ;;  %v6309_v11 = vsub.f32 %v20600_v54, %v24339_v26  ;;  %v6317_v26 = vand.u32 4294901760, %v6316_v23  ;;  %v6324_v47 = vand.u32 4294901760, %v6323_v10  ;;  %v24349_v23 = vand.u32 4294901760, %v20729_v46 }
 0x63c   :  { %14416 = vmatpush1.bf16.msra.mxu1 %v14415_v58  ;;  %6445 = vmatprep.mubr.f32.mxu1 %v25299_v40  ;;  %v6303_v58 = vand.u32 4294901760, %v6302_v36  ;;  %v25302_v40 = vld [vmem:[#allocation34_spill] sm:$0xff] }
 0x63d   :  { %14417 = vmatprep.subr.bf16.mxu1 %v24661_v24  ;;  %15265 = vmatpush1.bf16.msra.mxu0 %v25300_v51  ;;  %v6310_v3 = vand.u32 4294901760, %v6309_v11  ;;  %v6351_v0 = vsub.f32 %v20729_v46, %v24349_v23 }
 0x63e   :  { %15266 = vmatprep.subr.bf16.mxu0 %v24661_v24  ;;  %v14424_v36 = vpack.c.bf16 %v6303_v58, %v6296_v63  ;;  %v24348_v63 = vand.u32 4294901760, %v20734_v48  ;;  %v25303_v58 = vld [vmem:[#allocation35_spill] sm:$0xff] }
 0x640   :  { %14419 = vmatpush1.bf16.msra.mxu1 %v14418_v1  ;;  %v6330_v1 = vsub.f32 %v20651_v52, %v24343_v60  ;;  %v6337_v60 = vsub.f32 %v20694_v49, %v24347_v55  ;;  %v25304_v55 = vld [vmem:[#allocation44_spill] sm:$0xff] }
 0x641   :  { %14420 = vmatprep.subr.bf16.mxu1 %v24661_v24  ;;  %15268 = vmatpush1.bf16.msra.mxu0 %v25301_v13 }
 0x642   :  { %15269 = vmatprep.subr.bf16.mxu0 %v24661_v24  ;;  %v6331_v41 = vand.u32 4294901760, %v6330_v1  ;;  %v6338_v10 = vand.u32 4294901760, %v6337_v60  ;;  %v6345_v1 = vand.u32 4294901760, %v6344_v14  ;;  %v6352_v60 = vand.u32 4294901760, %v6351_v0 }
 0x644   :  { %14422 = vmatpush1.bf16.msra.mxu1 %v14421_v22  ;;  %v14427_v22 = vpack.c.bf16 %v6317_v26, %v6310_v3  ;;  %v14430_v11 = vpack.c.bf16 %v6331_v41, %v6324_v47  ;;  %v6358_v26 = vsub.f32 %v20734_v48, %v24348_v63  ;;  %v24353_v3 = vand.u32 4294901760, %v20829_v34 }
 0x645   :  { %14423 = vmatprep.subr.bf16.mxu1 %v24661_v24  ;;  %15271 = vmatpush1.bf16.msra.mxu0 %v25302_v40  ;;  %v14433_v14 = vpack.c.bf16 %v6345_v1, %v6338_v10  ;;  %v24360_v47 = vand.u32 4294901760, %v20873_v61  ;;  %v24363_v41 = vand.u32 4294901760, %v20878_v29  ;;  %v25306_v10 = vld [vmem:[#allocation45_spill] sm:$0xff] }
 0x646   :  { %15272 = vmatprep.subr.bf16.mxu0 %v24661_v24  ;;  %v6365_v63 = vsub.f32 %v20829_v34, %v24353_v3 }
 0x647   :  { %v6379_v0 = vsub.f32 %v20873_v61, %v24360_v47 }
 0x648   :  { %14425 = vmatpush1.bf16.msra.mxu1 %v14424_v36  ;;  %v24352_v36 = vand.u32 4294901760, %v20834_v32 }
 0x649   :  { %14426 = vmatprep.subr.bf16.mxu1 %v24661_v24  ;;  %15274 = vmatpush1.bf16.msra.mxu0 %v25303_v58  ;;  %v6380_v47 = vand.u32 4294901760, %v6379_v0 }
 0x64a   :  { %15275 = vmatprep.subr.bf16.mxu0 %v24661_v24  ;;  %v6372_v23 = vsub.f32 %v20834_v32, %v24352_v36  ;;  %v24365_v36 = vand.u32 4294901760, %v20890_v12  ;;  %v25308_v32 = vld [vmem:[#allocation51_spill] sm:$0xff] }
 0x64b   :  { %v21173_v46 = vpop.f32.mrb[24].mxu0 }
 0x64c   :  { %14428 = vmatpush1.bf16.msra.mxu1 %v14427_v22  ;;  %v6359_v22 = vand.u32 4294901760, %v6358_v26  ;;  %25305 = vst [vmem:[#allocation195_spill] sm:$0xff] %v21173_v46  ;;  %v8352_v1 = vpop.f32.mrb[25].mxu0  ;;  %v24364_v26 = vand.u32 4294901760, %v20885_v17  ;;  %v6366_v46 = vand.u32 4294901760, %v6365_v63  ;;  %v6373_v34 = vand.u32 4294901760, %v6372_v23 }
 0x64d   :  { %14429 = vmatprep.subr.bf16.mxu1 %v24661_v24  ;;  %15277 = vmatpush1.bf16.msra.mxu0 %v25304_v55  ;;  %v6400_v63 = vsub.f32 %v20890_v12, %v24365_v36  ;;  %v24374_v36 = vand.u32 4294901760, %v20954_v44 }
 0x64e   :  { %15278 = vmatprep.subr.bf16.mxu0 %v24661_v24  ;;  %v14436_v3 = vpack.c.bf16 %v6359_v22, %v6352_v60  ;;  %v14439_v23 = vpack.c.bf16 %v6373_v34, %v6366_v46  ;;  %v24366_v60 = vand.u32 4294901760, %v20927_v8  ;;  %v24375_v34 = vand.u32 4294901760, %v20951_v57 }
 0x64f   :  { %v21186_v1 = vpop.f32.mrb[26].mxu0 }
 0x650   :  { %14431 = vmatpush1.bf16.msra.mxu1 %v14430_v11  ;;  %v6386_v11 = vsub.f32 %v20878_v29, %v24363_v41  ;;  %25307 = vst [vmem:[#allocation196_spill] sm:$0xff] %v21186_v1  ;;  %v8359_v48 = vpop.f32.mrb[27].mxu0  ;;  %v6393_v41 = vsub.f32 %v20885_v17, %v24364_v26  ;;  %v6414_v46 = vsub.f32 %v20927_v8, %v24366_v60 }
 0x651   :  { %14432 = vmatprep.subr.bf16.mxu1 %v24661_v24  ;;  %15280 = vmatpush1.bf16.msra.mxu0 %v25306_v10  ;;  %v25309_v48 = vld [vmem:[#allocation65_spill] sm:$0xff] }
 0x652   :  { %15281 = vmatprep.subr.bf16.mxu0 %v24661_v24  ;;  %v6387_v61 = vand.u32 4294901760, %v6386_v11  ;;  %v6394_v0 = vand.u32 4294901760, %v6393_v41  ;;  %v6401_v11 = vand.u32 4294901760, %v6400_v63  ;;  %v21217_v41 = vsub.f32 %v25280_v31, %v21015_v45 }
 0x653   :  { %v21221_v63 = vsub.f32 %v21055_v21, %v21075_v62  ;;  %v25312_v21 = vld [vmem:[#allocation94_spill] sm:$0xff] }
 0x654   :  { %14434 = vmatpush1.bf16.msra.mxu1 %v14433_v14  ;;  %v24367_v14 = vand.u32 4294901760, %v20922_v38  ;;  %v14442_v22 = vpack.c.bf16 %v6387_v61, %v6380_v47  ;;  %v25310_v47 = vld [vmem:[#allocation83_spill] sm:$0xff]  ;;  %25311 = vst [vmem:[#allocation197_spill] sm:$0xff] %v21217_v41 }
 0x655   :  { %14435 = vmatprep.subr.bf16.mxu1 %v24661_v24  ;;  %15283 = vmatpush1.bf16.msra.mxu0 %v25308_v32 }
 0x656   :  { %15284 = vmatprep.subr.bf16.mxu0 %v24661_v24 }
 0x658   :  { %14437 = vmatpush1.bf16.msra.mxu1 %v14436_v3  ;;  %v6407_v3 = vsub.f32 %v20922_v38, %v24367_v14  ;;  %v6428_v14 = vsub.f32 %v20954_v44, %v24374_v36  ;;  %v25334_v36 = vld [vmem:[#allocation125_spill] sm:$0xff] }
 0x659   :  { %14438 = vmatprep.subr.bf16.mxu1 %v24661_v24  ;;  %15286 = vmatpush1.bf16.msra.mxu0 %v25309_v48 }
 0x65a   :  { %15287 = vmatprep.subr.bf16.mxu0 %v24661_v24  ;;  %v5781_v26 = vpop.f32.mrb[12].mxu1 }
 0x65b   :  { %v21210_v1 = vadd.f32 %v5781_v26, %v20968_v6  ;;  %v5783_v61 = vpop.f32.mrb[13].mxu1  ;;  %v6408_v6 = vand.u32 4294901760, %v6407_v3  ;;  %v6415_v26 = vand.u32 4294901760, %v6414_v46  ;;  %v24373_v3 = vand.u32 4294901760, %v21221_v63  ;;  %v25315_v46 = vld [vmem:[#allocation189_spill] sm:$0xff] }
 0x65c   :  { %14440 = vmatpush1.bf16.msra.mxu1 %v14439_v23  ;;  %v14445_v23 = vpack.c.bf16 %v6401_v11, %v6394_v0  ;;  %v6421_v61 = vsub.f32 %v20951_v57, %v24375_v34  ;;  %v24372_v0 = vand.u32 4294901760, %v21217_v41  ;;  %v21242_v11 = vsub.f32 %v25288_v50, %v21048_v30 }
 0x65d   :  { %14441 = vmatprep.subr.bf16.mxu1 %v24661_v24  ;;  %15289 = vmatpush1.bf16.msra.mxu0 %v25310_v47 }
 0x65e   :  { %15290 = vmatprep.subr.bf16.mxu0 %v24661_v24  ;;  %v5792_v60 = vpop.f32.mrb[14].mxu1  ;;  %25314 = vst [vmem:[#allocation199_spill] sm:$0xff] %v21242_v11 }
 0x65f   :  { %v21230_v31 = vadd.f32 %v5792_v60, %v20992_v15  ;;  %v5794_v38 = vpop.f32.mrb[15].mxu1  ;;  %v14448_v15 = vpack.c.bf16 %v6415_v26, %v6408_v6  ;;  %v6422_v60 = vand.u32 4294901760, %v6421_v61  ;;  %v25316_v26 = vpack.c.bf16 %v20401_v19, %v20381_v25  ;;  %v25317_v61 = vld [vmem:[#allocation117_spill] sm:$0xff] }
 0x660   :  { %14443 = vmatpush1.bf16.msra.mxu1 %v14442_v22  ;;  %v21236_v22 = vsub.f32 %v20998_v43, %v21022_v4  ;;  %v6429_v38 = vand.u32 4294901760, %v6428_v14  ;;  %v24370_v14 = vand.u32 4294901760, %v21242_v11 }
 0x661   :  { %14444 = vmatprep.subr.bf16.mxu1 %v24661_v24  ;;  %15292 = vmatpush1.bf16.msra.mxu0 %v25312_v21 }
 0x662   :  { %25313 = vst [vmem:[#allocation198_spill] sm:$0xff] %v21236_v22  ;;  %9538 = vmatprep.subr.mxu0 %v24770_v39  ;;  %v24371_v43 = vand.u32 4294901760, %v21236_v22  ;;  %v14451_v50 = vpack.c.bf16 %v6429_v38, %v6422_v60  ;;  %v25320_v38 = vld [vmem:[#allocation95_spill] sm:$0xff] }
 0x664   :  { %14446 = vmatpush1.bf16.msra.mxu1 %v14445_v23  ;;  %v6435_v23 = vsub.f32 %v21221_v63, %v24373_v3 }
 0x665   :  { %14447 = vmatprep.subr.bf16.mxu1 %v24661_v24  ;;  %9540 = vmatpush1.msra.mxu0 %v25315_v46 }
 0x666   :  { %9554 = vmatmul.mubr.f32.vlgmr.msra.gmra.mrb[40].mxu0 %v24372_v0  ;;  %15335 = vmatprep.subr.bf16.mxu0 %v24661_v24  ;;  %v6436_v6 = vand.u32 4294901760, %v6435_v23  ;;  %v25322_v23 = vpack.c.bf16 %v20511_v59, %v20506_v16  ;;  %v25331_v0 = vld [vmem:[#allocation183_spill] sm:$0xff] }
 0x667   :  { %9561 = vmatprep.mubr.f32.mxu0 %v24371_v43  ;;  %15337 = vmatpush1.bf16.msra.mxu0 %v25285_v37  ;;  %v25330_v43 = vld [vmem:[#allocation184_spill] sm:$0xff] }
 0x668   :  { %14449 = vmatpush1.bf16.msra.mxu1 %v14448_v15  ;;  %15338 = vmatprep.subr.bf16.mxu0 %v24661_v24  ;;  %v25318_v15 = vld [vmem:[#allocation114_spill] sm:$0xff]  ;;  %v25332_v3 = vpack.c.bf16 %v25330_v43, %v25331_v0 }
 0x669   :  { %14450 = vmatprep.subr.bf16.mxu1 %v24661_v24  ;;  %v25319_v60 = vpack.c.bf16 %v25317_v61, %v25318_v15 }
 0x66a   :  { %9565 = vmatmul.mubr.f32.gmra.mrb[42].mxu0 %v24370_v14 }
 0x66b   :  { %15340 = vmatpush1.bf16.msra.mxu0 %v20032_v35  ;;  %9830 = vmatprep.mubr.f32.mxu0 %v20357_v18 }
 0x66c   :  { %14452 = vmatpush1.bf16.msra.mxu1 %v14451_v50  ;;  %15341 = vmatprep.subr.bf16.mxu0 %v24661_v24  ;;  %v25321_v50 = vpack.c.bf16 %v20462_v53, %v20457_v7 }
 0x66d   :  { %6431 = vmatprep.subr.mxu1 %v24770_v39 }
 0x66f   :  { %15343 = vmatpush1.bf16.msra.mxu0 %v25295_v27 }
 0x670   :  { %6437 = vmatpush1.msra.mxu1 %v6436_v6  ;;  %15344 = vmatprep.subr.bf16.mxu0 %v24661_v24  ;;  %v25323_v6 = vpack.c.bf16 %v20556_v2, %v20551_v56 }
 0x671   :  { %6447 = vmatmul.mubr.f32.vlgmr.msra.gmra.mrb[28].mxu1 %v20978_v20  ;;  %14453 = vmatprep.subr.bf16.mxu1 %v24661_v24 }
 0x672   :  { %6452 = vmatprep.mubr.f32.mxu1 %v20987_v28  ;;  %14455 = vmatpush1.bf16.msra.mxu1 %v25316_v26  ;;  %v25324_v26 = vpack.c.bf16 %v20605_v33, %v20600_v54 }
 0x673   :  { %14456 = vmatprep.subr.bf16.mxu1 %v24661_v24  ;;  %15346 = vmatpush1.bf16.msra.mxu0 %v25298_v9  ;;  %v25367_v9 = vand.u32 4294901760, %v25317_v61 }
 0x674   :  { %15347 = vmatprep.subr.bf16.mxu0 %v24661_v24 }
 0x675   :  { %6454 = vmatmul.mubr.f32.gmra.mrb[30].mxu1 %v21005_v5 }
 0x676   :  { %14458 = vmatpush1.bf16.msra.mxu1 %v25319_v60  ;;  %6583 = vmatprep.mubr.f32.mxu1 %v25320_v38  ;;  %v25325_v60 = vld [vmem:[#allocation179_spill] sm:$0xff] }
 0x677   :  { %14459 = vmatprep.subr.bf16.mxu1 %v24661_v24  ;;  %15349 = vmatpush1.bf16.msra.mxu0 %v25300_v51  ;;  %v25361_v51 = vld [vmem:[#allocation194_spill] sm:$0xff] }
 0x678   :  { %15350 = vmatprep.subr.bf16.mxu0 %v24661_v24 }
 0x67a   :  { %14461 = vmatpush1.bf16.msra.mxu1 %v25321_v50  ;;  %v25326_v50 = vpack.c.bf16 %v20651_v52, %v25325_v60 }
 0x67b   :  { %14462 = vmatprep.subr.bf16.mxu1 %v24661_v24  ;;  %15352 = vmatpush1.bf16.msra.mxu0 %v25301_v13 }
 0x67c   :  { %15353 = vmatprep.subr.bf16.mxu0 %v24661_v24 }
 0x67e   :  { %14464 = vmatpush1.bf16.msra.mxu1 %v25322_v23 }
 0x67f   :  { %14465 = vmatprep.subr.bf16.mxu1 %v24661_v24  ;;  %15355 = vmatpush1.bf16.msra.mxu0 %v25302_v40 }
 0x680   :  { %15356 = vmatprep.subr.bf16.mxu0 %v24661_v24 }
 0x682   :  { %14467 = vmatpush1.bf16.msra.mxu1 %v25323_v6 }
 0x683   :  { %14468 = vmatprep.subr.bf16.mxu1 %v24661_v24  ;;  %15358 = vmatpush1.bf16.msra.mxu0 %v25303_v58 }
 0x684   :  { %15359 = vmatprep.subr.bf16.mxu0 %v24661_v24 }
 0x685   :  { %v21313_v23 = vpop.f32.mrb[28].mxu0 }
 0x686   :  { %14470 = vmatpush1.bf16.msra.mxu1 %v25324_v26  ;;  %25327 = vst [vmem:[#allocation117_spill] sm:$0xff] %v21313_v23  ;;  %v8605_v6 = vpop.f32.mrb[29].mxu0  ;;  %v25328_v26 = vpack.c.bf16 %v20699_v42, %v20694_v49  ;;  %v25336_v23 = vld [vmem:[#allocation191_spill] sm:$0xff] }
 0x687   :  { %14471 = vmatprep.subr.bf16.mxu1 %v24661_v24  ;;  %15361 = vmatpush1.bf16.msra.mxu0 %v25304_v55  ;;  %v25337_v18 = vpack.c.bf16 %v20878_v29, %v25336_v23 }
 0x688   :  { %15362 = vmatprep.subr.bf16.mxu0 %v24661_v24 }
 0x689   :  { %v21321_v14 = vpop.f32.mrb[30].mxu0 }
 0x68a   :  { %14473 = vmatpush1.bf16.msra.mxu1 %v25326_v50  ;;  %25329 = vst [vmem:[#allocation114_spill] sm:$0xff] %v21321_v14  ;;  %v8616_v50 = vpop.f32.mrb[31].mxu0 }
 0x68b   :  { %14474 = vmatprep.subr.bf16.mxu1 %v24661_v24  ;;  %15364 = vmatpush1.bf16.msra.mxu0 %v25306_v10  ;;  %v25357_v10 = vld [vmem:[#allocation140_spill] sm:$0xff] }
 0x68c   :  { %15365 = vmatprep.subr.bf16.mxu0 %v24661_v24 }
 0x68e   :  { %14476 = vmatpush1.bf16.msra.mxu1 %v25328_v26  ;;  %v25333_v26 = vld [vmem:[#allocation132_spill] sm:$0xff] }
 0x68f   :  { %14477 = vmatprep.subr.bf16.mxu1 %v24661_v24  ;;  %15367 = vmatpush1.bf16.msra.mxu0 %v25308_v32  ;;  %v25335_v34 = vpack.c.bf16 %v25333_v26, %v25334_v36 }
 0x690   :  { %15368 = vmatprep.subr.bf16.mxu0 %v24661_v24 }
 0x692   :  { %14479 = vmatpush1.bf16.msra.mxu1 %v25332_v3 }
 0x693   :  { %14480 = vmatprep.subr.bf16.mxu1 %v24661_v24  ;;  %15370 = vmatpush1.bf16.msra.mxu0 %v25309_v48  ;;  %v25356_v48 = vld [vmem:[#allocation190_spill] sm:$0xff] }
 0x694   :  { %15371 = vmatprep.subr.bf16.mxu0 %v24661_v24  ;;  %v5951_v6 = vpop.f32.mrb[16].mxu1 }
 0x695   :  { %v5952_v14 = vadd.f32 %v5951_v6, %v21210_v1  ;;  %v5953_v50 = vpop.f32.mrb[17].mxu1  ;;  %v25338_v1 = vpack.c.bf16 %v20890_v12, %v20885_v17  ;;  %v25343_v6 = vld [vmem:[#allocation113_spill] sm:$0xff] }
 0x696   :  { %14482 = vmatpush1.bf16.msra.mxu1 %v25335_v34  ;;  %v25344_v50 = vld [vmem:[#allocation123_spill] sm:$0xff] }
 0x697   :  { %14483 = vmatprep.subr.bf16.mxu1 %v24661_v24  ;;  %15373 = vmatpush1.bf16.msra.mxu0 %v25310_v47 }
 0x698   :  { %15374 = vmatprep.subr.bf16.mxu0 %v24661_v24  ;;  %v5958_v3 = vpop.f32.mrb[18].mxu1 }
 0x699   :  { %v5959_v11 = vadd.f32 %v5958_v3, %v21230_v31  ;;  %v5960_v22 = vpop.f32.mrb[19].mxu1  ;;  %v25341_v31 = vpack.c.bf16 %v20954_v44, %v20951_v57  ;;  %v25345_v3 = vld [vmem:[#allocation16_spill] sm:$0xff] }
 0x69a   :  { %14485 = vmatpush1.bf16.msra.mxu1 %v25337_v18  ;;  %v25339_v18 = vld [vmem:[#allocation122_spill] sm:$0xff]  ;;  %v25342_v22 = vld [vmem:[#allocation124_spill] sm:$0xff] }
 0x69b   :  { %14486 = vmatprep.subr.bf16.mxu1 %v24661_v24  ;;  %15376 = vmatpush1.bf16.msra.mxu0 %v25312_v21  ;;  %v25340_v34 = vpack.c.bf16 %v20927_v8, %v25339_v18  ;;  %v25354_v21 = vld [vmem:[#allocation187_spill] sm:$0xff] }
 0x69c   :  { %9820 = vmatprep.subr.mxu0 %v24770_v39 }
 0x69e   :  { %14488 = vmatpush1.bf16.msra.mxu1 %v25338_v1  ;;  %v25346_v1 = vld [vmem:[#allocation109_spill] sm:$0xff] }
 0x69f   :  { %14489 = vmatprep.subr.bf16.mxu1 %v24661_v24  ;;  %9822 = vmatpush1.msra.mxu0 %v25315_v46 }
 0x6a0   :  { %9832 = vmatmul.mubr.f32.vlgmr.msra.gmra.mrb[44].mxu0 %v21015_v45  ;;  %15401 = vmatprep.subr.bf16.mxu0 %v24661_v24  ;;  %v25351_v45 = vld [vmem:[#allocation118_spill] sm:$0xff] }
 0x6a1   :  { %9837 = vmatprep.mubr.f32.mxu0 %v21022_v4  ;;  %v25350_v4 = vld [vmem:[#allocation180_spill] sm:$0xff] }
 0x6a2   :  { %14491 = vmatpush1.bf16.msra.mxu1 %v25340_v34  ;;  %v25347_v34 = vand.u32 4294901760, %v25320_v38  ;;  %v25352_v38 = vld [vmem:[#allocation186_spill] sm:$0xff] }
 0x6a3   :  { %14492 = vmatprep.subr.bf16.mxu1 %v24661_v24 }
 0x6a4   :  { %9839 = vmatmul.mubr.f32.gmra.mrb[46].mxu0 %v21048_v30  ;;  %v25349_v30 = vld [vmem:[#allocation178_spill] sm:$0xff] }
 0x6a5   :  { %13104 = vmatprep.mubr.msk.f32.mxu0 %vm16402_vm0, %v24770_v39 }
 0x6a6   :  { %14494 = vmatpush1.bf16.msra.mxu1 %v25341_v31  ;;  %v25348_v31 = vld [vmem:[#allocation175_spill] sm:$0xff] }
 0x6a7   :  { %6571 = vmatprep.subr.mxu1 %v24770_v39 }
 0x6aa   :  { %6574 = vmatpush1.msra.mxu1 %v21221_v63 }
 0x6ab   :  { %6586 = vmatmul.mubr.f32.vlgmr.msra.gmra.mrb[32].mxu1 %v25342_v22  ;;  %14495 = vmatprep.subr.bf16.mxu1 %v24661_v24 }
 0x6ac   :  { %6592 = vmatprep.mubr.f32.mxu1 %v25343_v6  ;;  %14497 = vmatpush1.bf16.msra.mxu1 %v25344_v50 }
 0x6ad   :  { %14498 = vmatprep.subr.bf16.mxu1 %v24661_v24 }
 0x6af   :  { %6595 = vmatmul.mubr.f32.gmra.mrb[34].mxu1 %v25345_v3 }
 0x6b0   :  { %14500 = vmatpush1.bf16.msra.mxu1 %v25346_v1  ;;  %6696 = vmatprep.mubr.f32.mxu1 %v25347_v34 }
 0x6b1   :  { %14501 = vmatprep.subr.bf16.mxu1 %v24661_v24 }
 0x6b4   :  { %14503 = vmatpush1.bf16.msra.mxu1 %v25348_v31 }
 0x6b5   :  { %14504 = vmatprep.subr.bf16.mxu1 %v24661_v24 }
 0x6b8   :  { %14506 = vmatpush1.bf16.msra.mxu1 %v25349_v30 }
 0x6b9   :  { %14507 = vmatprep.subr.bf16.mxu1 %v24661_v24 }
 0x6bc   :  { %14509 = vmatpush1.bf16.msra.mxu1 %v25350_v4 }
 0x6bd   :  { %14510 = vmatprep.subr.bf16.mxu1 %v24661_v24 }
 0x6bf   :  { %v21383_v34 = vpop.f32.mrb[32].mxu0 }
 0x6c0   :  { %14512 = vmatpush1.bf16.msra.mxu1 %v25351_v45  ;;  %25353 = vst [vmem:[#allocation95_spill] sm:$0xff] %v21383_v34  ;;  %v8883_v46 = vpop.f32.mrb[33].mxu0 }
 0x6c1   :  { %14513 = vmatprep.subr.bf16.mxu1 %v24661_v24  ;;  %v25358_v46 = vld [vmem:[#allocation135_spill] sm:$0xff] }
 0x6c3   :  { %v21387_v41 = vpop.f32.mrb[34].mxu0 }
 0x6c4   :  { %14515 = vmatpush1.bf16.msra.mxu1 %v25352_v38  ;;  %25355 = vst [vmem:[#allocation179_spill] sm:$0xff] %v21387_v41  ;;  %v8890_v47 = vpop.f32.mrb[35].mxu0  ;;  %v25359_v41 = vld [vmem:[#allocation142_spill] sm:$0xff] }
 0x6c5   :  { %14516 = vmatprep.subr.bf16.mxu1 %v24661_v24  ;;  %v25360_v47 = vld [vmem:[#allocation139_spill] sm:$0xff] }
 0x6c8   :  { %14518 = vmatpush1.bf16.msra.mxu1 %v25354_v21 }
 0x6c9   :  { %14519 = vmatprep.subr.bf16.mxu1 %v24661_v24 }
 0x6cc   :  { %14521 = vmatpush1.bf16.msra.mxu1 %v25356_v48 }
 0x6cd   :  { %14522 = vmatprep.subr.bf16.mxu1 %v24661_v24 }
 0x6ce   :  { %v6059_v32 = vpop.f32.mrb[20].mxu1 }
 0x6cf   :  { %v6060_v55 = vadd.f32 %v6059_v32, %v5952_v14  ;;  %v6061_v58 = vpop.f32.mrb[21].mxu1  ;;  %v25362_v32 = vand.u32 4294901760, %v20381_v25  ;;  %v25365_v14 = vand.u32 4294901760, %v25343_v6  ;;  %v25369_v25 = vld [vmem:[#allocation82_spill] sm:$0xff] }
 0x6d0   :  { %14524 = vmatpush1.bf16.msra.mxu1 %v25357_v10  ;;  %v25363_v58 = vand.u32 4294901760, %v20401_v19  ;;  %v25368_v19 = vand.u32 4294901760, %v25345_v3  ;;  %v25375_v3 = vand.u32 4294901760, %v20556_v2  ;;  %v25381_v2 = vand.u32 4294901760, %v20699_v42 }
 0x6d1   :  { %14525 = vmatprep.subr.bf16.mxu1 %v24661_v24  ;;  %v25385_v42 = vand.u32 4294901760, %v25333_v26  ;;  %v25389_v26 = vand.u32 4294901760, %v20890_v12  ;;  %v25394_v12 = vand.u32 4294901760, %v21221_v63 }
 0x6d2   :  { %v6066_v34 = vpop.f32.mrb[22].mxu1 }
 0x6d3   :  { %v6067_v40 = vadd.f32 %v6066_v34, %v5959_v11  ;;  %v6068_v13 = vpop.f32.mrb[23].mxu1  ;;  %v14538_v11 = vpack.c.bf16 %v25363_v58, %v25362_v32  ;;  %v25366_v34 = vand.u32 4294901760, %v25318_v15  ;;  %v25371_v32 = vand.u32 4294901760, %v20462_v53 }
 0x6d4   :  { %14527 = vmatpush1.bf16.msra.mxu1 %v25358_v46  ;;  %v25364_v13 = vand.u32 4294901760, %v25342_v22  ;;  %v25370_v22 = vand.u32 4294901760, %v20457_v7  ;;  %v25372_v15 = vand.u32 4294901760, %v20506_v16  ;;  %v25376_v53 = vand.u32 4294901760, %v20600_v54 }
 0x6d5   :  { %14528 = vmatprep.subr.bf16.mxu1 %v24661_v24  ;;  %v14541_v27 = vpack.c.bf16 %v25367_v9, %v25366_v34  ;;  %v25373_v9 = vand.u32 4294901760, %v20511_v59  ;;  %v25377_v7 = vand.u32 4294901760, %v20605_v33  ;;  %v25378_v16 = vand.u32 4294901760, %v25325_v60 }
 0x6d6   :  { %v14544_v6 = vpack.c.bf16 %v25371_v32, %v25370_v22  ;;  %v25379_v59 = vand.u32 4294901760, %v20651_v52  ;;  %v25382_v34 = vand.u32 4294901760, %v25331_v0  ;;  %v25383_v60 = vand.u32 4294901760, %v25330_v43 }
 0x6d7   :  { %v14547_v61 = vpack.c.bf16 %v25373_v9, %v25372_v15  ;;  %v25386_v0 = vand.u32 4294901760, %v25336_v23  ;;  %v25387_v43 = vand.u32 4294901760, %v20878_v29  ;;  %v25390_v23 = vand.u32 4294901760, %v25339_v18 }
 0x6d8   :  { %14530 = vmatpush1.bf16.msra.mxu1 %v25359_v41  ;;  %v14562_v52 = vpack.c.bf16 %v25383_v60, %v25382_v34  ;;  %v25391_v29 = vand.u32 4294901760, %v20927_v8  ;;  %v25407_v34 = vld [vmem:[#allocation53_spill] sm:$0xff] }
 0x6d9   :  { %14531 = vmatprep.subr.bf16.mxu1 %v24661_v24  ;;  %v14568_v15 = vpack.c.bf16 %v25387_v43, %v25386_v0  ;;  %v25412_v0 = vld [vmem:[#allocation61_spill] sm:$0xff]  ;;  %v25413_v43 = vld [vmem:[#allocation68_spill] sm:$0xff] }
 0x6dc   :  { %14533 = vmatpush1.bf16.msra.mxu1 %v25360_v47 }
 0x6dd   :  { %14534 = vmatprep.subr.bf16.mxu1 %v24661_v24 }
 0x6e0   :  { %14536 = vmatpush1.bf16.msra.mxu1 %v25361_v51 }
 0x6e1   :  { %6684 = vmatprep.subr.mxu1 %v24770_v39 }
 0x6e4   :  { %6686 = vmatpush1.msra.mxu1 %v21075_v62 }
 0x6e5   :  { %6700 = vmatmul.mubr.f32.vlgmr.msra.gmra.mrb[36].mxu1 %v25364_v13  ;;  %14537 = vmatprep.subr.bf16.mxu1 %v24661_v24  ;;  %v14556_v13 = vpack.c.bf16 %v25379_v59, %v25378_v16  ;;  %v25405_v59 = vld [vmem:[#allocation46_spill] sm:$0xff] }
 0x6e6   :  { %6707 = vmatprep.mubr.f32.mxu1 %v25365_v14  ;;  %14539 = vmatpush1.bf16.msra.mxu1 %v14538_v11  ;;  %v14553_v11 = vpack.c.bf16 %v25377_v7, %v25376_v53  ;;  %v25392_v7 = vand.u32 4294901760, %v20951_v57 }
 0x6e7   :  { %14540 = vmatprep.subr.bf16.mxu1 %v24661_v24 }
 0x6e9   :  { %6711 = vmatmul.mubr.f32.gmra.mrb[38].mxu1 %v25368_v19 }
 0x6ea   :  { %14542 = vmatpush1.bf16.msra.mxu1 %v14541_v27  ;;  %6868 = vmatprep.mubr.f32.mxu1 %v25369_v25  ;;  %v25374_v27 = vand.u32 4294901760, %v20551_v56  ;;  %v25380_v56 = vand.u32 4294901760, %v20694_v49  ;;  %v25384_v49 = vand.u32 4294901760, %v25334_v36  ;;  %v25388_v36 = vand.u32 4294901760, %v20885_v17 }
 0x6eb   :  { %14543 = vmatprep.subr.bf16.mxu1 %v24661_v24  ;;  %v25393_v17 = vand.u32 4294901760, %v20954_v44 }
 0x6ec   :  { %v14550_v58 = vpack.c.bf16 %v25375_v3, %v25374_v27  ;;  %v14559_v14 = vpack.c.bf16 %v25381_v2, %v25380_v56  ;;  %v14565_v32 = vpack.c.bf16 %v25385_v42, %v25384_v49  ;;  %v14571_v3 = vpack.c.bf16 %v25389_v26, %v25388_v36  ;;  %v25406_v56 = vld [vmem:[#allocation47_spill] sm:$0xff]  ;;  %v25409_v49 = vld [vmem:[#allocation60_spill] sm:$0xff] }
 0x6ed   :  { %v25410_v42 = vld [vmem:[#allocation67_spill] sm:$0xff] }
 0x6ee   :  { %14545 = vmatpush1.bf16.msra.mxu1 %v14544_v6 }
 0x6ef   :  { %14546 = vmatprep.subr.bf16.mxu1 %v24661_v24 }
 0x6f2   :  { %14548 = vmatpush1.bf16.msra.mxu1 %v14547_v61 }
 0x6f3   :  { %14549 = vmatprep.subr.bf16.mxu1 %v24661_v24 }
 0x6f6   :  { %14551 = vmatpush1.bf16.msra.mxu1 %v14550_v58 }
 0x6f7   :  { %14552 = vmatprep.subr.bf16.mxu1 %v24661_v24 }
 0x6fa   :  { %14554 = vmatpush1.bf16.msra.mxu1 %v14553_v11  ;;  %v14577_v11 = vpack.c.bf16 %v25393_v17, %v25392_v7  ;;  %v25421_v7 = vld [vmem:[#allocation14_spill] sm:$0xff] }
 0x6fb   :  { %14555 = vmatprep.subr.bf16.mxu1 %v24661_v24 }
 0x6fe   :  { %14557 = vmatpush1.bf16.msra.mxu1 %v14556_v13 }
 0x6ff   :  { %14558 = vmatprep.subr.bf16.mxu1 %v24661_v24  ;;  %v21449_v54 = vpop.f32.mrb[36].mxu0 }
 0x700   :  { %v9304_v33 = vpop.f32.mrb[37].mxu0 }
 0x702   :  { %14560 = vmatpush1.bf16.msra.mxu1 %v14559_v14 }
 0x703   :  { %14561 = vmatprep.subr.bf16.mxu1 %v24661_v24  ;;  %v21456_v19 = vpop.f32.mrb[38].mxu0 }
 0x704   :  { %v9311_v22 = vpop.f32.mrb[39].mxu0 }
 0x705   :  { %v25408_v22 = vld [vmem:[#allocation54_spill] sm:$0xff] }
 0x706   :  { %14563 = vmatpush1.bf16.msra.mxu1 %v14562_v52 }
 0x707   :  { %14564 = vmatprep.subr.bf16.mxu1 %v24661_v24 }
 0x70a   :  { %v6216_v6 = vpop.f32.mrb[24].mxu1  ;;  %14566 = vmatpush1.bf16.msra.mxu1 %v14565_v32  ;;  %v25411_v32 = vand.u32 4294901760, %v25410_v42 }
 0x70b   :  { %v6217_v9 = vadd.f32 %v6216_v6, %v6060_v55  ;;  %v6218_v61 = vpop.f32.mrb[25].mxu1  ;;  %14567 = vmatprep.subr.bf16.mxu1 %v24661_v24  ;;  %v14574_v55 = vpack.c.bf16 %v25391_v29, %v25390_v23  ;;  %v25419_v23 = vld [vmem:[#allocation88_spill] sm:$0xff] }
 0x70c   :  { %v7163_v6 = vsub.f32 %v25410_v42, %v25411_v32  ;;  %v25415_v61 = vld [vmem:[#allocation11_spill] sm:$0xff]  ;;  %v25441_v32 = vld [vmem:[#allocation74_spill] sm:$0xff] }
 0x70e   :  { %v6231_v27 = vpop.f32.mrb[26].mxu1  ;;  %14569 = vmatpush1.bf16.msra.mxu1 %v14568_v15  ;;  %v25414_v15 = vand.u32 4294901760, %v25413_v43  ;;  %v7164_v26 = vand.u32 4294901760, %v7163_v6 }
 0x70f   :  { %v6232_v58 = vadd.f32 %v6231_v27, %v6067_v40  ;;  %v6233_v53 = vpop.f32.mrb[27].mxu1  ;;  %14570 = vmatprep.subr.bf16.mxu1 %v24661_v24  ;;  %v25416_v27 = vld [vmem:[#allocation12_spill] sm:$0xff] }
 0x710   :  { %v14706_v36 = vpack.c.bf16 %v25416_v27, %v25415_v61 }
 0x712   :  { %14572 = vmatpush1.bf16.msra.mxu1 %v14571_v3  ;;  %v25417_v3 = vld [vmem:[#allocation72_spill] sm:$0xff] }
 0x713   :  { %14573 = vmatprep.subr.bf16.mxu1 %v24661_v24 }
 0x716   :  { %14575 = vmatpush1.bf16.msra.mxu1 %v14574_v55  ;;  %v25420_v55 = vld [vmem:[#allocation13_spill] sm:$0xff] }
 0x717   :  { %14576 = vmatprep.subr.bf16.mxu1 %v24661_v24  ;;  %v14709_v17 = vpack.c.bf16 %v25421_v7, %v25420_v55 }
 0x71a   :  { %14578 = vmatpush1.bf16.msra.mxu1 %v14577_v11 }
 0x71b   :  { %6856 = vmatprep.subr.mxu1 %v24770_v39 }
 0x71e   :  { %6860 = vmatpush1.msra.mxu1 %v25394_v12  ;;  %v25422_v12 = vld [vmem:[#allocation18_spill] sm:$0xff] }
 0x71f   :  { %6870 = vmatmul.mubr.f32.vlgmr.msra.gmra.mrb[40].mxu1 %v20978_v20  ;;  %14579 = vmatprep.subr.bf16.mxu1 %v24661_v24 }
 0x720   :  { %6875 = vmatprep.mubr.f32.mxu1 %v20987_v28  ;;  %14581 = vmatpush1.bf16.msra.mxu1 %v25344_v50 }
 0x721   :  { %14582 = vmatprep.subr.bf16.mxu1 %v24661_v24 }
 0x723   :  { %6877 = vmatmul.mubr.f32.gmra.mrb[42].mxu1 %v21005_v5 }
 0x724   :  { %14584 = vmatpush1.bf16.msra.mxu1 %v25346_v1  ;;  %6976 = vmatprep.mubr.f32.mxu1 %v25369_v25 }
 0x725   :  { %14585 = vmatprep.subr.bf16.mxu1 %v24661_v24 }
 0x728   :  { %14587 = vmatpush1.bf16.msra.mxu1 %v25348_v31  ;;  %v25402_v31 = vld [vmem:[#allocation28_spill] sm:$0xff] }
 0x729   :  { %14588 = vmatprep.subr.bf16.mxu1 %v24661_v24 }
 0x72c   :  { %14590 = vmatpush1.bf16.msra.mxu1 %v25349_v30 }
 0x72d   :  { %14591 = vmatprep.subr.bf16.mxu1 %v24661_v24 }
 0x730   :  { %14593 = vmatpush1.bf16.msra.mxu1 %v25350_v4 }
 0x731   :  { %14594 = vmatprep.subr.bf16.mxu1 %v24661_v24 }
 0x734   :  { %14596 = vmatpush1.bf16.msra.mxu1 %v25351_v45 }
 0x735   :  { %14597 = vmatprep.subr.bf16.mxu1 %v24661_v24 }
 0x738   :  { %14599 = vmatpush1.bf16.msra.mxu1 %v25352_v38 }
 0x739   :  { %14600 = vmatprep.subr.bf16.mxu1 %v24661_v24  ;;  %v21505_v8 = vpop.f32.mrb[40].mxu0 }
 0x73a   :  { %v9557_v57 = vpop.f32.mrb[41].mxu0 }
 0x73b   :  { %v25423_v57 = vld [vmem:[#allocation19_spill] sm:$0xff] }
 0x73c   :  { %14602 = vmatpush1.bf16.msra.mxu1 %v25354_v21 }
 0x73d   :  { %14603 = vmatprep.subr.bf16.mxu1 %v24661_v24  ;;  %v21509_v30 = vpop.f32.mrb[42].mxu0 }
 0x73e   :  { %v9568_v44 = vpop.f32.mrb[43].mxu0 }
 0x73f   :  { %v14712_v44 = vpack.c.bf16 %v25423_v57, %v25422_v12 }
 0x740   :  { %14605 = vmatpush1.bf16.msra.mxu1 %v25356_v48 }
 0x741   :  { %14606 = vmatprep.subr.bf16.mxu1 %v24661_v24 }
 0x744   :  { %v6448_v45 = vpop.f32.mrb[28].mxu1  ;;  %14608 = vmatpush1.bf16.msra.mxu1 %v25357_v10  ;;  %v25395_v10 = vld [vmem:[#allocation151_spill] sm:$0xff] }
 0x745   :  { %v6449_v4 = vadd.f32 %v6448_v45, %v6217_v9  ;;  %v6450_v40 = vpop.f32.mrb[29].mxu1  ;;  %14609 = vmatprep.subr.bf16.mxu1 %v24661_v24  ;;  %v25396_v48 = vand.u32 4294901760, %v25395_v10  ;;  %v7172_v9 = vsub.f32 %v25413_v43, %v25414_v15  ;;  %v25424_v45 = vld [vmem:[#allocation25_spill] sm:$0xff] }
 0x747   :  { %v7157_v50 = vsub.f32 %v25395_v10, %v25396_v48  ;;  %v7173_v29 = vand.u32 4294901760, %v7172_v9  ;;  %v25428_v48 = vld [vmem:[#allocation36_spill] sm:$0xff]  ;;  %v25442_v9 = vld [vmem:[#allocation78_spill] sm:$0xff] }
 0x748   :  { %v6455_v63 = vpop.f32.mrb[30].mxu1  ;;  %14611 = vmatpush1.bf16.msra.mxu1 %v25358_v46 }
 0x749   :  { %v6456_v21 = vadd.f32 %v6455_v63, %v6232_v58  ;;  %v6457_v18 = vpop.f32.mrb[31].mxu1  ;;  %14612 = vmatprep.subr.bf16.mxu1 %v24661_v24  ;;  %v7158_v1 = vand.u32 4294901760, %v7157_v50  ;;  %v25418_v58 = vand.u32 4294901760, %v25417_v3  ;;  %v25426_v63 = vld [vmem:[#allocation29_spill] sm:$0xff] }
 0x74b   :  { %v7178_v53 = vsub.f32 %v25417_v3, %v25418_v58  ;;  %v25445_v58 = vld [vmem:[#allocation86_spill] sm:$0xff] }
 0x74c   :  { %14614 = vmatpush1.bf16.msra.mxu1 %v25359_v41  ;;  %v25397_v41 = vld [vmem:[#allocation110_spill] sm:$0xff] }
 0x74d   :  { %14615 = vmatprep.subr.bf16.mxu1 %v24661_v24  ;;  %v7179_v11 = vand.u32 4294901760, %v7178_v53 }
 0x750   :  { %14617 = vmatpush1.bf16.msra.mxu1 %v25360_v47  ;;  %v25404_v47 = vld [vmem:[#allocation40_spill] sm:$0xff] }
 0x751   :  { %14618 = vmatprep.subr.bf16.mxu1 %v24661_v24 }
 0x754   :  { %14620 = vmatpush1.bf16.msra.mxu1 %v25361_v51  ;;  %v25398_v51 = vld [vmem:[#allocation111_spill] sm:$0xff] }
 0x755   :  { %6966 = vmatprep.subr.mxu1 %v24770_v39 }
 0x758   :  { %6968 = vmatpush1.msra.mxu1 %v21075_v62  ;;  %v25399_v62 = vld [vmem:[#allocation9_spill] sm:$0xff] }
 0x759   :  { %6978 = vmatmul.mubr.f32.vlgmr.msra.gmra.mrb[44].mxu1 %v20978_v20  ;;  %14621 = vmatprep.subr.bf16.mxu1 %v24661_v24  ;;  %v25400_v20 = vld [vmem:[#allocation20_spill] sm:$0xff] }
 0x75a   :  { %6983 = vmatprep.mubr.f32.mxu1 %v20987_v28  ;;  %14623 = vmatpush1.bf16.msra.mxu1 %v25397_v41  ;;  %v25401_v28 = vld [vmem:[#allocation27_spill] sm:$0xff]  ;;  %v25430_v41 = vld [vmem:[#allocation41_spill] sm:$0xff] }
 0x75b   :  { %14624 = vmatprep.subr.bf16.mxu1 %v24661_v24 }
 0x75d   :  { %6985 = vmatmul.mubr.f32.gmra.mrb[46].mxu1 %v21005_v5  ;;  %v25403_v5 = vld [vmem:[#allocation39_spill] sm:$0xff] }
 0x75e   :  { %14626 = vmatpush1.bf16.msra.mxu1 %v25398_v51  ;;  %7159 = vmatprep.mubr.f32.mxu1 %v7158_v1  ;;  %v25431_v1 = vld [vmem:[#allocation42_spill] sm:$0xff] }
 0x75f   :  { %14627 = vmatprep.subr.bf16.mxu1 %v24661_v24  ;;  %v14724_v51 = vpack.c.bf16 %v25431_v1, %v25430_v41 }
 0x762   :  { %14629 = vmatpush1.bf16.msra.mxu1 %v25399_v62  ;;  %v25432_v62 = vld [vmem:[#allocation48_spill] sm:$0xff] }
 0x763   :  { %14630 = vmatprep.subr.bf16.mxu1 %v24661_v24 }
 0x766   :  { %14632 = vmatpush1.bf16.msra.mxu1 %v25400_v20  ;;  %v25433_v20 = vld [vmem:[#allocation49_spill] sm:$0xff] }
 0x767   :  { %14633 = vmatprep.subr.bf16.mxu1 %v24661_v24 }
 0x76a   :  { %14635 = vmatpush1.bf16.msra.mxu1 %v25401_v28  ;;  %v14727_v28 = vpack.c.bf16 %v25433_v20, %v25432_v62 }
 0x76b   :  { %14636 = vmatprep.subr.bf16.mxu1 %v24661_v24 }
 0x76e   :  { %14638 = vmatpush1.bf16.msra.mxu1 %v25402_v31  ;;  %v25434_v31 = vld [vmem:[#allocation55_spill] sm:$0xff] }
 0x76f   :  { %14639 = vmatprep.subr.bf16.mxu1 %v24661_v24 }
 0x772   :  { %14641 = vmatpush1.bf16.msra.mxu1 %v25403_v5  ;;  %v25435_v5 = vld [vmem:[#allocation56_spill] sm:$0xff] }
 0x773   :  { %14642 = vmatprep.subr.bf16.mxu1 %v24661_v24  ;;  %v21545_v38 = vpop.f32.mrb[44].mxu0 }
 0x774   :  { %v9835_v46 = vpop.f32.mrb[45].mxu0 }
 0x775   :  { %v14730_v46 = vpack.c.bf16 %v25435_v5, %v25434_v31 }
 0x776   :  { %14644 = vmatpush1.bf16.msra.mxu1 %v25404_v47  ;;  %v25436_v47 = vld [vmem:[#allocation62_spill] sm:$0xff] }
 0x777   :  { %14645 = vmatprep.subr.bf16.mxu1 %v24661_v24  ;;  %v21549_v25 = vpop.f32.mrb[46].mxu0 }
 0x778   :  { %v9842_v16 = vpop.f32.mrb[47].mxu0 }
 0x779   :  { %v25437_v16 = vld [vmem:[#allocation63_spill] sm:$0xff] }
 0x77a   :  { %14647 = vmatpush1.bf16.msra.mxu1 %v25405_v59  ;;  %v14733_v59 = vpack.c.bf16 %v25437_v16, %v25436_v47 }
 0x77b   :  { %14648 = vmatprep.subr.bf16.mxu1 %v24661_v24 }
 0x77e   :  { %v6587_v13 = vpop.f32.mrb[32].mxu1  ;;  %14650 = vmatpush1.bf16.msra.mxu1 %v25406_v56  ;;  %v25438_v56 = vld [vmem:[#allocation69_spill] sm:$0xff] }
 0x77f   :  { %v6588_v2 = vadd.f32 %v6587_v13, %v6449_v4  ;;  %v6589_v14 = vpop.f32.mrb[33].mxu1  ;;  %14651 = vmatprep.subr.bf16.mxu1 %v24661_v24  ;;  %v25425_v4 = vld [vmem:[#allocation26_spill] sm:$0xff] }
 0x780   :  { %v14715_v40 = vpack.c.bf16 %v25425_v4, %v25424_v45  ;;  %v25439_v14 = vld [vmem:[#allocation70_spill] sm:$0xff] }
 0x782   :  { %v6596_v33 = vpop.f32.mrb[34].mxu1  ;;  %14653 = vmatpush1.bf16.msra.mxu1 %v25407_v34 }
 0x783   :  { %v6597_v60 = vadd.f32 %v6596_v33, %v6456_v21  ;;  %v6598_v52 = vpop.f32.mrb[35].mxu1  ;;  %14654 = vmatprep.subr.bf16.mxu1 %v24661_v24  ;;  %v25427_v21 = vld [vmem:[#allocation30_spill] sm:$0xff]  ;;  %v14736_v33 = vpack.c.bf16 %v25439_v14, %v25438_v56 }
 0x784   :  { %v14718_v18 = vpack.c.bf16 %v25427_v21, %v25426_v63 }
 0x786   :  { %14656 = vmatpush1.bf16.msra.mxu1 %v25408_v22 }
 0x787   :  { %14657 = vmatprep.subr.bf16.mxu1 %v24661_v24 }
 0x78a   :  { %14659 = vmatpush1.bf16.msra.mxu1 %v25409_v49  ;;  %v25440_v49 = vld [vmem:[#allocation73_spill] sm:$0xff] }
 0x78b   :  { %14660 = vmatprep.subr.bf16.mxu1 %v24661_v24  ;;  %v14739_v6 = vpack.c.bf16 %v25441_v32, %v25440_v49 }
 0x78e   :  { %14662 = vmatpush1.bf16.msra.mxu1 %v25412_v0 }
 0x78f   :  { %7145 = vmatprep.subr.mxu1 %v24770_v39 }
 0x792   :  { %7147 = vmatpush1.msra.mxu1 %v25419_v23  ;;  %v25447_v23 = vand.u32 4294901760, %v25416_v27  ;;  %v25452_v27 = vand.u32 4294901760, %v25422_v12  ;;  %v25458_v12 = vand.u32 4294901760, %v25428_v48 }
 0x793   :  { %7165 = vmatmul.mubr.f32.vlgmr.msra.gmra.mrb[48].mxu1 %v7164_v26  ;;  %14705 = vmatprep.subr.bf16.mxu1 %v24661_v24 }
 0x794   :  { %7174 = vmatprep.mubr.f32.mxu1 %v7173_v29  ;;  %14707 = vmatpush1.bf16.msra.mxu1 %v14706_v36  ;;  %v25443_v36 = vld [vmem:[#allocation79_spill] sm:$0xff] }
 0x795   :  { %14708 = vmatprep.subr.bf16.mxu1 %v24661_v24  ;;  %v14742_v26 = vpack.c.bf16 %v25443_v36, %v25442_v9 }
 0x797   :  { %7180 = vmatmul.mubr.f32.gmra.mrb[50].mxu1 %v7179_v11  ;;  %v25449_v11 = vand.u32 4294901760, %v25420_v55  ;;  %v25455_v55 = vand.u32 4294901760, %v25425_v4  ;;  %v25461_v4 = vand.u32 4294901760, %v25431_v1  ;;  %v25467_v1 = vand.u32 4294901760, %v25437_v16 }
 0x798   :  { %14710 = vmatpush1.bf16.msra.mxu1 %v14709_v17  ;;  %7533 = vmatprep.mubr.f32.mxu1 %v25395_v10  ;;  %v25429_v10 = vld [vmem:[#allocation37_spill] sm:$0xff]  ;;  %v25471_v16 = vand.u32 4294901760, %v25441_v32 }
 0x799   :  { %14711 = vmatprep.subr.bf16.mxu1 %v24661_v24  ;;  %v14721_v50 = vpack.c.bf16 %v25429_v10, %v25428_v48  ;;  %v25448_v17 = vld [vmem:[#allocation89_spill] sm:$0xff]  ;;  %v25464_v48 = vand.u32 4294901760, %v25434_v31 }
 0x79a   :  { %v25476_v32 = vand.u32 4294901760, %v25448_v17 }
 0x79c   :  { %14713 = vmatpush1.bf16.msra.mxu1 %v14712_v44  ;;  %v25450_v44 = vand.u32 4294901760, %v25421_v7 }
 0x79d   :  { %14714 = vmatprep.subr.bf16.mxu1 %v24661_v24 }
 0x7a0   :  { %14716 = vmatpush1.bf16.msra.mxu1 %v14715_v40  ;;  %v14793_v40 = vpack.c.bf16 %v25450_v44, %v25449_v11  ;;  %v25482_v44 = vld [vmem:[#allocation153_spill] sm:$0xff] }
 0x7a1   :  { %14717 = vmatprep.subr.bf16.mxu1 %v24661_v24 }
 0x7a4   :  { %14719 = vmatpush1.bf16.msra.mxu1 %v14718_v18 }
 0x7a5   :  { %14720 = vmatprep.subr.bf16.mxu1 %v24661_v24 }
 0x7a8   :  { %14722 = vmatpush1.bf16.msra.mxu1 %v14721_v50  ;;  %v25457_v50 = vand.u32 4294901760, %v25427_v21  ;;  %v25463_v21 = vand.u32 4294901760, %v25433_v20  ;;  %v25468_v20 = vand.u32 4294901760, %v25438_v56  ;;  %v25472_v56 = vand.u32 4294901760, %v25442_v9 }
 0x7a9   :  { %14723 = vmatprep.subr.bf16.mxu1 %v24661_v24 }
 0x7ac   :  { %14725 = vmatpush1.bf16.msra.mxu1 %v14724_v51 }
 0x7ad   :  { %14726 = vmatprep.subr.bf16.mxu1 %v24661_v24 }
 0x7b0   :  { %14728 = vmatpush1.bf16.msra.mxu1 %v14727_v28 }
 0x7b1   :  { %14729 = vmatprep.subr.bf16.mxu1 %v24661_v24 }
 0x7b4   :  { %14731 = vmatpush1.bf16.msra.mxu1 %v14730_v46 }
 0x7b5   :  { %14732 = vmatprep.subr.bf16.mxu1 %v24661_v24 }
 0x7b8   :  { %v6701_v13 = vpop.f32.mrb[36].mxu1  ;;  %14734 = vmatpush1.bf16.msra.mxu1 %v14733_v59 }
 0x7b9   :  { %v6702_v34 = vadd.f32 %v6701_v13, %v6588_v2  ;;  %v6703_v52 = vpop.f32.mrb[37].mxu1  ;;  %14735 = vmatprep.subr.bf16.mxu1 %v24661_v24  ;;  %v25444_v2 = vld [vmem:[#allocation85_spill] sm:$0xff] }
 0x7ba   :  { %v14745_v53 = vpack.c.bf16 %v25445_v58, %v25444_v2  ;;  %v25469_v52 = vand.u32 4294901760, %v25439_v14  ;;  %v25473_v14 = vand.u32 4294901760, %v25443_v36 }
 0x7bc   :  { %v6712_v22 = vpop.f32.mrb[38].mxu1  ;;  %14737 = vmatpush1.bf16.msra.mxu1 %v14736_v33  ;;  %v14820_v31 = vpack.c.bf16 %v25469_v52, %v25468_v20  ;;  %v25502_v52 = vld [vmem:[#allocation17_spill] sm:$0xff] }
 0x7bd   :  { %v6713_v0 = vadd.f32 %v6712_v22, %v6597_v60  ;;  %v6714_v15 = vpop.f32.mrb[39].mxu1  ;;  %14738 = vmatprep.subr.bf16.mxu1 %v24661_v24  ;;  %v25446_v60 = vand.u32 4294901760, %v25415_v61  ;;  %v25451_v61 = vld [vmem:[#allocation144_spill] sm:$0xff] }
 0x7bf   :  { %v14790_v29 = vpack.c.bf16 %v25447_v23, %v25446_v60  ;;  %v25474_v60 = vand.u32 4294901760, %v25444_v2  ;;  %v25480_v2 = vld [vmem:[#allocation152_spill] sm:$0xff] }
 0x7c0   :  { %14740 = vmatpush1.bf16.msra.mxu1 %v14739_v6 }
 0x7c1   :  { %14741 = vmatprep.subr.bf16.mxu1 %v24661_v24 }
 0x7c4   :  { %14743 = vmatpush1.bf16.msra.mxu1 %v14742_v26 }
 0x7c5   :  { %14744 = vmatprep.subr.bf16.mxu1 %v24661_v24 }
 0x7c8   :  { %14746 = vmatpush1.bf16.msra.mxu1 %v14745_v53 }
 0x7c9   :  { %7521 = vmatprep.subr.mxu1 %v24770_v39 }
 0x7cc   :  { %7524 = vmatpush1.msra.mxu1 %v25448_v17  ;;  %v25484_v17 = vld [vmem:[#allocation157_spill] sm:$0xff] }
 0x7cd   :  { %7536 = vmatmul.mubr.f32.vlgmr.msra.gmra.mrb[52].mxu1 %v25410_v42  ;;  %14789 = vmatprep.subr.bf16.mxu1 %v24661_v24  ;;  %v25453_v42 = vand.u32 4294901760, %v25423_v57  ;;  %v25459_v57 = vand.u32 4294901760, %v25429_v10  ;;  %v25465_v10 = vand.u32 4294901760, %v25435_v5 }
 0x7ce   :  { %7542 = vmatprep.mubr.f32.mxu1 %v25413_v43  ;;  %14791 = vmatpush1.bf16.msra.mxu1 %v14790_v29  ;;  %v25454_v43 = vand.u32 4294901760, %v25424_v45  ;;  %v25460_v45 = vand.u32 4294901760, %v25430_v41  ;;  %v25466_v41 = vand.u32 4294901760, %v25436_v47  ;;  %v25470_v47 = vand.u32 4294901760, %v25440_v49  ;;  %v25479_v29 = vld [vmem:[#allocation146_spill] sm:$0xff] }
 0x7cf   :  { %14792 = vmatprep.subr.bf16.mxu1 %v24661_v24  ;;  %v14796_v18 = vpack.c.bf16 %v25453_v42, %v25452_v27  ;;  %v14805_v28 = vpack.c.bf16 %v25459_v57, %v25458_v12  ;;  %v14814_v13 = vpack.c.bf16 %v25465_v10, %v25464_v48  ;;  %v25475_v49 = vand.u32 4294901760, %v25445_v58  ;;  %v25481_v58 = vld [vmem:[#allocation112_spill] sm:$0xff]  ;;  %v25486_v27 = vld [vmem:[#allocation159_spill] sm:$0xff]  ;;  %v25492_v57 = vld [vmem:[#allocation165_spill] sm:$0xff] }
 0x7d0   :  { %v14799_v7 = vpack.c.bf16 %v25455_v55, %v25454_v43  ;;  %v14808_v46 = vpack.c.bf16 %v25461_v4, %v25460_v45  ;;  %v14817_v33 = vpack.c.bf16 %v25467_v1, %v25466_v41  ;;  %v14823_v15 = vpack.c.bf16 %v25471_v16, %v25470_v47  ;;  %v25487_v42 = vld [vmem:[#allocation160_spill] sm:$0xff]  ;;  %v25489_v43 = vld [vmem:[#allocation162_spill] sm:$0xff]  ;;  %v25490_v55 = vld [vmem:[#allocation163_spill] sm:$0xff] }
 0x7d1   :  { %7545 = vmatmul.mubr.f32.gmra.mrb[54].mxu1 %v25417_v3  ;;  %v25456_v3 = vand.u32 4294901760, %v25426_v63  ;;  %v25462_v63 = vand.u32 4294901760, %v25432_v62  ;;  %v14829_v23 = vpack.c.bf16 %v25475_v49, %v25474_v60  ;;  %v25493_v4 = vld [vmem:[#allocation166_spill] sm:$0xff]  ;;  %v25497_v48 = vld [vmem:[#allocation136_spill] sm:$0xff]  ;;  %v25505_v47 = vld [vmem:[#allocation105_spill] sm:$0xff] }
 0x7d2   :  { %14794 = vmatpush1.bf16.msra.mxu1 %v14793_v40  ;;  %7818 = vmatprep.mubr.f32.mxu1 %v25451_v61  ;;  %v25483_v40 = vld [vmem:[#allocation128_spill] sm:$0xff]  ;;  %v25485_v61 = vld [vmem:[#allocation158_spill] sm:$0xff] }
 0x7d3   :  { %14795 = vmatprep.subr.bf16.mxu1 %v24661_v24  ;;  %v14802_v51 = vpack.c.bf16 %v25457_v50, %v25456_v3  ;;  %v14811_v59 = vpack.c.bf16 %v25463_v21, %v25462_v63  ;;  %v25491_v3 = vld [vmem:[#allocation164_spill] sm:$0xff]  ;;  %v25495_v63 = vld [vmem:[#allocation91_spill] sm:$0xff]  ;;  %v25498_v10 = vld [vmem:[#allocation102_spill] sm:$0xff] }
 0x7d4   :  { %v25496_v21 = vand.u32 4294901760, %v25495_v63  ;;  %v25500_v1 = vld [vmem:[#allocation80_spill] sm:$0xff]  ;;  %v25510_v60 = vld [vmem:[#allocation170_spill] sm:$0xff] }
 0x7d5   :  { %v25506_v16 = vld [vmem:[#allocation156_spill] sm:$0xff] }
 0x7d6   :  { %14797 = vmatpush1.bf16.msra.mxu1 %v14796_v18  ;;  %v25488_v18 = vld [vmem:[#allocation161_spill] sm:$0xff] }
 0x7d7   :  { %14798 = vmatprep.subr.bf16.mxu1 %v24661_v24 }
 0x7da   :  { %14800 = vmatpush1.bf16.msra.mxu1 %v14799_v7 }
 0x7db   :  { %14801 = vmatprep.subr.bf16.mxu1 %v24661_v24 }
 0x7de   :  { %14803 = vmatpush1.bf16.msra.mxu1 %v14802_v51 }
 0x7df   :  { %14804 = vmatprep.subr.bf16.mxu1 %v24661_v24 }
 0x7e2   :  { %14806 = vmatpush1.bf16.msra.mxu1 %v14805_v28 }
 0x7e3   :  { %14807 = vmatprep.subr.bf16.mxu1 %v24661_v24 }
 0x7e6   :  { %14809 = vmatpush1.bf16.msra.mxu1 %v14808_v46  ;;  %v25494_v46 = vld [vmem:[#allocation168_spill] sm:$0xff] }
 0x7e7   :  { %14810 = vmatprep.subr.bf16.mxu1 %v24661_v24 }
 0x7ea   :  { %14812 = vmatpush1.bf16.msra.mxu1 %v14811_v59  ;;  %v8115_v59 = vsub.f32 %v25495_v63, %v25496_v21  ;;  %v25526_v21 = vld [vmem:[#allocation33_spill] sm:$0xff] }
 0x7eb   :  { %14813 = vmatprep.subr.bf16.mxu1 %v24661_v24 }
 0x7ec   :  { %v8116_v20 = vand.u32 4294901760, %v8115_v59  ;;  %v25527_v59 = vld [vmem:[#allocation38_spill] sm:$0xff] }
 0x7ee   :  { %14815 = vmatpush1.bf16.msra.mxu1 %v14814_v13  ;;  %v25499_v13 = vand.u32 4294901760, %v25498_v10 }
 0x7ef   :  { %14816 = vmatprep.subr.bf16.mxu1 %v24661_v24 }
 0x7f0   :  { %v8124_v41 = vsub.f32 %v25498_v10, %v25499_v13  ;;  %v25528_v13 = vld [vmem:[#allocation90_spill] sm:$0xff] }
 0x7f2   :  { %v6871_v62 = vpop.f32.mrb[40].mxu1  ;;  %14818 = vmatpush1.bf16.msra.mxu1 %v14817_v33  ;;  %v25501_v33 = vld [vmem:[#allocation81_spill] sm:$0xff] }
 0x7f3   :  { %v6872_v22 = vadd.f32 %v6871_v62, %v6702_v34  ;;  %v6873_v5 = vpop.f32.mrb[41].mxu1  ;;  %14819 = vmatprep.subr.bf16.mxu1 %v24661_v24  ;;  %v14826_v34 = vpack.c.bf16 %v25473_v14, %v25472_v56  ;;  %v14958_v62 = vpack.c.bf16 %v25501_v33, %v25500_v1  ;;  %v25508_v56 = vld [vmem:[#allocation130_spill] sm:$0xff] }
 0x7f4   :  { %v25504_v5 = vld [vmem:[#allocation115_spill] sm:$0xff] }
 0x7f6   :  { %v6878_v6 = vpop.f32.mrb[42].mxu1  ;;  %14821 = vmatpush1.bf16.msra.mxu1 %v14820_v31  ;;  %v25503_v31 = vand.u32 4294901760, %v25502_v52 }
 0x7f7   :  { %v6879_v26 = vadd.f32 %v6878_v6, %v6713_v0  ;;  %v6880_v53 = vpop.f32.mrb[43].mxu1  ;;  %14822 = vmatprep.subr.bf16.mxu1 %v24661_v24  ;;  %v25477_v0 = vld [vmem:[#allocation84_spill] sm:$0xff]  ;;  %v8125_v6 = vand.u32 4294901760, %v8124_v41 }
 0x7f8   :  { %v25478_v9 = vand.u32 4294901760, %v25477_v0  ;;  %v25507_v53 = vld [vmem:[#allocation167_spill] sm:$0xff] }
 0x7f9   :  { %v14964_v14 = vpack.c.bf16 %v25508_v56, %v25507_v53 }
 0x7fa   :  { %14824 = vmatpush1.bf16.msra.mxu1 %v14823_v15  ;;  %v8109_v36 = vsub.f32 %v25477_v0, %v25478_v9  ;;  %v14961_v15 = vpack.c.bf16 %v25506_v16, %v25505_v47 }
 0x7fb   :  { %14825 = vmatprep.subr.bf16.mxu1 %v24661_v24 }
 0x7fc   :  { %v8110_v11 = vand.u32 4294901760, %v8109_v36  ;;  %v25513_v36 = vld [vmem:[#allocation75_spill] sm:$0xff] }
 0x7fe   :  { %14827 = vmatpush1.bf16.msra.mxu1 %v14826_v34  ;;  %v25509_v34 = vld [vmem:[#allocation131_spill] sm:$0xff] }
 0x7ff   :  { %14828 = vmatprep.subr.bf16.mxu1 %v24661_v24  ;;  %v14967_v49 = vpack.c.bf16 %v25510_v60, %v25509_v34 }
 0x802   :  { %14830 = vmatpush1.bf16.msra.mxu1 %v14829_v23  ;;  %v25511_v23 = vld [vmem:[#allocation145_spill] sm:$0xff] }
 0x803   :  { %7806 = vmatprep.subr.mxu1 %v24770_v39 }
 0x806   :  { %7810 = vmatpush1.msra.mxu1 %v25476_v32  ;;  %v25512_v32 = vld [vmem:[#allocation148_spill] sm:$0xff] }
 0x807   :  { %7820 = vmatmul.mubr.f32.vlgmr.msra.gmra.mrb[56].mxu1 %v25479_v29  ;;  %14873 = vmatprep.subr.bf16.mxu1 %v24661_v24  ;;  %v14970_v9 = vpack.c.bf16 %v25512_v32, %v25511_v23 }
 0x808   :  { %7825 = vmatprep.mubr.f32.mxu1 %v25480_v2  ;;  %14875 = vmatpush1.bf16.msra.mxu1 %v25481_v58  ;;  %v25515_v2 = vld [vmem:[#allocation101_spill] sm:$0xff]  ;;  %v25516_v58 = vld [vmem:[#allocation100_spill] sm:$0xff] }
 0x809   :  { %14876 = vmatprep.subr.bf16.mxu1 %v24661_v24 }
 0x80b   :  { %7827 = vmatmul.mubr.f32.gmra.mrb[58].mxu1 %v25482_v44  ;;  %v25517_v44 = vld [vmem:[#allocation104_spill] sm:$0xff] }
 0x80c   :  { %14878 = vmatpush1.bf16.msra.mxu1 %v25483_v40  ;;  %8111 = vmatprep.mubr.f32.mxu1 %v8110_v11  ;;  %v14976_v11 = vpack.c.bf16 %v25516_v58, %v25515_v2  ;;  %v25518_v40 = vld [vmem:[#allocation103_spill] sm:$0xff] }
 0x80d   :  { %14879 = vmatprep.subr.bf16.mxu1 %v24661_v24 }
 0x810   :  { %14881 = vmatpush1.bf16.msra.mxu1 %v25484_v17  ;;  %v14979_v17 = vpack.c.bf16 %v25518_v40, %v25517_v44 }
 0x811   :  { %14882 = vmatprep.subr.bf16.mxu1 %v24661_v24 }
 0x814   :  { %14884 = vmatpush1.bf16.msra.mxu1 %v25485_v61  ;;  %v25519_v61 = vld [vmem:[#allocation71_spill] sm:$0xff] }
 0x815   :  { %14885 = vmatprep.subr.bf16.mxu1 %v24661_v24 }
 0x818   :  { %14887 = vmatpush1.bf16.msra.mxu1 %v25486_v27  ;;  %v25520_v27 = vld [vmem:[#allocation149_spill] sm:$0xff] }
 0x819   :  { %14888 = vmatprep.subr.bf16.mxu1 %v24661_v24 }
 0x81c   :  { %14890 = vmatpush1.bf16.msra.mxu1 %v25487_v42  ;;  %v14982_v42 = vpack.c.bf16 %v25520_v27, %v25519_v61 }
 0x81d   :  { %14891 = vmatprep.subr.bf16.mxu1 %v24661_v24 }
 0x820   :  { %14893 = vmatpush1.bf16.msra.mxu1 %v25488_v18  ;;  %v25521_v18 = vld [vmem:[#allocation154_spill] sm:$0xff] }
 0x821   :  { %14894 = vmatprep.subr.bf16.mxu1 %v24661_v24 }
 0x824   :  { %14896 = vmatpush1.bf16.msra.mxu1 %v25489_v43  ;;  %v25522_v43 = vld [vmem:[#allocation15_spill] sm:$0xff] }
 0x825   :  { %14897 = vmatprep.subr.bf16.mxu1 %v24661_v24 }
 0x828   :  { %14899 = vmatpush1.bf16.msra.mxu1 %v25490_v55  ;;  %v14985_v55 = vpack.c.bf16 %v25522_v43, %v25521_v18 }
 0x829   :  { %14900 = vmatprep.subr.bf16.mxu1 %v24661_v24 }
 0x82c   :  { %v6979_v7 = vpop.f32.mrb[44].mxu1  ;;  %14902 = vmatpush1.bf16.msra.mxu1 %v25491_v3  ;;  %v25523_v3 = vld [vmem:[#allocation155_spill] sm:$0xff] }
 0x82d   :  { %v21721_v50 = vadd.f32 %v6979_v7, %v6872_v22  ;;  %v6981_v51 = vpop.f32.mrb[45].mxu1  ;;  %14903 = vmatprep.subr.bf16.mxu1 %v24661_v24  ;;  %v8130_v22 = vsub.f32 %v25502_v52, %v25503_v31  ;;  %v25530_v31 = vld [vmem:[#allocation171_spill] sm:$0xff] }
 0x82e   :  { %v25524_v51 = vld [vmem:[#allocation23_spill] sm:$0xff] }
 0x830   :  { %v6986_v12 = vpop.f32.mrb[46].mxu1  ;;  %14905 = vmatpush1.bf16.msra.mxu1 %v25492_v57  ;;  %v25525_v57 = vld [vmem:[#allocation76_spill] sm:$0xff] }
 0x831   :  { %v21725_v28 = vadd.f32 %v6986_v12, %v6879_v26  ;;  %v6988_v45 = vpop.f32.mrb[47].mxu1  ;;  %14906 = vmatprep.subr.bf16.mxu1 %v24661_v24  ;;  %v8131_v26 = vand.u32 4294901760, %v8130_v22  ;;  %v14988_v12 = vpack.c.bf16 %v25524_v51, %v25523_v3 }
 0x834   :  { %14908 = vmatpush1.bf16.msra.mxu1 %v25493_v4 }
 0x835   :  { %14909 = vmatprep.subr.bf16.mxu1 %v24661_v24 }
 0x838   :  { %14911 = vmatpush1.bf16.msra.mxu1 %v25494_v46 }
 0x839   :  { %14912 = vmatprep.subr.bf16.mxu1 %v24661_v24 }
 0x83c   :  { %14914 = vmatpush1.bf16.msra.mxu1 %v25497_v48  ;;  %v14991_v48 = vpack.c.bf16 %v25527_v59, %v25526_v21 }
 0x83d   :  { %8097 = vmatprep.subr.mxu1 %v24770_v39 }
 0x840   :  { %8099 = vmatpush1.msra.mxu1 %v25504_v5  ;;  %v25531_v5 = vld [vmem:[#allocation50_spill] sm:$0xff] }
 0x841   :  { %8117 = vmatmul.mubr.f32.vlgmr.msra.gmra.mrb[60].mxu1 %v8116_v20  ;;  %14957 = vmatprep.subr.bf16.mxu1 %v24661_v24  ;;  %v25529_v20 = vld [vmem:[#allocation43_spill] sm:$0xff] }
 0x842   :  { %8126 = vmatprep.mubr.f32.mxu1 %v8125_v6  ;;  %14959 = vmatpush1.bf16.msra.mxu1 %v14958_v62  ;;  %v14994_v22 = vpack.c.bf16 %v25530_v31, %v25529_v20  ;;  %v25532_v6 = vld [vmem:[#allocation172_spill] sm:$0xff] }
 0x843   :  { %14960 = vmatprep.subr.bf16.mxu1 %v24661_v24 }
 0x845   :  { %8132 = vmatmul.mubr.f32.gmra.mrb[62].mxu1 %v8131_v26  ;;  %v25533_v26 = vand.u32 4294901760, %v25500_v1  ;;  %v25538_v1 = vld [vmem:[#allocation150_spill] sm:$0xff] }
 0x846   :  { %14962 = vmatpush1.bf16.msra.mxu1 %v14961_v15  ;;  %8485 = vmatprep.mubr.f32.mxu1 %v25477_v0  ;;  %v25514_v0 = vld [vmem:[#allocation143_spill] sm:$0xff]  ;;  %v14997_v15 = vpack.c.bf16 %v25532_v6, %v25531_v5 }
 0x847   :  { %14963 = vmatprep.subr.bf16.mxu1 %v24661_v24  ;;  %v14973_v29 = vpack.c.bf16 %v25514_v0, %v25513_v36 }
 0x84a   :  { %14965 = vmatpush1.bf16.msra.mxu1 %v14964_v14  ;;  %v25534_v14 = vand.u32 4294901760, %v25501_v33  ;;  %v25539_v33 = vand.u32 4294901760, %v25507_v53  ;;  %v25545_v53 = vand.u32 4294901760, %v25513_v36  ;;  %v25551_v36 = vand.u32 4294901760, %v25519_v61 }
 0x84b   :  { %14966 = vmatprep.subr.bf16.mxu1 %v24661_v24 }
 0x84e   :  { %14968 = vmatpush1.bf16.msra.mxu1 %v14967_v49  ;;  %v15042_v49 = vpack.c.bf16 %v25534_v14, %v25533_v26 }
 0x84f   :  { %14969 = vmatprep.subr.bf16.mxu1 %v24661_v24 }
 0x852   :  { %14971 = vmatpush1.bf16.msra.mxu1 %v14970_v9  ;;  %v25535_v9 = vld [vmem:[#allocation57_spill] sm:$0xff] }
 0x853   :  { %14972 = vmatprep.subr.bf16.mxu1 %v24661_v24 }
 0x856   :  { %14974 = vmatpush1.bf16.msra.mxu1 %v14973_v29  ;;  %v25536_v29 = vand.u32 4294901760, %v25505_v47  ;;  %v25542_v47 = vand.u32 4294901760, %v25510_v60  ;;  %v25548_v60 = vand.u32 4294901760, %v25516_v58  ;;  %v25554_v58 = vand.u32 4294901760, %v25522_v43 }
 0x857   :  { %14975 = vmatprep.subr.bf16.mxu1 %v24661_v24  ;;  %v25559_v43 = vand.u32 4294901760, %v25527_v59  ;;  %v25564_v59 = vand.u32 4294901760, %v25532_v6 }
 0x85a   :  { %14977 = vmatpush1.bf16.msra.mxu1 %v14976_v11  ;;  %v25537_v11 = vand.u32 4294901760, %v25506_v16 }
 0x85b   :  { %14978 = vmatprep.subr.bf16.mxu1 %v24661_v24 }
 0x85e   :  { %14980 = vmatpush1.bf16.msra.mxu1 %v14979_v17  ;;  %v15045_v17 = vpack.c.bf16 %v25537_v11, %v25536_v29  ;;  %v25562_v11 = vand.u32 4294901760, %v25530_v31 }
 0x85f   :  { %14981 = vmatprep.subr.bf16.mxu1 %v24661_v24 }
 0x862   :  { %14983 = vmatpush1.bf16.msra.mxu1 %v14982_v42 }
 0x863   :  { %14984 = vmatprep.subr.bf16.mxu1 %v24661_v24 }
 0x866   :  { %v7166_v7 = vpop.f32.mrb[48].mxu1  ;;  %14986 = vmatpush1.bf16.msra.mxu1 %v14985_v55  ;;  %v25544_v55 = vand.u32 4294901760, %v25512_v32  ;;  %v25550_v32 = vand.u32 4294901760, %v25518_v40  ;;  %v25555_v40 = vand.u32 4294901760, %v25523_v3  ;;  %v25560_v3 = vld [vmem:[#allocation66_spill] sm:$0xff] }
 0x867   :  { %v7399_v45 = vadd.f32 %v25525_v57, %v7166_v7  ;;  %v7168_v4 = vpop.f32.mrb[49].mxu1  ;;  %14987 = vmatprep.subr.bf16.mxu1 %v24661_v24 }
 0x86a   :  { %v7181_v46 = vpop.f32.mrb[50].mxu1  ;;  %14989 = vmatpush1.bf16.msra.mxu1 %v14988_v12 }
 0x86b   :  { %v7406_v41 = vadd.f32 %v25528_v13, %v7181_v46  ;;  %v7183_v62 = vpop.f32.mrb[51].mxu1  ;;  %14990 = vmatprep.subr.bf16.mxu1 %v24661_v24  ;;  %v25556_v13 = vand.u32 4294901760, %v25524_v51 }
 0x86d   :  { %v15072_v61 = vpack.c.bf16 %v25556_v13, %v25555_v40  ;;  %v25586_v40 = vld [vmem:[#allocation94_spill] sm:$0xff] }
 0x86e   :  { %14992 = vmatpush1.bf16.msra.mxu1 %v14991_v48  ;;  %v25587_v13 = vld [vmem:[#allocation198_spill] sm:$0xff] }
 0x86f   :  { %14993 = vmatprep.subr.bf16.mxu1 %v24661_v24 }
 0x872   :  { %14995 = vmatpush1.bf16.msra.mxu1 %v14994_v22  ;;  %v25557_v22 = vld [vmem:[#allocation52_spill] sm:$0xff] }
 0x873   :  { %14996 = vmatprep.subr.bf16.mxu1 %v24661_v24 }
 0x876   :  { %14998 = vmatpush1.bf16.msra.mxu1 %v14997_v15 }
 0x877   :  { %8473 = vmatprep.subr.mxu1 %v24770_v39 }
 0x87a   :  { %8476 = vmatpush1.msra.mxu1 %v25535_v9 }
 0x87b   :  { %8488 = vmatmul.mubr.f32.vlgmr.msra.gmra.mrb[64].mxu1 %v25495_v63  ;;  %15041 = vmatprep.subr.bf16.mxu1 %v24661_v24  ;;  %v25540_v63 = vand.u32 4294901760, %v25508_v56  ;;  %v25546_v56 = vand.u32 4294901760, %v25514_v0  ;;  %v25552_v0 = vand.u32 4294901760, %v25520_v27 }
 0x87c   :  { %8494 = vmatprep.mubr.f32.mxu1 %v25498_v10  ;;  %15043 = vmatpush1.bf16.msra.mxu1 %v15042_v49  ;;  %v25541_v10 = vand.u32 4294901760, %v25509_v34  ;;  %v25547_v34 = vand.u32 4294901760, %v25515_v2  ;;  %v25553_v2 = vand.u32 4294901760, %v25521_v18  ;;  %v25558_v18 = vand.u32 4294901760, %v25526_v21 }
 0x87d   :  { %15044 = vmatprep.subr.bf16.mxu1 %v24661_v24  ;;  %v15048_v42 = vpack.c.bf16 %v25540_v63, %v25539_v33  ;;  %v15057_v12 = vpack.c.bf16 %v25546_v56, %v25545_v53  ;;  %v15066_v46 = vpack.c.bf16 %v25552_v0, %v25551_v36  ;;  %v25563_v21 = vand.u32 4294901760, %v25531_v5  ;;  %v25568_v63 = vld [vmem:[#allocation64_spill] sm:$0xff]  ;;  %v25569_v5 = vld [vmem:[#allocation77_spill] sm:$0xff]  ;;  %v25581_v36 = vld [vmem:[#allocation134_spill] sm:$0xff] }
 0x87e   :  { %v15051_v16 = vpack.c.bf16 %v25542_v47, %v25541_v10  ;;  %v15060_v57 = vpack.c.bf16 %v25548_v60, %v25547_v34  ;;  %v15069_v48 = vpack.c.bf16 %v25554_v58, %v25553_v2  ;;  %v15075_v14 = vpack.c.bf16 %v25559_v43, %v25558_v18  ;;  %v25572_v10 = vld [vmem:[#allocation22_spill] sm:$0xff]  ;;  %v25573_v47 = vld [vmem:[#allocation24_spill] sm:$0xff]  ;;  %v25583_v58 = vld [vmem:[#allocation83_spill] sm:$0xff] }
 0x87f   :  { %8497 = vmatmul.mubr.f32.gmra.mrb[66].mxu1 %v25502_v52  ;;  %v25543_v52 = vand.u32 4294901760, %v25511_v23  ;;  %v25549_v23 = vand.u32 4294901760, %v25517_v44 }
 0x880   :  { %15046 = vmatpush1.bf16.msra.mxu1 %v15045_v17  ;;  %8770 = vmatprep.mubr.f32.mxu1 %v25538_v1  ;;  %v15081_v1 = vpack.c.bf16 %v25564_v59, %v25563_v21  ;;  %v25598_v59 = vld [vmem:[#allocation97_spill] sm:$0xff] }
 0x881   :  { %15047 = vmatprep.subr.bf16.mxu1 %v24661_v24  ;;  %v15054_v7 = vpack.c.bf16 %v25544_v55, %v25543_v52  ;;  %v15063_v4 = vpack.c.bf16 %v25550_v32, %v25549_v23  ;;  %v25577_v52 = vld [vmem:[#allocation44_spill] sm:$0xff] }
 0x884   :  { %15049 = vmatpush1.bf16.msra.mxu1 %v15048_v42  ;;  %v25570_v42 = vld [vmem:[#allocation87_spill] sm:$0xff] }
 0x885   :  { %15050 = vmatprep.subr.bf16.mxu1 %v24661_v24 }
 0x888   :  { %15052 = vmatpush1.bf16.msra.mxu1 %v15051_v16  ;;  %v25576_v16 = vld [vmem:[#allocation35_spill] sm:$0xff] }
 0x889   :  { %15053 = vmatprep.subr.bf16.mxu1 %v24661_v24 }
 0x88c   :  { %15055 = vmatpush1.bf16.msra.mxu1 %v15054_v7  ;;  %v25578_v7 = vld [vmem:[#allocation45_spill] sm:$0xff] }
 0x88d   :  { %15056 = vmatprep.subr.bf16.mxu1 %v24661_v24 }
 0x890   :  { %15058 = vmatpush1.bf16.msra.mxu1 %v15057_v12  ;;  %v25579_v12 = vld [vmem:[#allocation188_spill] sm:$0xff] }
 0x891   :  { %15059 = vmatprep.subr.bf16.mxu1 %v24661_v24 }
 0x894   :  { %15061 = vmatpush1.bf16.msra.mxu1 %v15060_v57  ;;  %v25580_v57 = vld [vmem:[#allocation51_spill] sm:$0xff] }
 0x895   :  { %15062 = vmatprep.subr.bf16.mxu1 %v24661_v24 }
 0x898   :  { %15064 = vmatpush1.bf16.msra.mxu1 %v15063_v4 }
 0x899   :  { %15065 = vmatprep.subr.bf16.mxu1 %v24661_v24 }
 0x89c   :  { %15067 = vmatpush1.bf16.msra.mxu1 %v15066_v46  ;;  %v25582_v46 = vld [vmem:[#allocation65_spill] sm:$0xff] }
 0x89d   :  { %15068 = vmatprep.subr.bf16.mxu1 %v24661_v24 }
 0x8a0   :  { %v7537_v44 = vpop.f32.mrb[52].mxu1  ;;  %15070 = vmatpush1.bf16.msra.mxu1 %v15069_v48  ;;  %v25584_v48 = vld [vmem:[#allocation197_spill] sm:$0xff] }
 0x8a1   :  { %v7538_v62 = vadd.f32 %v7537_v44, %v7399_v45  ;;  %v7539_v27 = vpop.f32.mrb[53].mxu1  ;;  %15071 = vmatprep.subr.bf16.mxu1 %v24661_v24  ;;  %v25561_v45 = vand.u32 4294901760, %v25529_v20  ;;  %v25566_v20 = vld [vmem:[#allocation193_spill] sm:$0xff] }
 0x8a2   :  { %v25567_v33 = vand.u32 4294901760, %v25566_v20  ;;  %v25590_v27 = vld [vmem:[#allocation59_spill] sm:$0xff] }
 0x8a3   :  { %v7652_v15 = vadd.f32 %v25557_v22, %v7538_v62  ;;  %v15078_v17 = vpack.c.bf16 %v25562_v11, %v25561_v45  ;;  %v25596_v11 = vld [vmem:[#allocation108_spill] sm:$0xff] }
 0x8a4   :  { %v7546_v26 = vpop.f32.mrb[54].mxu1  ;;  %15073 = vmatpush1.bf16.msra.mxu1 %v15072_v61  ;;  %v9061_v31 = vsub.f32 %v25566_v20, %v25567_v33  ;;  %v25588_v61 = vand.u32 4294901760, %v25587_v13  ;;  %v25600_v33 = vld [vmem:[#allocation31_spill] sm:$0xff] }
 0x8a5   :  { %v7547_v49 = vadd.f32 %v7546_v26, %v7406_v41  ;;  %v7548_v29 = vpop.f32.mrb[55].mxu1  ;;  %15074 = vmatprep.subr.bf16.mxu1 %v24661_v24  ;;  %v25565_v41 = vand.u32 4294901760, %v25535_v9  ;;  %v25571_v9 = vld [vmem:[#allocation106_spill] sm:$0xff]  ;;  %v25591_v26 = vld [vmem:[#allocation199_spill] sm:$0xff] }
 0x8a6   :  { %v9062_v6 = vand.u32 4294901760, %v9061_v31  ;;  %v9076_v62 = vsub.f32 %v25587_v13, %v25588_v61  ;;  %v25592_v18 = vand.u32 4294901760, %v25591_v26  ;;  %v25594_v29 = vld [vmem:[#allocation92_spill] sm:$0xff] }
 0x8a7   :  { %v7663_v51 = vadd.f32 %v25560_v3, %v7547_v49  ;;  %v25595_v3 = vld [vmem:[#allocation93_spill] sm:$0xff]  ;;  %v25601_v31 = vld [vmem:[#allocation32_spill] sm:$0xff] }
 0x8a8   :  { %15076 = vmatpush1.bf16.msra.mxu1 %v15075_v14  ;;  %v9082_v43 = vsub.f32 %v25591_v26, %v25592_v18  ;;  %v25593_v14 = vld [vmem:[#allocation189_spill] sm:$0xff]  ;;  %v9077_v49 = vand.u32 4294901760, %v9076_v62  ;;  %v25620_v18 = vld [vmem:[#allocation120_spill] sm:$0xff] }
 0x8a9   :  { %15077 = vmatprep.subr.bf16.mxu1 %v24661_v24  ;;  %v25618_v62 = vld [vmem:[#allocation137_spill] sm:$0xff] }
 0x8aa   :  { %v9083_v45 = vand.u32 4294901760, %v9082_v43  ;;  %v25621_v43 = vld [vmem:[#allocation138_spill] sm:$0xff] }
 0x8ac   :  { %15079 = vmatpush1.bf16.msra.mxu1 %v15078_v17  ;;  %v25597_v17 = vld [vmem:[#allocation96_spill] sm:$0xff] }
 0x8ad   :  { %15080 = vmatprep.subr.bf16.mxu1 %v24661_v24  ;;  %v15216_v21 = vpack.c.bf16 %v25597_v17, %v25596_v11 }
 0x8b0   :  { %15082 = vmatpush1.bf16.msra.mxu1 %v15081_v1  ;;  %v25599_v1 = vld [vmem:[#allocation99_spill] sm:$0xff] }
 0x8b1   :  { %8758 = vmatprep.subr.mxu1 %v24770_v39 }
 0x8b4   :  { %8762 = vmatpush1.msra.mxu1 %v25565_v41  ;;  %v15219_v41 = vpack.c.bf16 %v25599_v1, %v25598_v59 }
 0x8b5   :  { %8772 = vmatmul.mubr.f32.vlgmr.msra.gmra.mrb[68].mxu1 %v25568_v63  ;;  %15125 = vmatprep.subr.bf16.mxu1 %v24661_v24  ;;  %v15222_v63 = vpack.c.bf16 %v25601_v31, %v25600_v33 }
 0x8b6   :  { %8777 = vmatprep.mubr.f32.mxu1 %v25569_v5  ;;  %15127 = vmatpush1.bf16.msra.mxu1 %v25285_v37  ;;  %v25574_v37 = vld [vmem:[#allocation147_spill] sm:$0xff]  ;;  %v25602_v5 = vld [vmem:[#allocation21_spill] sm:$0xff] }
 0x8b7   :  { %15128 = vmatprep.subr.bf16.mxu1 %v24661_v24 }
 0x8b9   :  { %8779 = vmatmul.mubr.f32.gmra.mrb[70].mxu1 %v25570_v42  ;;  %v25604_v42 = vld [vmem:[#allocation119_spill] sm:$0xff] }
 0x8ba   :  { %15130 = vmatpush1.bf16.msra.mxu1 %v20032_v35  ;;  %9063 = vmatprep.mubr.f32.mxu1 %v9062_v6  ;;  %v25575_v35 = vld [vmem:[#allocation34_spill] sm:$0xff] }
 0x8bb   :  { %15131 = vmatprep.subr.bf16.mxu1 %v24661_v24 }
 0x8be   :  { %15133 = vmatpush1.bf16.msra.mxu1 %v25571_v9  ;;  %v25605_v9 = vld [vmem:[#allocation121_spill] sm:$0xff] }
 0x8bf   :  { %15134 = vmatprep.subr.bf16.mxu1 %v24661_v24 }
 0x8c2   :  { %15136 = vmatpush1.bf16.msra.mxu1 %v25572_v10  ;;  %v15228_v10 = vpack.c.bf16 %v25605_v9, %v25604_v42 }
 0x8c3   :  { %15137 = vmatprep.subr.bf16.mxu1 %v24661_v24 }
 0x8c6   :  { %15139 = vmatpush1.bf16.msra.mxu1 %v25573_v47  ;;  %v25606_v47 = vld [vmem:[#allocation127_spill] sm:$0xff] }
 0x8c7   :  { %15140 = vmatprep.subr.bf16.mxu1 %v24661_v24 }
 0x8ca   :  { %15142 = vmatpush1.bf16.msra.mxu1 %v25574_v37  ;;  %v25607_v37 = vld [vmem:[#allocation169_spill] sm:$0xff] }
 0x8cb   :  { %15143 = vmatprep.subr.bf16.mxu1 %v24661_v24 }
 0x8ce   :  { %15145 = vmatpush1.bf16.msra.mxu1 %v25575_v35  ;;  %v15231_v35 = vpack.c.bf16 %v25607_v37, %v25606_v47 }
 0x8cf   :  { %15146 = vmatprep.subr.bf16.mxu1 %v24661_v24 }
 0x8d2   :  { %15148 = vmatpush1.bf16.msra.mxu1 %v25576_v16  ;;  %v25608_v16 = vld [vmem:[#allocation173_spill] sm:$0xff] }
 0x8d3   :  { %15149 = vmatprep.subr.bf16.mxu1 %v24661_v24 }
 0x8d6   :  { %15151 = vmatpush1.bf16.msra.mxu1 %v25577_v52  ;;  %v25609_v52 = vld [vmem:[#allocation174_spill] sm:$0xff] }
 0x8d7   :  { %15152 = vmatprep.subr.bf16.mxu1 %v24661_v24 }
 0x8da   :  { %v7821_v55 = vpop.f32.mrb[56].mxu1  ;;  %15154 = vmatpush1.bf16.msra.mxu1 %v25578_v7  ;;  %v25610_v7 = vld [vmem:[#allocation176_spill] sm:$0xff] }
 0x8db   :  { %v7822_v53 = vadd.f32 %v7821_v55, %v7652_v15  ;;  %v7823_v56 = vpop.f32.mrb[57].mxu1  ;;  %15155 = vmatprep.subr.bf16.mxu1 %v24661_v24  ;;  %v15234_v55 = vpack.c.bf16 %v25609_v52, %v25608_v16 }
 0x8dd   :  { %v7930_v34 = vadd.f32 %v25579_v12, %v7822_v53  ;;  %v25611_v53 = vld [vmem:[#allocation177_spill] sm:$0xff] }
 0x8de   :  { %v7828_v60 = vpop.f32.mrb[58].mxu1  ;;  %15157 = vmatpush1.bf16.msra.mxu1 %v25580_v57  ;;  %v15237_v56 = vpack.c.bf16 %v25611_v53, %v25610_v7 }
 0x8df   :  { %v21900_v23 = vadd.f32 %v7930_v34, %v21721_v50  ;;  %v7829_v32 = vadd.f32 %v7828_v60, %v7663_v51  ;;  %v7830_v4 = vpop.f32.mrb[59].mxu1  ;;  %15158 = vmatprep.subr.bf16.mxu1 %v24661_v24  ;;  %v25585_v50 = vand.u32 4294901760, %v25584_v48  ;;  %v15213_v51 = vpack.c.bf16 %v25595_v3, %v25594_v29  ;;  %v25612_v34 = vld [vmem:[#allocation126_spill] sm:$0xff]  ;;  %v25613_v60 = vld [vmem:[#allocation133_spill] sm:$0xff] }
 0x8e0   :  { %v15240_v57 = vpack.c.bf16 %v25613_v60, %v25612_v34 }
 0x8e1   :  { %v7937_v0 = vadd.f32 %v25581_v36, %v7829_v32  ;;  %v9067_v44 = vsub.f32 %v25584_v48, %v25585_v50  ;;  %v25614_v32 = vld [vmem:[#allocation195_spill] sm:$0xff] }
 0x8e2   :  { %15160 = vmatpush1.bf16.msra.mxu1 %v25582_v46  ;;  %v25615_v46 = vld [vmem:[#allocation181_spill] sm:$0xff] }
 0x8e3   :  { %v21906_v2 = vadd.f32 %v7937_v0, %v21725_v28  ;;  %15161 = vmatprep.subr.bf16.mxu1 %v24661_v24  ;;  %v25589_v28 = vld [vmem:[#allocation58_spill] sm:$0xff]  ;;  %v9068_v15 = vand.u32 4294901760, %v9067_v44  ;;  %v25617_v44 = vld [vmem:[#allocation196_spill] sm:$0xff] }
 0x8e4   :  { %v15210_v22 = vpack.c.bf16 %v25590_v27, %v25589_v28 }
 0x8e6   :  { %15163 = vmatpush1.bf16.msra.mxu1 %v25583_v58  ;;  %v25616_v58 = vld [vmem:[#allocation182_spill] sm:$0xff] }
 0x8e7   :  { %15164 = vmatprep.subr.bf16.mxu1 %v24661_v24  ;;  %v15243_v50 = vpack.c.bf16 %v25616_v58, %v25615_v46 }
 0x8ea   :  { %15166 = vmatpush1.bf16.msra.mxu1 %v25586_v40 }
 0x8eb   :  { %9049 = vmatprep.subr.mxu1 %v24770_v39 }
 0x8ee   :  { %9051 = vmatpush1.msra.mxu1 %v25593_v14  ;;  %v15249_v14 = vpack.c.bf16 %v25621_v43, %v25620_v18 }
 0x8ef   :  { %9069 = vmatmul.mubr.f32.vlgmr.msra.gmra.mrb[72].mxu1 %v9068_v15  ;;  %15209 = vmatprep.subr.bf16.mxu1 %v24661_v24 }
 0x8f0   :  { %9078 = vmatprep.mubr.f32.mxu1 %v9077_v49  ;;  %15211 = vmatpush1.bf16.msra.mxu1 %v15210_v22  ;;  %v25619_v22 = vld [vmem:[#allocation185_spill] sm:$0xff]  ;;  %v25622_v49 = vand.u32 4294901760, %v25589_v28  ;;  %v25627_v28 = vld [vmem:[#allocation10_spill] sm:$0xff] }
 0x8f1   :  { %15212 = vmatprep.subr.bf16.mxu1 %v24661_v24  ;;  %v15246_v15 = vpack.c.bf16 %v25619_v22, %v25618_v62 }
 0x8f3   :  { %9084 = vmatmul.mubr.f32.gmra.mrb[74].mxu1 %v9083_v45 }
 0x8f4   :  { %15214 = vmatpush1.bf16.msra.mxu1 %v15213_v51  ;;  %9437 = vmatprep.mubr.f32.mxu1 %v25566_v20  ;;  %v25603_v20 = vld [vmem:[#allocation116_spill] sm:$0xff]  ;;  %v25623_v51 = vand.u32 4294901760, %v25590_v27  ;;  %v25628_v27 = vand.u32 4294901760, %v25596_v11  ;;  %v25634_v11 = vand.u32 4294901760, %v25602_v5 }
 0x8f5   :  { %15215 = vmatprep.subr.bf16.mxu1 %v24661_v24  ;;  %v15225_v6 = vpack.c.bf16 %v25603_v20, %v25602_v5  ;;  %v25640_v5 = vand.u32 4294901760, %v25608_v16 }
 0x8f6   :  { %v15294_v45 = vpack.c.bf16 %v25623_v51, %v25622_v49 }
 0x8f8   :  { %15217 = vmatpush1.bf16.msra.mxu1 %v15216_v21  ;;  %v25624_v21 = vld [vmem:[#allocation192_spill] sm:$0xff] }
 0x8f9   :  { %15218 = vmatprep.subr.bf16.mxu1 %v24661_v24 }
 0x8fc   :  { %15220 = vmatpush1.bf16.msra.mxu1 %v15219_v41  ;;  %v25625_v41 = vand.u32 4294901760, %v25594_v29  ;;  %v25631_v29 = vand.u32 4294901760, %v25599_v1  ;;  %v25637_v1 = vand.u32 4294901760, %v25605_v9  ;;  %v25643_v9 = vand.u32 4294901760, %v25611_v53 }
 0x8fd   :  { %15221 = vmatprep.subr.bf16.mxu1 %v24661_v24  ;;  %v25648_v53 = vand.u32 4294901760, %v25616_v58  ;;  %v25653_v58 = vand.u32 4294901760, %v25621_v43 }
 0x900   :  { %15223 = vmatpush1.bf16.msra.mxu1 %v15222_v63  ;;  %v25626_v63 = vand.u32 4294901760, %v25595_v3 }
 0x901   :  { %15224 = vmatprep.subr.bf16.mxu1 %v24661_v24 }
 0x904   :  { %15226 = vmatpush1.bf16.msra.mxu1 %v15225_v6  ;;  %v15297_v6 = vpack.c.bf16 %v25626_v63, %v25625_v41 }
 0x905   :  { %15227 = vmatprep.subr.bf16.mxu1 %v24661_v24 }
 0x908   :  { %15229 = vmatpush1.bf16.msra.mxu1 %v15228_v10 }
 0x909   :  { %15230 = vmatprep.subr.bf16.mxu1 %v24661_v24 }
 0x90c   :  { %15232 = vmatpush1.bf16.msra.mxu1 %v15231_v35  ;;  %v25633_v35 = vand.u32 4294901760, %v25601_v31  ;;  %v25639_v31 = vand.u32 4294901760, %v25607_v37  ;;  %v25644_v37 = vand.u32 4294901760, %v25612_v34  ;;  %v25649_v34 = vld [vmem:[#allocation114_spill] sm:$0xff] }
 0x90d   :  { %15233 = vmatprep.subr.bf16.mxu1 %v24661_v24 }
 0x910   :  { %15235 = vmatpush1.bf16.msra.mxu1 %v15234_v55 }
 0x911   :  { %15236 = vmatprep.subr.bf16.mxu1 %v24661_v24 }
 0x914   :  { %v8118_v12 = vpop.f32.mrb[60].mxu1  ;;  %15238 = vmatpush1.bf16.msra.mxu1 %v15237_v56 }
 0x915   :  { %v8351_v4 = vadd.f32 %v25614_v32, %v8118_v12  ;;  %v8120_v36 = vpop.f32.mrb[61].mxu1  ;;  %15239 = vmatprep.subr.bf16.mxu1 %v24661_v24 }
 0x918   :  { %v8133_v0 = vpop.f32.mrb[62].mxu1  ;;  %15241 = vmatpush1.bf16.msra.mxu1 %v15240_v57 }
 0x919   :  { %v8358_v40 = vadd.f32 %v25617_v44, %v8133_v0  ;;  %v8135_v61 = vpop.f32.mrb[63].mxu1  ;;  %15242 = vmatprep.subr.bf16.mxu1 %v24661_v24  ;;  %v25645_v0 = vand.u32 4294901760, %v25613_v60  ;;  %v25646_v44 = vld [vmem:[#allocation117_spill] sm:$0xff] }
 0x91b   :  { %v15324_v16 = vpack.c.bf16 %v25645_v0, %v25644_v37 }
 0x91c   :  { %15244 = vmatpush1.bf16.msra.mxu1 %v15243_v50 }
 0x91d   :  { %15245 = vmatprep.subr.bf16.mxu1 %v24661_v24 }
 0x920   :  { %15247 = vmatpush1.bf16.msra.mxu1 %v15246_v15 }
 0x921   :  { %15248 = vmatprep.subr.bf16.mxu1 %v24661_v24 }
 0x924   :  { %15250 = vmatpush1.bf16.msra.mxu1 %v15249_v14 }
 0x925   :  { %9425 = vmatprep.subr.mxu1 %v24770_v39 }
 0x928   :  { %9428 = vmatpush1.msra.mxu1 %v25624_v21 }
 0x929   :  { %9440 = vmatmul.mubr.f32.vlgmr.msra.gmra.mrb[76].mxu1 %v25584_v48  ;;  %15293 = vmatprep.subr.bf16.mxu1 %v24661_v24  ;;  %v25629_v48 = vand.u32 4294901760, %v25597_v17  ;;  %v25635_v17 = vand.u32 4294901760, %v25603_v20  ;;  %v25641_v20 = vand.u32 4294901760, %v25609_v52 }
 0x92a   :  { %9446 = vmatprep.mubr.f32.mxu1 %v25587_v13  ;;  %15295 = vmatpush1.bf16.msra.mxu1 %v15294_v45  ;;  %v25630_v13 = vand.u32 4294901760, %v25598_v59  ;;  %v25636_v59 = vand.u32 4294901760, %v25604_v42  ;;  %v25642_v42 = vand.u32 4294901760, %v25610_v7  ;;  %v25647_v7 = vand.u32 4294901760, %v25615_v46 }
 0x92b   :  { %15296 = vmatprep.subr.bf16.mxu1 %v24661_v24  ;;  %v15300_v10 = vpack.c.bf16 %v25629_v48, %v25628_v27  ;;  %v15309_v56 = vpack.c.bf16 %v25635_v17, %v25634_v11  ;;  %v15318_v32 = vpack.c.bf16 %v25641_v20, %v25640_v5  ;;  %v25651_v45 = vand.u32 4294901760, %v25619_v22  ;;  %v25656_v22 = vld [vmem:[#allocation129_spill] sm:$0xff]  ;;  %v25658_v27 = vld [vmem:[#allocation95_spill] sm:$0xff] }
 0x92c   :  { %v15303_v3 = vpack.c.bf16 %v25631_v29, %v25630_v13  ;;  %v15312_v12 = vpack.c.bf16 %v25637_v1, %v25636_v59  ;;  %v15321_v36 = vpack.c.bf16 %v25643_v9, %v25642_v42  ;;  %v15327_v14 = vpack.c.bf16 %v25648_v53, %v25647_v7  ;;  %v9981_v59 = vld [vmem:[#allocation6 + $0x88] sm:$0xff]  ;;  %v22058_v1 = vld [vmem:[#allocation6 + $0x90] sm:$0xff] }
 0x92d   :  { %9449 = vmatmul.mubr.f32.gmra.mrb[78].mxu1 %v25591_v26  ;;  %v25632_v26 = vand.u32 4294901760, %v25600_v33  ;;  %v25638_v33 = vand.u32 4294901760, %v25606_v47  ;;  %v25652_v46 = vand.u32 4294901760, %v25620_v18 }
 0x92e   :  { %15298 = vmatpush1.bf16.msra.mxu1 %v15297_v6  ;;  %9722 = vmatprep.mubr.f32.mxu1 %v25627_v28  ;;  %v25657_v6 = vld [vmem:[#allocation98_spill] sm:$0xff] }
 0x92f   :  { %15299 = vmatprep.subr.bf16.mxu1 %v24661_v24  ;;  %v15306_v55 = vpack.c.bf16 %v25633_v35, %v25632_v26  ;;  %v15315_v57 = vpack.c.bf16 %v25639_v31, %v25638_v33  ;;  %v15333_v63 = vpack.c.bf16 %v25653_v58, %v25652_v46  ;;  %v10004_v31 = vand.u32 4294901760, %v9981_v59 }
 0x932   :  { %15301 = vmatpush1.bf16.msra.mxu1 %v15300_v10 }
 0x933   :  { %15302 = vmatprep.subr.bf16.mxu1 %v24661_v24 }
 0x936   :  { %15304 = vmatpush1.bf16.msra.mxu1 %v15303_v3 }
 0x937   :  { %15305 = vmatprep.subr.bf16.mxu1 %v24661_v24 }
 0x93a   :  { %15307 = vmatpush1.bf16.msra.mxu1 %v15306_v55 }
 0x93b   :  { %15308 = vmatprep.subr.bf16.mxu1 %v24661_v24 }
 0x93e   :  { %15310 = vmatpush1.bf16.msra.mxu1 %v15309_v56  ;;  %v9980_v56 = vld [vmem:[#allocation6 + $0x80] sm:$0xff] }
 0x93f   :  { %15311 = vmatprep.subr.bf16.mxu1 %v24661_v24  ;;  %v10001_v33 = vand.u32 4294901760, %v9980_v56 }
 0x942   :  { %15313 = vmatpush1.bf16.msra.mxu1 %v15312_v12 }
 0x943   :  { %15314 = vmatprep.subr.bf16.mxu1 %v24661_v24 }
 0x946   :  { %15316 = vmatpush1.bf16.msra.mxu1 %v15315_v57  ;;  %v22060_v57 = vld [vmem:[#allocation6 + $0x98] sm:$0xff] }
 0x947   :  { %15317 = vmatprep.subr.bf16.mxu1 %v24661_v24 }
 0x94a   :  { %15319 = vmatpush1.bf16.msra.mxu1 %v15318_v32  ;;  %v22065_v32 = vsub.f32 %v9980_v56, %v10001_v33 }
 0x94b   :  { %15320 = vmatprep.subr.bf16.mxu1 %v24661_v24 }
 0x94e   :  { %v8489_v47 = vpop.f32.mrb[64].mxu1  ;;  %15322 = vmatpush1.bf16.msra.mxu1 %v15321_v36  ;;  %v24402_v36 = vand.u32 4294901760, %v22065_v32 }
 0x94f   :  { %v8490_v50 = vadd.f32 %v8489_v47, %v8351_v4  ;;  %v8491_v52 = vpop.f32.mrb[65].mxu1  ;;  %15323 = vmatprep.subr.bf16.mxu1 %v24661_v24  ;;  %v25650_v4 = vand.u32 4294901760, %v25618_v62  ;;  %v25655_v62 = vld [vmem:[#allocation141_spill] sm:$0xff] }
 0x950   :  { %v10095_v0 = vsub.f32 %v22065_v32, %v24402_v36 }
 0x951   :  { %v8604_v61 = vadd.f32 %v25646_v44, %v8490_v50  ;;  %v15330_v41 = vpack.c.bf16 %v25651_v45, %v25650_v4 }
 0x952   :  { %v8498_v15 = vpop.f32.mrb[66].mxu1  ;;  %15325 = vmatpush1.bf16.msra.mxu1 %v15324_v16  ;;  %v10096_v44 = vand.u32 4294901760, %v10095_v0  ;;  %v9989_v0 = vld [vmem:[#allocation6 + $0xc8] sm:$0xff] }
 0x953   :  { %v8499_v49 = vadd.f32 %v8498_v15, %v8358_v40  ;;  %v8500_v51 = vpop.f32.mrb[67].mxu1  ;;  %15326 = vmatprep.subr.bf16.mxu1 %v24661_v24  ;;  %v25654_v40 = vand.u32 4294901760, %v25624_v21  ;;  %v25659_v21 = vld [vmem:[#allocation179_spill] sm:$0xff] }
 0x955   :  { %v8615_v60 = vadd.f32 %v25649_v34, %v8499_v49 }
 0x956   :  { %15328 = vmatpush1.bf16.msra.mxu1 %v15327_v14 }
 0x957   :  { %15329 = vmatprep.subr.bf16.mxu1 %v24661_v24 }
 0x95a   :  { %15331 = vmatpush1.bf16.msra.mxu1 %v15330_v41 }
 0x95b   :  { %15332 = vmatprep.subr.bf16.mxu1 %v24661_v24 }
 0x95e   :  { %15334 = vmatpush1.bf16.msra.mxu1 %v15333_v63 }
 0x95f   :  { %9710 = vmatprep.subr.mxu1 %v24770_v39 }
 0x962   :  { %9714 = vmatpush1.msra.mxu1 %v25654_v40 }
 0x963   :  { %9724 = vmatmul.mubr.f32.vlgmr.msra.gmra.mrb[80].mxu1 %v25655_v62  ;;  %15377 = vmatprep.subr.bf16.mxu1 %v24661_v24 }
 0x964   :  { %9729 = vmatprep.mubr.f32.mxu1 %v25656_v22 }
 0x967   :  { %9731 = vmatmul.mubr.f32.gmra.mrb[82].mxu1 %v25657_v6  ;;  %v12627_v6 = vld [vmem:[%s23653_s4] ss:$0 sm:$0xff] }
 0x968   :  { %13069 = vmatprep.mubr.msk.f32.mxu1 %vm16402_vm0, %v24770_v39 }
 0x988   :  { %v8773_v18 = vpop.f32.mrb[68].mxu1 }
 0x989   :  { %v8774_v28 = vadd.f32 %v8773_v18, %v8604_v61  ;;  %v8775_v43 = vpop.f32.mrb[69].mxu1 }
 0x98b   :  { %v8882_v48 = vadd.f32 %v25658_v27, %v8774_v28 }
 0x98c   :  { %v8780_v10 = vpop.f32.mrb[70].mxu1 }
 0x98d   :  { %v8892_v13 = vadd.f32 %v8882_v48, %v21900_v23  ;;  %v8781_v29 = vadd.f32 %v8780_v10, %v8615_v60  ;;  %v8782_v3 = vpop.f32.mrb[71].mxu1  ;;  %v10007_v23 = vand.u32 4294901760, %v22058_v1 }
 0x98f   :  { %v8889_v26 = vadd.f32 %v25659_v21, %v8781_v29  ;;  %v22072_v42 = vsub.f32 %v22058_v1, %v10007_v23  ;;  %v9985_v29 = vld [vmem:[#allocation6 + $0xa8] sm:$0xff] }
 0x990   :  { %v10016_v21 = vand.u32 4294901760, %v9985_v29 }
 0x991   :  { %v8893_v35 = vadd.f32 %v8889_v26, %v21906_v2  ;;  %v10010_v2 = vand.u32 4294901760, %v22060_v57 }
 0x993   :  { %v22075_v9 = vsub.f32 %v22060_v57, %v10010_v2 }
 0x995   :  { %v24399_v37 = vand.u32 4294901760, %v22075_v9 }
 0x997   :  { %v10116_v52 = vsub.f32 %v22075_v9, %v24399_v37 }
 0x999   :  { %v10117_v7 = vand.u32 4294901760, %v10116_v52  ;;  %v9991_v52 = vld [vmem:[#allocation6 + $0xd8] sm:$0xff] }
 0x9c2   :  { %v9070_v55 = vpop.f32.mrb[72].mxu1 }
 0x9c3   :  { %v9303_v11 = vadd.f32 %v21449_v54, %v9070_v55  ;;  %v9072_v17 = vpop.f32.mrb[73].mxu1  ;;  %v22067_v54 = vsub.f32 %v9981_v59, %v10004_v31  ;;  %v22132_v59 = vpack.c.bf16 %v10010_v2, %v10007_v23 }
 0x9c5   :  { %v24401_v47 = vand.u32 4294901760, %v22067_v54 }
 0x9c6   :  { %v9085_v12 = vpop.f32.mrb[74].mxu1 }
 0x9c7   :  { %v9310_v5 = vadd.f32 %v21456_v19, %v9085_v12  ;;  %v9087_v20 = vpop.f32.mrb[75].mxu1  ;;  %v24400_v19 = vand.u32 4294901760, %v22072_v42  ;;  %v10102_v16 = vsub.f32 %v22067_v54, %v24401_v47  ;;  %v9986_v12 = vld [vmem:[#allocation6 + $0xb0] sm:$0xff] }
 0x9c8   :  { %v10019_v57 = vand.u32 4294901760, %v9986_v12 }
 0x9c9   :  { %v10109_v50 = vsub.f32 %v22072_v42, %v24400_v19  ;;  %v10103_v61 = vand.u32 4294901760, %v10102_v16 }
 0x9ca   :  { %v22140_v23 = vsub.f32 %v9986_v12, %v10019_v57  ;;  %v9995_v12 = vld [vmem:[#allocation6 + $0xf8] sm:$0xff] }
 0x9cb   :  { %v10110_v15 = vand.u32 4294901760, %v10109_v50  ;;  %v15402_v53 = vpack.c.bf16 %v10103_v61, %v10096_v44  ;;  %v22136_v50 = vld [vmem:[#allocation6 + $0xd0] sm:$0xff] }
 0x9cc   :  { %v10031_v1 = vand.u32 4294901760, %v22136_v50 }
 0x9cd   :  { %15403 = vmatpush3.bf16.msra.mxu0 %v15402_v53  ;;  %v15405_v14 = vpack.c.bf16 %v10117_v7, %v10110_v15  ;;  %v10028_v15 = vand.u32 4294901760, %v9989_v0  ;;  %v22147_v53 = vld [vmem:[#allocation6 + $0xe0] sm:$0xff] }
 0x9ce   :  { %15404 = vmatprep.subr.bf16.mxu0 %v24661_v24 }
 0x9d1   :  { %15406 = vmatpush3.bf16.msra.mxu0 %v15405_v14 }
 0x9d2   :  { %15407 = vmatprep.subr.bf16.mxu0 %v24661_v24 }
 0x9fc   :  { %v9441_v49 = vpop.f32.mrb[76].mxu1 }
 0x9fd   :  { %v9442_v51 = vadd.f32 %v9441_v49, %v9303_v11  ;;  %v9443_v34 = vpop.f32.mrb[77].mxu1  ;;  %v22149_v49 = vsub.f32 %v9989_v0, %v10028_v15 }
 0x9fe   :  { %v22152_v34 = vsub.f32 %v22136_v50, %v10031_v1 }
 0x9ff   :  { %v9556_v60 = vadd.f32 %v21505_v8, %v9442_v51  ;;  %v10034_v51 = vand.u32 4294901760, %v9991_v52 }
 0xa00   :  { %v9450_v4 = vpop.f32.mrb[78].mxu1 }
 0xa01   :  { %v9451_v45 = vadd.f32 %v9450_v4, %v9310_v5  ;;  %v9452_v41 = vpop.f32.mrb[79].mxu1  ;;  %v10136_v4 = vand.u32 4294901760, %v22140_v23 }
 0xa03   :  { %v9567_v46 = vadd.f32 %v21509_v30, %v9451_v45 }
 0xa36   :  { %v9725_v58 = vpop.f32.mrb[80].mxu1 }
 0xa37   :  { %v9726_v63 = vadd.f32 %v9725_v58, %v9556_v60  ;;  %v9727_v40 = vpop.f32.mrb[81].mxu1  ;;  %v22154_v60 = vld [vmem:[#allocation6 + $0xe8] sm:$0xff]  ;;  %v10157_v58 = vand.u32 4294901760, %v22149_v49 }
 0xa38   :  { %v22164_v40 = vsub.f32 %v9991_v52, %v10034_v51 }
 0xa39   :  { %v9834_v62 = vadd.f32 %v21545_v38, %v9726_v63  ;;  %v10164_v63 = vand.u32 4294901760, %v22152_v34 }
 0xa3a   :  { %v9732_v22 = vpop.f32.mrb[82].mxu1 }
 0xa3b   :  { %v9844_v18 = vadd.f32 %v9834_v62, %v8892_v13  ;;  %v9733_v28 = vadd.f32 %v9732_v22, %v9567_v46  ;;  %v9734_v43 = vpop.f32.mrb[83].mxu1  ;;  %v22114_v13 = vpack.c.bf16 %v10004_v31, %v10001_v33  ;;  %v9987_v33 = vld [vmem:[#allocation6 + $0xb8] sm:$0xff]  ;;  %v9988_v31 = vld [vmem:[#allocation6 + $0xc0] sm:$0xff]  ;;  %v10037_v62 = vand.u32 4294901760, %v22147_v53 }
 0xa3c   :  { %v10022_v5 = vand.u32 4294901760, %v9987_v33  ;;  %v10025_v16 = vand.u32 4294901760, %v9988_v31  ;;  %v10137_v22 = vsub.f32 %v22140_v23, %v10136_v4  ;;  %v10158_v43 = vsub.f32 %v22149_v49, %v10157_v58 }
 0xa3d   :  { %v9841_v8 = vadd.f32 %v21549_v25, %v9733_v28  ;;  %v22102_v27 = vadd.f32 %v12627_v6, %v9844_v18  ;;  %v9984_v25 = vld [vmem:[#allocation6 + $0xa0] sm:$0xff]  ;;  %15379 = vmatpush3.bf16.msra.mxu1 %v22114_v13  ;;  %v10040_v28 = vand.u32 4294901760, %v22154_v60 }
 0xa3e   :  { %v10013_v3 = vand.u32 4294901760, %v9984_v25  ;;  %15380 = vmatprep.subr.bf16.mxu1 %v24661_v24  ;;  %v22142_v2 = vsub.f32 %v9987_v33, %v10022_v5  ;;  %v22145_v7 = vsub.f32 %v9988_v31, %v10025_v16  ;;  %v22159_v46 = vpack.c.bf16 %v10022_v5, %v10019_v57 }
 0xa3f   :  { %v9845_v48 = vadd.f32 %v9841_v8, %v8893_v35  ;;  %v9855_v30 = vmax.f32 %v22102_v27, 0.0  ;;  %v22119_v35 = vsub.f32 %v9985_v29, %v10016_v21  ;;  %v10165_v8 = vsub.f32 %v22152_v34, %v10164_v63  ;;  %v9994_v29 = vld [vmem:[#allocation6 + $0xf0] sm:$0xff] }
 0xa40   :  { %v22117_v26 = vsub.f32 %v9984_v25, %v10013_v3  ;;  %v22134_v20 = vpack.c.bf16 %v10016_v21, %v10013_v3  ;;  %v10143_v45 = vand.u32 4294901760, %v22142_v2  ;;  %v10150_v41 = vand.u32 4294901760, %v22145_v7 }
 0xa41   :  { %9857 = vrot.lane.b32.xlu0 %v9855_v30, %s16400_s2  ;;  %v22108_v38 = vadd.f32 %v12627_v6, %v9845_v48  ;;  %v10129_v11 = vand.u32 4294901760, %v22119_v35  ;;  %15382 = vmatpush3.bf16.msra.mxu1 %v22132_v59  ;;  %v10171_v48 = vand.u32 4294901760, %v22164_v40  ;;  %v22187_v25 = vsub.f32 %v22147_v53, %v10037_v62 }
 0xa42   :  { %v10122_v55 = vand.u32 4294901760, %v22117_v26  ;;  %15383 = vmatprep.subr.bf16.mxu1 %v24661_v24  ;;  %v10144_v6 = vsub.f32 %v22142_v2, %v10143_v45  ;;  %v10151_v18 = vsub.f32 %v22145_v7, %v10150_v41  ;;  %v10138_v3 = vand.u32 4294901760, %v10137_v22 }
 0xa43   :  { %v9856_v10 = vmax.f32 %v22108_v38, 0.0  ;;  %v10130_v56 = vsub.f32 %v22119_v35, %v10129_v11  ;;  %v10159_v33 = vand.u32 4294901760, %v10158_v43  ;;  %v10172_v31 = vsub.f32 %v22164_v40, %v10171_v48 }
 0xa44   :  { %v10123_v17 = vsub.f32 %v22117_v26, %v10122_v55  ;;  %v10145_v21 = vand.u32 4294901760, %v10144_v6  ;;  %v22196_v57 = vpack.c.bf16 %v10028_v15, %v10025_v16  ;;  %v10178_v5 = vand.u32 4294901760, %v22187_v25 }
 0xa45   :  { %9859 = vrot.lane.b32.xlu1 %v9856_v10, %s16400_s2  ;;  %v10131_v61 = vand.u32 4294901760, %v10130_v56  ;;  %15385 = vmatpush3.bf16.msra.mxu1 %v22134_v20  ;;  %v22190_v56 = vsub.f32 %v22154_v60, %v10040_v28  ;;  %v10043_v52 = vand.u32 4294901760, %v9994_v29  ;;  %v10173_v53 = vand.u32 4294901760, %v10172_v31 }
 0xa46   :  { %v10124_v44 = vand.u32 4294901760, %v10123_v17  ;;  %15386 = vmatprep.subr.bf16.mxu1 %v24661_v24  ;;  %v10152_v17 = vand.u32 4294901760, %v10151_v18  ;;  %v15411_v0 = vpack.c.bf16 %v10145_v21, %v10138_v3  ;;  %v10179_v60 = vsub.f32 %v22187_v25, %v10178_v5 }
 0xa47   :  { %v10185_v50 = vand.u32 4294901760, %v22190_v56  ;;  %v22203_v6 = vsub.f32 %v9994_v29, %v10043_v52  ;;  %v22207_v16 = vpack.c.bf16 %v10034_v51, %v10031_v1  ;;  %v22222_v21 = vpack.c.bf16 %v10040_v28, %v10037_v62 }
 0xa48   :  { %v15408_v14 = vpack.c.bf16 %v10131_v61, %v10124_v44  ;;  %v15414_v44 = vpack.c.bf16 %v10159_v33, %v10152_v17  ;;  %v10166_v61 = vand.u32 4294901760, %v10165_v8  ;;  %v10180_v29 = vand.u32 4294901760, %v10179_v60 }
 0xa49   :  { %15388 = vmatpush3.bf16.msra.mxu1 %v22159_v46  ;;  %v10186_v22 = vsub.f32 %v22190_v56, %v10185_v50  ;;  %v10192_v18 = vand.u32 4294901760, %v22203_v6  ;;  %v22256_v60 = vpack.c.bf16 %v10143_v45, %v10136_v4 }
 0xa4a   :  { %15409 = vmatpush3.bf16.msra.mxu0 %v15408_v14  ;;  %15389 = vmatprep.subr.bf16.mxu1 %v24661_v24  ;;  %v10046_v14 = vand.u32 4294901760, %v9995_v12  ;;  %v15417_v8 = vpack.c.bf16 %v10173_v53, %v10166_v61 }
 0xa4b   :  { %15410 = vmatprep.subr.bf16.mxu0 %v24661_v24  ;;  %v10187_v1 = vand.u32 4294901760, %v10186_v22  ;;  %v10193_v51 = vsub.f32 %v22203_v6, %v10192_v18  ;;  %v22262_v22 = vpack.c.bf16 %v10157_v58, %v10150_v41 }
 0xa4c   :  { %v22209_v15 = vsub.f32 %v9995_v12, %v10046_v14 }
 0xa4d   :  { %15391 = vmatpush3.bf16.msra.mxu1 %v22196_v57  ;;  %v15420_v12 = vpack.c.bf16 %v10187_v1, %v10180_v29  ;;  %v10194_v33 = vand.u32 4294901760, %v10193_v51  ;;  %v25661_v1 = vld [vmem:[#allocation107_spill] sm:$0xff] }
 0xa4e   :  { %15412 = vmatpush3.bf16.msra.mxu0 %v15411_v0  ;;  %15392 = vmatprep.subr.bf16.mxu1 %v24661_v24  ;;  %v10199_v43 = vand.u32 4294901760, %v22209_v15  ;;  %v22229_v0 = vpack.c.bf16 %v10046_v14, %v10043_v52  ;;  %v22250_v14 = vpack.c.bf16 %v10129_v11, %v10122_v55  ;;  %v22270_v55 = vpack.c.bf16 %v10185_v50, %v10178_v5 }
 0xa4f   :  { %15413 = vmatprep.subr.bf16.mxu0 %v24661_v24 }
 0xa50   :  { %v10200_v3 = vsub.f32 %v22209_v15, %v10199_v43  ;;  %v22272_v11 = vpack.c.bf16 %v10199_v43, %v10192_v18 }
 0xa51   :  { %15394 = vmatpush3.bf16.msra.mxu1 %v22207_v16 }
 0xa52   :  { %15415 = vmatpush3.bf16.msra.mxu0 %v15414_v44  ;;  %15395 = vmatprep.subr.bf16.mxu1 %v24661_v24  ;;  %v10201_v31 = vand.u32 4294901760, %v10200_v3  ;;  %25660 = vst [vmem:[#allocation184_spill] sm:$0xff] %v22272_v11 }
 0xa53   :  { %15416 = vmatprep.subr.bf16.mxu0 %v24661_v24 }
 0xa54   :  { %v15423_v28 = vpack.c.bf16 %v10201_v31, %v10194_v33 }
 0xa55   :  { %15397 = vmatpush3.bf16.msra.mxu1 %v22222_v21 }
 0xa56   :  { %15418 = vmatpush3.bf16.msra.mxu0 %v15417_v8  ;;  %15398 = vmatprep.subr.bf16.mxu1 %v24661_v24  ;;  %v22268_v8 = vpack.c.bf16 %v10171_v48, %v10164_v63 }
 0xa57   :  { %15419 = vmatprep.subr.bf16.mxu0 %v24661_v24 }
 0xa59   :  { %15400 = vmatpush3.bf16.msra.mxu1 %v22229_v0 }
 0xa5a   :  { %15421 = vmatpush3.bf16.msra.mxu0 %v15420_v12  ;;  %15425 = vmatprep.subr.bf16.mxu1 %v24661_v24 }
 0xa5b   :  { %15422 = vmatprep.subr.bf16.mxu0 %v24661_v24 }
 0xa5e   :  { %15424 = vmatpush3.bf16.msra.mxu0 %v15423_v28 }
 0xa5f   :  { %15449 = vmatprep.subr.bf16.mxu0 %v24661_v24 }
 0xab3   :  { %v9858_v29 = vpop.permute.xlu0 %9857 }
 0xab4   :  { %v9861_v4 = vmax.f32 %v9855_v30, %v9858_v29 }
 0xab6   :  { %v9865_v45 = vcombine.high %v9861_v4, %v9861_v4  ;;  %v9872_v51 = vrot.slane %v9861_v4, %v25661_v1 }
 0xab7   :  { %v9860_v3 = vpop.permute.xlu1 %9859 }
 0xab8   :  { %v9879_v41 = vrot.slane %v9865_v45, %v25661_v1  ;;  %v9880_v58 = vcombine.high %v9872_v51, %v9872_v51  ;;  %v9907_v12 = vsel %vm4717_vm6, %v9872_v51, -inf  ;;  %v9862_v63 = vmax.f32 %v9856_v10, %v9860_v3 }
 0xab9   :  { %v9908_v48 = vrot.slane %v9907_v12, 4 }
 0xaba   :  { %v9881_v5 = vcombine.high %v9879_v41, %v9879_v41  ;;  %v9914_v50 = vsel %vm4717_vm6, %v9880_v58, -inf  ;;  %v9921_v18 = vsel %vm4717_vm6, %v9879_v41, -inf  ;;  %v9882_v27 = vcombine.high %v9862_v63, %v9862_v63 }
 0xabb   :  { %v9909_v30 = vmax.f32 %v9907_v12, %v9908_v48  ;;  %v9915_v43 = vrot.slane %v9914_v50, 4  ;;  %v9922_v33 = vrot.slane %v9921_v18, 4  ;;  %v9889_v31 = vrot.slane %v9862_v63, %v25661_v1 }
 0xabc   :  { %v9928_v28 = vsel %vm4717_vm6, %v9881_v5, -inf  ;;  %v9896_v29 = vrot.slane %v9882_v27, %v25661_v1 }
 0xabd   :  { %v9910_v4 = vrot.slane %v9909_v30, 2  ;;  %v9916_v45 = vmax.f32 %v9914_v50, %v9915_v43  ;;  %v9923_v38 = vmax.f32 %v9921_v18, %v9922_v33  ;;  %v9929_v10 = vrot.slane %v9928_v28, 4 }
 0xabe   :  { %v9897_v51 = vcombine.high %v9889_v31, %v9889_v31  ;;  %v9898_v3 = vcombine.high %v9896_v29, %v9896_v29  ;;  %v9935_v58 = vsel %vm4717_vm6, %v9889_v31, -inf  ;;  %v9949_v41 = vsel %vm4717_vm6, %v9896_v29, -inf }
 0xabf   :  { %v9917_v37 = vrot.slane %v9916_v45, 2  ;;  %v9924_v12 = vrot.slane %v9923_v38, 2  ;;  %v9930_v48 = vmax.f32 %v9928_v28, %v9929_v10  ;;  %v9936_v19 = vrot.slane %v9935_v58, 4 }
 0xac0   :  { %v9942_v63 = vsel %vm4717_vm6, %v9897_v51, -inf  ;;  %v9950_v47 = vrot.slane %v9949_v41, 4  ;;  %v9956_v5 = vsel %vm4717_vm6, %v9898_v3, -inf  ;;  %v9911_v1 = vmax.f32 %v9909_v30, %v9910_v4 }
 0xac1   :  { %v9925_v27 = vmax.f32 %v9923_v38, %v9924_v12  ;;  %v9931_v50 = vrot.slane %v9930_v48, 2  ;;  %v9937_v18 = vmax.f32 %v9935_v58, %v9936_v19  ;;  %v9943_v43 = vrot.slane %v9942_v63, 4 }
 0xac2   :  { %v9951_v33 = vmax.f32 %v9949_v41, %v9950_v47  ;;  %v9957_v36 = vrot.slane %v9956_v5, 4  ;;  %v9918_v53 = vmax.f32 %v9916_v45, %v9917_v37  ;;  %v9912_v28 = vrot.slane %v9911_v1, 1 }
 0xac3   :  { %v9932_v31 = vmax.f32 %v9930_v48, %v9931_v50  ;;  %v9938_v61 = vrot.slane %v9937_v18, 2  ;;  %v9944_v29 = vmax.f32 %v9942_v63, %v9943_v43  ;;  %v9926_v10 = vrot.slane %v9925_v27, 1  ;;  %v22290_v50 = vld [vmem:[#allocation6] sm:$0xff] }
 0xac4   :  { %v9952_v52 = vrot.slane %v9951_v33, 2  ;;  %v9958_v44 = vmax.f32 %v9956_v5, %v9957_v36  ;;  %v9919_v3 = vrot.slane %v9918_v53, 1  ;;  %v9913_v47 = vmax.f32 %v9911_v1, %v9912_v28  ;;  %v22321_v28 = vld [vmem:[#allocation6 + $0x20] sm:$0xff] }
 0xac5   :  { %v9939_v62 = vmax.f32 %v9937_v18, %v9938_v61  ;;  %v9945_v51 = vrot.slane %v9944_v29, 2  ;;  %v9933_v30 = vrot.slane %v9932_v31, 1  ;;  %v9927_v41 = vmax.f32 %v9925_v27, %v9926_v10  ;;  %v22292_v61 = vld [vmem:[#allocation6 + $0x8] sm:$0xff] }
 0xac6   :  { %v9953_v17 = vmax.f32 %v9951_v33, %v9952_v52  ;;  %v9959_v11 = vrot.slane %v9958_v44, 2  ;;  %v9920_v63 = vmax.f32 %v9918_v53, %v9919_v3  ;;  %v24408_v27 = vand.u32 4294901760, %v22290_v50  ;;  %v22323_v10 = vld [vmem:[#allocation6 + $0x28] sm:$0xff] }
 0xac7   :  { %v9940_v4 = vrot.slane %v9939_v62, 1  ;;  %v9946_v38 = vmax.f32 %v9944_v29, %v9945_v51  ;;  %v9934_v36 = vmax.f32 %v9932_v31, %v9933_v30  ;;  %v24405_v43 = vand.u32 4294901760, %v22292_v61 }
 0xac8   :  { %v9954_v19 = vrot.slane %v9953_v17, 1  ;;  %v9960_v58 = vmax.f32 %v9958_v44, %v9959_v11  ;;  %v22300_v11 = vld [vmem:[#allocation6 + $0x10] sm:$0xff]  ;;  %v22330_v3 = vsub.f32 %v22290_v50, %v24408_v27 }
 0xac9   :  { %v9941_v37 = vmax.f32 %v9939_v62, %v9940_v4  ;;  %v9947_v45 = vrot.slane %v9946_v38, 1  ;;  %v24404_v33 = vand.u32 4294901760, %v22300_v11  ;;  %v22335_v30 = vsub.f32 %v22292_v61, %v24405_v43  ;;  %v22385_v43 = vld [vmem:[#allocation6 + $0x40] sm:$0xff] }
 0xaca   :  { %v9955_v12 = vmax.f32 %v9953_v17, %v9954_v19  ;;  %v9961_v48 = vrot.slane %v9960_v58, 1  ;;  %v22303_v17 = vld [vmem:[#allocation6 + $0x18] sm:$0xff] }
 0xacb   :  { %v9948_v5 = vmax.f32 %v9946_v38, %v9947_v45  ;;  %v22295_v52 = vsel %vm5146_vm8, %v9941_v37, %v9913_v47  ;;  %v24403_v29 = vand.u32 4294901760, %v22303_v17  ;;  %v22340_v4 = vsub.f32 %v22300_v11, %v24404_v33  ;;  %v22354_v37 = vld [vmem:[#allocation6 + $0x38] sm:$0xff] }
 0xacc   :  { %25662 = vst [vmem:[#allocation183_spill] sm:$0xff] %v22295_v52  ;;  %v22298_v18 = vsel %vm5146_vm8, %v9955_v12, %v9927_v41  ;;  %v9962_v44 = vmax.f32 %v9960_v58, %v9961_v48  ;;  %v24406_v58 = vand.u32 4294901760, %v22321_v28  ;;  %v24407_v47 = vand.u32 4294901760, %v22323_v10  ;;  %v22352_v41 = vld [vmem:[#allocation6 + $0x30] sm:$0xff]  ;;  %v22474_v52 = vld [vmem:[#allocation6 + $0x78] sm:$0xff] }
 0xacd   :  { %25663 = vst [vmem:[#allocation132_spill] sm:$0xff] %v22298_v18  ;;  %v9998_v62 = vsel %vm5146_vm8, %v9948_v5, %v9920_v63  ;;  %v22348_v19 = vsub.f32 %v22303_v17, %v24403_v29  ;;  %v15426_v45 = vpack.c.bf16 %v22067_v54, %v22065_v32  ;;  %v24410_v48 = vand.u32 4294901760, %v22330_v3 }
 0xace   :  { %v22306_v53 = vsel %vm5146_vm8, %v9962_v44, %v9934_v36  ;;  %v22308_v1 = vand.u32 4294901760, %v9998_v62  ;;  %v24409_v63 = vand.u32 4294901760, %v22335_v30  ;;  %v24412_v36 = vand.u32 4294901760, %v22340_v4 }
 0xacf   :  { %25664 = vst [vmem:[#allocation125_spill] sm:$0xff] %v22306_v53  ;;  %v24414_v5 = vand.u32 4294901760, %v22352_v41  ;;  %v24415_v44 = vand.u32 4294901760, %v22354_v37  ;;  %v22369_v29 = vsub.f32 %v22321_v28, %v24406_v58  ;;  %v22387_v58 = vld [vmem:[#allocation6 + $0x48] sm:$0xff] }
 0xad0   :  { %v22314_v31 = vsub.f32 %v9998_v62, %v22308_v1  ;;  %13105 = vmatmul.mubr.f32.vlgmr.msra.gmra.mrb[48].mxu0 %v22308_v1  ;;  %v24411_v62 = vand.u32 4294901760, %v22348_v19  ;;  %v22380_v33 = vpack.c.bf16 %v24409_v63, %v24410_v48  ;;  %25666 = vst [vmem:[#allocation122_spill] sm:$0xff] %v22387_v58  ;;  %v25672_v18 = vand.u32 4294901760, %v22387_v58 }
 0xad1   :  { %15451 = vmatpush3.bf16.msra.mxu0 %v22114_v13  ;;  %13174 = vmatprep.mubr.msk.f32.mxu0 %vm16402_vm0, %v24770_v39  ;;  %v22407_v27 = vsub.f32 %v22354_v37, %v24415_v44  ;;  %v24420_v63 = vand.u32 4294901760, %v22369_v29 }
 0xad2   :  { %15452 = vmatprep.subr.bf16.mxu0 %v24661_v24  ;;  %v24413_v51 = vand.u32 4294901760, %v22314_v31  ;;  %25665 = vst [vmem:[#allocation191_spill] sm:$0xff] %v22380_v33 }
 0xad4   :  { %v10084_v38 = vsub.f32 %v22314_v31, %v24413_v51  ;;  %v22414_v51 = vld [vmem:[#allocation6 + $0x50] sm:$0xff] }
 0xad5   :  { %15454 = vmatpush3.bf16.msra.mxu0 %v22132_v59  ;;  %25668 = vst [vmem:[#allocation113_spill] sm:$0xff] %v22414_v51  ;;  %v24423_v33 = vand.u32 4294901760, %v22414_v51 }
 0xad6   :  { %15455 = vmatprep.subr.bf16.mxu0 %v24661_v24  ;;  %v10085_v12 = vand.u32 4294901760, %v10084_v38  ;;  %v22374_v38 = vsub.f32 %v22323_v10, %v24407_v47  ;;  %v22395_v47 = vpack.c.bf16 %v24411_v62, %v24412_v36  ;;  %v25671_v36 = vand.u32 4294901760, %v22385_v43 }
 0xad8   :  { %13070 = vmatmul.mubr.f32.vlgmr.msra.gmra.mrb[84].mxu1 %v10085_v12  ;;  %v15429_v12 = vpack.c.bf16 %v22075_v9, %v22072_v42  ;;  %25667 = vst [vmem:[#allocation124_spill] sm:$0xff] %v22395_v47  ;;  %v24419_v48 = vand.u32 4294901760, %v22374_v38  ;;  %v22431_v53 = vsub.f32 %v22385_v43, %v25671_v36  ;;  %v22436_v47 = vsub.f32 %v22387_v58, %v25672_v18  ;;  %v22452_v36 = vld [vmem:[#allocation6 + $0x60] sm:$0xff] }
 0xad9   :  { %15427 = vmatpush3.bf16.msra.mxu1 %v15426_v45  ;;  %15457 = vmatpush3.bf16.msra.mxu0 %v22134_v20  ;;  %v22402_v45 = vsub.f32 %v22352_v41, %v24414_v5  ;;  %v22416_v5 = vld [vmem:[#allocation6 + $0x58] sm:$0xff]  ;;  %v25679_v58 = vpack.c.bf16 %v22149_v49, %v22145_v7 }
 0xada   :  { %15428 = vmatprep.subr.bf16.mxu1 %v24661_v24  ;;  %15458 = vmatprep.subr.bf16.mxu0 %v24661_v24  ;;  %25669 = vst [vmem:[#allocation123_spill] sm:$0xff] %v22416_v5  ;;  %v22424_v44 = vpack.c.bf16 %v24419_v48, %v24420_v63  ;;  %v25673_v48 = vpack.c.bf16 %v22119_v35, %v22117_v26  ;;  %v22454_v63 = vld [vmem:[#allocation6 + $0x68] sm:$0xff] }
 0xadb   :  { %13139 = vmatprep.mubr.msk.f32.mxu1 %vm16402_vm0, %v24770_v39  ;;  %v24422_v62 = vand.u32 4294901760, %v22402_v45  ;;  %v22461_v35 = vsub.f32 %v22414_v51, %v24423_v33  ;;  %v24428_v33 = vand.u32 4294901760, %v22452_v36  ;;  %v24427_v26 = vand.u32 4294901760, %v22454_v63 }
 0xadc   :  { %25670 = vst [vmem:[#allocation16_spill] sm:$0xff] %v22424_v44  ;;  %v24431_v51 = vand.u32 4294901760, %v22474_v52 }
 0xadd   :  { %15430 = vmatpush3.bf16.msra.mxu1 %v15429_v12  ;;  %15460 = vmatpush3.bf16.msra.mxu0 %v22159_v46  ;;  %v24421_v12 = vand.u32 4294901760, %v22407_v27 }
 0xade   :  { %15431 = vmatprep.subr.bf16.mxu1 %v24661_v24  ;;  %15461 = vmatprep.subr.bf16.mxu0 %v24661_v24 }
 0xadf   :  { %v22450_v18 = vpack.c.bf16 %v24421_v12, %v24422_v62  ;;  %v25676_v12 = vpack.c.bf16 %v22142_v2, %v22140_v23  ;;  %v22472_v62 = vld [vmem:[#allocation6 + $0x70] sm:$0xff]  ;;  %v24432_v2 = vand.u32 4294901760, %v22461_v35 }
 0xae1   :  { %15433 = vmatpush3.bf16.msra.mxu1 %v25673_v48  ;;  %15463 = vmatpush3.bf16.msra.mxu0 %v22196_v57  ;;  %25674 = vst [vmem:[#allocation109_spill] sm:$0xff] %v22450_v18  ;;  %v25675_v48 = vand.u32 4294901760, %v22416_v5  ;;  %v25678_v18 = vand.u32 4294901760, %v22436_v47 }
 0xae2   :  { %15434 = vmatprep.subr.bf16.mxu1 %v24661_v24  ;;  %15464 = vmatprep.subr.bf16.mxu0 %v24661_v24 }
 0xae3   :  { %v22466_v44 = vsub.f32 %v22416_v5, %v25675_v48  ;;  %v25677_v48 = vand.u32 4294901760, %v22431_v53  ;;  %v24429_v5 = vand.u32 4294901760, %v22472_v62 }
 0xae5   :  { %15436 = vmatpush3.bf16.msra.mxu1 %v25676_v12  ;;  %15466 = vmatpush3.bf16.msra.mxu0 %v22207_v16  ;;  %v22484_v23 = vpack.c.bf16 %v25678_v18, %v25677_v48  ;;  %v24430_v12 = vand.u32 4294901760, %v22466_v44  ;;  %v22499_v18 = vsub.f32 %v22452_v36, %v24428_v33  ;;  %v22504_v48 = vsub.f32 %v22454_v63, %v24427_v26 }
 0xae6   :  { %15437 = vmatprep.subr.bf16.mxu1 %v24661_v24  ;;  %15467 = vmatprep.subr.bf16.mxu0 %v24661_v24  ;;  %v22515_v49 = vsub.f32 %v22472_v62, %v24429_v5  ;;  %v25680_v26 = vpack.c.bf16 %v22164_v40, %v22152_v34  ;;  %v25682_v40 = vpack.c.bf16 %v22190_v56, %v22187_v25  ;;  %v25685_v25 = vand.u32 4294901760, %v22067_v54 }
 0xae7   :  { %v22510_v7 = vpack.c.bf16 %v24430_v12, %v24432_v2  ;;  %v10823_v33 = vand.u32 4294901760, %v22499_v18  ;;  %v10830_v5 = vand.u32 4294901760, %v22504_v48  ;;  %v25681_v12 = vand.u32 4294901760, %v22314_v31 }
 0xae9   :  { %15439 = vmatpush3.bf16.msra.mxu1 %v25679_v58  ;;  %15469 = vmatpush3.bf16.msra.mxu0 %v22222_v21  ;;  %v22520_v58 = vsub.f32 %v22474_v52, %v24431_v51  ;;  %v10837_v51 = vand.u32 4294901760, %v22515_v49  ;;  %v22538_v34 = vpack.c.bf16 %v10830_v5, %v10823_v33 }
 0xaea   :  { %15440 = vmatprep.subr.bf16.mxu1 %v24661_v24  ;;  %15470 = vmatprep.subr.bf16.mxu0 %v24661_v24 }
 0xaeb   :  { %v10844_v2 = vand.u32 4294901760, %v22520_v58 }
 0xaed   :  { %15442 = vmatpush3.bf16.msra.mxu1 %v25680_v26  ;;  %15472 = vmatpush3.bf16.msra.mxu0 %v22229_v0  ;;  %v22550_v26 = vpack.c.bf16 %v10844_v2, %v10837_v51 }
 0xaee   :  { %15443 = vmatprep.subr.bf16.mxu1 %v24661_v24  ;;  %15497 = vmatprep.subr.bf16.mxu0 %v24661_v24 }
 0xaf0   :  { %13175 = vmatmul.mubr.f32.vlgmr.msra.gmra.mrb[50].mxu0 %v25681_v12  ;;  %v25683_v12 = vpack.c.bf16 %v22209_v15, %v22203_v6  ;;  %v25687_v6 = vand.u32 4294901760, %v22075_v9 }
 0xaf1   :  { %15445 = vmatpush3.bf16.msra.mxu1 %v25682_v40  ;;  %15499 = vmatpush3.bf16.msra.mxu0 %v22114_v13  ;;  %v25684_v13 = vand.u32 4294901760, %v22065_v32  ;;  %v25686_v40 = vand.u32 4294901760, %v22072_v42  ;;  %v25688_v32 = vand.u32 4294901760, %v22330_v3  ;;  %v25689_v42 = vand.u32 4294901760, %v22335_v30 }
 0xaf2   :  { %15446 = vmatprep.subr.bf16.mxu1 %v24661_v24  ;;  %15500 = vmatprep.subr.bf16.mxu0 %v24661_v24 }
 0xaf3   :  { %13244 = vmatprep.mubr.msk.f32.mxu0 %vm16402_vm0, %v24770_v39  ;;  %v15474_v56 = vpack.c.bf16 %v25685_v25, %v25684_v13  ;;  %v15477_v15 = vpack.c.bf16 %v25687_v6, %v25686_v40  ;;  %v10740_v54 = vsub.f32 %v22330_v3, %v25688_v32  ;;  %v10747_v9 = vsub.f32 %v22335_v30, %v25689_v42 }
 0xaf5   :  { %15448 = vmatpush3.bf16.msra.mxu1 %v25683_v12  ;;  %15502 = vmatpush3.bf16.msra.mxu0 %v22132_v59  ;;  %v10741_v59 = vand.u32 4294901760, %v10740_v54  ;;  %v25696_v54 = vand.u32 4294901760, %v22290_v50  ;;  %v25701_v50 = vand.u32 4294901760, %v22461_v35 }
 0xaf6   :  { %15473 = vmatprep.subr.bf16.mxu1 %v24661_v24  ;;  %15503 = vmatprep.subr.bf16.mxu0 %v24661_v24 }
 0xaf8   :  { %13140 = vmatmul.mubr.f32.vlgmr.msra.gmra.mrb[86].mxu1 %v22314_v31 }
 0xaf9   :  { %15475 = vmatpush3.bf16.msra.mxu1 %v15474_v56  ;;  %15505 = vmatpush3.bf16.msra.mxu0 %v22134_v20  ;;  %v10748_v20 = vand.u32 4294901760, %v10747_v9 }
 0xafa   :  { %15476 = vmatprep.subr.bf16.mxu1 %v24661_v24  ;;  %15506 = vmatprep.subr.bf16.mxu0 %v24661_v24 }
 0xafb   :  { %13209 = vmatprep.mubr.msk.f32.mxu1 %vm16402_vm0, %v24770_v39  ;;  %v15546_v12 = vpack.c.bf16 %v10748_v20, %v10741_v59  ;;  %v25698_v59 = vld [vmem:[#allocation184_spill] sm:$0xff] }
 0xafd   :  { %15478 = vmatpush3.bf16.msra.mxu1 %v15477_v15  ;;  %15508 = vmatpush3.bf16.msra.mxu0 %v22159_v46  ;;  %v25690_v46 = vand.u32 4294901760, %v22340_v4  ;;  %v25694_v15 = vand.u32 4294901760, %v22402_v45 }
 0xafe   :  { %15479 = vmatprep.subr.bf16.mxu1 %v24661_v24  ;;  %15509 = vmatprep.subr.bf16.mxu0 %v24661_v24 }
 0xb01   :  { %15481 = vmatpush3.bf16.msra.mxu1 %v22250_v14  ;;  %15511 = vmatpush3.bf16.msra.mxu0 %v22196_v57  ;;  %v10754_v57 = vsub.f32 %v22340_v4, %v25690_v46 }
 0xb02   :  { %15482 = vmatprep.subr.bf16.mxu1 %v24661_v24  ;;  %15512 = vmatprep.subr.bf16.mxu0 %v24661_v24 }
 0xb03   :  { %v10755_v13 = vand.u32 4294901760, %v10754_v57  ;;  %v25699_v57 = vand.u32 4294901760, %v22431_v53 }
 0xb05   :  { %15484 = vmatpush3.bf16.msra.mxu1 %v22256_v60  ;;  %15514 = vmatpush3.bf16.msra.mxu0 %v22207_v16  ;;  %v25691_v16 = vand.u32 4294901760, %v22348_v19  ;;  %v25692_v60 = vand.u32 4294901760, %v22369_v29 }
 0xb06   :  { %15485 = vmatprep.subr.bf16.mxu1 %v24661_v24  ;;  %15515 = vmatprep.subr.bf16.mxu0 %v24661_v24 }
 0xb07   :  { %v10761_v14 = vsub.f32 %v22348_v19, %v25691_v16  ;;  %v10796_v16 = vsub.f32 %v22431_v53, %v25699_v57 }
 0xb09   :  { %15487 = vmatpush3.bf16.msra.mxu1 %v22262_v22  ;;  %15517 = vmatpush3.bf16.msra.mxu0 %v22222_v21  ;;  %v10768_v22 = vsub.f32 %v22369_v29, %v25692_v60  ;;  %v25693_v21 = vand.u32 4294901760, %v22374_v38  ;;  %v10762_v25 = vand.u32 4294901760, %v10761_v14  ;;  %v25700_v14 = vand.u32 4294901760, %v22436_v47 }
 0xb0a   :  { %15488 = vmatprep.subr.bf16.mxu1 %v24661_v24  ;;  %15518 = vmatprep.subr.bf16.mxu0 %v24661_v24 }
 0xb0b   :  { %v10775_v31 = vsub.f32 %v22374_v38, %v25693_v21  ;;  %v10769_v56 = vand.u32 4294901760, %v10768_v22  ;;  %v15549_v6 = vpack.c.bf16 %v10762_v25, %v10755_v13  ;;  %v10803_v60 = vsub.f32 %v22436_v47, %v25700_v14 }
 0xb0c   :  { %v25702_v22 = vand.u32 4294901760, %v22466_v44 }
 0xb0d   :  { %15490 = vmatpush3.bf16.msra.mxu1 %v22268_v8  ;;  %15520 = vmatpush3.bf16.msra.mxu0 %v22229_v0  ;;  %v10776_v40 = vand.u32 4294901760, %v10775_v31  ;;  %v10782_v8 = vsub.f32 %v22402_v45, %v25694_v15  ;;  %v25695_v0 = vand.u32 4294901760, %v22407_v27  ;;  %v25703_v31 = vand.u32 4294901760, %v22300_v11 }
 0xb0e   :  { %15491 = vmatprep.subr.bf16.mxu1 %v24661_v24  ;;  %15545 = vmatprep.subr.bf16.mxu0 %v24661_v24  ;;  %v10817_v21 = vsub.f32 %v22466_v44, %v25702_v22 }
 0xb0f   :  { %v10789_v32 = vsub.f32 %v22407_v27, %v25695_v0  ;;  %v15552_v9 = vpack.c.bf16 %v10776_v40, %v10769_v56  ;;  %v10783_v20 = vand.u32 4294901760, %v10782_v8  ;;  %v10797_v56 = vand.u32 4294901760, %v10796_v16 }
 0xb10   :  { %13245 = vmatmul.mubr.f32.vlgmr.msra.gmra.mrb[52].mxu0 %v22308_v1  ;;  %v25705_v40 = vand.u32 4294901760, %v22321_v28  ;;  %v10824_v0 = vsub.f32 %v22499_v18, %v10823_v33  ;;  %v25707_v28 = vand.u32 4294901760, %v22352_v41  ;;  %v25709_v41 = vand.u32 4294901760, %v22385_v43  ;;  %v25715_v43 = vld [vmem:[#allocation123_spill] sm:$0xff] }
 0xb11   :  { %15493 = vmatpush3.bf16.msra.mxu1 %v22270_v55  ;;  %15547 = vmatpush3.bf16.msra.mxu0 %v15546_v12  ;;  %v25697_v55 = vand.u32 4294901760, %v22292_v61  ;;  %v10790_v46 = vand.u32 4294901760, %v10789_v32  ;;  %v10810_v61 = vsub.f32 %v22461_v35, %v25701_v50  ;;  %v25704_v12 = vand.u32 4294901760, %v22303_v17 }
 0xb12   :  { %15494 = vmatprep.subr.bf16.mxu1 %v24661_v24  ;;  %15548 = vmatprep.subr.bf16.mxu0 %v24661_v24  ;;  %v10818_v17 = vand.u32 4294901760, %v10817_v21  ;;  %v10831_v32 = vsub.f32 %v22504_v48, %v10830_v5  ;;  %v10838_v5 = vsub.f32 %v22515_v49, %v10837_v51 }
 0xb13   :  { %13314 = vmatprep.mubr.msk.f32.mxu0 %vm16402_vm0, %v24770_v39  ;;  %v22627_v42 = vpack.c.bf16 %v25697_v55, %v25696_v54  ;;  %v22650_v13 = vpack.c.bf16 %v25704_v12, %v25703_v31  ;;  %v15555_v25 = vpack.c.bf16 %v10790_v46, %v10783_v20  ;;  %v10811_v11 = vand.u32 4294901760, %v10810_v61  ;;  %v22711_v12 = vld [vmem:[#allocation6 + $0x100] sm:$0xff] }
 0xb14   :  { %v10832_v33 = vand.u32 4294901760, %v10831_v32  ;;  %v10839_v16 = vand.u32 4294901760, %v10838_v5  ;;  %v25716_v61 = vand.u32 4294901760, %v25715_v43 }
 0xb15   :  { %15496 = vmatpush3.bf16.msra.mxu1 %v25698_v59  ;;  %15550 = vmatpush3.bf16.msra.mxu0 %v15549_v6  ;;  %v25706_v6 = vand.u32 4294901760, %v22323_v10  ;;  %v25708_v10 = vand.u32 4294901760, %v22354_v37  ;;  %v15561_v55 = vpack.c.bf16 %v10818_v17, %v10811_v11  ;;  %v10845_v59 = vsub.f32 %v22520_v58, %v10844_v2  ;;  %v25710_v37 = vld [vmem:[#allocation122_spill] sm:$0xff]  ;;  %v25712_v2 = vld [vmem:[#allocation183_spill] sm:$0xff]  ;;  %v22724_v11 = vld [vmem:[#allocation6 + $0x118] sm:$0xff] }
 0xb16   :  { %15521 = vmatprep.subr.bf16.mxu1 %v24661_v24  ;;  %15551 = vmatprep.subr.bf16.mxu0 %v24661_v24  ;;  %v25711_v20 = vand.u32 4294901760, %v25710_v37  ;;  %v22696_v14 = vand.u32 4294901760, %v25712_v2 }
 0xb17   :  { %v22660_v15 = vpack.c.bf16 %v25706_v6, %v25705_v40  ;;  %v22675_v54 = vpack.c.bf16 %v25708_v10, %v25707_v28  ;;  %v10846_v51 = vand.u32 4294901760, %v10845_v59  ;;  %v25718_v40 = vand.u32 4294901760, %v22454_v63 }
 0xb18   :  { %13210 = vmatmul.mubr.f32.vlgmr.msra.gmra.mrb[88].mxu1 %v22308_v1  ;;  %v10804_v1 = vand.u32 4294901760, %v10803_v60  ;;  %v22691_v46 = vpack.c.bf16 %v25711_v20, %v25709_v41  ;;  %v25713_v60 = vld [vmem:[#allocation113_spill] sm:$0xff]  ;;  %v22709_v31 = vsub.f32 %v25712_v2, %v22696_v14  ;;  %v24435_v63 = vand.u32 4294901760, %v22724_v11 }
 0xb19   :  { %15523 = vmatpush3.bf16.msra.mxu1 %v22627_v42  ;;  %15553 = vmatpush3.bf16.msra.mxu0 %v15552_v9  ;;  %v10825_v9 = vand.u32 4294901760, %v10824_v0  ;;  %v25714_v50 = vand.u32 4294901760, %v25713_v60  ;;  %v15567_v21 = vpack.c.bf16 %v10846_v51, %v10839_v16  ;;  %v25720_v28 = vand.u32 4294901760, %v22474_v52  ;;  %v22784_v60 = vld [vmem:[#allocation6 + $0x130] sm:$0xff] }
 0xb1a   :  { %15524 = vmatprep.subr.bf16.mxu1 %v24661_v24  ;;  %15554 = vmatprep.subr.bf16.mxu0 %v24661_v24  ;;  %v15558_v8 = vpack.c.bf16 %v10804_v1, %v10797_v56  ;;  %v22715_v56 = vld [vmem:[#allocation6 + $0x110] sm:$0xff]  ;;  %v25717_v1 = vand.u32 4294901760, %v22452_v36  ;;  %v24453_v17 = vand.u32 4294901760, %v22709_v31  ;;  %v25719_v36 = vand.u32 4294901760, %v22472_v62 }
 0xb1b   :  { %13279 = vmatprep.mubr.msk.f32.mxu1 %vm16402_vm0, %v24770_v39  ;;  %v15564_v57 = vpack.c.bf16 %v10832_v33, %v10825_v9  ;;  %v22703_v22 = vpack.c.bf16 %v25716_v61, %v25714_v50  ;;  %v24438_v32 = vand.u32 4294901760, %v22715_v56  ;;  %v22744_v9 = vld [vmem:[#allocation6 + $0x128] sm:$0xff]  ;;  %v22771_v59 = vsub.f32 %v22724_v11, %v24435_v63  ;;  %v22786_v50 = vld [vmem:[#allocation6 + $0x138] sm:$0xff] }
 0xb1c   :  { %v22722_v6 = vpack.c.bf16 %v25718_v40, %v25717_v1  ;;  %v22740_v10 = vpack.c.bf16 %v25720_v28, %v25719_v36  ;;  %v10729_v33 = vsub.f32 %v22709_v31, %v24453_v17  ;;  %v24433_v37 = vand.u32 4294901760, %v22744_v9  ;;  %v22808_v1 = vld [vmem:[#allocation6 + $0x140] sm:$0xff]  ;;  %v22810_v40 = vld [vmem:[#allocation6 + $0x148] sm:$0xff] }
 0xb1d   :  { %15526 = vmatpush3.bf16.msra.mxu1 %v22650_v13  ;;  %15556 = vmatpush3.bf16.msra.mxu0 %v15555_v25  ;;  %v22713_v25 = vld [vmem:[#allocation6 + $0x108] sm:$0xff]  ;;  %v22766_v5 = vsub.f32 %v22715_v56, %v24438_v32  ;;  %v15570_v20 = vpack.c.bf16 %v22335_v30, %v22330_v3  ;;  %v24445_v43 = vand.u32 4294901760, %v22771_v59  ;;  %v24436_v36 = vand.u32 4294901760, %v22784_v60 }
 0xb1e   :  { %15527 = vmatprep.subr.bf16.mxu1 %v24661_v24  ;;  %15557 = vmatprep.subr.bf16.mxu0 %v24661_v24  ;;  %v24439_v0 = vand.u32 4294901760, %v22713_v25  ;;  %v22797_v30 = vsub.f32 %v22744_v9, %v24433_v37  ;;  %v24437_v28 = vand.u32 4294901760, %v22786_v50  ;;  %v15576_v37 = vpack.c.bf16 %v22374_v38, %v22369_v29  ;;  %v22851_v38 = vld [vmem:[#allocation6 + $0x158] sm:$0xff] }
 0xb1f   :  { %v24446_v2 = vand.u32 4294901760, %v22766_v5  ;;  %v15579_v32 = vpack.c.bf16 %v22407_v27, %v22402_v45 }
 0xb20   :  { %v22759_v52 = vsub.f32 %v22713_v25, %v24439_v0  ;;  %v22841_v63 = vsub.f32 %v22786_v50, %v24437_v28 }
 0xb21   :  { %15529 = vmatpush3.bf16.msra.mxu1 %v22660_v15  ;;  %15559 = vmatpush3.bf16.msra.mxu0 %v15558_v8  ;;  %v24441_v8 = vand.u32 4294901760, %v22711_v12 }
 0xb22   :  { %15530 = vmatprep.subr.bf16.mxu1 %v24661_v24  ;;  %15560 = vmatprep.subr.bf16.mxu0 %v24661_v24  ;;  %v24447_v51 = vand.u32 4294901760, %v22759_v52 }
 0xb23   :  { %v22754_v62 = vsub.f32 %v22711_v12, %v24441_v8  ;;  %v24450_v8 = vand.u32 4294901760, %v22841_v63 }
 0xb25   :  { %15532 = vmatpush3.bf16.msra.mxu1 %v22675_v54  ;;  %15562 = vmatpush3.bf16.msra.mxu0 %v15561_v55  ;;  %v22742_v55 = vld [vmem:[#allocation6 + $0x120] sm:$0xff]  ;;  %v24448_v16 = vand.u32 4294901760, %v22754_v62 }
 0xb26   :  { %15533 = vmatprep.subr.bf16.mxu1 %v24661_v24  ;;  %15563 = vmatprep.subr.bf16.mxu0 %v24661_v24  ;;  %v24434_v41 = vand.u32 4294901760, %v22742_v55 }
 0xb27   :  { %v22803_v61 = vpack.c.bf16 %v24447_v51, %v24448_v16  ;;  %v22892_v51 = vld [vmem:[#allocation6 + $0x170] sm:$0xff]  ;;  %v22894_v16 = vld [vmem:[#allocation6 + $0x178] sm:$0xff] }
 0xb28   :  { %v22792_v3 = vsub.f32 %v22742_v55, %v24434_v41  ;;  %v22836_v41 = vsub.f32 %v22784_v60, %v24436_v36 }
 0xb29   :  { %15535 = vmatpush3.bf16.msra.mxu1 %v22691_v46  ;;  %15565 = vmatpush3.bf16.msra.mxu0 %v15564_v57  ;;  %v10730_v57 = vand.u32 4294901760, %v10729_v33  ;;  %v22820_v33 = vpack.c.bf16 %v24445_v43, %v24446_v2  ;;  %v15582_v43 = vpack.c.bf16 %v22436_v47, %v22431_v53 }
 0xb2a   :  { %15536 = vmatprep.subr.bf16.mxu1 %v24661_v24  ;;  %15566 = vmatprep.subr.bf16.mxu0 %v24661_v24 }
 0xb2d   :  { %15538 = vmatpush3.bf16.msra.mxu1 %v22703_v22  ;;  %15568 = vmatpush3.bf16.msra.mxu0 %v15567_v21  ;;  %v15573_v21 = vpack.c.bf16 %v22348_v19, %v22340_v4  ;;  %v24444_v4 = vand.u32 4294901760, %v22792_v3  ;;  %v24442_v19 = vand.u32 4294901760, %v22797_v30 }
 0xb2e   :  { %15539 = vmatprep.subr.bf16.mxu1 %v24661_v24  ;;  %15593 = vmatprep.subr.bf16.mxu0 %v24661_v24 }
 0xb2f   :  { %v22849_v29 = vpack.c.bf16 %v24442_v19, %v24444_v4  ;;  %v24452_v19 = vand.u32 4294901760, %v22851_v38 }
 0xb30   :  { %13315 = vmatmul.mubr.f32.vlgmr.msra.gmra.mrb[54].mxu0 %v22696_v14 }
 0xb31   :  { %15541 = vmatpush3.bf16.msra.mxu1 %v22722_v6  ;;  %15595 = vmatpush3.bf16.msra.mxu0 %v22627_v42 }
 0xb32   :  { %15542 = vmatprep.subr.bf16.mxu1 %v24661_v24  ;;  %15596 = vmatprep.subr.bf16.mxu0 %v24661_v24 }
 0xb33   :  { %13384 = vmatprep.mubr.msk.f32.mxu0 %vm16402_vm0, %v24770_v39 }
 0xb35   :  { %15544 = vmatpush3.bf16.msra.mxu1 %v22740_v10  ;;  %15598 = vmatpush3.bf16.msra.mxu0 %v22650_v13 }
 0xb36   :  { %15569 = vmatprep.subr.bf16.mxu1 %v24661_v24  ;;  %15599 = vmatprep.subr.bf16.mxu0 %v24661_v24 }
 0xb38   :  { %13280 = vmatmul.mubr.f32.vlgmr.msra.gmra.mrb[90].mxu1 %v10730_v57  ;;  %v24443_v57 = vand.u32 4294901760, %v22810_v40 }
 0xb39   :  { %15571 = vmatpush3.bf16.msra.mxu1 %v15570_v20  ;;  %15601 = vmatpush3.bf16.msra.mxu0 %v22660_v15  ;;  %v24440_v20 = vand.u32 4294901760, %v22808_v1 }
 0xb3a   :  { %15572 = vmatprep.subr.bf16.mxu1 %v24661_v24  ;;  %15602 = vmatprep.subr.bf16.mxu0 %v24661_v24  ;;  %v22861_v28 = vsub.f32 %v22810_v40, %v24443_v57  ;;  %v22872_v57 = vld [vmem:[#allocation6 + $0x160] sm:$0xff] }
 0xb3b   :  { %13349 = vmatprep.mubr.msk.f32.mxu1 %vm16402_vm0, %v24770_v39  ;;  %v22856_v36 = vsub.f32 %v22808_v1, %v24440_v20  ;;  %v24451_v20 = vand.u32 4294901760, %v22836_v41  ;;  %v24456_v53 = vand.u32 4294901760, %v22872_v57 }
 0xb3c   :  { %v24454_v27 = vand.u32 4294901760, %v22861_v28 }
 0xb3d   :  { %15574 = vmatpush3.bf16.msra.mxu1 %v15573_v21  ;;  %15604 = vmatpush3.bf16.msra.mxu0 %v22675_v54  ;;  %v22843_v21 = vld [vmem:[#allocation6 + $0x150] sm:$0xff]  ;;  %v24455_v4 = vand.u32 4294901760, %v22856_v36  ;;  %v22882_v45 = vpack.c.bf16 %v24450_v8, %v24451_v20  ;;  %v24457_v8 = vand.u32 4294901760, %v22892_v51  ;;  %v24458_v20 = vand.u32 4294901760, %v22894_v16 }
 0xb3e   :  { %15575 = vmatprep.subr.bf16.mxu1 %v24661_v24  ;;  %15605 = vmatprep.subr.bf16.mxu0 %v24661_v24  ;;  %v24449_v0 = vand.u32 4294901760, %v22843_v21 }
 0xb40   :  { %v22890_v2 = vsub.f32 %v22843_v21, %v24449_v0  ;;  %v22909_v0 = vpack.c.bf16 %v24454_v27, %v24455_v4  ;;  %v22923_v27 = vsub.f32 %v22872_v57, %v24456_v53 }
 0xb41   :  { %15577 = vmatpush3.bf16.msra.mxu1 %v15576_v37  ;;  %15607 = vmatpush3.bf16.msra.mxu0 %v22691_v46  ;;  %v22874_v37 = vld [vmem:[#allocation6 + $0x168] sm:$0xff] }
 0xb42   :  { %15578 = vmatprep.subr.bf16.mxu1 %v24661_v24  ;;  %15608 = vmatprep.subr.bf16.mxu0 %v24661_v24  ;;  %25721 = vst [vmem:[#allocation175_spill] sm:$0xff] %v22909_v0  ;;  %v11471_v17 = vand.u32 4294901760, %v22890_v2  ;;  %v25723_v0 = vand.u32 4294901760, %v22709_v31 }
 0xb45   :  { %15580 = vmatpush3.bf16.msra.mxu1 %v15579_v32  ;;  %15610 = vmatpush3.bf16.msra.mxu0 %v22703_v22  ;;  %v22901_v32 = vsub.f32 %v22851_v38, %v24452_v19  ;;  %v15585_v19 = vpack.c.bf16 %v22466_v44, %v22461_v35  ;;  %v22933_v44 = vsub.f32 %v22892_v51, %v24457_v8  ;;  %v11485_v8 = vand.u32 4294901760, %v22923_v27 }
 0xb46   :  { %15581 = vmatprep.subr.bf16.mxu1 %v24661_v24  ;;  %15611 = vmatprep.subr.bf16.mxu0 %v24661_v24  ;;  %v22938_v35 = vsub.f32 %v22894_v16, %v24458_v20 }
 0xb47   :  { %v24459_v47 = vand.u32 4294901760, %v22901_v32 }
 0xb49   :  { %15583 = vmatpush3.bf16.msra.mxu1 %v15582_v43  ;;  %15613 = vmatpush3.bf16.msra.mxu0 %v22722_v6  ;;  %v25722_v43 = vand.u32 4294901760, %v22874_v37  ;;  %v22944_v53 = vpack.c.bf16 %v24459_v47, %v11471_v17  ;;  %v11499_v47 = vand.u32 4294901760, %v22933_v44 }
 0xb4a   :  { %15584 = vmatprep.subr.bf16.mxu1 %v24661_v24  ;;  %15614 = vmatprep.subr.bf16.mxu0 %v24661_v24 }
 0xb4b   :  { %v22928_v4 = vsub.f32 %v22874_v37, %v25722_v43  ;;  %v15588_v43 = vpack.c.bf16 %v22504_v48, %v22499_v18  ;;  %v15591_v48 = vpack.c.bf16 %v22520_v58, %v22515_v49  ;;  %v25724_v49 = vld [vmem:[#allocation191_spill] sm:$0xff]  ;;  %v25725_v58 = vld [vmem:[#allocation124_spill] sm:$0xff] }
 0xb4d   :  { %15586 = vmatpush3.bf16.msra.mxu1 %v15585_v19  ;;  %15616 = vmatpush3.bf16.msra.mxu0 %v22740_v10  ;;  %v11492_v20 = vand.u32 4294901760, %v22928_v4  ;;  %v11506_v19 = vand.u32 4294901760, %v22938_v35 }
 0xb4e   :  { %15587 = vmatprep.subr.bf16.mxu1 %v24661_v24  ;;  %15641 = vmatprep.subr.bf16.mxu0 %v24661_v24 }
 0xb4f   :  { %v22961_v18 = vpack.c.bf16 %v11492_v20, %v11485_v8 }
 0xb50   :  { %13385 = vmatmul.mubr.f32.vlgmr.msra.gmra.mrb[56].mxu0 %v25723_v0  ;;  %v22972_v0 = vpack.c.bf16 %v11506_v19, %v11499_v47 }
 0xb51   :  { %15589 = vmatpush3.bf16.msra.mxu1 %v15588_v43  ;;  %15643 = vmatpush3.bf16.msra.mxu0 %v22627_v42  ;;  %v25726_v42 = vld [vmem:[#allocation16_spill] sm:$0xff] }
 0xb52   :  { %15590 = vmatprep.subr.bf16.mxu1 %v24661_v24  ;;  %15644 = vmatprep.subr.bf16.mxu0 %v24661_v24 }
 0xb53   :  { %13454 = vmatprep.mubr.msk.f32.mxu0 %vm16402_vm0, %v24770_v39 }
 0xb55   :  { %15592 = vmatpush3.bf16.msra.mxu1 %v15591_v48  ;;  %15646 = vmatpush3.bf16.msra.mxu0 %v22650_v13  ;;  %v25727_v13 = vld [vmem:[#allocation109_spill] sm:$0xff] }
 0xb56   :  { %15617 = vmatprep.subr.bf16.mxu1 %v24661_v24  ;;  %15647 = vmatprep.subr.bf16.mxu0 %v24661_v24 }
 0xb58   :  { %13350 = vmatmul.mubr.f32.vlgmr.msra.gmra.mrb[92].mxu1 %v22709_v31  ;;  %v25729_v31 = vand.u32 4294901760, %v22759_v52 }
 0xb59   :  { %15619 = vmatpush3.bf16.msra.mxu1 %v25724_v49  ;;  %15649 = vmatpush3.bf16.msra.mxu0 %v22660_v15  ;;  %v25728_v15 = vand.u32 4294901760, %v22754_v62 }
 0xb5a   :  { %15620 = vmatprep.subr.bf16.mxu1 %v24661_v24  ;;  %15650 = vmatprep.subr.bf16.mxu0 %v24661_v24  ;;  %v11409_v43 = vsub.f32 %v22759_v52, %v25729_v31 }
 0xb5b   :  { %13419 = vmatprep.mubr.msk.f32.mxu1 %vm16402_vm0, %v24770_v39 }
 0xb5c   :  { %v11410_v48 = vand.u32 4294901760, %v11409_v43 }
 0xb5d   :  { %15622 = vmatpush3.bf16.msra.mxu1 %v25725_v58  ;;  %15652 = vmatpush3.bf16.msra.mxu0 %v22675_v54  ;;  %v11402_v54 = vsub.f32 %v22754_v62, %v25728_v15  ;;  %v25731_v58 = vand.u32 4294901760, %v22771_v59 }
 0xb5e   :  { %15623 = vmatprep.subr.bf16.mxu1 %v24661_v24  ;;  %15653 = vmatprep.subr.bf16.mxu0 %v24661_v24 }
 0xb61   :  { %15625 = vmatpush3.bf16.msra.mxu1 %v25726_v42  ;;  %15655 = vmatpush3.bf16.msra.mxu0 %v22691_v46  ;;  %v11403_v46 = vand.u32 4294901760, %v11402_v54  ;;  %v11423_v42 = vsub.f32 %v22771_v59, %v25731_v58 }
 0xb62   :  { %15626 = vmatprep.subr.bf16.mxu1 %v24661_v24  ;;  %15656 = vmatprep.subr.bf16.mxu0 %v24661_v24 }
 0xb63   :  { %v15690_v54 = vpack.c.bf16 %v11410_v48, %v11403_v46  ;;  %v11424_v43 = vand.u32 4294901760, %v11423_v42  ;;  %v25736_v48 = vand.u32 4294901760, %v22711_v12  ;;  %v25740_v12 = vand.u32 4294901760, %v22901_v32 }
 0xb65   :  { %15628 = vmatpush3.bf16.msra.mxu1 %v25727_v13  ;;  %15658 = vmatpush3.bf16.msra.mxu0 %v22703_v22  ;;  %v25730_v22 = vand.u32 4294901760, %v22766_v5  ;;  %v25732_v13 = vand.u32 4294901760, %v22792_v3 }
 0xb66   :  { %15629 = vmatprep.subr.bf16.mxu1 %v24661_v24  ;;  %15659 = vmatprep.subr.bf16.mxu0 %v24661_v24 }
 0xb67   :  { %v11416_v49 = vsub.f32 %v22766_v5, %v25730_v22 }
 0xb69   :  { %15631 = vmatpush3.bf16.msra.mxu1 %v22484_v23  ;;  %15661 = vmatpush3.bf16.msra.mxu0 %v22722_v6  ;;  %v11430_v23 = vsub.f32 %v22792_v3, %v25732_v13  ;;  %v25733_v6 = vand.u32 4294901760, %v22797_v30  ;;  %v11417_v31 = vand.u32 4294901760, %v11416_v49 }
 0xb6a   :  { %15632 = vmatprep.subr.bf16.mxu1 %v24661_v24  ;;  %15662 = vmatprep.subr.bf16.mxu0 %v24661_v24 }
 0xb6b   :  { %v11437_v15 = vsub.f32 %v22797_v30, %v25733_v6  ;;  %v11431_v22 = vand.u32 4294901760, %v11430_v23  ;;  %v15693_v13 = vpack.c.bf16 %v11424_v43, %v11417_v31  ;;  %v25734_v6 = vand.u32 4294901760, %v22836_v41 }
 0xb6c   :  { %v25739_v43 = vand.u32 4294901760, %v22861_v28 }
 0xb6d   :  { %15634 = vmatpush3.bf16.msra.mxu1 %v22510_v7  ;;  %15664 = vmatpush3.bf16.msra.mxu0 %v22740_v10  ;;  %v11438_v58 = vand.u32 4294901760, %v11437_v15  ;;  %v11444_v7 = vsub.f32 %v22836_v41, %v25734_v6  ;;  %v25735_v10 = vand.u32 4294901760, %v22841_v63 }
 0xb6e   :  { %15635 = vmatprep.subr.bf16.mxu1 %v24661_v24  ;;  %15689 = vmatprep.subr.bf16.mxu0 %v24661_v24  ;;  %v11465_v6 = vsub.f32 %v22861_v28, %v25739_v43  ;;  %v11507_v43 = vsub.f32 %v22938_v35, %v11506_v19  ;;  %v25749_v19 = vld [vmem:[#allocation132_spill] sm:$0xff] }
 0xb6f   :  { %v11451_v46 = vsub.f32 %v22841_v63, %v25735_v10  ;;  %v15696_v42 = vpack.c.bf16 %v11438_v58, %v11431_v22  ;;  %v11445_v23 = vand.u32 4294901760, %v11444_v7  ;;  %v25741_v22 = vand.u32 4294901760, %v22715_v56 }
 0xb70   :  { %13455 = vmatmul.mubr.f32.vlgmr.msra.gmra.mrb[58].mxu0 %v22696_v14  ;;  %v25742_v58 = vand.u32 4294901760, %v22724_v11 }
 0xb71   :  { %15637 = vmatpush3.bf16.msra.mxu1 %v22538_v34  ;;  %15691 = vmatpush3.bf16.msra.mxu0 %v15690_v54  ;;  %v25737_v34 = vand.u32 4294901760, %v22713_v25  ;;  %v11452_v15 = vand.u32 4294901760, %v11451_v46  ;;  %v25738_v54 = vand.u32 4294901760, %v22856_v36  ;;  %v11479_v25 = vsub.f32 %v22901_v32, %v25740_v12 }
 0xb72   :  { %15638 = vmatprep.subr.bf16.mxu1 %v24661_v24  ;;  %15692 = vmatprep.subr.bf16.mxu0 %v24661_v24  ;;  %v25744_v46 = vand.u32 4294901760, %v22744_v9  ;;  %v25746_v9 = vand.u32 4294901760, %v22786_v50  ;;  %v25748_v50 = vand.u32 4294901760, %v22810_v40 }
 0xb73   :  { %13524 = vmatprep.mubr.msk.f32.mxu0 %vm16402_vm0, %v24770_v39  ;;  %v23040_v49 = vpack.c.bf16 %v25737_v34, %v25736_v48  ;;  %v11458_v31 = vsub.f32 %v22856_v36, %v25738_v54  ;;  %v15699_v7 = vpack.c.bf16 %v11452_v15, %v11445_v23  ;;  %v11480_v11 = vand.u32 4294901760, %v11479_v25 }
 0xb74   :  { %v11493_v23 = vsub.f32 %v22928_v4, %v11492_v20  ;;  %v11500_v20 = vsub.f32 %v22933_v44, %v11499_v47  ;;  %v11508_v47 = vand.u32 4294901760, %v11507_v43  ;;  %v23109_v25 = vand.u32 4294901760, %v25749_v19 }
 0xb75   :  { %15640 = vmatpush3.bf16.msra.mxu1 %v22550_v26  ;;  %15694 = vmatpush3.bf16.msra.mxu0 %v15693_v13  ;;  %v11472_v26 = vsub.f32 %v22890_v2, %v11471_v17  ;;  %v23063_v13 = vpack.c.bf16 %v25742_v58, %v25741_v22  ;;  %v11459_v10 = vand.u32 4294901760, %v11458_v31  ;;  %v25743_v17 = vand.u32 4294901760, %v22742_v55 }
 0xb76   :  { %15665 = vmatprep.subr.bf16.mxu1 %v24661_v24  ;;  %15695 = vmatprep.subr.bf16.mxu0 %v24661_v24  ;;  %v25745_v55 = vand.u32 4294901760, %v22784_v60  ;;  %v25747_v60 = vand.u32 4294901760, %v22808_v1  ;;  %v11501_v12 = vand.u32 4294901760, %v11500_v20  ;;  %v25750_v22 = vand.u32 4294901760, %v22843_v21 }
 0xb77   :  { %v23073_v48 = vpack.c.bf16 %v25744_v46, %v25743_v17  ;;  %v11473_v56 = vand.u32 4294901760, %v11472_v26  ;;  %v25751_v1 = vand.u32 4294901760, %v22851_v38  ;;  %v23128_v17 = vld [vmem:[#allocation6 + $0x190] sm:$0xff]  ;;  %v25752_v21 = vand.u32 4294901760, %v22872_v57 }
 0xb78   :  { %13420 = vmatmul.mubr.f32.vlgmr.msra.gmra.mrb[94].mxu1 %v22696_v14  ;;  %v11466_v14 = vand.u32 4294901760, %v11465_v6  ;;  %v23088_v15 = vpack.c.bf16 %v25746_v9, %v25745_v55  ;;  %v23104_v6 = vpack.c.bf16 %v25748_v50, %v25747_v60  ;;  %v15711_v58 = vpack.c.bf16 %v11508_v47, %v11501_v12 }
 0xb79   :  { %15667 = vmatpush3.bf16.msra.mxu1 %v23040_v49  ;;  %15697 = vmatpush3.bf16.msra.mxu0 %v15696_v42  ;;  %v11486_v42 = vsub.f32 %v22923_v27, %v11485_v8  ;;  %v15705_v54 = vpack.c.bf16 %v11480_v11, %v11473_v56  ;;  %v11494_v8 = vand.u32 4294901760, %v11493_v23  ;;  %v23116_v40 = vpack.c.bf16 %v25751_v1, %v25750_v22  ;;  %v23137_v56 = vld [vmem:[#allocation6 + $0x198] sm:$0xff]  ;;  %v23197_v1 = vld [vmem:[#allocation6 + $0x1b0] sm:$0xff] }
 0xb7a   :  { %15668 = vmatprep.subr.bf16.mxu1 %v24661_v24  ;;  %15698 = vmatprep.subr.bf16.mxu0 %v24661_v24  ;;  %v15702_v34 = vpack.c.bf16 %v11466_v14, %v11459_v10  ;;  %v23124_v10 = vld [vmem:[#allocation6 + $0x180] sm:$0xff]  ;;  %v23126_v14 = vld [vmem:[#allocation6 + $0x188] sm:$0xff]  ;;  %v25753_v38 = vand.u32 4294901760, %v22874_v37  ;;  %v24463_v23 = vand.u32 4294901760, %v23128_v17  ;;  %v24462_v57 = vand.u32 4294901760, %v23137_v56 }
 0xb7b   :  { %13489 = vmatprep.mubr.msk.f32.mxu1 %vm16402_vm0, %v24770_v39  ;;  %v11487_v31 = vand.u32 4294901760, %v11486_v42  ;;  %v24464_v42 = vand.u32 4294901760, %v23126_v14  ;;  %v25754_v37 = vand.u32 4294901760, %v22892_v51  ;;  %v25755_v55 = vand.u32 4294901760, %v22894_v16 }
 0xb7c   :  { %v23135_v46 = vpack.c.bf16 %v25753_v38, %v25752_v21  ;;  %v23179_v20 = vsub.f32 %v23128_v17, %v24463_v23  ;;  %v23184_v43 = vsub.f32 %v23137_v56, %v24462_v57  ;;  %v15720_v23 = vpack.c.bf16 %v22797_v30, %v22792_v3  ;;  %v23264_v30 = vld [vmem:[#allocation6 + $0x1d8] sm:$0xff] }
 0xb7d   :  { %15670 = vmatpush3.bf16.msra.mxu1 %v23063_v13  ;;  %15700 = vmatpush3.bf16.msra.mxu0 %v15699_v7  ;;  %v15708_v26 = vpack.c.bf16 %v11494_v8, %v11487_v31  ;;  %v23122_v7 = vsub.f32 %v25749_v19, %v23109_v25  ;;  %v23153_v9 = vpack.c.bf16 %v25755_v55, %v25754_v37  ;;  %v23157_v31 = vld [vmem:[#allocation6 + $0x1a8] sm:$0xff]  ;;  %v23221_v55 = vld [vmem:[#allocation6 + $0x1c0] sm:$0xff] }
 0xb7e   :  { %15671 = vmatprep.subr.bf16.mxu1 %v24661_v24  ;;  %15701 = vmatprep.subr.bf16.mxu0 %v24661_v24  ;;  %v23172_v16 = vsub.f32 %v23126_v14, %v24464_v42  ;;  %v24460_v50 = vand.u32 4294901760, %v23157_v31  ;;  %v24472_v22 = vand.u32 4294901760, %v23179_v20  ;;  %v24468_v21 = vand.u32 4294901760, %v23184_v43  ;;  %25759 = vst [vmem:[#allocation186_spill] sm:$0xff] %v23264_v30 }
 0xb7f   :  { %v24476_v11 = vand.u32 4294901760, %v23122_v7  ;;  %v15717_v37 = vpack.c.bf16 %v22771_v59, %v22766_v5 }
 0xb80   :  { %v24474_v19 = vand.u32 4294901760, %v23172_v16 }
 0xb81   :  { %15673 = vmatpush3.bf16.msra.mxu1 %v23073_v48  ;;  %15703 = vmatpush3.bf16.msra.mxu0 %v15702_v34  ;;  %v24465_v34 = vand.u32 4294901760, %v23124_v10  ;;  %v11391_v8 = vsub.f32 %v23122_v7, %v24476_v11 }
 0xb82   :  { %15674 = vmatprep.subr.bf16.mxu1 %v24661_v24  ;;  %15704 = vmatprep.subr.bf16.mxu0 %v24661_v24 }
 0xb83   :  { %v23167_v51 = vsub.f32 %v23124_v10, %v24465_v34  ;;  %v11392_v12 = vand.u32 4294901760, %v11391_v8  ;;  %v23223_v8 = vld [vmem:[#allocation6 + $0x1c8] sm:$0xff] }
 0xb84   :  { %v24473_v57 = vand.u32 4294901760, %v23223_v8 }
 0xb85   :  { %15676 = vmatpush3.bf16.msra.mxu1 %v23088_v15  ;;  %15706 = vmatpush3.bf16.msra.mxu0 %v15705_v54  ;;  %v23155_v54 = vld [vmem:[#allocation6 + $0x1a0] sm:$0xff]  ;;  %v24475_v47 = vand.u32 4294901760, %v23167_v51 }
 0xb86   :  { %15677 = vmatprep.subr.bf16.mxu1 %v24661_v24  ;;  %15707 = vmatprep.subr.bf16.mxu0 %v24661_v24  ;;  %v24461_v60 = vand.u32 4294901760, %v23155_v54 }
 0xb87   :  { %v23216_v38 = vpack.c.bf16 %v24474_v19, %v24475_v47  ;;  %v23285_v19 = vld [vmem:[#allocation6 + $0x1e0] sm:$0xff] }
 0xb88   :  { %25760 = vst [vmem:[#allocation187_spill] sm:$0xff] %v23285_v19 }
 0xb89   :  { %15679 = vmatpush3.bf16.msra.mxu1 %v23104_v6  ;;  %15709 = vmatpush3.bf16.msra.mxu0 %v15708_v26  ;;  %v15714_v26 = vpack.c.bf16 %v22759_v52, %v22754_v62  ;;  %v23205_v62 = vsub.f32 %v23155_v54, %v24461_v60  ;;  %v23210_v52 = vsub.f32 %v23157_v31, %v24460_v50  ;;  %v24470_v60 = vand.u32 4294901760, %v23221_v55 }
 0xb8a   :  { %15680 = vmatprep.subr.bf16.mxu1 %v24661_v24  ;;  %15710 = vmatprep.subr.bf16.mxu0 %v24661_v24  ;;  %25756 = vst [vmem:[#allocation178_spill] sm:$0xff] %v23216_v38 }
 0xb8b   :  { %v24471_v5 = vand.u32 4294901760, %v23205_v62  ;;  %v24469_v59 = vand.u32 4294901760, %v23210_v52 }
 0xb8d   :  { %15682 = vmatpush3.bf16.msra.mxu1 %v23116_v40  ;;  %15712 = vmatpush3.bf16.msra.mxu0 %v15711_v58  ;;  %v23199_v58 = vld [vmem:[#allocation6 + $0x1b8] sm:$0xff]  ;;  %v23262_v3 = vpack.c.bf16 %v24469_v59, %v24471_v5 }
 0xb8e   :  { %15683 = vmatprep.subr.bf16.mxu1 %v24661_v24  ;;  %15737 = vmatprep.subr.bf16.mxu0 %v24661_v24  ;;  %v24467_v50 = vand.u32 4294901760, %v23199_v58 }
 0xb8f   :  { %25758 = vst [vmem:[#allocation118_spill] sm:$0xff] %v23262_v3 }
 0xb90   :  { %13525 = vmatmul.mubr.f32.vlgmr.msra.gmra.mrb[60].mxu0 %v23109_v25  ;;  %v23254_v34 = vsub.f32 %v23199_v58, %v24467_v50  ;;  %v23274_v50 = vsub.f32 %v23223_v8, %v24473_v57 }
 0xb91   :  { %15685 = vmatpush3.bf16.msra.mxu1 %v23135_v46  ;;  %15739 = vmatpush3.bf16.msra.mxu0 %v23040_v49 }
 0xb92   :  { %15686 = vmatprep.subr.bf16.mxu1 %v24661_v24  ;;  %15740 = vmatprep.subr.bf16.mxu0 %v24661_v24  ;;  %v24477_v5 = vand.u32 4294901760, %v23254_v34 }
 0xb93   :  { %13594 = vmatprep.mubr.msk.f32.mxu0 %vm16402_vm0, %v24770_v39 }
 0xb95   :  { %15688 = vmatpush3.bf16.msra.mxu1 %v23153_v9  ;;  %15742 = vmatpush3.bf16.msra.mxu0 %v23063_v13 }
 0xb96   :  { %15713 = vmatprep.subr.bf16.mxu1 %v24661_v24  ;;  %15743 = vmatprep.subr.bf16.mxu0 %v24661_v24 }
 0xb98   :  { %13490 = vmatmul.mubr.f32.vlgmr.msra.gmra.mrb[96].mxu1 %v11392_v12  ;;  %v24466_v12 = vand.u32 4294901760, %v23197_v1 }
 0xb99   :  { %15715 = vmatpush3.bf16.msra.mxu1 %v15714_v26  ;;  %15745 = vmatpush3.bf16.msra.mxu0 %v23073_v48  ;;  %v23233_v26 = vpack.c.bf16 %v24468_v21, %v24472_v22  ;;  %v15723_v21 = vpack.c.bf16 %v22841_v63, %v22836_v41  ;;  %v15726_v22 = vpack.c.bf16 %v22861_v28, %v22856_v36  ;;  %v23305_v63 = vld [vmem:[#allocation6 + $0x1f0] sm:$0xff]  ;;  %v23307_v41 = vld [vmem:[#allocation6 + $0x1f8] sm:$0xff] }
 0xb9a   :  { %15716 = vmatprep.subr.bf16.mxu1 %v24661_v24  ;;  %15746 = vmatprep.subr.bf16.mxu0 %v24661_v24  ;;  %v23249_v42 = vsub.f32 %v23197_v1, %v24466_v12  ;;  %v23269_v12 = vsub.f32 %v23221_v55, %v24470_v60  ;;  %v25769_v36 = vand.u32 4294901760, %v23307_v41 }
 0xb9b   :  { %25757 = vst [vmem:[#allocation180_spill] sm:$0xff] %v23233_v26  ;;  %13559 = vmatprep.mubr.msk.f32.mxu1 %vm16402_vm0, %v24770_v39 }
 0xb9c   :  { %v24479_v60 = vand.u32 4294901760, %v23249_v42  ;;  %v23351_v28 = vsub.f32 %v23307_v41, %v25769_v36  ;;  %v25772_v36 = vand.u32 4294901760, %v23122_v7 }
 0xb9d   :  { %15718 = vmatpush3.bf16.msra.mxu1 %v15717_v37  ;;  %15748 = vmatpush3.bf16.msra.mxu0 %v23088_v15  ;;  %v23256_v37 = vld [vmem:[#allocation6 + $0x1d0] sm:$0xff] }
 0xb9e   :  { %15719 = vmatprep.subr.bf16.mxu1 %v24661_v24  ;;  %15749 = vmatprep.subr.bf16.mxu0 %v24661_v24  ;;  %v24478_v59 = vand.u32 4294901760, %v23256_v37  ;;  %v23295_v11 = vpack.c.bf16 %v24477_v5, %v24479_v60  ;;  %v25764_v60 = vand.u32 4294901760, %v23274_v50 }
 0xba0   :  { %25761 = vst [vmem:[#allocation190_spill] sm:$0xff] %v23295_v11 }
 0xba1   :  { %15721 = vmatpush3.bf16.msra.mxu1 %v15720_v23  ;;  %15751 = vmatpush3.bf16.msra.mxu0 %v23104_v6  ;;  %v23287_v23 = vld [vmem:[#allocation6 + $0x1e8] sm:$0xff] }
 0xba2   :  { %15722 = vmatprep.subr.bf16.mxu1 %v24661_v24  ;;  %15752 = vmatprep.subr.bf16.mxu0 %v24661_v24 }
 0xba3   :  { %v10238_v57 = vpop.f32.mrb[48].mxu0 }
 0xba4   :  { %v13106_v47 = vpop.f32.mrb[49].mxu0 }
 0xba5   :  { %15724 = vmatpush3.bf16.msra.mxu1 %v15723_v21  ;;  %15754 = vmatpush3.bf16.msra.mxu0 %v23116_v40  ;;  %v23303_v47 = vsub.f32 %v23256_v37, %v24478_v59  ;;  %v25762_v21 = vand.u32 4294901760, %v23264_v30  ;;  %v25763_v59 = vand.u32 4294901760, %v23269_v12 }
 0xba6   :  { %15725 = vmatprep.subr.bf16.mxu1 %v24661_v24  ;;  %15755 = vmatprep.subr.bf16.mxu0 %v24661_v24 }
 0xba7   :  { %v23314_v5 = vsub.f32 %v23264_v30, %v25762_v21  ;;  %v23322_v11 = vpack.c.bf16 %v25764_v60, %v25763_v59  ;;  %v15729_v21 = vpack.c.bf16 %v22901_v32, %v22890_v2  ;;  %v25766_v60 = vand.u32 4294901760, %v23285_v19 }
 0xba9   :  { %25765 = vst [vmem:[#allocation140_spill] sm:$0xff] %v23322_v11  ;;  %15727 = vmatpush3.bf16.msra.mxu1 %v15726_v22  ;;  %15757 = vmatpush3.bf16.msra.mxu0 %v23135_v46  ;;  %v23336_v59 = vsub.f32 %v23285_v19, %v25766_v60  ;;  %v25767_v22 = vand.u32 4294901760, %v23287_v23  ;;  %v25768_v11 = vand.u32 4294901760, %v23305_v63  ;;  %v25770_v60 = vand.u32 4294901760, %v23303_v47 }
 0xbaa   :  { %15728 = vmatprep.subr.bf16.mxu1 %v24661_v24  ;;  %15758 = vmatprep.subr.bf16.mxu0 %v24661_v24  ;;  %v25771_v19 = vand.u32 4294901760, %v23314_v5 }
 0xbab   :  { %v23341_v26 = vsub.f32 %v23287_v23, %v25767_v22  ;;  %v10087_v3 = vpop.f32.mrb[84].mxu1  ;;  %v23346_v38 = vsub.f32 %v23305_v63, %v25768_v11  ;;  %v12148_v11 = vand.u32 4294901760, %v23336_v59 }
 0xbac   :  { %v10239_v2 = vadd.f32 %v10238_v57, %v10087_v3  ;;  %v13071_v32 = vpop.f32.mrb[85].mxu1  ;;  %v23357_v30 = vpack.c.bf16 %v25771_v19, %v25770_v60  ;;  %v15732_v57 = vpack.c.bf16 %v22928_v4, %v22923_v27  ;;  %v15735_v27 = vpack.c.bf16 %v22938_v35, %v22933_v44 }
 0xbad   :  { %15730 = vmatpush3.bf16.msra.mxu1 %v15729_v21  ;;  %15760 = vmatpush3.bf16.msra.mxu0 %v23153_v9  ;;  %v12155_v3 = vand.u32 4294901760, %v23341_v26  ;;  %v12162_v19 = vand.u32 4294901760, %v23346_v38  ;;  %v12169_v21 = vand.u32 4294901760, %v23351_v28 }
 0xbae   :  { %15731 = vmatprep.subr.bf16.mxu1 %v24661_v24  ;;  %15785 = vmatprep.subr.bf16.mxu0 %v24661_v24 }
 0xbaf   :  { %v23374_v4 = vpack.c.bf16 %v12155_v3, %v12148_v11  ;;  %v23385_v22 = vpack.c.bf16 %v12169_v21, %v12162_v19 }
 0xbb0   :  { %13595 = vmatmul.mubr.f32.vlgmr.msra.gmra.mrb[62].mxu0 %v25772_v36  ;;  %v25778_v36 = vand.u32 4294901760, %v23205_v62 }
 0xbb1   :  { %15733 = vmatpush3.bf16.msra.mxu1 %v15732_v57  ;;  %15787 = vmatpush3.bf16.msra.mxu0 %v23040_v49  ;;  %v25774_v49 = vand.u32 4294901760, %v23172_v16 }
 0xbb2   :  { %15734 = vmatprep.subr.bf16.mxu1 %v24661_v24  ;;  %15788 = vmatprep.subr.bf16.mxu0 %v24661_v24 }
 0xbb3   :  { %13664 = vmatprep.mubr.msk.f32.mxu0 %vm16402_vm0, %v24770_v39 }
 0xbb5   :  { %15736 = vmatpush3.bf16.msra.mxu1 %v15735_v27  ;;  %15790 = vmatpush3.bf16.msra.mxu0 %v23063_v13  ;;  %v25775_v13 = vld [vmem:[#allocation175_spill] sm:$0xff]  ;;  %v25779_v27 = vand.u32 4294901760, %v23210_v52 }
 0xbb6   :  { %15761 = vmatprep.subr.bf16.mxu1 %v24661_v24  ;;  %15791 = vmatprep.subr.bf16.mxu0 %v24661_v24 }
 0xbb8   :  { %13560 = vmatmul.mubr.f32.vlgmr.msra.gmra.mrb[98].mxu1 %v23122_v7 }
 0xbb9   :  { %15763 = vmatpush3.bf16.msra.mxu1 %v22803_v61  ;;  %15793 = vmatpush3.bf16.msra.mxu0 %v23073_v48 }
 0xbba   :  { %15764 = vmatprep.subr.bf16.mxu1 %v24661_v24  ;;  %15794 = vmatprep.subr.bf16.mxu0 %v24661_v24 }
 0xbbb   :  { %13629 = vmatprep.mubr.msk.f32.mxu1 %vm16402_vm0, %v24770_v39 }
 0xbbd   :  { %15766 = vmatpush3.bf16.msra.mxu1 %v22820_v33  ;;  %15796 = vmatpush3.bf16.msra.mxu0 %v23088_v15  ;;  %v25773_v33 = vand.u32 4294901760, %v23167_v51  ;;  %v25776_v15 = vand.u32 4294901760, %v23179_v20 }
 0xbbe   :  { %15767 = vmatprep.subr.bf16.mxu1 %v24661_v24  ;;  %15797 = vmatprep.subr.bf16.mxu0 %v24661_v24 }
 0xbbf   :  { %v12065_v35 = vsub.f32 %v23167_v51, %v25773_v33 }
 0xbc1   :  { %15769 = vmatpush3.bf16.msra.mxu1 %v22849_v29  ;;  %15799 = vmatpush3.bf16.msra.mxu0 %v23104_v6  ;;  %v12072_v29 = vsub.f32 %v23172_v16, %v25774_v49  ;;  %v12066_v48 = vand.u32 4294901760, %v12065_v35  ;;  %v12079_v6 = vsub.f32 %v23179_v20, %v25776_v15 }
 0xbc2   :  { %15770 = vmatprep.subr.bf16.mxu1 %v24661_v24  ;;  %15800 = vmatprep.subr.bf16.mxu0 %v24661_v24 }
 0xbc3   :  { %v10431_v61 = vpop.f32.mrb[50].mxu0  ;;  %v12080_v35 = vand.u32 4294901760, %v12079_v6 }
 0xbc4   :  { %v13176_v44 = vpop.f32.mrb[51].mxu0 }
 0xbc5   :  { %15772 = vmatpush3.bf16.msra.mxu1 %v22882_v45  ;;  %15802 = vmatpush3.bf16.msra.mxu0 %v23116_v40  ;;  %v12073_v45 = vand.u32 4294901760, %v12072_v29  ;;  %v25777_v40 = vand.u32 4294901760, %v23184_v43  ;;  %v12100_v44 = vsub.f32 %v23210_v52, %v25779_v27 }
 0xbc6   :  { %15773 = vmatprep.subr.bf16.mxu1 %v24661_v24  ;;  %15803 = vmatprep.subr.bf16.mxu0 %v24661_v24 }
 0xbc7   :  { %v12086_v7 = vsub.f32 %v23184_v43, %v25777_v40  ;;  %v15834_v33 = vpack.c.bf16 %v12073_v45, %v12066_v48  ;;  %v25781_v48 = vand.u32 4294901760, %v23254_v34 }
 0xbc9   :  { %15775 = vmatpush3.bf16.msra.mxu1 %v25775_v13  ;;  %15805 = vmatpush3.bf16.msra.mxu0 %v23135_v46  ;;  %v12093_v46 = vsub.f32 %v23205_v62, %v25778_v36  ;;  %v12087_v49 = vand.u32 4294901760, %v12086_v7  ;;  %v12101_v13 = vand.u32 4294901760, %v12100_v44  ;;  %v12114_v45 = vsub.f32 %v23254_v34, %v25781_v48 }
 0xbca   :  { %15776 = vmatprep.subr.bf16.mxu1 %v24661_v24  ;;  %15806 = vmatprep.subr.bf16.mxu0 %v24661_v24  ;;  %v25785_v36 = vand.u32 4294901760, %v23274_v50  ;;  %v25788_v44 = vand.u32 4294901760, %v23128_v17  ;;  %v12149_v48 = vsub.f32 %v23336_v59, %v12148_v11 }
 0xbcb   :  { %v10342_v32 = vpop.f32.mrb[86].mxu1  ;;  %v12094_v29 = vand.u32 4294901760, %v12093_v46  ;;  %v15837_v15 = vpack.c.bf16 %v12087_v49, %v12080_v35 }
 0xbcc   :  { %v10343_v60 = vadd.f32 %v10342_v32, %v10239_v2  ;;  %v13141_v57 = vpop.f32.mrb[87].mxu1  ;;  %v12115_v32 = vand.u32 4294901760, %v12114_v45  ;;  %v12128_v46 = vsub.f32 %v23274_v50, %v25785_v36  ;;  %v12156_v45 = vsub.f32 %v23341_v26, %v12155_v3 }
 0xbcd   :  { %15778 = vmatpush3.bf16.msra.mxu1 %v22944_v53  ;;  %15808 = vmatpush3.bf16.msra.mxu0 %v23153_v9  ;;  %v25780_v53 = vand.u32 4294901760, %v23249_v42  ;;  %v15840_v40 = vpack.c.bf16 %v12101_v13, %v12094_v29  ;;  %v25790_v13 = vand.u32 4294901760, %v23155_v54  ;;  %v25792_v54 = vand.u32 4294901760, %v23197_v1 }
 0xbce   :  { %15779 = vmatprep.subr.bf16.mxu1 %v24661_v24  ;;  %15833 = vmatprep.subr.bf16.mxu0 %v24661_v24  ;;  %v23437_v2 = vadd.f32 %v10431_v61, %v10343_v60  ;;  %v25782_v61 = vand.u32 4294901760, %v23124_v10  ;;  %v25784_v60 = vand.u32 4294901760, %v23269_v12  ;;  %v25786_v10 = vand.u32 4294901760, %v23303_v47 }
 0xbcf   :  { %v12107_v9 = vsub.f32 %v23249_v42, %v25780_v53  ;;  %v12157_v11 = vand.u32 4294901760, %v12156_v45  ;;  %v12163_v3 = vsub.f32 %v23346_v38, %v12162_v19 }
 0xbd0   :  { %13665 = vmatmul.mubr.f32.vlgmr.msra.gmra.mrb[64].mxu0 %v23109_v25  ;;  %v12121_v57 = vsub.f32 %v23269_v12, %v25784_v60  ;;  %v25795_v60 = vand.u32 4294901760, %v23223_v8 }
 0xbd1   :  { %15781 = vmatpush3.bf16.msra.mxu1 %v22961_v18  ;;  %15835 = vmatpush3.bf16.msra.mxu0 %v15834_v33  ;;  %v25783_v18 = vand.u32 4294901760, %v23126_v14  ;;  %v12108_v7 = vand.u32 4294901760, %v12107_v9  ;;  %v25787_v14 = vand.u32 4294901760, %v23314_v5  ;;  %v25789_v33 = vand.u32 4294901760, %v23137_v56 }
 0xbd2   :  { %15782 = vmatprep.subr.bf16.mxu1 %v24661_v24  ;;  %15836 = vmatprep.subr.bf16.mxu0 %v24661_v24  ;;  %v12122_v29 = vand.u32 4294901760, %v12121_v57  ;;  %v12164_v36 = vand.u32 4294901760, %v12163_v3 }
 0xbd3   :  { %13734 = vmatprep.mubr.msk.f32.mxu0 %vm16402_vm0, %v24770_v39  ;;  %v23455_v6 = vpack.c.bf16 %v25783_v18, %v25782_v61  ;;  %v12142_v27 = vsub.f32 %v23314_v5, %v25787_v14  ;;  %v23478_v35 = vpack.c.bf16 %v25789_v33, %v25788_v44  ;;  %v15843_v49 = vpack.c.bf16 %v12115_v32, %v12108_v7 }
 0xbd4   :  { %v12170_v7 = vsub.f32 %v23351_v28, %v12169_v21  ;;  %v25794_v32 = vand.u32 4294901760, %v23221_v55  ;;  %v25796_v21 = vld [vmem:[#allocation125_spill] sm:$0xff]  ;;  %v25798_v55 = vld [vmem:[#allocation186_spill] sm:$0xff] }
 0xbd5   :  { %15784 = vmatpush3.bf16.msra.mxu1 %v22972_v0  ;;  %15838 = vmatpush3.bf16.msra.mxu0 %v15837_v15  ;;  %v12135_v0 = vsub.f32 %v23303_v47, %v25786_v10  ;;  %v25791_v15 = vand.u32 4294901760, %v23157_v31  ;;  %v12143_v56 = vand.u32 4294901760, %v12142_v27  ;;  %v25793_v31 = vand.u32 4294901760, %v23199_v58 }
 0xbd6   :  { %15809 = vmatprep.subr.bf16.mxu1 %v24661_v24  ;;  %15839 = vmatprep.subr.bf16.mxu0 %v24661_v24  ;;  %v23519_v57 = vpack.c.bf16 %v25795_v60, %v25794_v32  ;;  %v23524_v10 = vand.u32 4294901760, %v25796_v21  ;;  %v25799_v14 = vand.u32 4294901760, %v25798_v55 }
 0xbd7   :  { %v23488_v53 = vpack.c.bf16 %v25791_v15, %v25790_v13  ;;  %v12136_v17 = vand.u32 4294901760, %v12135_v0  ;;  %v23503_v61 = vpack.c.bf16 %v25793_v31, %v25792_v54  ;;  %v25797_v0 = vand.u32 4294901760, %v23256_v37  ;;  %v25800_v37 = vld [vmem:[#allocation187_spill] sm:$0xff] }
 0xbd8   :  { %13630 = vmatmul.mubr.f32.vlgmr.msra.gmra.mrb[100].mxu1 %v23109_v25  ;;  %v12129_v25 = vand.u32 4294901760, %v12128_v46  ;;  %v12171_v46 = vand.u32 4294901760, %v12170_v7  ;;  %v23537_v44 = vsub.f32 %v25796_v21, %v23524_v10  ;;  %v25802_v13 = vand.u32 4294901760, %v23287_v23 }
 0xbd9   :  { %15811 = vmatpush3.bf16.msra.mxu1 %v23455_v6  ;;  %15841 = vmatpush3.bf16.msra.mxu0 %v15840_v40  ;;  %v15849_v18 = vpack.c.bf16 %v12143_v56, %v12136_v17  ;;  %v12150_v40 = vand.u32 4294901760, %v12149_v48  ;;  %v23531_v8 = vpack.c.bf16 %v25799_v14, %v25797_v0 }
 0xbda   :  { %15812 = vmatprep.subr.bf16.mxu1 %v24661_v24  ;;  %15842 = vmatprep.subr.bf16.mxu0 %v24661_v24  ;;  %v15846_v9 = vpack.c.bf16 %v12129_v25, %v12122_v29  ;;  %v15855_v27 = vpack.c.bf16 %v12171_v46, %v12164_v36  ;;  %v25801_v25 = vand.u32 4294901760, %v25800_v37  ;;  %v12053_v17 = vand.u32 4294901760, %v23537_v44 }
 0xbdb   :  { %13699 = vmatprep.mubr.msk.f32.mxu1 %vm16402_vm0, %v24770_v39  ;;  %v15852_v19 = vpack.c.bf16 %v12157_v11, %v12150_v40 }
 0xbdc   :  { %v23545_v15 = vpack.c.bf16 %v25802_v13, %v25801_v25  ;;  %v12054_v48 = vsub.f32 %v23537_v44, %v12053_v17 }
 0xbdd   :  { %15814 = vmatpush3.bf16.msra.mxu1 %v23478_v35  ;;  %15844 = vmatpush3.bf16.msra.mxu0 %v15843_v49 }
 0xbde   :  { %15815 = vmatprep.subr.bf16.mxu1 %v24661_v24  ;;  %15845 = vmatprep.subr.bf16.mxu0 %v24661_v24  ;;  %v12055_v45 = vand.u32 4294901760, %v12054_v48 }
 0xbe1   :  { %15817 = vmatpush3.bf16.msra.mxu1 %v23488_v53  ;;  %15847 = vmatpush3.bf16.msra.mxu0 %v15846_v9  ;;  %v25804_v9 = vand.u32 4294901760, %v23307_v41  ;;  %v15861_v41 = vpack.c.bf16 %v23184_v43, %v23179_v20 }
 0xbe2   :  { %15818 = vmatprep.subr.bf16.mxu1 %v24661_v24  ;;  %15848 = vmatprep.subr.bf16.mxu0 %v24661_v24 }
 0xbe3   :  { %v10637_v1 = vpop.f32.mrb[52].mxu0 }
 0xbe4   :  { %v13246_v58 = vpop.f32.mrb[53].mxu0 }
 0xbe5   :  { %15820 = vmatpush3.bf16.msra.mxu1 %v23503_v61  ;;  %15850 = vmatpush3.bf16.msra.mxu0 %v15849_v18 }
 0xbe6   :  { %15821 = vmatprep.subr.bf16.mxu1 %v24661_v24  ;;  %15851 = vmatprep.subr.bf16.mxu0 %v24661_v24 }
 0xbe9   :  { %15823 = vmatpush3.bf16.msra.mxu1 %v23519_v57  ;;  %15853 = vmatpush3.bf16.msra.mxu0 %v15852_v19 }
 0xbea   :  { %15824 = vmatprep.subr.bf16.mxu1 %v24661_v24  ;;  %15854 = vmatprep.subr.bf16.mxu0 %v24661_v24 }
 0xbeb   :  { %v10550_v33 = vpop.f32.mrb[88].mxu1 }
 0xbec   :  { %v10551_v49 = vadd.f32 %v10550_v33, %v23437_v2  ;;  %v13211_v29 = vpop.f32.mrb[89].mxu1  ;;  %v25803_v2 = vand.u32 4294901760, %v23305_v63  ;;  %v15858_v63 = vpack.c.bf16 %v23172_v16, %v23167_v51  ;;  %v15864_v51 = vpack.c.bf16 %v23210_v52, %v23205_v62 }
 0xbed   :  { %15826 = vmatpush3.bf16.msra.mxu1 %v23531_v8  ;;  %15856 = vmatpush3.bf16.msra.mxu0 %v15855_v27  ;;  %v15867_v16 = vpack.c.bf16 %v23254_v34, %v23249_v42  ;;  %v15870_v62 = vpack.c.bf16 %v23274_v50, %v23269_v12  ;;  %v15873_v34 = vpack.c.bf16 %v23314_v5, %v23303_v47  ;;  %v25807_v47 = vld [vmem:[#allocation118_spill] sm:$0xff] }
 0xbee   :  { %15827 = vmatprep.subr.bf16.mxu1 %v24661_v24  ;;  %15881 = vmatprep.subr.bf16.mxu0 %v24661_v24  ;;  %v10638_v56 = vadd.f32 %v10637_v1, %v10551_v49  ;;  %v23557_v23 = vpack.c.bf16 %v25804_v9, %v25803_v2  ;;  %v15876_v50 = vpack.c.bf16 %v23341_v26, %v23336_v59  ;;  %v25805_v26 = vld [vmem:[#allocation178_spill] sm:$0xff] }
 0xbef   :  { %v15879_v5 = vpack.c.bf16 %v23351_v28, %v23346_v38  ;;  %v25806_v38 = vld [vmem:[#allocation180_spill] sm:$0xff] }
 0xbf0   :  { %13735 = vmatmul.mubr.f32.vlgmr.msra.gmra.mrb[66].mxu0 %v23524_v10 }
 0xbf1   :  { %15829 = vmatpush3.bf16.msra.mxu1 %v23545_v15  ;;  %15883 = vmatpush3.bf16.msra.mxu0 %v23455_v6 }
 0xbf2   :  { %15830 = vmatprep.subr.bf16.mxu1 %v24661_v24  ;;  %15884 = vmatprep.subr.bf16.mxu0 %v24661_v24 }
 0xbf3   :  { %13804 = vmatprep.mubr.msk.f32.mxu0 %vm16402_vm0, %v24770_v39 }
 0xbf5   :  { %15832 = vmatpush3.bf16.msra.mxu1 %v23557_v23  ;;  %15886 = vmatpush3.bf16.msra.mxu0 %v23478_v35 }
 0xbf6   :  { %15857 = vmatprep.subr.bf16.mxu1 %v24661_v24  ;;  %15887 = vmatprep.subr.bf16.mxu0 %v24661_v24 }
 0xbf8   :  { %13700 = vmatmul.mubr.f32.vlgmr.msra.gmra.mrb[102].mxu1 %v12055_v45 }
 0xbf9   :  { %15859 = vmatpush3.bf16.msra.mxu1 %v15858_v63  ;;  %15889 = vmatpush3.bf16.msra.mxu0 %v23488_v53 }
 0xbfa   :  { %15860 = vmatprep.subr.bf16.mxu1 %v24661_v24  ;;  %15890 = vmatprep.subr.bf16.mxu0 %v24661_v24 }
 0xbfb   :  { %13769 = vmatprep.mubr.msk.f32.mxu1 %vm16402_vm0, %v24770_v39 }
 0xbfd   :  { %15862 = vmatpush3.bf16.msra.mxu1 %v15861_v41  ;;  %15892 = vmatpush3.bf16.msra.mxu0 %v23503_v61 }
 0xbfe   :  { %15863 = vmatprep.subr.bf16.mxu1 %v24661_v24  ;;  %15893 = vmatprep.subr.bf16.mxu0 %v24661_v24 }
 0xc01   :  { %15865 = vmatpush3.bf16.msra.mxu1 %v15864_v51  ;;  %15895 = vmatpush3.bf16.msra.mxu0 %v23519_v57  ;;  %v12628_v51 = vld [vmem:[%s23655_s6] ss:$0 sm:$0xff] }
 0xc02   :  { %15866 = vmatprep.subr.bf16.mxu1 %v24661_v24  ;;  %15896 = vmatprep.subr.bf16.mxu0 %v24661_v24 }
 0xc03   :  { %v10883_v20 = vpop.f32.mrb[54].mxu0 }
 0xc04   :  { %v13316_v43 = vpop.f32.mrb[55].mxu0 }
 0xc05   :  { %15868 = vmatpush3.bf16.msra.mxu1 %v15867_v16  ;;  %15898 = vmatpush3.bf16.msra.mxu0 %v23531_v8 }
 0xc06   :  { %15869 = vmatprep.subr.bf16.mxu1 %v24661_v24  ;;  %15899 = vmatprep.subr.bf16.mxu0 %v24661_v24 }
 0xc09   :  { %15871 = vmatpush3.bf16.msra.mxu1 %v15870_v62  ;;  %15901 = vmatpush3.bf16.msra.mxu0 %v23545_v15 }
 0xc0a   :  { %15872 = vmatprep.subr.bf16.mxu1 %v24661_v24  ;;  %15902 = vmatprep.subr.bf16.mxu0 %v24661_v24 }
 0xc0b   :  { %v10732_v42 = vpop.f32.mrb[90].mxu1 }
 0xc0c   :  { %v10733_v52 = vadd.f32 %v10732_v42, %v10638_v56  ;;  %v13281_v54 = vpop.f32.mrb[91].mxu1 }
 0xc0d   :  { %15874 = vmatpush3.bf16.msra.mxu1 %v15873_v34  ;;  %15904 = vmatpush3.bf16.msra.mxu0 %v23557_v23 }
 0xc0e   :  { %15875 = vmatprep.subr.bf16.mxu1 %v24661_v24  ;;  %15929 = vmatprep.subr.bf16.mxu0 %v24661_v24  ;;  %v10884_v12 = vadd.f32 %v10883_v20, %v10733_v52 }
 0xc10   :  { %13805 = vmatmul.mubr.f32.vlgmr.msra.gmra.mrb[68].mxu0 %v12053_v17 }
 0xc11   :  { %15877 = vmatpush3.bf16.msra.mxu1 %v15876_v50  ;;  %15931 = vmatpush3.bf16.msra.mxu0 %v23455_v6  ;;  %v25808_v6 = vld [vmem:[#allocation190_spill] sm:$0xff] }
 0xc12   :  { %15878 = vmatprep.subr.bf16.mxu1 %v24661_v24  ;;  %15932 = vmatprep.subr.bf16.mxu0 %v24661_v24 }
 0xc13   :  { %13874 = vmatprep.mubr.msk.f32.mxu0 %vm16402_vm0, %v24770_v39 }
 0xc15   :  { %15880 = vmatpush3.bf16.msra.mxu1 %v15879_v5  ;;  %15934 = vmatpush3.bf16.msra.mxu0 %v23478_v35 }
 0xc16   :  { %15905 = vmatprep.subr.bf16.mxu1 %v24661_v24  ;;  %15935 = vmatprep.subr.bf16.mxu0 %v24661_v24 }
 0xc18   :  { %13770 = vmatmul.mubr.f32.vlgmr.msra.gmra.mrb[104].mxu1 %v23537_v44 }
 0xc19   :  { %15907 = vmatpush3.bf16.msra.mxu1 %v25805_v26  ;;  %15937 = vmatpush3.bf16.msra.mxu0 %v23488_v53 }
 0xc1a   :  { %15908 = vmatprep.subr.bf16.mxu1 %v24661_v24  ;;  %15938 = vmatprep.subr.bf16.mxu0 %v24661_v24 }
 0xc1b   :  { %13839 = vmatprep.mubr.msk.f32.mxu1 %vm16402_vm0, %v24770_v39  ;;  %v25809_v39 = vld [vmem:[#allocation140_spill] sm:$0xff] }
 0xc1d   :  { %15910 = vmatpush3.bf16.msra.mxu1 %v25806_v38  ;;  %15940 = vmatpush3.bf16.msra.mxu0 %v23503_v61 }
 0xc1e   :  { %15911 = vmatprep.subr.bf16.mxu1 %v24661_v24  ;;  %15941 = vmatprep.subr.bf16.mxu0 %v24661_v24 }
 0xc21   :  { %15913 = vmatpush3.bf16.msra.mxu1 %v25807_v47  ;;  %15943 = vmatpush3.bf16.msra.mxu0 %v23519_v57 }
 0xc22   :  { %15914 = vmatprep.subr.bf16.mxu1 %v24661_v24  ;;  %15944 = vmatprep.subr.bf16.mxu0 %v24661_v24 }
 0xc23   :  { %v11076_v28 = vpop.f32.mrb[56].mxu0 }
 0xc24   :  { %v13386_v59 = vpop.f32.mrb[57].mxu0 }
 0xc25   :  { %15916 = vmatpush3.bf16.msra.mxu1 %v25808_v6  ;;  %15946 = vmatpush3.bf16.msra.mxu0 %v23531_v8 }
 0xc26   :  { %15917 = vmatprep.subr.bf16.mxu1 %v24661_v24  ;;  %15947 = vmatprep.subr.bf16.mxu0 %v24661_v24 }
 0xc29   :  { %15919 = vmatpush3.bf16.msra.mxu1 %v25809_v39  ;;  %15949 = vmatpush3.bf16.msra.mxu0 %v23545_v15 }
 0xc2a   :  { %15920 = vmatprep.subr.bf16.mxu1 %v24661_v24  ;;  %15950 = vmatprep.subr.bf16.mxu0 %v24661_v24 }
 0xc2b   :  { %v10987_v35 = vpop.f32.mrb[92].mxu1 }
 0xc2c   :  { %v10988_v53 = vadd.f32 %v10987_v35, %v10884_v12  ;;  %v13351_v31 = vpop.f32.mrb[93].mxu1 }
 0xc2d   :  { %15922 = vmatpush3.bf16.msra.mxu1 %v23357_v30  ;;  %15952 = vmatpush3.bf16.msra.mxu0 %v23557_v23 }
 0xc2e   :  { %15923 = vmatprep.subr.bf16.mxu1 %v24661_v24  ;;  %v11077_v61 = vadd.f32 %v11076_v28, %v10988_v53 }
 0xc30   :  { %13875 = vmatmul.mubr.f32.vlgmr.msra.gmra.mrb[70].mxu0 %v23524_v10 }
 0xc31   :  { %15925 = vmatpush3.bf16.msra.mxu1 %v23374_v4 }
 0xc32   :  { %15926 = vmatprep.subr.bf16.mxu1 %v24661_v24 }
 0xc35   :  { %15928 = vmatpush3.bf16.msra.mxu1 %v23385_v22 }
 0xc38   :  { %13840 = vmatmul.mubr.f32.vlgmr.msra.gmra.mrb[106].mxu1 %v23524_v10 }
 0xc43   :  { %v11282_v18 = vpop.f32.mrb[58].mxu0 }
 0xc44   :  { %v13456_v40 = vpop.f32.mrb[59].mxu0 }
 0xc4b   :  { %v11195_v11 = vpop.f32.mrb[94].mxu1 }
 0xc4c   :  { %v11196_v3 = vadd.f32 %v11195_v11, %v11077_v61  ;;  %v13421_v30 = vpop.f32.mrb[95].mxu1 }
 0xc4e   :  { %v11283_v7 = vadd.f32 %v11282_v18, %v11196_v3 }
 0xc63   :  { %v11545_v1 = vpop.f32.mrb[60].mxu0 }
 0xc64   :  { %v13526_v58 = vpop.f32.mrb[61].mxu0 }
 0xc6b   :  { %v11394_v32 = vpop.f32.mrb[96].mxu1 }
 0xc6c   :  { %v11546_v60 = vadd.f32 %v11545_v1, %v11394_v32  ;;  %v13491_v57 = vpop.f32.mrb[97].mxu1 }
 0xc83   :  { %v11738_v19 = vpop.f32.mrb[62].mxu0 }
 0xc84   :  { %v13596_v36 = vpop.f32.mrb[63].mxu0 }
 0xc8b   :  { %v11649_v4 = vpop.f32.mrb[98].mxu1 }
 0xc8c   :  { %v11650_v46 = vadd.f32 %v11649_v4, %v11546_v60  ;;  %v13561_v24 = vpop.f32.mrb[99].mxu1 }
 0xc8e   :  { %v11739_v21 = vadd.f32 %v11738_v19, %v11650_v46 }
 0xca3   :  { %v11944_v22 = vpop.f32.mrb[64].mxu0 }
 0xca4   :  { %v13666_v0 = vpop.f32.mrb[65].mxu0 }
 0xcab   :  { %v11857_v10 = vpop.f32.mrb[100].mxu1 }
 0xcac   :  { %v11858_v55 = vadd.f32 %v11857_v10, %v11739_v21  ;;  %v13631_v14 = vpop.f32.mrb[101].mxu1 }
 0xcae   :  { %v11945_v8 = vadd.f32 %v11944_v22, %v11858_v55 }
 0xcb0   :  { %v11948_v27 = vadd.f32 %v11945_v8, %v11283_v7 }
 0xcc3   :  { %v12208_v44 = vpop.f32.mrb[66].mxu0 }
 0xcc4   :  { %v13736_v33 = vpop.f32.mrb[67].mxu0 }
 0xccb   :  { %v12057_v49 = vpop.f32.mrb[102].mxu1 }
 0xccc   :  { %v12209_v29 = vadd.f32 %v12208_v44, %v12057_v49  ;;  %v13701_v37 = vpop.f32.mrb[103].mxu1 }
 0xce3   :  { %v12401_v25 = vpop.f32.mrb[68].mxu0 }
 0xce4   :  { %v13806_v13 = vpop.f32.mrb[69].mxu0 }
 0xceb   :  { %v12312_v15 = vpop.f32.mrb[104].mxu1 }
 0xcec   :  { %v12313_v17 = vadd.f32 %v12312_v15, %v12209_v29  ;;  %v13771_v56 = vpop.f32.mrb[105].mxu1 }
 0xcee   :  { %v12402_v2 = vadd.f32 %v12401_v25, %v12313_v17 }
 0xd03   :  { %v12607_v9 = vpop.f32.mrb[70].mxu0 }
 0xd04   :  { %v13876_v23 = vpop.f32.mrb[71].mxu0 }
 0xd0b   :  { %v12520_v48 = vpop.f32.mrb[106].mxu1 }
 0xd0c   :  { %v12521_v63 = vadd.f32 %v12520_v48, %v12402_v2  ;;  %v13841_v45 = vpop.f32.mrb[107].mxu1 }
 0xd0e   :  { %v12608_v41 = vadd.f32 %v12607_v9, %v12521_v63 }
 0xd10   :  { %v12611_v16 = vadd.f32 %v12608_v41, %v11948_v27 }
 0xd12   :  { %v12619_v20 = vadd.f32 %v12628_v51, %v12611_v16 }
 0xd14   :  { %12620 = vst [vmem:[%s23656_s7] sm:$0x3] %v12619_v20 }
 0xd15   :  { %12625 = vsyncpa [#allocation3], 1 }
 0xd16   :  { %12626 = vsyncpa [#allocation5], 1 }

</bundles_post_ra>
